<compile_context>
chip_gen: v7x
topology: tpu7x:2x2x1
jax: 0.10.0
libtpu: 0.0.40
codegen_flags: <defaults>
</compile_context>

<pallas_src>
import functools

import jax
import jax.numpy as jnp
from jax.experimental import pallas as pl
from jax.experimental.pallas import tpu as pltpu


def _amil_surv_kernel(n_instances, tile_n,
                      x_ref, w1_ref, b1_ref,
                      wa_ref, ba_ref, wb_ref, bb_ref, wc_ref, bc_ref,
                      wf_ref, bf_ref, wl_ref, bl_ref,
                      out_ref,
                      acc_ref, m_ref, l_ref):
    i = pl.program_id(0)

    @pl.when(i == 0)
    def _init():
        acc_ref[...] = jnp.zeros_like(acc_ref)
        m_ref[...] = jnp.full_like(m_ref, -1e30)
        l_ref[...] = jnp.zeros_like(l_ref)

    # ---- mask for padded rows of the last (ragged) tile ----
    row_ids = i * tile_n + jax.lax.broadcasted_iota(jnp.int32, (tile_n, 1), 0)
    valid = row_ids < n_instances                                    # [tN, 1]

    # ---- instance embedding: h = ReLU(x @ W1 + b1)  (dropout = identity) ----
    x_tile = jnp.where(valid, x_ref[...], jnp.zeros_like(x_ref[...]))  # bf16
    h = jnp.dot(x_tile, w1_ref[...], preferred_element_type=jnp.float32)
    h = jnp.maximum(h + b1_ref[...], 0.0)                            # [tN, H1] f32
    h16 = h.astype(jnp.bfloat16)

    # ---- gated attention scores: s = (tanh(hWa+ba) * sigm(hWb+bb)) @ Wc + bc ----
    a = jnp.tanh(
        jnp.dot(h16, wa_ref[...], preferred_element_type=jnp.float32) + ba_ref[...])
    b = jax.nn.sigmoid(
        jnp.dot(h16, wb_ref[...], preferred_element_type=jnp.float32) + bb_ref[...])
    gate = a * b                                                     # [tN, D] f32
    # attention_c is a D->1 Linear; do it as VPU mul + lane reduce (avoids a
    # degenerate [tN,D]@[D,1] MXU op every step).
    scores = jnp.sum(gate * wc_ref[...], axis=1, keepdims=True) + bc_ref[...]
    scores = jnp.where(valid, scores, -1e30)                         # mask pad rows

    # ---- online softmax-weighted pooling over the bag ----
    m_new = jnp.maximum(m_ref[...], jnp.max(scores, axis=0, keepdims=True))  # [1,1]
    alpha = jnp.exp(m_ref[...] - m_new)                              # [1,1]
    p = jnp.exp(scores - m_new)                                      # [tN,1]
    l_ref[...] = alpha * l_ref[...] + jnp.sum(p, axis=0, keepdims=True)
    acc_ref[...] = alpha * acc_ref[...] + jnp.sum(p * h, axis=0, keepdims=True)
    m_ref[...] = m_new

    # ---- epilogue (features / classifier / sigmoid) on the last step only ----
    @pl.when(i == pl.num_programs(0) - 1)
    def _finalize():
        pooled = acc_ref[...] / l_ref[...]                           # [1, H1]
        feat = jnp.maximum(
            jnp.dot(pooled, wf_ref[...], preferred_element_type=jnp.float32)
            + bf_ref[...], 0.0)                                      # [1, fusion]
        logits = (jnp.dot(feat, wl_ref[...], preferred_element_type=jnp.float32)
                  + bl_ref[...])                                     # [1, out]
        out_ref[...] = jax.nn.sigmoid(logits)
    # TODO(synk): nn.Dropout layers are identity here (eval mode); training-mode
    # dropout is not implemented.


def amil_surv_forward(x, params, *, tile_n=256):
    """x: [N, in_feats] f32. Returns hazards [1, output_dim] f32."""
    (w1, b1, wa, ba, wb, bb, wc, bc, wf, bf_, wl, bl) = params
    n, in_feats = x.shape
    h1 = w1.shape[1]
    d = wa.shape[1]
    fusion = wf.shape[1]
    out_dim = wl.shape[1]

    # bf16 for the N-scaling matmul operands; accumulation stays f32 on the MXU.
    x16 = x.astype(jnp.bfloat16)
    w1_16 = w1.astype(jnp.bfloat16)
    wa16 = wa.astype(jnp.bfloat16)
    wb16 = wb.astype(jnp.bfloat16)

    grid = (pl.cdiv(n, tile_n),)

    def resident(shape):
        return pl.BlockSpec(shape, lambda i, _s=shape: (0,) * len(_s))

    in_specs = [
        pl.BlockSpec((tile_n, in_feats), lambda i: (i, 0)),   # x, streamed over N
        resident((in_feats, h1)), resident((1, h1)),          # W1, b1
        resident((h1, d)), resident((1, d)),                  # Wa, ba
        resident((h1, d)), resident((1, d)),                  # Wb, bb
        resident((1, d)), resident((1, 1)),                   # Wc (row), bc
        resident((h1, fusion)), resident((1, fusion)),        # Wf, bf
        resident((fusion, out_dim)), resident((1, out_dim)),  # Wl, bl
    ]

    flops = (2 * n * in_feats * h1 + 2 * 2 * n * h1 * d + 2 * n * d
             + 2 * h1 * fusion + 2 * fusion * out_dim)
    bytes_accessed = (n * in_feats * 2
                      + (in_feats * h1 + 2 * h1 * d) * 2
                      + (h1 + 2 * d + d + 1 + h1 * fusion + fusion
                         + fusion * out_dim + out_dim) * 4
                      + out_dim * 4)
    cost = pl.CostEstimate(flops=flops,
                           transcendentals=n * (2 * d + 2) + out_dim,
                           bytes_accessed=bytes_accessed)

    kernel = functools.partial(_amil_surv_kernel, n, tile_n)
    return pl.pallas_call(
        kernel,
        out_shape=jax.ShapeDtypeStruct((1, out_dim), jnp.float32),
        grid=grid,
        in_specs=in_specs,
        out_specs=pl.BlockSpec((1, out_dim), lambda i: (0, 0)),
        scratch_shapes=[pltpu.VMEM((1, h1), jnp.float32),   # acc (weighted sum)
                        pltpu.VMEM((1, 1), jnp.float32),    # running max m
                        pltpu.VMEM((1, 1), jnp.float32)],   # running denom l
        compiler_params=pltpu.CompilerParams(
            dimension_semantics=("arbitrary",)),
        cost_estimate=cost,
    )(x16, w1_16, b1, wa16, ba, wb16, bb, wc, bc, wf, bf_, wl, bl)


def init_params(key, in_feats=1024, size_arg="small", fusion_dim=128, output_dim=1):
    """Xavier-normal weights, zero biases (matches initialize_weights)."""
    size = {"small": [in_feats, 512, 256], "big": [in_feats, 512, 384]}[size_arg]
    keys = jax.random.split(key, 6)

    def xavier(k, fan_in, fan_out, shape):
        std = (2.0 / (fan_in + fan_out)) ** 0.5
        return std * jax.random.normal(k, shape, jnp.float32)

    w1 = xavier(keys[0], size[0], size[1], (size[0], size[1]))
    b1 = jnp.zeros((1, size[1]), jnp.float32)
    wa = xavier(keys[1], size[1], size[2], (size[1], size[2]))
    ba = jnp.zeros((1, size[2]), jnp.float32)
    wb = xavier(keys[2], size[1], size[2], (size[1], size[2]))
    bb = jnp.zeros((1, size[2]), jnp.float32)
    wc = xavier(keys[3], size[2], 1, (1, size[2]))           # attention_c as row vec
    bc = jnp.zeros((1, 1), jnp.float32)
    wf = xavier(keys[4], size[1], fusion_dim, (size[1], fusion_dim))
    bf_ = jnp.zeros((1, fusion_dim), jnp.float32)
    wl = xavier(keys[5], fusion_dim, output_dim, (fusion_dim, output_dim))
    bl = jnp.zeros((1, output_dim), jnp.float32)
    return (w1, b1, wa, ba, wb, bb, wc, bc, wf, bf_, wl, bl)


if __name__ == "__main__":
    key = jax.random.PRNGKey(0)
    k_x, k_p = jax.random.split(key)

    # Small bag that still exercises >1 grid step and a ragged (masked) tile.
    N, F = 300, 1024
    x = jax.random.normal(k_x, (N, F), jnp.float32)
    params = init_params(k_p, in_feats=F)

    hazards = amil_surv_forward(x, params, tile_n=256)
    hazards = jax.block_until_ready(hazards)

    # Pure-JAX reference mirroring the kernel's bf16 casts.
    (w1, b1, wa, ba, wb, bb, wc, bc, wf, bf_, wl, bl) = params
    f32 = jnp.float32
    xb, w1b = x.astype(jnp.bfloat16), w1.astype(jnp.bfloat16)
    h = jnp.maximum(jnp.dot(xb, w1b, preferred_element_type=f32) + b1, 0.0)
    h16 = h.astype(jnp.bfloat16)
    a = jnp.tanh(jnp.dot(h16, wa.astype(jnp.bfloat16), preferred_element_type=f32) + ba)
    b = jax.nn.sigmoid(jnp.dot(h16, wb.astype(jnp.bfloat16),
                               preferred_element_type=f32) + bb)
    s = jnp.sum((a * b) * wc, axis=1, keepdims=True) + bc              # [N, 1]
    A = jax.nn.softmax(s[:, 0])                                        # over instances
    pooled = jnp.sum(A[:, None] * h, axis=0, keepdims=True)            # [1, 512]
    feat = jnp.maximum(pooled @ wf + bf_, 0.0)
    logits = feat @ wl + bl
    ref = jax.nn.sigmoid(logits)

    assert hazards.shape == ref.shape == (1, 1)
    assert bool(jnp.all(jnp.isfinite(hazards)))
    assert jnp.allclose(hazards, ref, atol=1e-3, rtol=1e-3), (hazards, ref)

    print("KERNEL_OK")
</pallas_src>

<mosaic_0001>
module attributes {stable_mosaic.version = 11 : i64} {
  func.func @_amil_surv_kernel(%arg0: i32, %arg1: memref<256x1024xbf16, #tpu.memory_space<vmem>>, %arg2: memref<1024x512xbf16, #tpu.memory_space<vmem>>, %arg3: memref<1x512xf32, #tpu.memory_space<vmem>>, %arg4: memref<512x256xbf16, #tpu.memory_space<vmem>>, %arg5: memref<1x256xf32, #tpu.memory_space<vmem>>, %arg6: memref<512x256xbf16, #tpu.memory_space<vmem>>, %arg7: memref<1x256xf32, #tpu.memory_space<vmem>>, %arg8: memref<1x256xf32, #tpu.memory_space<vmem>>, %arg9: memref<1x1xf32, #tpu.memory_space<vmem>>, %arg10: memref<512x128xf32, #tpu.memory_space<vmem>>, %arg11: memref<1x128xf32, #tpu.memory_space<vmem>>, %arg12: memref<128x1xf32, #tpu.memory_space<vmem>>, %arg13: memref<1x1xf32, #tpu.memory_space<vmem>>, %arg14: memref<1x1xf32, #tpu.memory_space<vmem>>, %arg15: memref<1x512xf32, #tpu.memory_space<vmem>>, %arg16: memref<1x1xf32, #tpu.memory_space<vmem>>, %arg17: memref<1x1xf32, #tpu.memory_space<vmem>>) attributes {dimension_semantics = [#tpu.dimension_semantics<arbitrary>], iteration_bounds = array<i64: 2>, scalar_prefetch = 0 : i64, scratch_operands = 3 : i64, tpu.core_type = #tpu.core_type<tc>, window_params = [{transform_indices = @transform_0, window_bounds = array<i64: 256, 1024>}, {pipeline_mode = #tpu.pipeline_mode<synchronous>, transform_indices = @transform_1, window_bounds = array<i64: 1024, 512>}, {pipeline_mode = #tpu.pipeline_mode<synchronous>, transform_indices = @transform_2, window_bounds = array<i64: 1, 512>}, {pipeline_mode = #tpu.pipeline_mode<synchronous>, transform_indices = @transform_3, window_bounds = array<i64: 512, 256>}, {pipeline_mode = #tpu.pipeline_mode<synchronous>, transform_indices = @transform_4, window_bounds = array<i64: 1, 256>}, {pipeline_mode = #tpu.pipeline_mode<synchronous>, transform_indices = @transform_5, window_bounds = array<i64: 512, 256>}, {pipeline_mode = #tpu.pipeline_mode<synchronous>, transform_indices = @transform_6, window_bounds = array<i64: 1, 256>}, {pipeline_mode = #tpu.pipeline_mode<synchronous>, transform_indices = @transform_7, window_bounds = array<i64: 1, 256>}, {pipeline_mode = #tpu.pipeline_mode<synchronous>, transform_indices = @transform_8, window_bounds = array<i64: 1, 1>}, {pipeline_mode = #tpu.pipeline_mode<synchronous>, transform_indices = @transform_9, window_bounds = array<i64: 512, 128>}, {pipeline_mode = #tpu.pipeline_mode<synchronous>, transform_indices = @transform_10, window_bounds = array<i64: 1, 128>}, {pipeline_mode = #tpu.pipeline_mode<synchronous>, transform_indices = @transform_11, window_bounds = array<i64: 128, 1>}, {pipeline_mode = #tpu.pipeline_mode<synchronous>, transform_indices = @transform_12, window_bounds = array<i64: 1, 1>}, {pipeline_mode = #tpu.pipeline_mode<synchronous>, transform_indices = @transform_13, window_bounds = array<i64: 1, 1>}]} {
    %c0_i32 = arith.constant 0 : i32
    %0 = arith.cmpi eq, %arg0, %c0_i32 : i32
    %1 = arith.extui %0 : i1 to i32
    %c0_i32_0 = arith.constant 0 : i32
    %2 = arith.cmpi ne, %1, %c0_i32_0 : i32
    scf.if %2 {
      %cst_43 = arith.constant 0.000000e+00 : f32
      %78 = vector.broadcast %cst_43 : f32 to vector<1x512xf32>
      %c0_44 = arith.constant 0 : index
      %c0_45 = arith.constant 0 : index
      %79 = vector.load %arg15[%c0_44, %c0_45] : memref<1x512xf32, #tpu.memory_space<vmem>>, vector<1x512xf32>
      tpu.vector_store %arg15[%c0_44, %c0_45], %78 {strides = array<i32>} : memref<1x512xf32, #tpu.memory_space<vmem>>, vector<1x512xf32>,
      %cst_46 = arith.constant -1.000000e+30 : f32
      %80 = vector.broadcast %cst_46 : f32 to vector<1x1xf32>
      %c0_47 = arith.constant 0 : index
      %c0_48 = arith.constant 0 : index
      %81 = vector.load %arg16[%c0_47, %c0_48] : memref<1x1xf32, #tpu.memory_space<vmem>>, vector<1x1xf32>
      tpu.vector_store %arg16[%c0_47, %c0_48], %80 {strides = array<i32>} : memref<1x1xf32, #tpu.memory_space<vmem>>, vector<1x1xf32>,
      %cst_49 = arith.constant 0.000000e+00 : f32
      %82 = vector.broadcast %cst_49 : f32 to vector<1x1xf32>
      %c0_50 = arith.constant 0 : index
      %c0_51 = arith.constant 0 : index
      %83 = vector.load %arg17[%c0_50, %c0_51] : memref<1x1xf32, #tpu.memory_space<vmem>>, vector<1x1xf32>
      tpu.vector_store %arg17[%c0_50, %c0_51], %82 {strides = array<i32>} : memref<1x1xf32, #tpu.memory_space<vmem>>, vector<1x1xf32>,
    } else {
    }
    %c256_i32 = arith.constant 256 : i32
    %3 = arith.muli %arg0, %c256_i32 : i32
    %4 = tpu.iota {dimensions = array<i32: 0>} : vector<256x1xi32>
    %5 = vector.broadcast %3 : i32 to vector<256x1xi32>
    %6 = arith.addi %5, %4 : vector<256x1xi32>
    %c300_i32 = arith.constant 300 : i32
    %7 = vector.broadcast %c300_i32 : i32 to vector<256x1xi32>
    %8 = arith.cmpi slt, %6, %7 : vector<256x1xi32>
    %c0 = arith.constant 0 : index
    %c0_1 = arith.constant 0 : index
    %9 = vector.load %arg1[%c0, %c0_1] : memref<256x1024xbf16, #tpu.memory_space<vmem>>, vector<256x1024xbf16>
    %cst = arith.constant 0.000000e+00 : bf16
    %10 = vector.broadcast %cst : bf16 to vector<256x1024xbf16>
    %11 = vector.shape_cast %8 : vector<256x1xi1> to vector<256x1xi1>
    %12 = vector.broadcast %11 : vector<256x1xi1> to vector<256x1024xi1>
    %13 = arith.select %12, %9, %10 : vector<256x1024xi1>, vector<256x1024xbf16>
    %c0_2 = arith.constant 0 : index
    %c0_3 = arith.constant 0 : index
    %14 = vector.load %arg2[%c0_2, %c0_3] : memref<1024x512xbf16, #tpu.memory_space<vmem>>, vector<1024x512xbf16>
    %cst_4 = arith.constant dense<0.000000e+00> : vector<256x512xf32>
    %15 = tpu.matmul %13, %14, %cst_4 {dimension_numbers = #tpu.dot_dimension_numbers<[1], [0], [0], [1], [0, 0, 1, 1], [], []>} : vector<256x1024xbf16>, vector<1024x512xbf16>, vector<256x512xf32> -> vector<256x512xf32>
    %c0_5 = arith.constant 0 : index
    %c0_6 = arith.constant 0 : index
    %16 = vector.load %arg3[%c0_5, %c0_6] : memref<1x512xf32, #tpu.memory_space<vmem>>, vector<1x512xf32>
    %17 = vector.broadcast %16 : vector<1x512xf32> to vector<256x512xf32>
    %18 = arith.addf %15, %17 : vector<256x512xf32>
    %cst_7 = arith.constant 0.000000e+00 : f32
    %19 = vector.broadcast %cst_7 : f32 to vector<256x512xf32>
    %20 = arith.maximumf %18, %19 : vector<256x512xf32>
    %21 = arith.truncf %20 : vector<256x512xf32> to vector<256x512xbf16>
    %c0_8 = arith.constant 0 : index
    %c0_9 = arith.constant 0 : index
    %22 = vector.load %arg4[%c0_8, %c0_9] : memref<512x256xbf16, #tpu.memory_space<vmem>>, vector<512x256xbf16>
    %cst_10 = arith.constant dense<0.000000e+00> : vector<256x256xf32>
    %23 = tpu.matmul %21, %22, %cst_10 {dimension_numbers = #tpu.dot_dimension_numbers<[1], [0], [0], [1], [0, 0, 1, 1], [], []>} : vector<256x512xbf16>, vector<512x256xbf16>, vector<256x256xf32> -> vector<256x256xf32>
    %c0_11 = arith.constant 0 : index
    %c0_12 = arith.constant 0 : index
    %24 = vector.load %arg5[%c0_11, %c0_12] : memref<1x256xf32, #tpu.memory_space<vmem>>, vector<1x256xf32>
    %25 = vector.broadcast %24 : vector<1x256xf32> to vector<256x256xf32>
    %26 = arith.addf %23, %25 : vector<256x256xf32>
    %27 = math.tanh %26 : vector<256x256xf32>
    %c0_13 = arith.constant 0 : index
    %c0_14 = arith.constant 0 : index
    %28 = vector.load %arg6[%c0_13, %c0_14] : memref<512x256xbf16, #tpu.memory_space<vmem>>, vector<512x256xbf16>
    %cst_15 = arith.constant dense<0.000000e+00> : vector<256x256xf32>
    %29 = tpu.matmul %21, %28, %cst_15 {dimension_numbers = #tpu.dot_dimension_numbers<[1], [0], [0], [1], [0, 0, 1, 1], [], []>} : vector<256x512xbf16>, vector<512x256xbf16>, vector<256x256xf32> -> vector<256x256xf32>
    %c0_16 = arith.constant 0 : index
    %c0_17 = arith.constant 0 : index
    %30 = vector.load %arg7[%c0_16, %c0_17] : memref<1x256xf32, #tpu.memory_space<vmem>>, vector<1x256xf32>
    %31 = vector.broadcast %30 : vector<1x256xf32> to vector<256x256xf32>
    %32 = arith.addf %29, %31 : vector<256x256xf32>
    %33 = arith.negf %32 : vector<256x256xf32>
    %34 = math.exp %33 : vector<256x256xf32>
    %cst_18 = arith.constant 1.000000e+00 : f32
    %35 = vector.broadcast %cst_18 : f32 to vector<256x256xf32>
    %36 = arith.addf %35, %34 : vector<256x256xf32>
    %37 = arith.divf %35, %36 : vector<256x256xf32>
    %38 = arith.mulf %27, %37 : vector<256x256xf32>
    %c0_19 = arith.constant 0 : index
    %c0_20 = arith.constant 0 : index
    %39 = vector.load %arg8[%c0_19, %c0_20] : memref<1x256xf32, #tpu.memory_space<vmem>>, vector<1x256xf32>
    %40 = vector.broadcast %39 : vector<1x256xf32> to vector<256x256xf32>
    %41 = arith.mulf %38, %40 : vector<256x256xf32>
    %cst_21 = arith.constant dense<0.000000e+00> : vector<256xf32>
    %42 = vector.multi_reduction <add>, %41, %cst_21 [1] : vector<256x256xf32> to vector<256xf32>
    %43 = vector.shape_cast %42 : vector<256xf32> to vector<256x1xf32>
    %c0_22 = arith.constant 0 : index
    %c0_23 = arith.constant 0 : index
    %44 = vector.load %arg9[%c0_22, %c0_23] : memref<1x1xf32, #tpu.memory_space<vmem>>, vector<1x1xf32>
    %45 = vector.broadcast %44 : vector<1x1xf32> to vector<256x1xf32>
    %46 = arith.addf %43, %45 : vector<256x1xf32>
    %cst_24 = arith.constant -1.000000e+30 : f32
    %47 = vector.broadcast %cst_24 : f32 to vector<256x1xf32>
    %48 = arith.select %8, %46, %47 : vector<256x1xi1>, vector<256x1xf32>
    %c0_25 = arith.constant 0 : index
    %c0_26 = arith.constant 0 : index
    %49 = vector.load %arg16[%c0_25, %c0_26] : memref<1x1xf32, #tpu.memory_space<vmem>>, vector<1x1xf32>
    %cst_27 = arith.constant dense<0xFF800000> : vector<1xf32>
    %50 = vector.multi_reduction <maximumf>, %48, %cst_27 [0] : vector<256x1xf32> to vector<1xf32>
    %51 = vector.shape_cast %50 : vector<1xf32> to vector<1x1xf32>
    %52 = arith.maximumf %49, %51 : vector<1x1xf32>
    %c0_28 = arith.constant 0 : index
    %c0_29 = arith.constant 0 : index
    %53 = vector.load %arg16[%c0_28, %c0_29] : memref<1x1xf32, #tpu.memory_space<vmem>>, vector<1x1xf32>
    %54 = arith.subf %53, %52 : vector<1x1xf32>
    %55 = math.exp %54 : vector<1x1xf32>
    %56 = vector.broadcast %52 : vector<1x1xf32> to vector<256x1xf32>
    %57 = arith.subf %48, %56 : vector<256x1xf32>
    %58 = math.exp %57 : vector<256x1xf32>
    %c0_30 = arith.constant 0 : index
    %c0_31 = arith.constant 0 : index
    %59 = vector.load %arg17[%c0_30, %c0_31] : memref<1x1xf32, #tpu.memory_space<vmem>>, vector<1x1xf32>
    %60 = arith.mulf %55, %59 : vector<1x1xf32>
    %cst_32 = arith.constant dense<0.000000e+00> : vector<1xf32>
    %61 = vector.multi_reduction <add>, %58, %cst_32 [0] : vector<256x1xf32> to vector<1xf32>
    %62 = vector.shape_cast %61 : vector<1xf32> to vector<1x1xf32>
    %63 = arith.addf %60, %62 : vector<1x1xf32>
    %c0_33 = arith.constant 0 : index
    %c0_34 = arith.constant 0 : index
    %64 = vector.load %arg17[%c0_33, %c0_34] : memref<1x1xf32, #tpu.memory_space<vmem>>, vector<1x1xf32>
    tpu.vector_store %arg17[%c0_33, %c0_34], %63 {strides = array<i32>} : memref<1x1xf32, #tpu.memory_space<vmem>>, vector<1x1xf32>,
    %c0_35 = arith.constant 0 : index
    %c0_36 = arith.constant 0 : index
    %65 = vector.load %arg15[%c0_35, %c0_36] : memref<1x512xf32, #tpu.memory_space<vmem>>, vector<1x512xf32>
    %66 = vector.broadcast %55 : vector<1x1xf32> to vector<1x512xf32>
    %67 = arith.mulf %66, %65 : vector<1x512xf32>
    %68 = vector.broadcast %58 : vector<256x1xf32> to vector<256x512xf32>
    %69 = arith.mulf %68, %20 : vector<256x512xf32>
    %cst_37 = arith.constant dense<0.000000e+00> : vector<512xf32>
    %70 = vector.multi_reduction <add>, %69, %cst_37 [0] : vector<256x512xf32> to vector<512xf32>
    %71 = vector.shape_cast %70 : vector<512xf32> to vector<1x512xf32>
    %72 = arith.addf %67, %71 : vector<1x512xf32>
    %c0_38 = arith.constant 0 : index
    %c0_39 = arith.constant 0 : index
    %73 = vector.load %arg15[%c0_38, %c0_39] : memref<1x512xf32, #tpu.memory_space<vmem>>, vector<1x512xf32>
    tpu.vector_store %arg15[%c0_38, %c0_39], %72 {strides = array<i32>} : memref<1x512xf32, #tpu.memory_space<vmem>>, vector<1x512xf32>,
    %c0_40 = arith.constant 0 : index
    %c0_41 = arith.constant 0 : index
    %74 = vector.load %arg16[%c0_40, %c0_41] : memref<1x1xf32, #tpu.memory_space<vmem>>, vector<1x1xf32>
    tpu.vector_store %arg16[%c0_40, %c0_41], %52 {strides = array<i32>} : memref<1x1xf32, #tpu.memory_space<vmem>>, vector<1x1xf32>,
    %c1_i32 = arith.constant 1 : i32
    %75 = arith.cmpi eq, %arg0, %c1_i32 : i32
    %76 = arith.extui %75 : i1 to i32
    %c0_i32_42 = arith.constant 0 : i32
    %77 = arith.cmpi ne, %76, %c0_i32_42 : i32
    scf.if %77 {
      %c0_43 = arith.constant 0 : index
      %c0_44 = arith.constant 0 : index
      %78 = vector.load %arg15[%c0_43, %c0_44] : memref<1x512xf32, #tpu.memory_space<vmem>>, vector<1x512xf32>
      %c0_45 = arith.constant 0 : index
      %c0_46 = arith.constant 0 : index
      %79 = vector.load %arg17[%c0_45, %c0_46] : memref<1x1xf32, #tpu.memory_space<vmem>>, vector<1x1xf32>
      %80 = vector.broadcast %79 : vector<1x1xf32> to vector<1x512xf32>
      %81 = arith.divf %78, %80 : vector<1x512xf32>
      %c0_47 = arith.constant 0 : index
      %c0_48 = arith.constant 0 : index
      %82 = vector.load %arg10[%c0_47, %c0_48] : memref<512x128xf32, #tpu.memory_space<vmem>>, vector<512x128xf32>
      %cst_49 = arith.constant dense<0.000000e+00> : vector<1x128xf32>
      %83 = tpu.matmul %81, %82, %cst_49 {dimension_numbers = #tpu.dot_dimension_numbers<[1], [0], [0], [1], [0, 0, 1, 1], [], []>} : vector<1x512xf32>, vector<512x128xf32>, vector<1x128xf32> -> vector<1x128xf32>
      %c0_50 = arith.constant 0 : index
      %c0_51 = arith.constant 0 : index
      %84 = vector.load %arg11[%c0_50, %c0_51] : memref<1x128xf32, #tpu.memory_space<vmem>>, vector<1x128xf32>
      %85 = arith.addf %83, %84 : vector<1x128xf32>
      %cst_52 = arith.constant 0.000000e+00 : f32
      %86 = vector.broadcast %cst_52 : f32 to vector<1x128xf32>
      %87 = arith.maximumf %85, %86 : vector<1x128xf32>
      %c0_53 = arith.constant 0 : index
      %c0_54 = arith.constant 0 : index
      %88 = vector.load %arg12[%c0_53, %c0_54] : memref<128x1xf32, #tpu.memory_space<vmem>>, vector<128x1xf32>
      %cst_55 = arith.constant dense<0.000000e+00> : vector<1x1xf32>
      %89 = tpu.matmul %87, %88, %cst_55 {dimension_numbers = #tpu.dot_dimension_numbers<[1], [0], [0], [1], [0, 0, 1, 1], [], []>} : vector<1x128xf32>, vector<128x1xf32>, vector<1x1xf32> -> vector<1x1xf32>
      %c0_56 = arith.constant 0 : index
      %c0_57 = arith.constant 0 : index
      %90 = vector.load %arg13[%c0_56, %c0_57] : memref<1x1xf32, #tpu.memory_space<vmem>>, vector<1x1xf32>
      %91 = arith.addf %89, %90 : vector<1x1xf32>
      %92 = arith.negf %91 : vector<1x1xf32>
      %93 = math.exp %92 : vector<1x1xf32>
      %cst_58 = arith.constant 1.000000e+00 : f32
      %94 = vector.broadcast %cst_58 : f32 to vector<1x1xf32>
      %95 = arith.addf %94, %93 : vector<1x1xf32>
      %96 = arith.divf %94, %95 : vector<1x1xf32>
      %c0_59 = arith.constant 0 : index
      %c0_60 = arith.constant 0 : index
      %97 = vector.load %arg14[%c0_59, %c0_60] : memref<1x1xf32, #tpu.memory_space<vmem>>, vector<1x1xf32>
      tpu.vector_store %arg14[%c0_59, %c0_60], %96 {strides = array<i32>} : memref<1x1xf32, #tpu.memory_space<vmem>>, vector<1x1xf32>,
    } else {
    }
    return
  }
  func.func @transform_0(%arg0: i32) -> (i32, i32) {
    %c0_i32 = arith.constant 0 : i32
    %c0_i32_0 = arith.constant 0 : i32
    return %arg0, %c0_i32 : i32, i32
  }
  func.func @transform_1(%arg0: i32) -> (i32, i32) {
    %c0_i32 = arith.constant 0 : i32
    %c0_i32_0 = arith.constant 0 : i32
    %c0_i32_1 = arith.constant 0 : i32
    return %c0_i32, %c0_i32_0 : i32, i32
  }
  func.func @transform_2(%arg0: i32) -> (i32, i32) {
    %c0_i32 = arith.constant 0 : i32
    %c0_i32_0 = arith.constant 0 : i32
    %c0_i32_1 = arith.constant 0 : i32
    return %c0_i32, %c0_i32_0 : i32, i32
  }
  func.func @transform_3(%arg0: i32) -> (i32, i32) {
    %c0_i32 = arith.constant 0 : i32
    %c0_i32_0 = arith.constant 0 : i32
    %c0_i32_1 = arith.constant 0 : i32
    return %c0_i32, %c0_i32_0 : i32, i32
  }
  func.func @transform_4(%arg0: i32) -> (i32, i32) {
    %c0_i32 = arith.constant 0 : i32
    %c0_i32_0 = arith.constant 0 : i32
    %c0_i32_1 = arith.constant 0 : i32
    return %c0_i32, %c0_i32_0 : i32, i32
  }
  func.func @transform_5(%arg0: i32) -> (i32, i32) {
    %c0_i32 = arith.constant 0 : i32
    %c0_i32_0 = arith.constant 0 : i32
    %c0_i32_1 = arith.constant 0 : i32
    return %c0_i32, %c0_i32_0 : i32, i32
  }
  func.func @transform_6(%arg0: i32) -> (i32, i32) {
    %c0_i32 = arith.constant 0 : i32
    %c0_i32_0 = arith.constant 0 : i32
    %c0_i32_1 = arith.constant 0 : i32
    return %c0_i32, %c0_i32_0 : i32, i32
  }
  func.func @transform_7(%arg0: i32) -> (i32, i32) {
    %c0_i32 = arith.constant 0 : i32
    %c0_i32_0 = arith.constant 0 : i32
    %c0_i32_1 = arith.constant 0 : i32
    return %c0_i32, %c0_i32_0 : i32, i32
  }
  func.func @transform_8(%arg0: i32) -> (i32, i32) {
    %c0_i32 = arith.constant 0 : i32
    %c0_i32_0 = arith.constant 0 : i32
    %c0_i32_1 = arith.constant 0 : i32
    return %c0_i32, %c0_i32_0 : i32, i32
  }
  func.func @transform_9(%arg0: i32) -> (i32, i32) {
    %c0_i32 = arith.constant 0 : i32
    %c0_i32_0 = arith.constant 0 : i32
    %c0_i32_1 = arith.constant 0 : i32
    return %c0_i32, %c0_i32_0 : i32, i32
  }
  func.func @transform_10(%arg0: i32) -> (i32, i32) {
    %c0_i32 = arith.constant 0 : i32
    %c0_i32_0 = arith.constant 0 : i32
    %c0_i32_1 = arith.constant 0 : i32
    return %c0_i32, %c0_i32_0 : i32, i32
  }
  func.func @transform_11(%arg0: i32) -> (i32, i32) {
    %c0_i32 = arith.constant 0 : i32
    %c0_i32_0 = arith.constant 0 : i32
    %c0_i32_1 = arith.constant 0 : i32
    return %c0_i32, %c0_i32_0 : i32, i32
  }
  func.func @transform_12(%arg0: i32) -> (i32, i32) {
    %c0_i32 = arith.constant 0 : i32
    %c0_i32_0 = arith.constant 0 : i32
    %c0_i32_1 = arith.constant 0 : i32
    return %c0_i32, %c0_i32_0 : i32, i32
  }
  func.func @transform_13(%arg0: i32) -> (i32, i32) {
    %c0_i32 = arith.constant 0 : i32
    %c0_i32_0 = arith.constant 0 : i32
    %c0_i32_1 = arith.constant 0 : i32
    return %c0_i32, %c0_i32_0 : i32, i32
  }
}

</mosaic_0001>

<bundles_post_ra>
// kernel: tpu_custom_call.1
= control target key start
LH: loop header
LB: loop body
LE: loop exit
PB: predicated region body
PF: predicated region fallthrough
CT: control target
= control target key end

     0   :  { %s14672_s0 = inlined_call_operand.hbm [shape: bf16[300,1024], index: 0, kind: input, shape index: {}]   ;;  %s14673_s1 = inlined_call_operand.hbm [shape: bf16[1024,512], index: 1, kind: input, shape index: {}]   ;;  %s14674_s2 = inlined_call_operand.vmem [shape: f32[1,512], index: 2, kind: input, shape index: {}]   ;;  %s14675_s3 = inlined_call_operand.hbm [shape: bf16[512,256], index: 3, kind: input, shape index: {}]   ;;  %s14676_s4 = inlined_call_operand.vmem [shape: f32[1,256], index: 4, kind: input, shape index: {}]   ;;  %s14677_s5 = inlined_call_operand.hbm [shape: bf16[512,256], index: 5, kind: input, shape index: {}]   ;;  %s14678_s6 = inlined_call_operand.vmem [shape: f32[1,256], index: 6, kind: input, shape index: {}]   ;;  %s14679_s7 = inlined_call_operand.vmem [shape: f32[1,256], index: 7, kind: input, shape index: {}]   ;;  %s14680_s8 = inlined_call_operand.<no memory space> [shape: f32[1,1], index: 8, kind: input, shape index: {}]   ;;  %s14681_s9 = inlined_call_operand.hbm [shape: f32[512,128], index: 9, kind: input, shape index: {}]   ;;  %s14682_s10 = inlined_call_operand.vmem [shape: f32[1,128], index: 10, kind: input, shape index: {}]   ;;  %s14683_s11 = inlined_call_operand.vmem [shape: f32[128,1], index: 11, kind: input, shape index: {}]   ;;  %s14684_s13 = inlined_call_operand.hbm [shape: f32[1,1], index: 13, kind: output, shape index: {}]   ;;  %s14685_s12 = inlined_call_operand.<no memory space> [shape: f32[1,1], index: 12, kind: input, shape index: {}]  }
   0x1   :  { %15066 = sst [smem:[#allocation192_spill]] %s14676_s4  ;;  %v18_v0 = vstv %s14680_s8  ;;  %v20_v1 = vstv %s14685_s12 }
   0x2   :  { %15067 = sst [smem:[#allocation193_spill]] %s14679_s7  ;;  %19 = vst [vmem:[#allocation5] sm:$0x1] %v18_v0  ;;  %21 = vst [vmem:[#allocation6] sm:$0x1] %v20_v1 }
   0x3   :  { %15068 = sst [smem:[#allocation194_spill]] %s14682_s10 }
   0x4   :  { %15069 = sst [smem:[#allocation195_spill]] %s14683_s11 }
   0x5   :  { %15070 = sst [smem:[#allocation196_spill]] %s14684_s13 }
   0x6   :  { %22 = vsyncpa [#allocation8], 0 }
   0x7   :  { %24 = vsyncpa [#allocation8 + $0x1], 0 }
   0x8   :  { %25 = vsyncpa [#allocation11], 0 }
   0x9   :  { %26 = vsyncpa [#allocation14], 0 }
   0xa   :  { %27 = vsyncpa [#allocation9], 0  ;;  %s11435_s29 = smov 0   ;;  %s11437_s30 = smov 0  }
   0xb   :  { %s11439_s14 = smov 0   ;;  %s11441_s15 = smov 0  }
   0xc LB: > { %s11454_s8 = sadd.s32 4294967295, %s11337_s15   ;;  %s11457_s12 = sadd.s32 1, %s11337_s15   ;;  %s11337_s15 = sphi %s11441_s15, %s15746_s15   ;;  %s11333_s14 = sphi %s11439_s14, %s15750_s14   ;;  %s11329_s30 = sphi %s11437_s30, %s15749_s30   ;;  %s11325_s29 = sphi %s11435_s29, %s15748_s29  }
   0xd   : > { %15071 = sst [smem:[#allocation21_spill]] %s11457_s12  ;;  %s37_s16 = ssub.s32 %s11337_s15, %s11457_s12 }
   0xe   : > { %s40_s17 = sadd.s32 1, %s11333_s14  ;;  %p38_p0 = scmp.eq.s32.totalorder %s37_s16, 0 }
   0xf   : > { %p47_p1 = scmp.ne.s32.totalorder %s11333_s14, %s11329_s30  ;;  %p48_p2 = scmp.eq.s32.totalorder %s11337_s15, 0 }
  0x10   : > { %p53_p3 = scmp.ne.s32.totalorder %s11329_s30, %s11325_s29  ;;  %p14688_p5 = scmp.eq.s32.totalorder %s11454_s8, 0 }
  0x11   : > { %s11467_s18 = scalar_select %p38_p0, %s11333_s14, %s40_s17  }
  0x12   : > { %p11469_p4 = por %p48_p2, %p47_p1  ;;  %p8408_p6 = scmp.ge.s32.totalorder %s11337_s15, 1 }
  0x13   : > { %15072 = sst [smem:[#allocation22_spill]] %s11467_s18  ;;  %p337_p7 = scmp.lt.s32.totalorder %s11337_s15, 3 }
  0x14   : > { %s15073_s19 = scalar_select %p11469_p4, 1, 0 }
  0x15   : > { %p11478_p8 = por %p14688_p5, %p53_p3  ;;  %p11483_p10 = pnand %p8408_p6, %p337_p7 }
  0x16   : > { %s11339_s22 = smov [#allocation10]   ;;  %s11340_s25 = smov [#allocation13]  }
  0x17   : > { %s15074_s20 = scalar_select %p11478_p8, 1, 0 }
  0x18   : > { %s15075_s21 = scalar_select %p11483_p10, 1, 0 }
  0x19   : > { %s349_s23 = sshll.u32 %s11339_s22, 4  ;;  %p10016_p11 = pneg %p11483_p10  ;;  %s350_s23 = int_to_ptr.vmem [resolvable:$true] %s349_s23 }
  0x1a   : > { %s381_s26 = sshll.u32 %s11340_s25, 4  ;;  %s11125_s29 = scalar_lea.hbm %s14673_s1, 32768  ;;  %s382_s26 = int_to_ptr.vmem [resolvable:$true] %s381_s26 }
  0x1b   : > { %p11491_p12 = pnand %p10016_p11, %p14688_p5  ;;  %p11126_p13 = scmp.ne.s32.totalorder %s14673_s1, %s11125_s29 }
  0x1c   : > { %p11132_p3 = scmp.lt.u32.totalorder %s11125_s29, %s14673_s1 }
  0x1d   : > { %p11503_p0 = pneg %p11491_p12 }
  0x1f   : > { %p11128_p1 = pnand %p11503_p0, %p11126_p13 }
  0x21   : > { %p11129_p2 = pneg %p11128_p1 }
  0x23   : > { %p11134_p6 = pnand %p11132_p3, %p11129_p2 }
  0x25   : > { %11137 = shalt.err (!%p11134_p6)
}
  0x26   : > { %s11138_s25 = scalar_lea.vmem %s350_s23, 32768  ;;  %p11146_p5 = scmp.lt.s32.totalorder %s350_s23, %s350_s23 }
  0x27   : > { %p11139_p7 = scmp.ne.s32.totalorder %s350_s23, %s11138_s25  ;;  %p11147_p8 = scmp.lt.s32.totalorder %s11138_s25, %s11138_s25 }
  0x29   : > { %p11141_p11 = pnand %p11139_p7, %p11503_p0  ;;  %p11148_p10 = por %p11147_p8, %p11146_p5 }
  0x2b   : > { %p11142_p9 = pneg %p11141_p11 }
  0x2d   : > { %p11149_p4 = pnand %p11148_p10, %p11142_p9 }
  0x2f   : > { %11152 = shalt.err (!%p11149_p4)
}
  0x30   : > { %s11341_s27 = smov 256   ;;  %s11342_s28 = smov 16  }
  0x31   : > { %10019 = dma.hbm_to_vmem [thread:$0]  (!%p11491_p12), %s14673_s1, 32768, %s350_s23, [#allocation11], %s11341_s27, %s11341_s27, %s11342_s28  }
  0x32   : > { %s11343_s29 = smov [#allocation12]   ;;  %s11153_s10 = scalar_lea.hbm %s14677_s5, 8192 }
  0x33   : > { %s365_s16 = sshll.u32 %s11343_s29, 4  ;;  %p11154_p4 = scmp.ne.s32.totalorder %s14677_s5, %s11153_s10  ;;  %s366_s16 = int_to_ptr.vmem [resolvable:$true] %s365_s16 }
  0x34   : > { %p11160_p9 = scmp.lt.u32.totalorder %s11153_s10, %s14677_s5 }
  0x35   : > { %p11156_p5 = pnand %p11154_p4, %p11503_p0 }
  0x37   : > { %p11157_p8 = pneg %p11156_p5 }
  0x39   : > { %p11162_p10 = pnand %p11160_p9, %p11157_p8 }
  0x3b   : > { %11165 = shalt.err (!%p11162_p10)
}
  0x3c   : > { %s11166_s23 = scalar_lea.vmem %s382_s26, 8192  ;;  %p11174_p3 = scmp.lt.s32.totalorder %s382_s26, %s382_s26 }
  0x3d   : > { %p11167_p13 = scmp.ne.s32.totalorder %s382_s26, %s11166_s23  ;;  %p11175_p6 = scmp.lt.s32.totalorder %s11166_s23, %s11166_s23 }
  0x3f   : > { %p11169_p1 = pnand %p11167_p13, %p11503_p0  ;;  %p11176_p7 = por %p11175_p6, %p11174_p3 }
  0x41   : > { %p11170_p2 = pneg %p11169_p1 }
  0x43   : > { %p11177_p11 = pnand %p11176_p7, %p11170_p2 }
  0x45   : > { %11180 = shalt.err (!%p11177_p11)
}
  0x46   : > { %s11344_s11 = smov 128   ;;  %s11345_s13 = smov 8  }
  0x47   : > { %10025 = dma.hbm_to_vmem [thread:$0]  (!%p11491_p12), %s14677_s5, 8192, %s382_s26, [#allocation14], %s11344_s11, %s11344_s11, %s11345_s13  }
  0x48   : > { %s11181_s28 = scalar_lea.hbm %s14675_s3, 8192 }
  0x49   : > { %p11182_p4 = scmp.ne.s32.totalorder %s14675_s3, %s11181_s28  ;;  %p11188_p9 = scmp.lt.u32.totalorder %s11181_s28, %s14675_s3 }
  0x4b   : > { %p11184_p5 = pnand %p11182_p4, %p11503_p0 }
  0x4d   : > { %p11185_p8 = pneg %p11184_p5 }
  0x4f   : > { %p11190_p10 = pnand %p11188_p9, %p11185_p8 }
  0x51   : > { %11193 = shalt.err (!%p11190_p10)
}
  0x52   : > { %s11194_s25 = scalar_lea.vmem %s366_s16, 8192  ;;  %p11202_p3 = scmp.lt.s32.totalorder %s366_s16, %s366_s16 }
  0x53   : > { %p11195_p13 = scmp.ne.s32.totalorder %s366_s16, %s11194_s25  ;;  %p11203_p6 = scmp.lt.s32.totalorder %s11194_s25, %s11194_s25 }
  0x55   : > { %p11197_p1 = pnand %p11195_p13, %p11503_p0  ;;  %p11204_p7 = por %p11203_p6, %p11202_p3 }
  0x57   : > { %p11198_p2 = pneg %p11197_p1 }
  0x59   : > { %p11205_p11 = pnand %p11204_p7, %p11198_p2 }
  0x5b   : > { %11208 = shalt.err (!%p11205_p11)
}
  0x5c   : > { %10022 = dma.hbm_to_vmem [thread:$0]  (!%p11491_p12), %s14675_s3, 8192, %s366_s16, [#allocation11], %s11344_s11, %s11344_s11, %s11345_s13  }
  0x5d   : > { %s11346_s4 = smov [#allocation15]   ;;  %s11209_s28 = scalar_lea.hbm %s14681_s9, 8192 }
  0x5e   : > { %s403_s7 = sshll.u32 %s11346_s4, 4  ;;  %p11210_p4 = scmp.ne.s32.totalorder %s14681_s9, %s11209_s28  ;;  %s404_s7 = int_to_ptr.vmem [resolvable:$true] %s403_s7 }
  0x5f   : > { %p11216_p9 = scmp.lt.u32.totalorder %s11209_s28, %s14681_s9 }
  0x60   : > { %p11212_p5 = pnand %p11210_p4, %p11503_p0 }
  0x62   : > { %p11213_p8 = pneg %p11212_p5 }
  0x64   : > { %p11218_p10 = pnand %p11216_p9, %p11213_p8 }
  0x66   : > { %11221 = shalt.err (!%p11218_p10)
}
  0x67   : > { %s11222_s16 = scalar_lea.vmem %s404_s7, 8192  ;;  %p11230_p3 = scmp.lt.s32.totalorder %s404_s7, %s404_s7 }
  0x68   : > { %p11223_p13 = scmp.ne.s32.totalorder %s404_s7, %s11222_s16  ;;  %p11231_p6 = scmp.lt.s32.totalorder %s11222_s16, %s11222_s16 }
  0x6a   : > { %p11225_p1 = pnand %p11223_p13, %p11503_p0  ;;  %p11232_p7 = por %p11231_p6, %p11230_p3 }
  0x6c   : > { %p11226_p2 = pneg %p11225_p1 }
  0x6e   : > { %p11233_p11 = pnand %p11232_p7, %p11226_p2 }
  0x70   : > { %11236 = shalt.err (!%p11233_p11)
}
  0x71   : > { %10028 = dma.hbm_to_vmem [thread:$0]  (!%p11491_p12), %s14681_s9, 8192, %s404_s7, [#allocation14], %s11344_s11, %s11344_s11, %s11345_s13  }
  0x72   : > { %p8413_p4 = scmp.ge.s32.totalorder %s11337_s15, 2 }
  0x73   : > { %p15078_p0 = scmp.ne.s32.totalorder (!%p8413_p4), %s15073_s19, 0 }
  0x74   : > { %422 = sbr.rel (%p8413_p4) target bundleno = 158 (0x9e), region = 64 }
  0x7b   : > { %425 = sbr.rel (!%p15078_p0) target bundleno = 158 (0x9e), region = 68  ;;  %s426_s22 = sand.u32 (%p15078_p0), 1, %s11333_s14  }
  0x7c   : > { %s8415_s23 = sshll.u32 (%p15078_p0), %s11337_s15, 5  ;;  %s8414_s4 = sshll.u32 (%p15078_p0), %s426_s22, 10 }
  0x7d   : > { %s432_s10 = ssub.s32 (%p15078_p0), 38, %s8415_s23  ;;  %s11590_s28 = scalar_lea.sflag (%p15078_p0), [#allocation8], %s426_s22 }
  0x7e   : > { %p433_p5 = scmp.lt.s32.totalorder (%p15078_p0), %s432_s10, 32  ;;  %s430_s11 = scalar_lea.vmem (%p15078_p0), [#allocation7], %s8414_s4 }
  0x82   : > { %s15752_s10 = smov (!%p433_p5, %s432_s10), 32 }
  0x83   : > { %s11587_s24 = sshll.u32 %s15752_s10, 9 }
  0x84   : > { %s438_s27 = ssub.s32 16384, %s11587_s24 }
  0x85   : > { %439 = vsyncadd %s11590_s28, %s438_s27  ;;  %p8418_p12 = scmp.ne.s32.totalorder %s11587_s24, 0  ;;  %s9016_s19 = sshll.u32 %s11337_s15, 14 }
  0x86   : > { %s11598_s12 = scalar_lea.hbm %s14672_s0, %s9016_s19  ;;  %s445_s18 = sshll.u32 %s430_s11, 4  ;;  %s11600_s18 = int_to_ptr.vmem [resolvable:$true] %s445_s18 }
  0x87   : > { %s11237_s29 = scalar_lea.hbm %s11598_s12, %s11587_s24  ;;  %s11241_s15 = scalar_lea.hbm %s14672_s0, 19456 }
  0x88   : > { %p11238_p8 = scmp.ne.s32.totalorder %s11598_s12, %s11237_s29  ;;  %p11242_p13 = scmp.lt.u32.totalorder %s11598_s12, %s14672_s0 }
  0x89   : > { %p11243_p1 = scmp.lt.u32.totalorder %s11241_s15, %s11237_s29  ;;  %p11245_p3 = scmp.lt.u32.totalorder %s11237_s29, %s11598_s12 }
  0x8a   : > { %p11239_p9 = pnand %p11238_p8, %p8418_p12 }
  0x8b   : > { %p11244_p2 = por %p11243_p1, %p11242_p13 }
  0x8c   : > { %p11240_p10 = pneg %p11239_p9 }
  0x8d   : > { %p11246_p6 = por %p11245_p3, %p11244_p2 }
  0x8f   : > { %p11247_p7 = pnand %p11246_p6, %p11240_p10 }
  0x91   : > { %11250 = shalt.err (!%p11247_p7)
}
  0x92   : > { %s11251_s22 = scalar_lea.vmem %s11600_s18, %s11587_s24  ;;  %s11347_s23 = smov [#allocation7]  }
  0x93   : > { %p11252_p11 = scmp.ne.s32.totalorder %s11600_s18, %s11251_s22  ;;  %s11255_s4 = sshll.u32 %s11347_s23, 4  ;;  %s11256_s4 = int_to_ptr.vmem [resolvable:$false] %s11255_s4 }
  0x94   : > { %s11257_s10 = scalar_lea.vmem %s11256_s4, 32768  ;;  %p11258_p5 = scmp.lt.s32.totalorder %s11600_s18, %s11256_s4 }
  0x95   : > { %p11253_p4 = pnand %p11252_p11, %p8418_p12  ;;  %p11259_p8 = scmp.lt.s32.totalorder %s11257_s10, %s11251_s22 }
  0x97   : > { %p11254_p0 = pneg %p11253_p4  ;;  %p11260_p9 = por %p11259_p8, %p11258_p5 }
  0x99   : > { %p11261_p13 = pnand %p11260_p9, %p11254_p0 }
  0x9b   : > { %11264 = shalt.err (!%p11261_p13)
}
  0x9c   : > { %s11348_s27 = smov 512   ;;  %s11349_s11 = smov 32  }
  0x9d   : > { %451 = dma.hbm_to_vmem [thread:$0]  (%p8418_p12), %s11598_s12, %s11587_s24, %s11600_s18, %s11590_s28, %s11348_s27, %s11348_s27, %s11349_s11  }
  0x9e PF: > { %p15079_p10 = scmp.ne.s32.totalorder %s15075_s21, 0 }
  0xa0   : > { %457 = sbr.rel (%p15079_p10) target bundleno = 2467 (0x9a3), region = 72 }
  0xa7   : > { %s459_s19 = sand.u32 1, %s11329_s30   ;;  %p15080_p1 = scmp.ne.s32.totalorder %s15074_s20, 0 }
  0xa8   : > { %s8424_s13 = sshll.u32 %s459_s19, 10  ;;  %s460_s7 = scalar_lea.sflag [#allocation8], %s459_s19 }
  0xa9   : > { %s11630_s29 = scalar_lea.vmem [#allocation7], %s8424_s13 }
  0xaa   : > { %11308 = dma.done.wait (%p15080_p1), %s460_s7, 16384  }
  0xab   : > { %11310 = vsyncadd (%p15080_p1), %s460_s7, 4294950912  ;;  %p15081_p2 = scmp.eq.s32.totalorder %s11454_s8, 0 }
  0xad   : > { %11312 = dma.done.wait (%p15081_p2), [#allocation11], 40960   ;;  %p15082_p12 = pmov %p15081_p2 }
  0xae   : > { %p15083_p3 = pmov %p15081_p2 }
  0xaf   : > { %11314 = vsyncadd (%p15082_p12), [#allocation11], 4294926336 }
  0xb0   : > { %11316 = dma.done.wait (%p15083_p3), [#allocation14], 16384   ;;  %p15084_p6 = pmov %p15081_p2 }
  0xb1   : > { %p15085_p7 = scmp.ne.s32.totalorder %s11454_s8, 0 }
  0xb2   : > { %11318 = vsyncadd (%p15084_p6), [#allocation14], 4294950912  ;;  %v528_v2 = vlaneseq (!%p15085_p7)  ;;  %vm533_vm0 = vcmask (!%p15085_p7), 0   ;;  %v11350_v3 = vmov (!%p15085_p7), -1e+30   ;;  %v11351_v4 = vmov (!%p15085_p7), 0.0  }
  0xb3   : > { %527 = sbr.rel (%p15085_p7) target bundleno = 186 (0xba), region = 96  ;;  %534 = vst.msk [vmem:[#allocation3] sm:$0x1] (!%p15085_p7), %vm533_vm0, %v11350_v3  ;;  %535 = vst.msk [vmem:[#allocation4] sm:$0x1] (!%p15085_p7), %vm533_vm0, %v11351_v4 }
  0xb4   : > { %vm530_vm1 = vcmp.lt.s32.totalorder (!%p15085_p7), %v528_v2, 512 }
  0xb5   : > { %532 = vst.msk [vmem:[#allocation2] sm:$0xf] (!%p15085_p7), %vm530_vm1, %v11351_v4 }
  0xba PF: > { %v10092_v5 = vld [vmem:[#allocation10 + $0x4] ss:$16 sps:$4 sm:$0xff]   ;;  %v10094_v6 = vld [vmem:[#allocation10 + $0xc] ss:$16 sps:$4 sm:$0xff]   ;;  %v10096_v7 = vld [vmem:[#allocation10] ss:$16 sps:$4 sm:$0xff]   ;;  %v14729_v35 = vlaneseq }
  0xbb   : > { %3185 = vmatprep.subr.bf16.mxu0 %v10092_v5  ;;  %v10097_v8 = vld [vmem:[#allocation10 + $0x8] ss:$16 sps:$4 sm:$0xff]   ;;  %3957 = vmatprep.subr.bf16.mxu1 %v10094_v6  ;;  %v10098_v9 = vld [vmem:[#allocation10 + $0x24] ss:$16 sps:$4 sm:$0xff]   ;;  %v10100_v10 = vld [vmem:[#allocation10 + $0x2c] ss:$16 sps:$4 sm:$0xff]  }
  0xbc   : > { %3186 = vmatpush1.bf16.msra.mxu0 %v10096_v7  ;;  %3958 = vmatpush1.bf16.msra.mxu1 %v10097_v8  ;;  %v10102_v11 = vld [vmem:[#allocation10 + $0x20] ss:$16 sps:$4 sm:$0xff]   ;;  %v10103_v12 = vld [vmem:[#allocation10 + $0x28] ss:$16 sps:$4 sm:$0xff]   ;;  %v10104_v13 = vld [vmem:[#allocation10 + $0x44] ss:$16 sps:$4 sm:$0xff]  }
  0xbd   : > { %3187 = vmatprep.subr.bf16.mxu0 %v10098_v9  ;;  %3959 = vmatprep.subr.bf16.mxu1 %v10100_v10  ;;  %v10106_v14 = vld [vmem:[#allocation10 + $0x4c] ss:$16 sps:$4 sm:$0xff]   ;;  %v10108_v15 = vld [vmem:[#allocation10 + $0x40] ss:$16 sps:$4 sm:$0xff]   ;;  %v10109_v16 = vld [vmem:[#allocation10 + $0x48] ss:$16 sps:$4 sm:$0xff]  }
  0xbe   : > { %v10110_v17 = vld [vmem:[#allocation10 + $0x64] ss:$16 sps:$4 sm:$0xff]   ;;  %v10112_v18 = vld [vmem:[#allocation10 + $0x6c] ss:$16 sps:$4 sm:$0xff]   ;;  %v10114_v19 = vld [vmem:[#allocation10 + $0x60] ss:$16 sps:$4 sm:$0xff]  }
  0xbf   : > { %v10115_v20 = vld [vmem:[#allocation10 + $0x68] ss:$16 sps:$4 sm:$0xff]   ;;  %v10116_v21 = vld [vmem:[#allocation10 + $0x84] ss:$16 sps:$4 sm:$0xff]   ;;  %v10118_v22 = vld [vmem:[#allocation10 + $0x8c] ss:$16 sps:$4 sm:$0xff]  }
  0xc0   : > { %3188 = vmatpush1.bf16.msra.mxu0 %v10102_v11  ;;  %3960 = vmatpush1.bf16.msra.mxu1 %v10103_v12  ;;  %v10120_v23 = vld [vmem:[#allocation10 + $0x80] ss:$16 sps:$4 sm:$0xff]   ;;  %v10121_v24 = vld [vmem:[#allocation10 + $0x88] ss:$16 sps:$4 sm:$0xff]   ;;  %v10122_v25 = vld [vmem:[#allocation10 + $0xa4] ss:$16 sps:$4 sm:$0xff]  }
  0xc1   : > { %3189 = vmatprep.subr.bf16.mxu0 %v10104_v13  ;;  %3961 = vmatprep.subr.bf16.mxu1 %v10106_v14  ;;  %v10124_v26 = vld [vmem:[#allocation10 + $0xac] ss:$16 sps:$4 sm:$0xff]   ;;  %v10126_v27 = vld [vmem:[#allocation10 + $0xa0] ss:$16 sps:$4 sm:$0xff]   ;;  %v10127_v28 = vld [vmem:[#allocation10 + $0xa8] ss:$16 sps:$4 sm:$0xff]  }
  0xc2   : > { %v10128_v29 = vld [vmem:[#allocation10 + $0xc4] ss:$16 sps:$4 sm:$0xff]   ;;  %v10130_v30 = vld [vmem:[#allocation10 + $0xcc] ss:$16 sps:$4 sm:$0xff]   ;;  %v10132_v31 = vld [vmem:[#allocation10 + $0xc0] ss:$16 sps:$4 sm:$0xff]  }
  0xc3   : > { %v10133_v32 = vld [vmem:[#allocation10 + $0xc8] ss:$16 sps:$4 sm:$0xff]   ;;  %v10134_v33 = vld [vmem:[#allocation10 + $0xe4] ss:$16 sps:$4 sm:$0xff]   ;;  %v10136_v34 = vld [vmem:[#allocation10 + $0xec] ss:$16 sps:$4 sm:$0xff]  }
  0xc4   : > { %3190 = vmatpush1.bf16.msra.mxu0 %v10108_v15  ;;  %3962 = vmatpush1.bf16.msra.mxu1 %v10109_v16  ;;  %v10138_v36 = vld [vmem:[#allocation10 + $0xe0] ss:$16 sps:$4 sm:$0xff]   ;;  %v10139_v37 = vld [vmem:[#allocation10 + $0xe8] ss:$16 sps:$4 sm:$0xff]   ;;  %v10140_v38 = vld [vmem:[#allocation10 + $0x104] ss:$16 sps:$4 sm:$0xff]  }
  0xc5   : > { %3191 = vmatprep.subr.bf16.mxu0 %v10110_v17  ;;  %3963 = vmatprep.subr.bf16.mxu1 %v10112_v18  ;;  %v10142_v39 = vld [vmem:[#allocation10 + $0x10c] ss:$16 sps:$4 sm:$0xff]   ;;  %v11647_v40 = vshrl.u32 %v14729_v35, 7  ;;  %s8430_s20 = sshll.u32 %s11454_s8, 8  ;;  %v10144_v41 = vld [vmem:[#allocation10 + $0x100] ss:$16 sps:$4 sm:$0xff]  }
  0xc6   : > { %v10145_v42 = vld [vmem:[#allocation10 + $0x108] ss:$16 sps:$4 sm:$0xff]   ;;  %v10146_v43 = vld [vmem:[#allocation10 + $0x124] ss:$16 sps:$4 sm:$0xff]   ;;  %v10148_v44 = vld [vmem:[#allocation10 + $0x12c] ss:$16 sps:$4 sm:$0xff]   ;;  %v11651_v46 = vstv %s8430_s20 }
  0xc7   : > { %15086 = vst [vmem:[#allocation23_spill] sm:$0xff] %v11647_v40  ;;  %v539_v45 = vadd.s32 8, %v11647_v40  ;;  %v10150_v47 = vld [vmem:[#allocation10 + $0x120] ss:$16 sps:$4 sm:$0xff]   ;;  %v10151_v48 = vld [vmem:[#allocation10 + $0x128] ss:$16 sps:$4 sm:$0xff]   ;;  %v11655_v50 = vadd.s32 %v11651_v46, %v11647_v40 }
  0xc8   : > { %3192 = vmatpush1.bf16.msra.mxu0 %v10114_v19  ;;  %3964 = vmatpush1.bf16.msra.mxu1 %v10115_v20  ;;  %v10152_v49 = vld [vmem:[#allocation10 + $0x144] ss:$16 sps:$4 sm:$0xff]   ;;  %v10154_v51 = vld [vmem:[#allocation10 + $0x14c] ss:$16 sps:$4 sm:$0xff]   ;;  %v10156_v53 = vld [vmem:[#allocation10 + $0x140] ss:$16 sps:$4 sm:$0xff]  }
  0xc9   : > { %3193 = vmatprep.subr.bf16.mxu0 %v10116_v21  ;;  %3965 = vmatprep.subr.bf16.mxu1 %v10118_v22  ;;  %15087 = vst [vmem:[#allocation24_spill] sm:$0xff] %v11655_v50  ;;  %v11658_v52 = vadd.s32 %v11651_v46, %v539_v45  ;;  %v10157_v54 = vld [vmem:[#allocation10 + $0x148] ss:$16 sps:$4 sm:$0xff]   ;;  %v10158_v55 = vld [vmem:[#allocation10 + $0x164] ss:$16 sps:$4 sm:$0xff]   ;;  %vm14702_vm2 = vcmp.lt.s32.totalorder %v11655_v50, 300 }
  0xca   : > { %v10160_v56 = vld [vmem:[#allocation10 + $0x16c] ss:$16 sps:$4 sm:$0xff]   ;;  %v10162_v57 = vld [vmem:[#allocation10 + $0x160] ss:$16 sps:$4 sm:$0xff]   ;;  %vm11667_vm4 = vmpackc.low %vm14702_vm2, %vm14702_vm2  ;;  %v540_v4 = vadd.s32 16, %v11647_v40  ;;  %v541_v5 = vadd.s32 24, %v11647_v40 }
  0xcb   : > { %15088 = vst [vmem:[#allocation25_spill] sm:$0xff] %v11658_v52  ;;  %vm14701_vm3 = vcmp.lt.s32.totalorder %v11658_v52, 300  ;;  %v635_v58 = vld [vmem:[%s11630_s29] sm:$0xff]  ;;  %v10163_v61 = vld [vmem:[#allocation10 + $0x168] ss:$16 sps:$4 sm:$0xff]   ;;  %v542_v16 = vadd.s32 32, %v11647_v40 }
  0xcc   : > { %3194 = vmatpush1.bf16.msra.mxu0 %v10120_v23  ;;  %3966 = vmatpush1.bf16.msra.mxu1 %v10121_v24  ;;  %v639_v59 = vld [vmem:[%s11630_s29 + $0x20] sm:$0xff]  ;;  %vm11674_vm5 = vmpackc.low %vm14701_vm3, %vm14701_vm3  ;;  %v859_v63 = vsel %vm11667_vm4, %v635_v58, 0  ;;  %v10166_v1 = vld [vmem:[#allocation10 + $0x18c] ss:$16 sps:$4 sm:$0xff]   ;;  %v11685_v10 = vadd.s32 %v11651_v46, %v540_v4  ;;  %v11688_v11 = vadd.s32 %v11651_v46, %v541_v5  ;;  %v543_v18 = vadd.s32 40, %v11647_v40  ;;  %s15400_s16 = sld [smem:[#allocation192_spill]] }
  0xcd   : > { %3195 = vmatprep.subr.bf16.mxu0 %v10122_v25  ;;  %3967 = vmatprep.subr.bf16.mxu1 %v10124_v26  ;;  %v10164_v0 = vld [vmem:[#allocation10 + $0x184] ss:$16 sps:$4 sm:$0xff]   ;;  %v863_v2 = vsel %vm11674_vm5, %v639_v59, 0  ;;  %v10168_v6 = vld [vmem:[#allocation10 + $0x180] ss:$16 sps:$4 sm:$0xff]   ;;  %v11711_v26 = vadd.s32 %v11651_v46, %v542_v16  ;;  %v15104_v45 = vmov 0 }
  0xce   : > { %v8432_v3 = vcombine.high %v859_v63, %v863_v2  ;;  %v10169_v7 = vld [vmem:[#allocation10 + $0x188] ss:$16 sps:$4 sm:$0xff]   ;;  %v10170_v8 = vld [vmem:[#allocation10 + $0x1a4] ss:$16 sps:$4 sm:$0xff]   ;;  %v10172_v9 = vld [vmem:[#allocation10 + $0x1ac] ss:$16 sps:$4 sm:$0xff]  }
  0xcf   : > { %15093 = vst [vmem:[#allocation26_spill] sm:$0xff] %v11685_v10  ;;  %15094 = vst [vmem:[#allocation27_spill] sm:$0xff] %v11688_v11  ;;  %v10174_v12 = vld [vmem:[#allocation10 + $0x1a0] ss:$16 sps:$4 sm:$0xff]   ;;  %v10175_v13 = vld [vmem:[#allocation10 + $0x1a8] ss:$16 sps:$4 sm:$0xff]  }
  0xd0   : > { %3196 = vmatpush1.bf16.msra.mxu0 %v10126_v27  ;;  %3968 = vmatpush1.bf16.msra.mxu1 %v10127_v28  ;;  %v10176_v14 = vld [vmem:[#allocation10 + $0x1c4] ss:$16 sps:$4 sm:$0xff]   ;;  %v10178_v15 = vld [vmem:[#allocation10 + $0x1cc] ss:$16 sps:$4 sm:$0xff]   ;;  %vm14699_vm6 = vcmp.lt.s32.totalorder %v11685_v10, 300  ;;  %vm14696_vm7 = vcmp.lt.s32.totalorder %v11688_v11, 300  ;;  %v11714_v27 = vadd.s32 %v11651_v46, %v543_v18 }
  0xd1   : > { %3197 = vmatprep.subr.bf16.mxu0 %v10128_v29  ;;  %3969 = vmatprep.subr.bf16.mxu1 %v10130_v30  ;;  %v10180_v17 = vld [vmem:[#allocation10 + $0x1c0] ss:$16 sps:$4 sm:$0xff]   ;;  %v10181_v19 = vld [vmem:[#allocation10 + $0x1c8] ss:$16 sps:$4 sm:$0xff]   ;;  %v10182_v20 = vld [vmem:[#allocation10 + $0x1e4] ss:$16 sps:$4 sm:$0xff]  }
  0xd2   : > { %3217 = vmatprep.mubr.bf16.mxu0 %v8432_v3  ;;  %3989 = vmatprep.mubr.bf16.mxu1 %v8432_v3  ;;  %v10184_v21 = vld [vmem:[#allocation10 + $0x1ec] ss:$16 sps:$4 sm:$0xff]   ;;  %vm11697_vm8 = vmpackc.low %vm14699_vm6, %vm14699_vm6  ;;  %v643_v23 = vld [vmem:[%s11630_s29 + $0x40] sm:$0xff]  ;;  %15099 = vst [vmem:[#allocation28_spill] sm:$0xff] %v11711_v26  ;;  %v544_v30 = vadd.s32 48, %v11647_v40  ;;  %vm14704_vm10 = vcmp.lt.s32.totalorder %v11711_v26, 300 }
  0xd3   : > { %v647_v24 = vld [vmem:[%s11630_s29 + $0x60] sm:$0xff]  ;;  %vm11706_vm9 = vmpackc.low %vm14696_vm7, %vm14696_vm7  ;;  %15100 = vst [vmem:[#allocation29_spill] sm:$0xff] %v11714_v27  ;;  %v10187_v29 = vld [vmem:[#allocation10 + $0x1e8] ss:$16 sps:$4 sm:$0xff]   ;;  %vm14694_vm11 = vcmp.lt.s32.totalorder %v11714_v27, 300  ;;  %v561_v35 = vadd.s32 184, %v11647_v40 }
  0xd4   : > { %3198 = vmatpush1.bf16.msra.mxu0 %v10132_v31  ;;  %3970 = vmatpush1.bf16.msra.mxu1 %v10133_v32  ;;  %v10186_v28 = vld [vmem:[#allocation10 + $0x1e0] ss:$16 sps:$4 sm:$0xff]   ;;  %v10190_v31 = vld [vmem:[#allocation10 + $0x204] ss:$16 sps:$4 sm:$0xff]   ;;  %v867_v32 = vsel %vm11697_vm8, %v643_v23, 0  ;;  %vm11731_vm12 = vmpackc.low %vm14704_vm10, %vm14704_vm10  ;;  %s15402_s26 = sld [smem:[#allocation193_spill]] }
  0xd5   : > { %3199 = vmatprep.subr.bf16.mxu0 %v10134_v33  ;;  %3971 = vmatprep.subr.bf16.mxu1 %v10136_v34  ;;  %v871_v33 = vsel %vm11706_vm9, %v647_v24, 0  ;;  %v8431_v34 = vcombine.low %v859_v63, %v863_v2  ;;  %vm11739_vm13 = vmpackc.low %vm14694_vm11, %vm14694_vm11  ;;  %v10220_v58 = vld [vmem:[#allocation10 + $0x22c] ss:$16 sps:$4 sm:$0xff]   ;;  %v15107_v2 = vmov 0  ;;  %v10218_v5 = vld [vmem:[#allocation10 + $0x228] ss:$16 sps:$4 sm:$0xff]  }
  0xd6   : > { %v15105_v45 = vsel %vm11739_vm13, 4294967295, %v15104_v45  ;;  %v8439_v59 = vcombine.low %v867_v32, %v871_v33  ;;  %v10202_v16 = vld [vmem:[#allocation10 + $0x284] ss:$16 sps:$4 sm:$0xff]   ;;  %v10476_v62 = vld [vmem:[#allocation13] ss:$8 sps:$4 sm:$0xff]   ;;  %p9008_p11 = scmp.ne.s32.totalorder %s11454_s8, 1 }
  0xd7   : > { %s15739_s4 = sld [smem:[#allocation195_spill]] (!%p9008_p11)  ;;  %s15744_s18 = sld [smem:[#allocation194_spill]] (!%p9008_p11) }
  0xd8   : > { %3200 = vmatpush1.bf16.msra.mxu0 %v10138_v36  ;;  %3972 = vmatpush1.bf16.msra.mxu1 %v10139_v37  ;;  %v545_v36 = vadd.s32 56, %v11647_v40  ;;  %v10188_v37 = vld [vmem:[#allocation10 + $0x200] ss:$16 sps:$4 sm:$0xff]  }
  0xd9   : > { %3201 = vmatprep.subr.bf16.mxu0 %v10140_v38  ;;  %3973 = vmatprep.subr.bf16.mxu1 %v10142_v39  ;;  %v8440_v38 = vcombine.high %v867_v32, %v871_v33  ;;  %v10193_v39 = vld [vmem:[#allocation10 + $0x224] ss:$16 sps:$4 sm:$0xff]   ;;  %v10235_v33 = vld [vmem:[#allocation10 + $0x28c] ss:$16 sps:$4 sm:$0xff]  }
  0xda   : > { %v10205_v32 = vld [vmem:[#allocation10 + $0x2a4] ss:$16 sps:$4 sm:$0xff]  }
  0xdc   : > { %3202 = vmatpush1.bf16.msra.mxu0 %v10144_v41  ;;  %3974 = vmatpush1.bf16.msra.mxu1 %v10145_v42  ;;  %v651_v41 = vld [vmem:[%s11630_s29 + $0x80] sm:$0xff]  ;;  %v11726_v42 = vadd.s32 %v11651_v46, %v544_v30 }
  0xdd   : > { %3203 = vmatprep.subr.bf16.mxu0 %v10146_v43  ;;  %3975 = vmatprep.subr.bf16.mxu1 %v10148_v44  ;;  %v655_v44 = vld [vmem:[%s11630_s29 + $0xa0] sm:$0xff] }
  0xde   : > { %15101 = vst [vmem:[#allocation30_spill] sm:$0xff] %v11726_v42  ;;  %vm14693_vm14 = vcmp.lt.s32.totalorder %v11726_v42, 300  ;;  %v10200_v30 = vld [vmem:[#allocation10 + $0x280] ss:$16 sps:$4 sm:$0xff]  }
  0xdf   : > { %vm11759_vm0 = vmpackc.low %vm14693_vm14, %vm14693_vm14  ;;  %v10494_v43 = vld [vmem:[#allocation12 + $0x20] ss:$8 sps:$4 sm:$0xff]  }
  0xe0   : > { %3204 = vmatpush1.bf16.msra.mxu0 %v10150_v47  ;;  %3976 = vmatpush1.bf16.msra.mxu1 %v10151_v48  ;;  %v11744_v47 = vadd.s32 %v11651_v46, %v545_v36  ;;  %v546_v48 = vadd.s32 64, %v11647_v40  ;;  %v15108_v2 = vsel %vm11759_vm0, 4294967295, %v15107_v2 }
  0xe1   : > { %3205 = vmatprep.subr.bf16.mxu0 %v10152_v49  ;;  %3977 = vmatprep.subr.bf16.mxu1 %v10154_v51  ;;  %v10215_v49 = vld [vmem:[#allocation10 + $0x208] ss:$16 sps:$4 sm:$0xff]   ;;  %v10217_v51 = vld [vmem:[#allocation10 + $0x20c] ss:$16 sps:$4 sm:$0xff]  }
  0xe2   : > { %15106 = vst [vmem:[#allocation31_spill] sm:$0xff] %v11744_v47  ;;  %vm14695_vm15 = vcmp.lt.s32.totalorder %v11744_v47, 300  ;;  %v11764_v3 = vadd.s32 %v11651_v46, %v546_v48  ;;  %v10233_v48 = vld [vmem:[#allocation10 + $0x288] ss:$16 sps:$4 sm:$0xff]  }
  0xe3   : > { %vm11772_vm1 = vmpackc.low %vm14695_vm15, %vm14695_vm15 }
  0xe4   : > { %3206 = vmatpush1.bf16.msra.mxu0 %v10156_v53  ;;  %3978 = vmatpush1.bf16.msra.mxu1 %v10157_v54  ;;  %v10191_v53 = vld [vmem:[#allocation10 + $0x220] ss:$16 sps:$4 sm:$0xff]   ;;  %v547_v54 = vadd.s32 72, %v11647_v40  ;;  %15109 = vst [vmem:[#allocation32_spill] sm:$0xff] %v11764_v3  ;;  %vm14697_vm14 = vcmp.lt.s32.totalorder %v11764_v3, 300 }
  0xe5   : > { %3207 = vmatprep.subr.bf16.mxu0 %v10158_v55  ;;  %3979 = vmatprep.subr.bf16.mxu1 %v10160_v56  ;;  %v875_v55 = vsel %vm11731_vm12, %v651_v41, 0  ;;  %v879_v56 = vsel %vm11739_vm13, %v655_v44, 0  ;;  %vm11787_vm15 = vmpackc.low %vm14697_vm14, %vm14697_vm14  ;;  %v10203_v41 = vld [vmem:[#allocation10 + $0x2a0] ss:$16 sps:$4 sm:$0xff]   ;;  %v10208_v44 = vld [vmem:[#allocation10 + $0x2c4] ss:$16 sps:$4 sm:$0xff]  }
  0xe6   : > { %v8448_v63 = vcombine.high %v875_v55, %v879_v56  ;;  %v11767_v4 = vadd.s32 %v11651_v46, %v547_v54  ;;  %v8447_v18 = vcombine.low %v875_v55, %v879_v56  ;;  %v675_v55 = vld [vmem:[%s11630_s29 + $0x140] sm:$0xff] }
  0xe7   : > { %v679_v56 = vld [vmem:[%s11630_s29 + $0x160] sm:$0xff] }
  0xe8   : > { %3208 = vmatpush1.bf16.msra.mxu0 %v10162_v57  ;;  %3980 = vmatpush1.bf16.msra.mxu1 %v10163_v61  ;;  %v10196_v57 = vld [vmem:[#allocation10 + $0x244] ss:$16 sps:$4 sm:$0xff]   ;;  %v10194_v61 = vld [vmem:[#allocation10 + $0x240] ss:$16 sps:$4 sm:$0xff]   ;;  %15110 = vst [vmem:[#allocation33_spill] sm:$0xff] %v11767_v4  ;;  %vm14698_vm11 = vcmp.lt.s32.totalorder %v11767_v4, 300 }
  0xe9   : > { %3209 = vmatprep.subr.bf16.mxu0 %v10164_v0  ;;  %3981 = vmatprep.subr.bf16.mxu1 %v10166_v1  ;;  %v659_v0 = vld [vmem:[%s11630_s29 + $0xc0] sm:$0xff]  ;;  %vm11799_vm7 = vmpackc.low %vm14698_vm11, %vm14698_vm11  ;;  %v10329_v4 = vld [vmem:[#allocation10 + $0x488] ss:$16 sps:$4 sm:$0xff]  }
  0xea   : > { %v663_v1 = vld [vmem:[%s11630_s29 + $0xe0] sm:$0xff] }
  0xec   : > { %3210 = vmatpush1.bf16.msra.mxu0 %v10168_v6  ;;  %3982 = vmatpush1.bf16.msra.mxu1 %v10169_v7  ;;  %v15111_v6 = vmov 0  ;;  %v10199_v7 = vld [vmem:[#allocation10 + $0x264] ss:$16 sps:$4 sm:$0xff]  }
  0xed   : > { %3211 = vmatprep.subr.bf16.mxu0 %v10170_v8  ;;  %3983 = vmatprep.subr.bf16.mxu1 %v10172_v9  ;;  %v15112_v6 = vsel %vm11772_vm1, 4294967295, %v15111_v6  ;;  %v10226_v8 = vld [vmem:[#allocation10 + $0x24c] ss:$16 sps:$4 sm:$0xff]   ;;  %v548_v9 = vadd.s32 80, %v11647_v40 }
  0xef   : > { %v11793_v23 = vadd.s32 %v11651_v46, %v548_v9 }
  0xf0   : > { %3212 = vmatpush1.bf16.msra.mxu0 %v10174_v12  ;;  %3984 = vmatpush1.bf16.msra.mxu1 %v10175_v13  ;;  %v10197_v12 = vld [vmem:[#allocation10 + $0x260] ss:$16 sps:$4 sm:$0xff]   ;;  %v883_v13 = vsel %vm11759_vm0, %v659_v0, 0  ;;  %v10211_v0 = vld [vmem:[#allocation10 + $0x2e4] ss:$16 sps:$4 sm:$0xff]  }
  0xf1   : > { %3213 = vmatprep.subr.bf16.mxu0 %v10176_v14  ;;  %3985 = vmatprep.subr.bf16.mxu1 %v10178_v15  ;;  %v887_v14 = vsel %vm11772_vm1, %v663_v1, 0  ;;  %v10224_v15 = vld [vmem:[#allocation10 + $0x248] ss:$16 sps:$4 sm:$0xff]   ;;  %15115 = vst [vmem:[#allocation34_spill] sm:$0xff] %v11793_v23  ;;  %vm14700_vm14 = vcmp.lt.s32.totalorder %v11793_v23, 300 }
  0xf2   : > { %v8456_v24 = vcombine.high %v883_v13, %v887_v14  ;;  %vm11817_vm6 = vmpackc.low %vm14700_vm14, %vm14700_vm14  ;;  %v10244_v1 = vld [vmem:[#allocation10 + $0x2cc] ss:$16 sps:$4 sm:$0xff]   ;;  %v10320_v23 = vld [vmem:[#allocation10 + $0x448] ss:$16 sps:$4 sm:$0xff]  }
  0xf4   : > { %3214 = vmatpush1.bf16.msra.mxu0 %v10180_v17  ;;  %3986 = vmatpush1.bf16.msra.mxu1 %v10181_v19  ;;  %v10229_v17 = vld [vmem:[#allocation10 + $0x26c] ss:$16 sps:$4 sm:$0xff]   ;;  %v667_v19 = vld [vmem:[%s11630_s29 + $0x100] sm:$0xff] }
  0xf5   : > { %3215 = vmatprep.subr.bf16.mxu0 %v10182_v20  ;;  %3987 = vmatprep.subr.bf16.mxu1 %v10184_v21  ;;  %v15113_v20 = vmov 0  ;;  %v549_v21 = vadd.s32 88, %v11647_v40  ;;  %v891_v36 = vsel %vm11787_vm15, %v667_v19, 0 }
  0xf6   : > { %v15114_v20 = vsel %vm11787_vm15, 4294967295, %v15113_v20 }
  0xf8   : > { %3216 = vmatpush1.bf16.msra.mxu0 %v10186_v28  ;;  %3988 = vmatpush1.bf16.msra.mxu1 %v10187_v29  ;;  %v671_v28 = vld [vmem:[%s11630_s29 + $0x120] sm:$0xff]  ;;  %v15116_v29 = vmov 0 }
  0xf9   : > { %3378 = vmatprep.subr.bf16.mxu0 %v10190_v31  ;;  %4150 = vmatprep.subr.bf16.mxu1 %v10217_v51  ;;  %v15117_v29 = vsel %vm11799_vm7, 4294967295, %v15116_v29  ;;  %v10227_v31 = vld [vmem:[#allocation10 + $0x268] ss:$16 sps:$4 sm:$0xff]   ;;  %v8455_v51 = vcombine.low %v883_v13, %v887_v14  ;;  %v10214_v13 = vld [vmem:[#allocation10 + $0x304] ss:$16 sps:$4 sm:$0xff]  }
  0xfa   : > { %v10247_v14 = vld [vmem:[#allocation10 + $0x2ec] ss:$16 sps:$4 sm:$0xff]  }
  0xfb   : > { %3218 = vmatmul.mubr.bf16.vlgmr.msra.gmra.mrb[0].mxu0 %v8431_v34  ;;  %3990 = vmatmul.mubr.bf16.vlgmr.msra.gmra.mrb[0].mxu1 %v8431_v34  ;;  %v11804_v34 = vadd.s32 %v11651_v46, %v549_v21  ;;  %v687_v21 = vld [vmem:[%s11630_s29 + $0x1a0] sm:$0xff] }
  0xfc   : > { %3379 = vmatpush1.bf16.msra.mxu0 %v10188_v37  ;;  %3227 = vmatprep.mubr.bf16.mxu0 %v8440_v38  ;;  %v895_v37 = vsel %vm11799_vm7, %v671_v28, 0 }
  0xfd   : > { %3999 = vmatprep.mubr.bf16.mxu1 %v8440_v38  ;;  %3380 = vmatprep.subr.bf16.mxu0 %v10193_v39  ;;  %15118 = vst [vmem:[#allocation35_spill] sm:$0xff] %v11804_v34  ;;  %v550_v38 = vadd.s32 96, %v11647_v40  ;;  %v551_v39 = vadd.s32 104, %v11647_v40  ;;  %vm14703_vm11 = vcmp.lt.s32.totalorder %v11804_v34, 300  ;;  %v8464_v54 = vcombine.high %v891_v36, %v895_v37  ;;  %v10295_v34 = vld [vmem:[#allocation10 + $0x464] ss:$16 sps:$4 sm:$0xff]  }
  0xfe   : > { %4151 = vmatpush1.bf16.msra.mxu1 %v10215_v49  ;;  %v10238_v49 = vld [vmem:[#allocation10 + $0x2ac] ss:$16 sps:$4 sm:$0xff]   ;;  %vm11832_vm14 = vmpackc.low %vm14703_vm11, %vm14703_vm11 }
  0xff   : > { %4152 = vmatprep.subr.bf16.mxu1 %v10220_v58  ;;  %v11827_v58 = vadd.s32 %v11651_v46, %v551_v39  ;;  %v903_v9 = vsel %vm11832_vm14, %v679_v56, 0  ;;  %v554_v39 = vadd.s32 128, %v11647_v40 }
 0x100   : > { %3381 = vmatpush1.bf16.msra.mxu0 %v10191_v53  ;;  %v15119_v53 = vmov 0 }
 0x101   : > { %3382 = vmatprep.subr.bf16.mxu0 %v10196_v57  ;;  %v15120_v53 = vsel %vm11817_vm6, 4294967295, %v15119_v53  ;;  %v11824_v57 = vadd.s32 %v11651_v46, %v550_v38  ;;  %15122 = vst [vmem:[#allocation37_spill] sm:$0xff] %v11827_v58  ;;  %vm14705_vm2 = vcmp.lt.s32.totalorder %v11827_v58, 300 }
 0x102   : > { %4153 = vmatpush1.bf16.msra.mxu1 %v10218_v5  ;;  %v552_v5 = vadd.s32 112, %v11647_v40  ;;  %vm11856_vm10 = vmpackc.low %vm14705_vm2, %vm14705_vm2 }
 0x103   : > { %3228 = vmatmul.mubr.bf16.gmra.mrb[4].mxu0 %v8439_v59  ;;  %4000 = vmatmul.mubr.bf16.gmra.mrb[4].mxu1 %v8439_v59  ;;  %15121 = vst [vmem:[#allocation36_spill] sm:$0xff] %v11824_v57  ;;  %v10206_v59 = vld [vmem:[#allocation10 + $0x2c0] ss:$16 sps:$4 sm:$0xff]   ;;  %vm14706_vm3 = vcmp.lt.s32.totalorder %v11824_v57, 300  ;;  %v911_v38 = vsel %vm11856_vm10, %v687_v21, 0  ;;  %v664_v57 = vld [vmem:[%s11630_s29 + $0xe8] sm:$0xff] }
 0x104   : > { %3237 = vmatprep.mubr.bf16.mxu0 %v8448_v63  ;;  %4009 = vmatprep.mubr.bf16.mxu1 %v8448_v63  ;;  %v15123_v63 = vmov 0  ;;  %vm11847_vm11 = vmpackc.low %vm14706_vm3, %vm14706_vm3  ;;  %v11861_v28 = vadd.s32 %v11651_v46, %v552_v5  ;;  %v10254_v5 = vld [vmem:[#allocation10 + $0x328] ss:$16 sps:$4 sm:$0xff]   ;;  %v10250_v21 = vld [vmem:[#allocation10 + $0x384] ss:$16 sps:$4 sm:$0xff]  }
 0x105   : > { %3383 = vmatpush1.bf16.msra.mxu0 %v10194_v61  ;;  %4154 = vmatprep.subr.bf16.mxu1 %v10226_v8  ;;  %v10236_v61 = vld [vmem:[#allocation10 + $0x2a8] ss:$16 sps:$4 sm:$0xff]   ;;  %v15124_v63 = vsel %vm11832_vm14, 4294967295, %v15123_v63  ;;  %v899_v8 = vsel %vm11817_vm6, %v675_v55, 0  ;;  %v15131_v55 = vmov 0 }
 0x106   : > { %3384 = vmatprep.subr.bf16.mxu0 %v10199_v7  ;;  %4155 = vmatpush1.bf16.msra.mxu1 %v10224_v15  ;;  %v10209_v7 = vld [vmem:[#allocation10 + $0x2e0] ss:$16 sps:$4 sm:$0xff]   ;;  %v8463_v15 = vcombine.low %v891_v36, %v895_v37  ;;  %v8472_v19 = vcombine.high %v899_v8, %v903_v9  ;;  %15129 = vst [vmem:[#allocation38_spill] sm:$0xff] %v11861_v28  ;;  %vm14711_vm2 = vcmp.lt.s32.totalorder %v11861_v28, 300  ;;  %v10316_v28 = vld [vmem:[#allocation10 + $0x42c] ss:$16 sps:$4 sm:$0xff]  }
 0x107   : > { %4156 = vmatprep.subr.bf16.mxu1 %v10229_v17  ;;  %v15125_v17 = vmov 0 }
 0x108   : > { %v15126_v17 = vsel %vm11847_vm11, 4294967295, %v15125_v17 }
 0x109   : > { %3385 = vmatpush1.bf16.msra.mxu0 %v10197_v12  ;;  %v10242_v12 = vld [vmem:[#allocation10 + $0x2c8] ss:$16 sps:$4 sm:$0xff]  }
 0x10a   : > { %3386 = vmatprep.subr.bf16.mxu0 %v10202_v16  ;;  %4157 = vmatpush1.bf16.msra.mxu1 %v10227_v31  ;;  %v683_v16 = vld [vmem:[%s11630_s29 + $0x180] sm:$0xff]  ;;  %v10245_v31 = vld [vmem:[#allocation10 + $0x2e8] ss:$16 sps:$4 sm:$0xff]  }
 0x10b   : > { %3238 = vmatmul.mubr.bf16.gmra.mrb[8].mxu0 %v8447_v18  ;;  %4010 = vmatmul.mubr.bf16.gmra.mrb[8].mxu1 %v8447_v18  ;;  %v553_v18 = vadd.s32 120, %v11647_v40  ;;  %v907_v37 = vsel %vm11847_vm11, %v683_v16, 0 }
 0x10c   : > { %3247 = vmatprep.mubr.bf16.mxu0 %v8456_v24  ;;  %4019 = vmatprep.mubr.bf16.mxu1 %v8456_v24  ;;  %v15127_v24 = vmov 0  ;;  %v8480_v56 = vcombine.high %v907_v37, %v911_v38 }
 0x10d   : > { %3387 = vmatpush1.bf16.msra.mxu0 %v10200_v30  ;;  %4158 = vmatprep.subr.bf16.mxu1 %v10235_v33  ;;  %v15128_v24 = vsel %vm11856_vm10, 4294967295, %v15127_v24  ;;  %v10212_v30 = vld [vmem:[#allocation10 + $0x300] ss:$16 sps:$4 sm:$0xff]   ;;  %v10253_v33 = vld [vmem:[#allocation10 + $0x30c] ss:$16 sps:$4 sm:$0xff]   ;;  %v11864_v36 = vadd.s32 %v11651_v46, %v553_v18  ;;  %vm11877_vm10 = vmpackc.low %vm14711_vm2, %vm14711_vm2 }
 0x10e   : > { %3388 = vmatprep.subr.bf16.mxu0 %v10205_v32  ;;  %4159 = vmatpush1.bf16.msra.mxu1 %v10233_v48  ;;  %v10223_v32 = vld [vmem:[#allocation10 + $0x324] ss:$16 sps:$4 sm:$0xff]   ;;  %v10251_v48 = vld [vmem:[#allocation10 + $0x308] ss:$16 sps:$4 sm:$0xff]   ;;  %v15132_v55 = vsel %vm11877_vm10, 4294967295, %v15131_v55 }
 0x10f   : > { %4160 = vmatprep.subr.bf16.mxu1 %v10238_v49  ;;  %15130 = vst [vmem:[#allocation39_spill] sm:$0xff] %v11864_v36  ;;  %v555_v49 = vadd.s32 136, %v11647_v40  ;;  %vm14712_vm3 = vcmp.lt.s32.totalorder %v11864_v36, 300  ;;  %v656_v36 = vld [vmem:[%s11630_s29 + $0xa8] sm:$0xff] }
 0x110   : > { %vm11889_vm11 = vmpackc.low %vm14712_vm3, %vm14712_vm3 }
 0x111   : > { %3389 = vmatpush1.bf16.msra.mxu0 %v10203_v41  ;;  %v10221_v41 = vld [vmem:[#allocation10 + $0x320] ss:$16 sps:$4 sm:$0xff]  }
 0x112   : > { %3390 = vmatprep.subr.bf16.mxu0 %v10208_v44  ;;  %4161 = vmatpush1.bf16.msra.mxu1 %v10236_v61  ;;  %v10232_v44 = vld [vmem:[#allocation10 + $0x344] ss:$16 sps:$4 sm:$0xff]  }
 0x113   : > { %3248 = vmatmul.mubr.bf16.gmra.mrb[12].mxu0 %v8455_v51  ;;  %4020 = vmatmul.mubr.bf16.gmra.mrb[12].mxu1 %v8455_v51  ;;  %v10256_v51 = vld [vmem:[#allocation10 + $0x32c] ss:$16 sps:$4 sm:$0xff]   ;;  %v695_v61 = vld [vmem:[%s11630_s29 + $0x1e0] sm:$0xff] }
 0x114   : > { %3257 = vmatprep.mubr.bf16.mxu0 %v8464_v54  ;;  %4029 = vmatprep.mubr.bf16.mxu1 %v8464_v54  ;;  %v8471_v54 = vcombine.low %v899_v8, %v903_v9  ;;  %v11894_v8 = vadd.s32 %v11651_v46, %v555_v49  ;;  %v10241_v9 = vld [vmem:[#allocation10 + $0x364] ss:$16 sps:$4 sm:$0xff]   ;;  %v919_v18 = vsel %vm11889_vm11, %v695_v61, 0  ;;  %v15138_v49 = vmov 0 }
 0x115   : > { %3391 = vmatpush1.bf16.msra.mxu0 %v10206_v59  ;;  %4162 = vmatprep.subr.bf16.mxu1 %v10244_v1  ;;  %v691_v59 = vld [vmem:[%s11630_s29 + $0x1c0] sm:$0xff] }
 0x116   : > { %3392 = vmatprep.subr.bf16.mxu0 %v10211_v0  ;;  %4163 = vmatpush1.bf16.msra.mxu1 %v10242_v12  ;;  %v11884_v0 = vadd.s32 %v11651_v46, %v554_v39  ;;  %v10230_v1 = vld [vmem:[#allocation10 + $0x340] ss:$16 sps:$4 sm:$0xff]   ;;  %15136 = vst [vmem:[#allocation41_spill] sm:$0xff] %v11894_v8  ;;  %v10262_v12 = vld [vmem:[#allocation10 + $0x34c] ss:$16 sps:$4 sm:$0xff]   ;;  %v915_v16 = vsel %vm11877_vm10, %v691_v59, 0 }
 0x117   : > { %4164 = vmatprep.subr.bf16.mxu1 %v10247_v14  ;;  %v557_v14 = vadd.s32 152, %v11647_v40  ;;  %vm14718_vm3 = vcmp.lt.s32.totalorder %v11894_v8, 300  ;;  %v559_v39 = vadd.s32 168, %v11647_v40  ;;  %v10271_v59 = vld [vmem:[#allocation10 + $0x38c] ss:$16 sps:$4 sm:$0xff]  }
 0x118   : > { %15133 = vst [vmem:[#allocation40_spill] sm:$0xff] %v11884_v0  ;;  %vm14717_vm2 = vcmp.lt.s32.totalorder %v11884_v0, 300  ;;  %vm11924_vm10 = vmpackc.low %vm14718_vm3, %vm14718_vm3  ;;  %v644_v8 = vld [vmem:[%s11630_s29 + $0x48] sm:$0xff] }
 0x119   : > { %3393 = vmatpush1.bf16.msra.mxu0 %v10209_v7  ;;  %v15134_v7 = vmov 0 }
 0x11a   : > { %3394 = vmatprep.subr.bf16.mxu0 %v10214_v13  ;;  %4165 = vmatpush1.bf16.msra.mxu1 %v10245_v31  ;;  %v15135_v7 = vsel %vm11889_vm11, 4294967295, %v15134_v7  ;;  %v556_v13 = vadd.s32 144, %v11647_v40  ;;  %v8479_v31 = vcombine.low %v907_v37, %v911_v38  ;;  %vm11914_vm11 = vmpackc.low %vm14717_vm2, %vm14717_vm2  ;;  %v10248_v37 = vld [vmem:[#allocation10 + $0x380] ss:$16 sps:$4 sm:$0xff]   ;;  %v10263_v38 = vld [vmem:[#allocation10 + $0x368] ss:$16 sps:$4 sm:$0xff]  }
 0x11b   : > { %3258 = vmatmul.mubr.bf16.gmra.mrb[16].mxu0 %v8463_v15  ;;  %4030 = vmatmul.mubr.bf16.gmra.mrb[16].mxu1 %v8463_v15  ;;  %v10239_v15 = vld [vmem:[#allocation10 + $0x360] ss:$16 sps:$4 sm:$0xff]   ;;  %v15139_v49 = vsel %vm11914_vm11, 4294967295, %v15138_v49 }
 0x11c   : > { %3267 = vmatprep.mubr.bf16.mxu0 %v8472_v19  ;;  %4039 = vmatprep.mubr.bf16.mxu1 %v8472_v19  ;;  %v10260_v19 = vld [vmem:[#allocation10 + $0x348] ss:$16 sps:$4 sm:$0xff]  }
 0x11d   : > { %3395 = vmatpush1.bf16.msra.mxu0 %v10212_v30  ;;  %4166 = vmatprep.subr.bf16.mxu1 %v10253_v33  ;;  %v10265_v30 = vld [vmem:[#allocation10 + $0x36c] ss:$16 sps:$4 sm:$0xff]   ;;  %v558_v33 = vadd.s32 160, %v11647_v40 }
 0x11e   : > { %3396 = vmatprep.subr.bf16.mxu0 %v10223_v32  ;;  %4167 = vmatpush1.bf16.msra.mxu1 %v10251_v48  ;;  %v11905_v32 = vadd.s32 %v11651_v46, %v556_v13  ;;  %v703_v48 = vld [vmem:[%s11630_s29 + $0x220] sm:$0xff]  ;;  %v10269_v13 = vld [vmem:[#allocation10 + $0x388] ss:$16 sps:$4 sm:$0xff]  }
 0x11f   : > { %4168 = vmatprep.subr.bf16.mxu1 %v10256_v51  ;;  %v11919_v51 = vadd.s32 %v11651_v46, %v557_v14  ;;  %v11930_v61 = vadd.s32 %v11651_v46, %v558_v33  ;;  %v15145_v14 = vmov 0  ;;  %v707_v33 = vld [vmem:[%s11630_s29 + $0x240] sm:$0xff] }
 0x120   : > { %15137 = vst [vmem:[#allocation42_spill] sm:$0xff] %v11905_v32  ;;  %vm14728_vm2 = vcmp.lt.s32.totalorder %v11905_v32, 300  ;;  %v759_v32 = vld [vmem:[%s11630_s29 + $0x3e0] sm:$0xff] }
 0x121   : > { %3397 = vmatpush1.bf16.msra.mxu0 %v10221_v41  ;;  %v8488_v41 = vcombine.high %v915_v16, %v919_v18  ;;  %15140 = vst [vmem:[#allocation43_spill] sm:$0xff] %v11919_v51  ;;  %15143 = vst [vmem:[#allocation44_spill] sm:$0xff] %v11930_v61  ;;  %vm14727_vm3 = vcmp.lt.s32.totalorder %v11919_v51, 300  ;;  %v10281_v51 = vld [vmem:[#allocation10 + $0x3e8] ss:$16 sps:$4 sm:$0xff]  }
 0x122   : > { %3398 = vmatprep.subr.bf16.mxu0 %v10232_v44  ;;  %4169 = vmatpush1.bf16.msra.mxu1 %v10254_v5  ;;  %v699_v44 = vld [vmem:[%s11630_s29 + $0x200] sm:$0xff]  ;;  %vm11943_vm14 = vmpackc.low %vm14728_vm2, %vm14728_vm2 }
 0x123   : > { %3268 = vmatmul.mubr.bf16.gmra.mrb[20].mxu0 %v8471_v54  ;;  %4040 = vmatmul.mubr.bf16.gmra.mrb[20].mxu1 %v8471_v54  ;;  %v15141_v54 = vmov 0  ;;  %v10257_v5 = vld [vmem:[#allocation10 + $0x3a0] ss:$16 sps:$4 sm:$0xff]   ;;  %v15146_v14 = vsel %vm11943_vm14, 4294967295, %v15145_v14 }
 0x124   : > { %3277 = vmatprep.mubr.bf16.mxu0 %v8480_v56  ;;  %4049 = vmatprep.mubr.bf16.mxu1 %v8480_v56  ;;  %v15142_v54 = vsel %vm11924_vm10, 4294967295, %v15141_v54  ;;  %v10259_v56 = vld [vmem:[#allocation10 + $0x3a4] ss:$16 sps:$4 sm:$0xff]  }
 0x125   : > { %3399 = vmatpush1.bf16.msra.mxu0 %v10230_v1  ;;  %4170 = vmatprep.subr.bf16.mxu1 %v10262_v12  ;;  %v11933_v1 = vadd.s32 %v11651_v46, %v559_v39  ;;  %v927_v12 = vsel %vm11924_vm10, %v703_v48, 0  ;;  %vm14734_vm10 = vcmp.lt.s32.totalorder %v11930_v61, 300  ;;  %v711_v39 = vld [vmem:[%s11630_s29 + $0x260] sm:$0xff] }
 0x126   : > { %3400 = vmatprep.subr.bf16.mxu0 %v10241_v9  ;;  %4171 = vmatpush1.bf16.msra.mxu1 %v10260_v19  ;;  %v923_v9 = vsel %vm11914_vm11, %v699_v44, 0  ;;  %v10274_v19 = vld [vmem:[#allocation10 + $0x3ac] ss:$16 sps:$4 sm:$0xff]   ;;  %vm11950_vm11 = vmpackc.low %vm14727_vm3, %vm14727_vm3  ;;  %v10272_v44 = vld [vmem:[#allocation10 + $0x3a8] ss:$16 sps:$4 sm:$0xff]  }
 0x127   : > { %4172 = vmatprep.subr.bf16.mxu1 %v10265_v30  ;;  %15144 = vst [vmem:[#allocation45_spill] sm:$0xff] %v11933_v1  ;;  %v15147_v30 = vmov 0  ;;  %vm14733_vm6 = vcmp.lt.s32.totalorder %v11933_v1, 300  ;;  %v10277_v48 = vld [vmem:[#allocation10 + $0x3e4] ss:$16 sps:$4 sm:$0xff]   ;;  %vm11961_vm3 = vmpackc.low %vm14734_vm10, %vm14734_vm10 }
 0x128   : > { %v15148_v30 = vsel %vm11950_vm11, 4294967295, %v15147_v30  ;;  %vm11968_vm2 = vmpackc.low %vm14733_vm6, %vm14733_vm6  ;;  %v715_v61 = vld [vmem:[%s11630_s29 + $0x280] sm:$0xff] }
 0x129   : > { %3401 = vmatpush1.bf16.msra.mxu0 %v10239_v15  ;;  %v10268_v15 = vld [vmem:[#allocation10 + $0x3c4] ss:$16 sps:$4 sm:$0xff]  }
 0x12a   : > { %3402 = vmatprep.subr.bf16.mxu0 %v10250_v21  ;;  %4173 = vmatpush1.bf16.msra.mxu1 %v10263_v38  ;;  %v8487_v21 = vcombine.low %v915_v16, %v919_v18  ;;  %v10280_v16 = vld [vmem:[#allocation10 + $0x3cc] ss:$16 sps:$4 sm:$0xff]   ;;  %v15149_v18 = vmov 0  ;;  %v10275_v38 = vld [vmem:[#allocation10 + $0x3e0] ss:$16 sps:$4 sm:$0xff]  }
 0x12b   : > { %3278 = vmatmul.mubr.bf16.gmra.mrb[24].mxu0 %v8479_v31  ;;  %4050 = vmatmul.mubr.bf16.gmra.mrb[24].mxu1 %v8479_v31  ;;  %v8496_v31 = vcombine.high %v923_v9, %v927_v12  ;;  %v15150_v18 = vsel %vm11961_vm3, 4294967295, %v15149_v18 }
 0x12c   : > { %3287 = vmatprep.mubr.bf16.mxu0 %v8488_v41  ;;  %4059 = vmatprep.mubr.bf16.mxu1 %v8488_v41  ;;  %v10266_v41 = vld [vmem:[#allocation10 + $0x3c0] ss:$16 sps:$4 sm:$0xff]  }
 0x12d   : > { %3403 = vmatpush1.bf16.msra.mxu0 %v10248_v37  ;;  %4174 = vmatprep.subr.bf16.mxu1 %v10271_v59  ;;  %v15151_v37 = vmov 0  ;;  %v10283_v59 = vld [vmem:[#allocation10 + $0x3ec] ss:$16 sps:$4 sm:$0xff]  }
 0x12e   : > { %3404 = vmatprep.subr.bf16.mxu0 %v10259_v56  ;;  %4175 = vmatpush1.bf16.msra.mxu1 %v10269_v13  ;;  %v15152_v37 = vsel %vm11968_vm2, 4294967295, %v15151_v37  ;;  %v10278_v56 = vld [vmem:[#allocation10 + $0x3c8] ss:$16 sps:$4 sm:$0xff]   ;;  %v931_v13 = vsel %vm11943_vm14, %v707_v33, 0 }
 0x12f   : > { %4176 = vmatprep.subr.bf16.mxu1 %v10274_v19  ;;  %v560_v19 = vadd.s32 176, %v11647_v40 }
 0x131   : > { %3405 = vmatpush1.bf16.msra.mxu0 %v10257_v5  ;;  %v10286_v5 = vld [vmem:[#allocation10 + $0x404] ss:$16 sps:$4 sm:$0xff]   ;;  %v11981_v33 = vadd.s32 %v11651_v46, %v560_v19 }
 0x132   : > { %3406 = vmatprep.subr.bf16.mxu0 %v10268_v15  ;;  %v935_v15 = vsel %vm11950_vm11, %v711_v39, 0  ;;  %4177 = vmatpush1.bf16.msra.mxu1 %v10272_v44  ;;  %v10313_v39 = vld [vmem:[#allocation10 + $0x40c] ss:$16 sps:$4 sm:$0xff]   ;;  %v562_v44 = vadd.s32 192, %v11647_v40 }
 0x133   : > { %3288 = vmatmul.mubr.bf16.gmra.mrb[28].mxu0 %v8487_v21  ;;  %4060 = vmatmul.mubr.bf16.gmra.mrb[28].mxu1 %v8487_v21  ;;  %v8495_v21 = vcombine.low %v923_v9, %v927_v12  ;;  %v8504_v1 = vcombine.high %v931_v13, %v935_v15  ;;  %15153 = vst [vmem:[#allocation46_spill] sm:$0xff] %v11981_v33  ;;  %v939_v12 = vsel %vm11961_vm3, %v715_v61, 0  ;;  %vm14740_vm6 = vcmp.lt.s32.totalorder %v11981_v33, 300  ;;  %v751_v33 = vld [vmem:[%s11630_s29 + $0x3a0] sm:$0xff] }
 0x134   : > { %3297 = vmatprep.mubr.bf16.mxu0 %v8496_v31  ;;  %4069 = vmatprep.mubr.bf16.mxu1 %v8496_v31  ;;  %v719_v31 = vld [vmem:[%s11630_s29 + $0x2a0] sm:$0xff]  ;;  %v11984_v9 = vadd.s32 %v11651_v46, %v561_v35  ;;  %v563_v35 = vadd.s32 200, %v11647_v40  ;;  %vm11999_vm3 = vmpackc.low %vm14740_vm6, %vm14740_vm6  ;;  %v15155_v61 = vmov 0 }
 0x135   : > { %3407 = vmatpush1.bf16.msra.mxu0 %v10266_v41  ;;  %4178 = vmatprep.subr.bf16.mxu1 %v10280_v16  ;;  %v943_v41 = vsel %vm11968_vm2, %v719_v31, 0  ;;  %v15156_v61 = vsel %vm11999_vm3, 4294967295, %v15155_v61 }
 0x136   : > { %3408 = vmatprep.subr.bf16.mxu0 %v10277_v48  ;;  %4179 = vmatpush1.bf16.msra.mxu1 %v10278_v56  ;;  %15154 = vst [vmem:[#allocation47_spill] sm:$0xff] %v11984_v9  ;;  %v8503_v48 = vcombine.low %v931_v13, %v935_v15  ;;  %vm14739_vm10 = vcmp.lt.s32.totalorder %v11984_v9, 300  ;;  %v8512_v16 = vcombine.high %v939_v12, %v943_v41  ;;  %v564_v15 = vadd.s32 208, %v11647_v40 }
 0x137   : > { %4180 = vmatprep.subr.bf16.mxu1 %v10283_v59  ;;  %vm12006_vm2 = vmpackc.low %vm14739_vm10, %vm14739_vm10  ;;  %v12011_v56 = vadd.s32 %v11651_v46, %v562_v44  ;;  %v12014_v59 = vadd.s32 %v11651_v46, %v563_v35  ;;  %v8511_v19 = vcombine.low %v939_v12, %v943_v41  ;;  %v735_v44 = vld [vmem:[%s11630_s29 + $0x320] sm:$0xff]  ;;  %v15163_v12 = vmov 0 }
 0x138   : > { %v12041_v41 = vadd.s32 %v11651_v46, %v564_v15  ;;  %v567_v15 = vadd.s32 232, %v11647_v40 }
 0x139   : > { %3409 = vmatpush1.bf16.msra.mxu0 %v10275_v38  ;;  %v723_v38 = vld [vmem:[%s11630_s29 + $0x2c0] sm:$0xff]  ;;  %15159 = vst [vmem:[#allocation48_spill] sm:$0xff] %v12011_v56  ;;  %15160 = vst [vmem:[#allocation49_spill] sm:$0xff] %v12014_v59  ;;  %vm14745_vm10 = vcmp.lt.s32.totalorder %v12011_v56, 300  ;;  %vm14747_vm6 = vcmp.lt.s32.totalorder %v12014_v59, 300 }
 0x13a   : > { %3571 = vmatprep.subr.bf16.mxu0 %v10286_v5  ;;  %4181 = vmatpush1.bf16.msra.mxu1 %v10281_v51  ;;  %v15157_v51 = vmov 0  ;;  %v947_v5 = vsel %vm11999_vm3, %v723_v38, 0  ;;  %vm12029_vm11 = vmpackc.low %vm14745_vm10, %vm14745_vm10  ;;  %15165 = vst [vmem:[#allocation50_spill] sm:$0xff] %v12041_v41  ;;  %vm14757_vm10 = vcmp.lt.s32.totalorder %v12041_v41, 300  ;;  %v743_v59 = vld [vmem:[%s11630_s29 + $0x360] sm:$0xff]  ;;  %v568_v41 = vadd.s32 240, %v11647_v40 }
 0x13b   : > { %3298 = vmatmul.mubr.bf16.gmra.mrb[32].mxu0 %v8495_v21  ;;  %4070 = vmatmul.mubr.bf16.gmra.mrb[32].mxu1 %v8495_v21  ;;  %v15158_v51 = vsel %vm12006_vm2, 4294967295, %v15157_v51  ;;  %v565_v21 = vadd.s32 216, %v11647_v40  ;;  %vm12059_vm3 = vmpackc.low %vm14757_vm10, %vm14757_vm10 }
 0x13c   : > { %3307 = vmatprep.mubr.bf16.mxu0 %v8504_v1  ;;  %4079 = vmatprep.mubr.bf16.mxu1 %v8504_v1  ;;  %v727_v1 = vld [vmem:[%s11630_s29 + $0x2e0] sm:$0xff] }
 0x13d   : > { %4343 = vmatprep.subr.bf16.mxu1 %v10313_v39  ;;  %v951_v13 = vsel %vm12006_vm2, %v727_v1, 0  ;;  %v731_v39 = vld [vmem:[%s11630_s29 + $0x300] sm:$0xff]  ;;  %vm12036_vm2 = vmpackc.low %vm14747_vm6, %vm14747_vm6  ;;  %v12044_v35 = vadd.s32 %v11651_v46, %v565_v21  ;;  %v566_v1 = vadd.s32 224, %v11647_v40 }
 0x13e   : > { %v8520_v31 = vcombine.high %v947_v5, %v951_v13  ;;  %v15164_v12 = vsel %vm12036_vm2, 4294967295, %v15163_v12  ;;  %v959_v38 = vsel %vm12036_vm2, %v735_v44, 0  ;;  %v8519_v56 = vcombine.low %v947_v5, %v951_v13  ;;  %v739_v21 = vld [vmem:[%s11630_s29 + $0x340] sm:$0xff] }
 0x13f   : > { %15166 = vst [vmem:[#allocation51_spill] sm:$0xff] %v12044_v35  ;;  %vm14754_vm6 = vcmp.lt.s32.totalorder %v12044_v35, 300  ;;  %v15169_v5 = vmov 0  ;;  %v12071_v13 = vadd.s32 %v11651_v46, %v566_v1  ;;  %v963_v44 = vsel %vm12059_vm3, %v739_v21, 0 }
 0x140   : > { %vm12066_vm2 = vmpackc.low %vm14754_vm6, %vm14754_vm6 }
 0x141   : > { %v15170_v5 = vsel %vm12066_vm2, 4294967295, %v15169_v5  ;;  %15171 = vst [vmem:[#allocation52_spill] sm:$0xff] %v12071_v13  ;;  %v967_v35 = vsel %vm12066_vm2, %v743_v59, 0  ;;  %vm14764_vm6 = vcmp.lt.s32.totalorder %v12071_v13, 300  ;;  %v15175_v59 = vmov 0 }
 0x142   : > { %v8536_v1 = vcombine.high %v963_v44, %v967_v35 }
 0x143   : > { %3308 = vmatmul.mubr.bf16.gmra.mrb[36].mxu0 %v8503_v48  ;;  %4080 = vmatmul.mubr.bf16.gmra.mrb[36].mxu1 %v8503_v48  ;;  %v15161_v48 = vmov 0 }
 0x144   : > { %3317 = vmatprep.mubr.bf16.mxu0 %v8512_v16  ;;  %4089 = vmatprep.mubr.bf16.mxu1 %v8512_v16  ;;  %v15162_v48 = vsel %vm12029_vm11, 4294967295, %v15161_v48  ;;  %v955_v16 = vsel %vm12029_vm11, %v731_v39, 0  ;;  %v12074_v39 = vadd.s32 %v11651_v46, %v567_v15  ;;  %v747_v15 = vld [vmem:[%s11630_s29 + $0x380] sm:$0xff] }
 0x145   : > { %v8527_v9 = vcombine.low %v955_v16, %v959_v38 }
 0x146   : > { %15172 = vst [vmem:[#allocation53_spill] sm:$0xff] %v12074_v39  ;;  %vm14766_vm10 = vcmp.lt.s32.totalorder %v12074_v39, 300  ;;  %v8535_v39 = vcombine.low %v963_v44, %v967_v35 }
 0x147   : > { %vm12096_vm2 = vmpackc.low %vm14766_vm10, %vm14766_vm10 }
 0x148   : > { %v15176_v59 = vsel %vm12096_vm2, 4294967295, %v15175_v59  ;;  %v975_v13 = vsel %vm12096_vm2, %v751_v33, 0  ;;  %v12429_v33 = vsub.s32 0, %v11647_v40 }
 0x14a   : > { %15234 = vst [vmem:[#allocation57_spill] sm:$0xff] %v12429_v33 }
 0x14b   : > { %3318 = vmatmul.mubr.bf16.gmra.mrb[40].mxu0 %v8511_v19  ;;  %4090 = vmatmul.mubr.bf16.gmra.mrb[40].mxu1 %v8511_v19  ;;  %v8528_v19 = vcombine.high %v955_v16, %v959_v38  ;;  %v12101_v16 = vadd.s32 %v11651_v46, %v568_v41 }
 0x14c   : > { %3327 = vmatprep.mubr.bf16.mxu0 %v8520_v31  ;;  %4099 = vmatprep.mubr.bf16.mxu1 %v8520_v31  ;;  %v15167_v31 = vmov 0 }
 0x14d   : > { %v15168_v31 = vsel %vm12059_vm3, 4294967295, %v15167_v31  ;;  %vm12089_vm3 = vmpackc.low %vm14764_vm6, %vm14764_vm6  ;;  %15177 = vst [vmem:[#allocation54_spill] sm:$0xff] %v12101_v16  ;;  %vm14784_vm6 = vcmp.lt.s32.totalorder %v12101_v16, 300 }
 0x14e   : > { %v971_v21 = vsel %vm12089_vm3, %v747_v15, 0  ;;  %vm12117_vm11 = vmpackc.low %vm14784_vm6, %vm14784_vm6  ;;  %v636_v15 = vld [vmem:[%s11630_s29 + $0x8] sm:$0xff]  ;;  %vm15184_vm6 = vnez %v15124_v63 }
 0x14f   : > { %v8544_v41 = vcombine.high %v971_v21, %v975_v13 }
 0x153   : > { %3328 = vmatmul.mubr.bf16.gmra.mrb[44].mxu0 %v8519_v56  ;;  %4100 = vmatmul.mubr.bf16.gmra.mrb[44].mxu1 %v8519_v56  ;;  %v569_v56 = vadd.s32 248, %v11647_v40 }
 0x154   : > { %3337 = vmatprep.mubr.bf16.mxu0 %v8528_v19  ;;  %4109 = vmatprep.mubr.bf16.mxu1 %v8528_v19 }
 0x155   : > { %v12104_v38 = vadd.s32 %v11651_v46, %v569_v56  ;;  %v8543_v56 = vcombine.low %v971_v21, %v975_v13  ;;  %v868_v13 = vsel %vm11697_vm8, %v644_v8, 0  ;;  %v10314_v8 = vld [vmem:[#allocation10 + $0x428] ss:$16 sps:$4 sm:$0xff]  }
 0x156   : > { %v12426_v46 = vld [vmem:[%s14674_s2] sm:$0xf] }
 0x157   : > { %15178 = vst [vmem:[#allocation55_spill] sm:$0xff] %v12104_v38  ;;  %vm14783_vm10 = vcmp.lt.s32.totalorder %v12104_v38, 300  ;;  %v640_v38 = vld [vmem:[%s11630_s29 + $0x28] sm:$0xff] }
 0x158   : > { %vm12124_vm2 = vmpackc.low %vm14783_vm10, %vm14783_vm10  ;;  %vm15183_vm10 = vnez %v15120_v53 }
 0x159   : > { %v983_v44 = vsel %vm12124_vm2, %v759_v32, 0  ;;  %v648_v32 = vld [vmem:[%s11630_s29 + $0x68] sm:$0xff] }
 0x15a   : > { %v872_v21 = vsel %vm11706_vm9, %v648_v32, 0  ;;  %v10290_v32 = vld [vmem:[#allocation10 + $0x440] ss:$16 sps:$4 sm:$0xff]  }
 0x15b   : > { %3338 = vmatmul.mubr.bf16.gmra.mrb[48].mxu0 %v8527_v9  ;;  %4110 = vmatmul.mubr.bf16.gmra.mrb[48].mxu1 %v8527_v9  ;;  %v755_v9 = vld [vmem:[%s11630_s29 + $0x3c0] sm:$0xff]  ;;  %v8442_v0 = vcombine.high %v868_v13, %v872_v21 }
 0x15c   : > { %3347 = vmatprep.mubr.bf16.mxu0 %v8536_v1  ;;  %4119 = vmatprep.mubr.bf16.mxu1 %v8536_v1  ;;  %v979_v35 = vsel %vm12117_vm11, %v755_v9, 0 }
 0x15d   : > { %v8552_v1 = vcombine.high %v979_v35, %v983_v44  ;;  %v8551_v9 = vcombine.low %v979_v35, %v983_v44  ;;  %v10311_v35 = vld [vmem:[#allocation10 + $0x408] ss:$16 sps:$4 sm:$0xff]   ;;  %v10287_v44 = vld [vmem:[#allocation10 + $0x420] ss:$16 sps:$4 sm:$0xff]  }
 0x163   : > { %3348 = vmatmul.mubr.bf16.gmra.mrb[52].mxu0 %v8535_v39  ;;  %4120 = vmatmul.mubr.bf16.gmra.mrb[52].mxu1 %v8535_v39  ;;  %v860_v39 = vsel %vm11667_vm4, %v636_v15, 0  ;;  %v10289_v15 = vld [vmem:[#allocation10 + $0x424] ss:$16 sps:$4 sm:$0xff]  }
 0x164   : > { %3357 = vmatprep.mubr.bf16.mxu0 %v8544_v41  ;;  %4129 = vmatprep.mubr.bf16.mxu1 %v8544_v41  ;;  %v864_v41 = vsel %vm11674_vm5, %v640_v38, 0  ;;  %v652_v38 = vld [vmem:[%s11630_s29 + $0x88] sm:$0xff] }
 0x165   : > { %v8434_v16 = vcombine.high %v860_v39, %v864_v41 }
 0x16b   : > { %3358 = vmatmul.mubr.bf16.gmra.mrb[56].mxu0 %v8543_v56  ;;  %4130 = vmatmul.mubr.bf16.gmra.mrb[56].mxu1 %v8543_v56  ;;  %v10284_v56 = vld [vmem:[#allocation10 + $0x400] ss:$16 sps:$4 sm:$0xff]  }
 0x16c   : > { %3367 = vmatprep.mubr.bf16.mxu0 %v8552_v1  ;;  %4139 = vmatprep.mubr.bf16.mxu1 %v8552_v1  ;;  %v8433_v1 = vcombine.low %v860_v39, %v864_v41  ;;  %v876_v39 = vsel %vm11731_vm12, %v652_v38, 0  ;;  %v880_v41 = vsel %vm11739_vm13, %v656_v36, 0  ;;  %v10298_v36 = vld [vmem:[#allocation10 + $0x484] ss:$16 sps:$4 sm:$0xff]  }
 0x16d   : > { %v8450_v58 = vcombine.high %v876_v39, %v880_v41  ;;  %v8449_v38 = vcombine.low %v876_v39, %v880_v41 }
 0x173   : > { %3368 = vmatmul.mubr.bf16.gmra.mrb[60].mxu0 %v8551_v9  ;;  %4140 = vmatmul.mubr.bf16.gmra.mrb[60].mxu1 %v8551_v9  ;;  %v8441_v9 = vcombine.low %v868_v13, %v872_v21  ;;  %v10323_v13 = vld [vmem:[#allocation10 + $0x468] ss:$16 sps:$4 sm:$0xff]   ;;  %v888_v21 = vsel %vm11772_vm1, %v664_v57, 0 }
 0x174   : > { %3410 = vmatprep.mubr.bf16.mxu0 %v8434_v16  ;;  %4182 = vmatprep.mubr.bf16.mxu1 %v8434_v16  ;;  %v10292_v16 = vld [vmem:[#allocation10 + $0x444] ss:$16 sps:$4 sm:$0xff]  }
 0x17b   : > { %3411 = vmatmul.mubr.bf16.vlgmr.msra.gmra.mrb[0].mxu0 %v8433_v1  ;;  %4183 = vmatmul.mubr.bf16.vlgmr.msra.gmra.mrb[0].mxu1 %v8433_v1  ;;  %v10322_v1 = vld [vmem:[#allocation10 + $0x44c] ss:$16 sps:$4 sm:$0xff]  }
 0x17c   : > { %3572 = vmatpush1.bf16.msra.mxu0 %v10284_v56  ;;  %3420 = vmatprep.mubr.bf16.mxu0 %v8442_v0  ;;  %v660_v56 = vld [vmem:[%s11630_s29 + $0xc8] sm:$0xff] }
 0x17d   : > { %4192 = vmatprep.mubr.bf16.mxu1 %v8442_v0  ;;  %3573 = vmatprep.subr.bf16.mxu0 %v10289_v15  ;;  %v10293_v0 = vld [vmem:[#allocation10 + $0x460] ss:$16 sps:$4 sm:$0xff]   ;;  %v10325_v15 = vld [vmem:[#allocation10 + $0x46c] ss:$16 sps:$4 sm:$0xff]  }
 0x17e   : > { %4344 = vmatpush1.bf16.msra.mxu1 %v10311_v35  ;;  %v10296_v35 = vld [vmem:[#allocation10 + $0x480] ss:$16 sps:$4 sm:$0xff]  }
 0x17f   : > { %4345 = vmatprep.subr.bf16.mxu1 %v10316_v28  ;;  %v884_v28 = vsel %vm11759_vm0, %v660_v56, 0  ;;  %v10334_v56 = vld [vmem:[#allocation10 + $0x4ac] ss:$16 sps:$4 sm:$0xff]  }
 0x180   : > { %3574 = vmatpush1.bf16.msra.mxu0 %v10287_v44  ;;  %v10331_v44 = vld [vmem:[#allocation10 + $0x48c] ss:$16 sps:$4 sm:$0xff]   ;;  %v8457_v41 = vcombine.low %v884_v28, %v888_v21 }
 0x181   : > { %3575 = vmatprep.subr.bf16.mxu0 %v10292_v16  ;;  %v8458_v16 = vcombine.high %v884_v28, %v888_v21  ;;  %v10341_v28 = vld [vmem:[#allocation10 + $0x4e8] ss:$16 sps:$4 sm:$0xff]  }
 0x182   : > { %4346 = vmatpush1.bf16.msra.mxu1 %v10314_v8  ;;  %v668_v8 = vld [vmem:[%s11630_s29 + $0x108] sm:$0xff] }
 0x183   : > { %3421 = vmatmul.mubr.bf16.gmra.mrb[4].mxu0 %v8441_v9  ;;  %4193 = vmatmul.mubr.bf16.gmra.mrb[4].mxu1 %v8441_v9  ;;  %v672_v9 = vld [vmem:[%s11630_s29 + $0x128] sm:$0xff]  ;;  %v892_v57 = vsel %vm11787_vm15, %v668_v8, 0  ;;  %v10305_v8 = vld [vmem:[#allocation10 + $0x4e0] ss:$16 sps:$4 sm:$0xff]  }
 0x184   : > { %3430 = vmatprep.mubr.bf16.mxu0 %v8450_v58  ;;  %4202 = vmatprep.mubr.bf16.mxu1 %v8450_v58  ;;  %v10301_v58 = vld [vmem:[#allocation10 + $0x4a4] ss:$16 sps:$4 sm:$0xff]   ;;  %v896_v39 = vsel %vm11799_vm7, %v672_v9, 0  ;;  %v10343_v9 = vld [vmem:[#allocation10 + $0x4ec] ss:$16 sps:$4 sm:$0xff]   ;;  %vm15197_vm7 = vnez %v15164_v12 }
 0x185   : > { %3576 = vmatpush1.bf16.msra.mxu0 %v10290_v32  ;;  %4347 = vmatprep.subr.bf16.mxu1 %v10322_v1  ;;  %v10299_v32 = vld [vmem:[#allocation10 + $0x4a0] ss:$16 sps:$4 sm:$0xff]  }
 0x186   : > { %3577 = vmatprep.subr.bf16.mxu0 %v10295_v34  ;;  %4348 = vmatpush1.bf16.msra.mxu1 %v10320_v23  ;;  %v10304_v23 = vld [vmem:[#allocation10 + $0x4c4] ss:$16 sps:$4 sm:$0xff]   ;;  %v10332_v34 = vld [vmem:[#allocation10 + $0x4a8] ss:$16 sps:$4 sm:$0xff]   ;;  %v10302_v1 = vld [vmem:[#allocation10 + $0x4c0] ss:$16 sps:$4 sm:$0xff]  }
 0x187   : > { %4349 = vmatprep.subr.bf16.mxu1 %v10325_v15  ;;  %v8466_v15 = vcombine.high %v892_v57, %v896_v39 }
 0x189   : > { %3578 = vmatpush1.bf16.msra.mxu0 %v10293_v0  ;;  %v10340_v0 = vld [vmem:[#allocation10 + $0x4cc] ss:$16 sps:$4 sm:$0xff]  }
 0x18a   : > { %3579 = vmatprep.subr.bf16.mxu0 %v10298_v36  ;;  %4350 = vmatpush1.bf16.msra.mxu1 %v10323_v13  ;;  %v676_v36 = vld [vmem:[%s11630_s29 + $0x148] sm:$0xff] }
 0x18b   : > { %3431 = vmatmul.mubr.bf16.gmra.mrb[8].mxu0 %v8449_v38  ;;  %4203 = vmatmul.mubr.bf16.gmra.mrb[8].mxu1 %v8449_v38  ;;  %v680_v13 = vld [vmem:[%s11630_s29 + $0x168] sm:$0xff]  ;;  %v10307_v38 = vld [vmem:[#allocation10 + $0x4e4] ss:$16 sps:$4 sm:$0xff]   ;;  %v900_v21 = vsel %vm15183_vm10, %v676_v36, 0  ;;  %v10317_v36 = vld [vmem:[#allocation10 + $0x520] ss:$16 sps:$4 sm:$0xff]   ;;  %vm15186_vm10 = vnez %v15128_v24 }
 0x18c   : > { %3440 = vmatprep.mubr.bf16.mxu0 %v8458_v16  ;;  %4212 = vmatprep.mubr.bf16.mxu1 %v8458_v16  ;;  %v10338_v16 = vld [vmem:[#allocation10 + $0x4c8] ss:$16 sps:$4 sm:$0xff]  }
 0x18d   : > { %3580 = vmatpush1.bf16.msra.mxu0 %v10296_v35  ;;  %4351 = vmatprep.subr.bf16.mxu1 %v10331_v44  ;;  %v904_v35 = vsel %vm15184_vm6, %v680_v13, 0  ;;  %v8465_v44 = vcombine.low %v892_v57, %v896_v39  ;;  %v10328_v57 = vld [vmem:[#allocation10 + $0x544] ss:$16 sps:$4 sm:$0xff]   ;;  %v10350_v39 = vld [vmem:[#allocation10 + $0x528] ss:$16 sps:$4 sm:$0xff]   ;;  %vm15185_vm6 = vnez %v15126_v17 }
 0x18e   : > { %3581 = vmatprep.subr.bf16.mxu0 %v10301_v58  ;;  %4352 = vmatpush1.bf16.msra.mxu1 %v10329_v4  ;;  %v10310_v4 = vld [vmem:[#allocation10 + $0x504] ss:$16 sps:$4 sm:$0xff]   ;;  %v10308_v58 = vld [vmem:[#allocation10 + $0x500] ss:$16 sps:$4 sm:$0xff]  }
 0x18f   : > { %4353 = vmatprep.subr.bf16.mxu1 %v10334_v56  ;;  %v8474_v56 = vcombine.high %v900_v21, %v904_v35 }
 0x191   : > { %3582 = vmatpush1.bf16.msra.mxu0 %v10299_v32  ;;  %v10349_v32 = vld [vmem:[#allocation10 + $0x50c] ss:$16 sps:$4 sm:$0xff]  }
 0x192   : > { %3583 = vmatprep.subr.bf16.mxu0 %v10304_v23  ;;  %4354 = vmatpush1.bf16.msra.mxu1 %v10332_v34  ;;  %v684_v23 = vld [vmem:[%s11630_s29 + $0x188] sm:$0xff] }
 0x193   : > { %3441 = vmatmul.mubr.bf16.gmra.mrb[12].mxu0 %v8457_v41  ;;  %4213 = vmatmul.mubr.bf16.gmra.mrb[12].mxu1 %v8457_v41  ;;  %v688_v34 = vld [vmem:[%s11630_s29 + $0x1a8] sm:$0xff]  ;;  %v10319_v41 = vld [vmem:[#allocation10 + $0x524] ss:$16 sps:$4 sm:$0xff]  }
 0x194   : > { %3450 = vmatprep.mubr.bf16.mxu0 %v8466_v15  ;;  %4222 = vmatprep.mubr.bf16.mxu1 %v8466_v15  ;;  %v10347_v15 = vld [vmem:[#allocation10 + $0x508] ss:$16 sps:$4 sm:$0xff]   ;;  %v912_v13 = vsel %vm15186_vm10, %v688_v34, 0  ;;  %vm15187_vm10 = vnez %v15132_v55 }
 0x195   : > { %3584 = vmatpush1.bf16.msra.mxu0 %v10302_v1  ;;  %4355 = vmatprep.subr.bf16.mxu1 %v10340_v0  ;;  %v10352_v1 = vld [vmem:[#allocation10 + $0x52c] ss:$16 sps:$4 sm:$0xff]   ;;  %v908_v0 = vsel %vm15185_vm6, %v684_v23, 0  ;;  %vm15188_vm6 = vnez %v15135_v7  ;;  %v10359_v34 = vld [vmem:[#allocation10 + $0x568] ss:$16 sps:$4 sm:$0xff]  }
 0x196   : > { %3585 = vmatprep.subr.bf16.mxu0 %v10307_v38  ;;  %4356 = vmatpush1.bf16.msra.mxu1 %v10338_v16  ;;  %v8473_v38 = vcombine.low %v900_v21, %v904_v35  ;;  %v8482_v16 = vcombine.high %v908_v0, %v912_v13  ;;  %v10361_v23 = vld [vmem:[#allocation10 + $0x56c] ss:$16 sps:$4 sm:$0xff]  }
 0x197   : > { %4357 = vmatprep.subr.bf16.mxu1 %v10343_v9  ;;  %v10326_v9 = vld [vmem:[#allocation10 + $0x540] ss:$16 sps:$4 sm:$0xff]  }
 0x199   : > { %3586 = vmatpush1.bf16.msra.mxu0 %v10305_v8  ;;  %v692_v8 = vld [vmem:[%s11630_s29 + $0x1c8] sm:$0xff] }
 0x19a   : > { %3587 = vmatprep.subr.bf16.mxu0 %v10310_v4  ;;  %4358 = vmatpush1.bf16.msra.mxu1 %v10341_v28  ;;  %v10358_v4 = vld [vmem:[#allocation10 + $0x54c] ss:$16 sps:$4 sm:$0xff]   ;;  %v916_v21 = vsel %vm15187_vm10, %v692_v8, 0  ;;  %vm15190_vm10 = vnez %v15142_v54 }
 0x19b   : > { %3451 = vmatmul.mubr.bf16.gmra.mrb[16].mxu0 %v8465_v44  ;;  %4223 = vmatmul.mubr.bf16.gmra.mrb[16].mxu1 %v8465_v44  ;;  %v696_v28 = vld [vmem:[%s11630_s29 + $0x1e8] sm:$0xff]  ;;  %v10337_v44 = vld [vmem:[#allocation10 + $0x564] ss:$16 sps:$4 sm:$0xff]  }
 0x19c   : > { %3460 = vmatprep.mubr.bf16.mxu0 %v8474_v56  ;;  %4232 = vmatprep.mubr.bf16.mxu1 %v8474_v56  ;;  %v10356_v56 = vld [vmem:[#allocation10 + $0x548] ss:$16 sps:$4 sm:$0xff]   ;;  %v920_v35 = vsel %vm15188_vm6, %v696_v28, 0  ;;  %v10370_v8 = vld [vmem:[#allocation10 + $0x5ac] ss:$16 sps:$4 sm:$0xff]   ;;  %vm15189_vm6 = vnez %v15139_v49 }
 0x19d   : > { %3588 = vmatpush1.bf16.msra.mxu0 %v10308_v58  ;;  %4359 = vmatprep.subr.bf16.mxu1 %v10349_v32  ;;  %v10335_v58 = vld [vmem:[#allocation10 + $0x560] ss:$16 sps:$4 sm:$0xff]   ;;  %v10346_v32 = vld [vmem:[#allocation10 + $0x584] ss:$16 sps:$4 sm:$0xff]   ;;  %v10368_v28 = vld [vmem:[#allocation10 + $0x5a8] ss:$16 sps:$4 sm:$0xff]  }
 0x19e   : > { %3589 = vmatprep.subr.bf16.mxu0 %v10319_v41  ;;  %4360 = vmatpush1.bf16.msra.mxu1 %v10347_v15  ;;  %v8481_v41 = vcombine.low %v908_v0, %v912_v13  ;;  %v8490_v15 = vcombine.high %v916_v21, %v920_v35 }
 0x19f   : > { %4361 = vmatprep.subr.bf16.mxu1 %v10352_v1  ;;  %v10344_v1 = vld [vmem:[#allocation10 + $0x580] ss:$16 sps:$4 sm:$0xff]  }
 0x1a1   : > { %3590 = vmatpush1.bf16.msra.mxu0 %v10317_v36  ;;  %v700_v36 = vld [vmem:[%s11630_s29 + $0x208] sm:$0xff] }
 0x1a2   : > { %3591 = vmatprep.subr.bf16.mxu0 %v10328_v57  ;;  %4362 = vmatpush1.bf16.msra.mxu1 %v10350_v39  ;;  %v10367_v57 = vld [vmem:[#allocation10 + $0x58c] ss:$16 sps:$4 sm:$0xff]   ;;  %v924_v0 = vsel %vm15189_vm6, %v700_v36, 0  ;;  %vm15194_vm6 = vnez %v15156_v61 }
 0x1a3   : > { %3461 = vmatmul.mubr.bf16.gmra.mrb[20].mxu0 %v8473_v38  ;;  %4233 = vmatmul.mubr.bf16.gmra.mrb[20].mxu1 %v8473_v38  ;;  %v704_v39 = vld [vmem:[%s11630_s29 + $0x228] sm:$0xff]  ;;  %v10355_v38 = vld [vmem:[#allocation10 + $0x5a4] ss:$16 sps:$4 sm:$0xff]  }
 0x1a4   : > { %3470 = vmatprep.mubr.bf16.mxu0 %v8482_v16  ;;  %4242 = vmatprep.mubr.bf16.mxu1 %v8482_v16  ;;  %v10365_v16 = vld [vmem:[#allocation10 + $0x588] ss:$16 sps:$4 sm:$0xff]   ;;  %v928_v13 = vsel %vm15190_vm10, %v704_v39, 0  ;;  %v10379_v36 = vld [vmem:[#allocation10 + $0x5ec] ss:$16 sps:$4 sm:$0xff]   ;;  %vm15191_vm10 = vnez %v15148_v30 }
 0x1a5   : > { %3592 = vmatpush1.bf16.msra.mxu0 %v10326_v9  ;;  %4363 = vmatprep.subr.bf16.mxu1 %v10358_v4  ;;  %v10353_v9 = vld [vmem:[#allocation10 + $0x5a0] ss:$16 sps:$4 sm:$0xff]   ;;  %v10364_v4 = vld [vmem:[#allocation10 + $0x5c4] ss:$16 sps:$4 sm:$0xff]  }
 0x1a6   : > { %3593 = vmatprep.subr.bf16.mxu0 %v10337_v44  ;;  %4364 = vmatpush1.bf16.msra.mxu1 %v10356_v56  ;;  %v8489_v44 = vcombine.low %v916_v21, %v920_v35  ;;  %v8498_v56 = vcombine.high %v924_v0, %v928_v13  ;;  %v10382_v39 = vld [vmem:[#allocation10 + $0x604] ss:$16 sps:$4 sm:$0xff]  }
 0x1a7   : > { %4365 = vmatprep.subr.bf16.mxu1 %v10361_v23  ;;  %v708_v23 = vld [vmem:[%s11630_s29 + $0x248] sm:$0xff] }
 0x1a8   : > { %v932_v21 = vsel %vm11943_vm14, %v708_v23, 0  ;;  %vm15193_vm14 = vnez %v15152_v37  ;;  %v728_v23 = vld [vmem:[%s11630_s29 + $0x2e8] sm:$0xff] }
 0x1a9   : > { %3594 = vmatpush1.bf16.msra.mxu0 %v10335_v58  ;;  %v10362_v58 = vld [vmem:[#allocation10 + $0x5c0] ss:$16 sps:$4 sm:$0xff]  }
 0x1aa   : > { %3595 = vmatprep.subr.bf16.mxu0 %v10346_v32  ;;  %4366 = vmatpush1.bf16.msra.mxu1 %v10359_v34  ;;  %v10376_v32 = vld [vmem:[#allocation10 + $0x5cc] ss:$16 sps:$4 sm:$0xff]  }
 0x1ab   : > { %3471 = vmatmul.mubr.bf16.gmra.mrb[24].mxu0 %v8481_v41  ;;  %4243 = vmatmul.mubr.bf16.gmra.mrb[24].mxu1 %v8481_v41  ;;  %v712_v34 = vld [vmem:[%s11630_s29 + $0x268] sm:$0xff]  ;;  %v10373_v41 = vld [vmem:[#allocation10 + $0x5e4] ss:$16 sps:$4 sm:$0xff]  }
 0x1ac   : > { %3480 = vmatprep.mubr.bf16.mxu0 %v8490_v15  ;;  %4252 = vmatprep.mubr.bf16.mxu1 %v8490_v15  ;;  %v10374_v15 = vld [vmem:[#allocation10 + $0x5c8] ss:$16 sps:$4 sm:$0xff]   ;;  %v936_v35 = vsel %vm15191_vm10, %v712_v34, 0  ;;  %vm15192_vm10 = vnez %v15150_v18 }
 0x1ad   : > { %3596 = vmatpush1.bf16.msra.mxu0 %v10344_v1  ;;  %4367 = vmatprep.subr.bf16.mxu1 %v10367_v57  ;;  %v10371_v1 = vld [vmem:[#allocation10 + $0x5e0] ss:$16 sps:$4 sm:$0xff]   ;;  %v10377_v57 = vld [vmem:[#allocation10 + $0x5e8] ss:$16 sps:$4 sm:$0xff]  }
 0x1ae   : > { %3597 = vmatprep.subr.bf16.mxu0 %v10355_v38  ;;  %4368 = vmatpush1.bf16.msra.mxu1 %v10365_v16  ;;  %v8497_v38 = vcombine.low %v924_v0, %v928_v13  ;;  %v8506_v16 = vcombine.high %v932_v21, %v936_v35  ;;  %v8505_v13 = vcombine.low %v932_v21, %v936_v35 }
 0x1af   : > { %4369 = vmatprep.subr.bf16.mxu1 %v10370_v8  ;;  %v10409_v8 = vld [vmem:[#allocation10 + $0x60c] ss:$16 sps:$4 sm:$0xff]  }
 0x1b1   : > { %3598 = vmatpush1.bf16.msra.mxu0 %v10353_v9  ;;  %v716_v9 = vld [vmem:[%s11630_s29 + $0x288] sm:$0xff] }
 0x1b2   : > { %3599 = vmatprep.subr.bf16.mxu0 %v10364_v4  ;;  %4370 = vmatpush1.bf16.msra.mxu1 %v10368_v28  ;;  %v720_v4 = vld [vmem:[%s11630_s29 + $0x2a8] sm:$0xff]  ;;  %v940_v28 = vsel %vm15192_vm10, %v716_v9, 0  ;;  %vm15195_vm10 = vnez %v15158_v51 }
 0x1b3   : > { %3481 = vmatmul.mubr.bf16.gmra.mrb[28].mxu0 %v8489_v44  ;;  %4253 = vmatmul.mubr.bf16.gmra.mrb[28].mxu1 %v8489_v44  ;;  %v944_v0 = vsel %vm15193_vm14, %v720_v4, 0  ;;  %vm15196_vm14 = vnez %v15162_v48  ;;  %v10566_v48 = vld [vmem:[#allocation13 + $0xf0] ss:$8 sps:$4 sm:$0xff]  }
 0x1b4   : > { %3490 = vmatprep.mubr.bf16.mxu0 %v8498_v56  ;;  %4262 = vmatprep.mubr.bf16.mxu1 %v8498_v56  ;;  %v8514_v44 = vcombine.high %v940_v28, %v944_v0  ;;  %v724_v56 = vld [vmem:[%s11630_s29 + $0x2c8] sm:$0xff]  ;;  %v8513_v34 = vcombine.low %v940_v28, %v944_v0 }
 0x1b5   : > { %3600 = vmatpush1.bf16.msra.mxu0 %v10362_v58  ;;  %4371 = vmatprep.subr.bf16.mxu1 %v10376_v32  ;;  %v948_v58 = vsel %vm15194_vm6, %v724_v56, 0  ;;  %v952_v32 = vsel %vm15195_vm10, %v728_v23, 0  ;;  %vm15198_vm10 = vnez %v15168_v31  ;;  %vm15199_vm6 = vnez %v15170_v5  ;;  %v748_v28 = vld [vmem:[%s11630_s29 + $0x388] sm:$0xff] }
 0x1b6   : > { %3601 = vmatprep.subr.bf16.mxu0 %v10373_v41  ;;  %4372 = vmatpush1.bf16.msra.mxu1 %v10374_v15  ;;  %v8522_v41 = vcombine.high %v948_v58, %v952_v32  ;;  %v732_v15 = vld [vmem:[%s11630_s29 + $0x308] sm:$0xff] }
 0x1b7   : > { %4373 = vmatprep.subr.bf16.mxu1 %v10379_v36  ;;  %v736_v36 = vld [vmem:[%s11630_s29 + $0x328] sm:$0xff]  ;;  %v956_v21 = vsel %vm15196_vm14, %v732_v15, 0 }
 0x1b8   : > { %v960_v35 = vsel %vm15197_vm7, %v736_v36, 0  ;;  %v752_v0 = vld [vmem:[%s11630_s29 + $0x3a8] sm:$0xff]  ;;  %vm15200_vm7 = vnez %v15176_v59 }
 0x1b9   : > { %3602 = vmatpush1.bf16.msra.mxu0 %v10371_v1  ;;  %v8521_v1 = vcombine.low %v948_v58, %v952_v32  ;;  %v8529_v9 = vcombine.low %v956_v21, %v960_v35  ;;  %v756_v58 = vld [vmem:[%s11630_s29 + $0x3c8] sm:$0xff] }
 0x1ba   : > { %4374 = vmatpush1.bf16.msra.mxu1 %v10377_v57  ;;  %3764 = vmatprep.subr.bf16.mxu0 %v10382_v39  ;;  %v8530_v57 = vcombine.high %v956_v21, %v960_v35  ;;  %v740_v39 = vld [vmem:[%s11630_s29 + $0x348] sm:$0xff]  ;;  %v637_v21 = vld [vmem:[%s11630_s29 + $0x10] sm:$0xff] }
 0x1bb   : > { %3491 = vmatmul.mubr.bf16.gmra.mrb[32].mxu0 %v8497_v38  ;;  %4263 = vmatmul.mubr.bf16.gmra.mrb[32].mxu1 %v8497_v38  ;;  %v744_v38 = vld [vmem:[%s11630_s29 + $0x368] sm:$0xff]  ;;  %v641_v35 = vld [vmem:[%s11630_s29 + $0x30] sm:$0xff] }
 0x1bc   : > { %3500 = vmatprep.mubr.bf16.mxu0 %v8506_v16  ;;  %4272 = vmatprep.mubr.bf16.mxu1 %v8506_v16  ;;  %v964_v16 = vsel %vm15198_vm10, %v740_v39, 0  ;;  %v760_v32 = vld [vmem:[%s11630_s29 + $0x3e8] sm:$0xff] }
 0x1bd   : > { %4536 = vmatprep.subr.bf16.mxu1 %v10409_v8  ;;  %v968_v8 = vsel %vm15199_vm6, %v744_v38, 0  ;;  %v10580_v59 = vld [vmem:[#allocation12 + $0x104] ss:$8 sps:$4 sm:$0xff]  }
 0x1be   : > { %v8538_v4 = vcombine.high %v964_v16, %v968_v8  ;;  %v8537_v56 = vcombine.low %v964_v16, %v968_v8  ;;  %v645_v16 = vld [vmem:[%s11630_s29 + $0x50] sm:$0xff] }
 0x1bf   : > { %v649_v8 = vld [vmem:[%s11630_s29 + $0x70] sm:$0xff] }
 0x1c3   : > { %3501 = vmatmul.mubr.bf16.gmra.mrb[36].mxu0 %v8505_v13  ;;  %4273 = vmatmul.mubr.bf16.gmra.mrb[36].mxu1 %v8505_v13  ;;  %v972_v13 = vsel %vm12089_vm3, %v748_v28, 0 }
 0x1c4   : > { %3510 = vmatprep.mubr.bf16.mxu0 %v8514_v44  ;;  %4282 = vmatprep.mubr.bf16.mxu1 %v8514_v44  ;;  %v976_v44 = vsel %vm15200_vm7, %v752_v0, 0  ;;  %v10380_v0 = vld [vmem:[#allocation10 + $0x600] ss:$16 sps:$4 sm:$0xff]  }
 0x1c5   : > { %v8546_v23 = vcombine.high %v972_v13, %v976_v44  ;;  %v8545_v15 = vcombine.low %v972_v13, %v976_v44  ;;  %v10385_v44 = vld [vmem:[#allocation10 + $0x624] ss:$16 sps:$4 sm:$0xff]  }
 0x1cb   : > { %3511 = vmatmul.mubr.bf16.gmra.mrb[40].mxu0 %v8513_v34  ;;  %4283 = vmatmul.mubr.bf16.gmra.mrb[40].mxu1 %v8513_v34  ;;  %v980_v34 = vsel %vm12117_vm11, %v756_v58, 0  ;;  %v10407_v58 = vld [vmem:[#allocation10 + $0x608] ss:$16 sps:$4 sm:$0xff]  }
 0x1cc   : > { %3520 = vmatprep.mubr.bf16.mxu0 %v8522_v41  ;;  %4292 = vmatprep.mubr.bf16.mxu1 %v8522_v41  ;;  %v984_v41 = vsel %vm12124_vm2, %v760_v32, 0  ;;  %v10412_v32 = vld [vmem:[#allocation10 + $0x62c] ss:$16 sps:$4 sm:$0xff]  }
 0x1cd   : > { %v8554_v36 = vcombine.high %v980_v34, %v984_v41  ;;  %v8553_v39 = vcombine.low %v980_v34, %v984_v41  ;;  %v10383_v34 = vld [vmem:[#allocation10 + $0x620] ss:$16 sps:$4 sm:$0xff]  }
 0x1d3   : > { %3521 = vmatmul.mubr.bf16.gmra.mrb[44].mxu0 %v8521_v1  ;;  %4293 = vmatmul.mubr.bf16.gmra.mrb[44].mxu1 %v8521_v1  ;;  %v861_v1 = vsel %vm11667_vm4, %v637_v21, 0  ;;  %v10410_v21 = vld [vmem:[#allocation10 + $0x628] ss:$16 sps:$4 sm:$0xff]  }
 0x1d4   : > { %3530 = vmatprep.mubr.bf16.mxu0 %v8530_v57  ;;  %4302 = vmatprep.mubr.bf16.mxu1 %v8530_v57  ;;  %v865_v57 = vsel %vm11674_vm5, %v641_v35, 0 }
 0x1d5   : > { %v8436_v38 = vcombine.high %v861_v1, %v865_v57  ;;  %v8435_v28 = vcombine.low %v861_v1, %v865_v57  ;;  %v10386_v57 = vld [vmem:[#allocation10 + $0x640] ss:$16 sps:$4 sm:$0xff]  }
 0x1db   : > { %3531 = vmatmul.mubr.bf16.gmra.mrb[48].mxu0 %v8529_v9  ;;  %4303 = vmatmul.mubr.bf16.gmra.mrb[48].mxu1 %v8529_v9  ;;  %v869_v9 = vsel %vm11697_vm8, %v645_v16, 0  ;;  %v665_v16 = vld [vmem:[%s11630_s29 + $0xf0] sm:$0xff] }
 0x1dc   : > { %3540 = vmatprep.mubr.bf16.mxu0 %v8538_v4  ;;  %4312 = vmatprep.mubr.bf16.mxu1 %v8538_v4  ;;  %v873_v4 = vsel %vm11706_vm9, %v649_v8, 0  ;;  %v10391_v8 = vld [vmem:[#allocation10 + $0x664] ss:$16 sps:$4 sm:$0xff]  }
 0x1dd   : > { %v8444_v13 = vcombine.high %v869_v9, %v873_v4  ;;  %v8443_v35 = vcombine.low %v869_v9, %v873_v4  ;;  %v889_v4 = vsel %vm11772_vm1, %v665_v16, 0  ;;  %vm15201_vm1 = vnez %v15117_v29  ;;  %v10428_v16 = vld [vmem:[#allocation10 + $0x6a8] ss:$16 sps:$4 sm:$0xff]  }
 0x1e3   : > { %3541 = vmatmul.mubr.bf16.gmra.mrb[52].mxu0 %v8537_v56  ;;  %4313 = vmatmul.mubr.bf16.gmra.mrb[52].mxu1 %v8537_v56  ;;  %v653_v56 = vld [vmem:[%s11630_s29 + $0x90] sm:$0xff] }
 0x1e4   : > { %3550 = vmatprep.mubr.bf16.mxu0 %v8546_v23  ;;  %4322 = vmatprep.mubr.bf16.mxu1 %v8546_v23  ;;  %v657_v23 = vld [vmem:[%s11630_s29 + $0xb0] sm:$0xff]  ;;  %v877_v41 = vsel %vm11731_vm12, %v653_v56, 0  ;;  %v10419_v56 = vld [vmem:[#allocation10 + $0x668] ss:$16 sps:$4 sm:$0xff]  }
 0x1eb   : > { %3551 = vmatmul.mubr.bf16.gmra.mrb[56].mxu0 %v8545_v15  ;;  %4323 = vmatmul.mubr.bf16.gmra.mrb[56].mxu1 %v8545_v15  ;;  %v881_v15 = vsel %vm11739_vm13, %v657_v23, 0  ;;  %vm15215_vm13 = vnez %v15158_v51 }
 0x1ec   : > { %3560 = vmatprep.mubr.bf16.mxu0 %v8554_v36  ;;  %4332 = vmatprep.mubr.bf16.mxu1 %v8554_v36  ;;  %v10388_v36 = vld [vmem:[#allocation10 + $0x644] ss:$16 sps:$4 sm:$0xff]   ;;  %v8452_v1 = vcombine.high %v877_v41, %v881_v15  ;;  %v8451_v23 = vcombine.low %v877_v41, %v881_v15 }
 0x1f3   : > { %3561 = vmatmul.mubr.bf16.gmra.mrb[60].mxu0 %v8553_v39  ;;  %4333 = vmatmul.mubr.bf16.gmra.mrb[60].mxu1 %v8553_v39  ;;  %v661_v39 = vld [vmem:[%s11630_s29 + $0xd0] sm:$0xff] }
 0x1f4   : > { %3603 = vmatprep.mubr.bf16.mxu0 %v8436_v38  ;;  %4375 = vmatprep.mubr.bf16.mxu1 %v8436_v38  ;;  %v10418_v38 = vld [vmem:[#allocation10 + $0x64c] ss:$16 sps:$4 sm:$0xff]   ;;  %v885_v9 = vsel %vm11759_vm0, %v661_v39, 0  ;;  %v10395_v39 = vld [vmem:[#allocation10 + $0x6a0] ss:$16 sps:$4 sm:$0xff]   ;;  %vm15214_vm0 = vnez %v15156_v61 }
 0x1fb   : > { %3604 = vmatmul.mubr.bf16.vlgmr.msra.gmra.mrb[0].mxu0 %v8435_v28  ;;  %4376 = vmatmul.mubr.bf16.vlgmr.msra.gmra.mrb[0].mxu1 %v8435_v28  ;;  %v10416_v28 = vld [vmem:[#allocation10 + $0x648] ss:$16 sps:$4 sm:$0xff]  }
 0x1fc   : > { %3765 = vmatpush1.bf16.msra.mxu0 %v10380_v0  ;;  %3613 = vmatprep.mubr.bf16.mxu0 %v8444_v13  ;;  %v10421_v0 = vld [vmem:[#allocation10 + $0x66c] ss:$16 sps:$4 sm:$0xff]  }
 0x1fd   : > { %4385 = vmatprep.mubr.bf16.mxu1 %v8444_v13  ;;  %3766 = vmatprep.subr.bf16.mxu0 %v10385_v44  ;;  %v10389_v13 = vld [vmem:[#allocation10 + $0x660] ss:$16 sps:$4 sm:$0xff]   ;;  %v10394_v44 = vld [vmem:[#allocation10 + $0x684] ss:$16 sps:$4 sm:$0xff]  }
 0x1fe   : > { %4537 = vmatpush1.bf16.msra.mxu1 %v10407_v58  ;;  %v8460_v58 = vcombine.high %v885_v9, %v889_v4 }
 0x1ff   : > { %4538 = vmatprep.subr.bf16.mxu1 %v10412_v32  ;;  %v669_v32 = vld [vmem:[%s11630_s29 + $0x110] sm:$0xff] }
 0x200   : > { %3767 = vmatpush1.bf16.msra.mxu0 %v10383_v34  ;;  %v10392_v34 = vld [vmem:[#allocation10 + $0x680] ss:$16 sps:$4 sm:$0xff]   ;;  %v893_v41 = vsel %vm11787_vm15, %v669_v32, 0  ;;  %v10439_v32 = vld [vmem:[#allocation10 + $0x6ec] ss:$16 sps:$4 sm:$0xff]   ;;  %vm15203_vm15 = vnez %v15124_v63 }
 0x201   : > { %3768 = vmatprep.subr.bf16.mxu0 %v10388_v36  ;;  %v10427_v36 = vld [vmem:[#allocation10 + $0x68c] ss:$16 sps:$4 sm:$0xff]  }
 0x202   : > { %4539 = vmatpush1.bf16.msra.mxu1 %v10410_v21  ;;  %v673_v21 = vld [vmem:[%s11630_s29 + $0x130] sm:$0xff] }
 0x203   : > { %3614 = vmatmul.mubr.bf16.gmra.mrb[4].mxu0 %v8443_v35  ;;  %4386 = vmatmul.mubr.bf16.gmra.mrb[4].mxu1 %v8443_v35  ;;  %v10397_v35 = vld [vmem:[#allocation10 + $0x6a4] ss:$16 sps:$4 sm:$0xff]   ;;  %v897_v15 = vsel %vm15201_vm1, %v673_v21, 0  ;;  %vm15202_vm1 = vnez %v15120_v53  ;;  %v10437_v21 = vld [vmem:[#allocation10 + $0x6e8] ss:$16 sps:$4 sm:$0xff]  }
 0x204   : > { %3623 = vmatprep.mubr.bf16.mxu0 %v8452_v1  ;;  %4395 = vmatprep.mubr.bf16.mxu1 %v8452_v1  ;;  %v10425_v1 = vld [vmem:[#allocation10 + $0x688] ss:$16 sps:$4 sm:$0xff]  }
 0x205   : > { %3769 = vmatpush1.bf16.msra.mxu0 %v10386_v57  ;;  %4540 = vmatprep.subr.bf16.mxu1 %v10418_v38  ;;  %v10430_v57 = vld [vmem:[#allocation10 + $0x6ac] ss:$16 sps:$4 sm:$0xff]   ;;  %v10400_v38 = vld [vmem:[#allocation10 + $0x6c4] ss:$16 sps:$4 sm:$0xff]  }
 0x206   : > { %3770 = vmatprep.subr.bf16.mxu0 %v10391_v8  ;;  %4541 = vmatpush1.bf16.msra.mxu1 %v10416_v28  ;;  %v8459_v8 = vcombine.low %v885_v9, %v889_v4  ;;  %v8468_v28 = vcombine.high %v893_v41, %v897_v15 }
 0x207   : > { %4542 = vmatprep.subr.bf16.mxu1 %v10421_v0  ;;  %v677_v0 = vld [vmem:[%s11630_s29 + $0x150] sm:$0xff] }
 0x208   : > { %v901_v9 = vsel %vm15202_vm1, %v677_v0, 0  ;;  %v10448_v0 = vld [vmem:[#allocation10 + $0x72c] ss:$16 sps:$4 sm:$0xff]   ;;  %vm15205_vm1 = vnez %v15128_v24 }
 0x209   : > { %3771 = vmatpush1.bf16.msra.mxu0 %v10389_v13  ;;  %v10398_v13 = vld [vmem:[#allocation10 + $0x6c0] ss:$16 sps:$4 sm:$0xff]  }
 0x20a   : > { %3772 = vmatprep.subr.bf16.mxu0 %v10394_v44  ;;  %4543 = vmatpush1.bf16.msra.mxu1 %v10419_v56  ;;  %v10436_v44 = vld [vmem:[#allocation10 + $0x6cc] ss:$16 sps:$4 sm:$0xff]   ;;  %v681_v56 = vld [vmem:[%s11630_s29 + $0x170] sm:$0xff] }
 0x20b   : > { %3624 = vmatmul.mubr.bf16.gmra.mrb[8].mxu0 %v8451_v23  ;;  %4396 = vmatmul.mubr.bf16.gmra.mrb[8].mxu1 %v8451_v23  ;;  %v10403_v23 = vld [vmem:[#allocation10 + $0x6e4] ss:$16 sps:$4 sm:$0xff]   ;;  %v905_v4 = vsel %vm15203_vm15, %v681_v56, 0  ;;  %vm15204_vm15 = vnez %v15126_v17  ;;  %v10446_v56 = vld [vmem:[#allocation10 + $0x728] ss:$16 sps:$4 sm:$0xff]  }
 0x20c   : > { %3633 = vmatprep.mubr.bf16.mxu0 %v8460_v58  ;;  %4405 = vmatprep.mubr.bf16.mxu1 %v8460_v58  ;;  %v10434_v58 = vld [vmem:[#allocation10 + $0x6c8] ss:$16 sps:$4 sm:$0xff]  }
 0x20d   : > { %3773 = vmatpush1.bf16.msra.mxu0 %v10392_v34  ;;  %4544 = vmatprep.subr.bf16.mxu1 %v10427_v36  ;;  %v10401_v34 = vld [vmem:[#allocation10 + $0x6e0] ss:$16 sps:$4 sm:$0xff]   ;;  %v10406_v36 = vld [vmem:[#allocation10 + $0x704] ss:$16 sps:$4 sm:$0xff]  }
 0x20e   : > { %3774 = vmatprep.subr.bf16.mxu0 %v10397_v35  ;;  %4545 = vmatpush1.bf16.msra.mxu1 %v10425_v1  ;;  %v8467_v35 = vcombine.low %v893_v41, %v897_v15  ;;  %v8476_v1 = vcombine.high %v901_v9, %v905_v4 }
 0x20f   : > { %4546 = vmatprep.subr.bf16.mxu1 %v10430_v57  ;;  %v685_v57 = vld [vmem:[%s11630_s29 + $0x190] sm:$0xff] }
 0x210   : > { %v909_v41 = vsel %vm15204_vm15, %v685_v57, 0  ;;  %v10457_v57 = vld [vmem:[#allocation10 + $0x76c] ss:$16 sps:$4 sm:$0xff]   ;;  %vm15207_vm15 = vnez %v15135_v7 }
 0x211   : > { %3775 = vmatpush1.bf16.msra.mxu0 %v10395_v39  ;;  %v10404_v39 = vld [vmem:[#allocation10 + $0x700] ss:$16 sps:$4 sm:$0xff]  }
 0x212   : > { %3776 = vmatprep.subr.bf16.mxu0 %v10400_v38  ;;  %4547 = vmatpush1.bf16.msra.mxu1 %v10428_v16  ;;  %v10445_v38 = vld [vmem:[#allocation10 + $0x70c] ss:$16 sps:$4 sm:$0xff]   ;;  %v689_v16 = vld [vmem:[%s11630_s29 + $0x1b0] sm:$0xff] }
 0x213   : > { %3634 = vmatmul.mubr.bf16.gmra.mrb[12].mxu0 %v8459_v8  ;;  %4406 = vmatmul.mubr.bf16.gmra.mrb[12].mxu1 %v8459_v8  ;;  %v10415_v8 = vld [vmem:[#allocation10 + $0x724] ss:$16 sps:$4 sm:$0xff]   ;;  %v913_v15 = vsel %vm15205_vm1, %v689_v16, 0  ;;  %vm15206_vm1 = vnez %v15132_v55  ;;  %v10455_v16 = vld [vmem:[#allocation10 + $0x768] ss:$16 sps:$4 sm:$0xff]  }
 0x214   : > { %3643 = vmatprep.mubr.bf16.mxu0 %v8468_v28  ;;  %4415 = vmatprep.mubr.bf16.mxu1 %v8468_v28  ;;  %v10443_v28 = vld [vmem:[#allocation10 + $0x708] ss:$16 sps:$4 sm:$0xff]  }
 0x215   : > { %3777 = vmatpush1.bf16.msra.mxu0 %v10398_v13  ;;  %4548 = vmatprep.subr.bf16.mxu1 %v10436_v44  ;;  %v10413_v13 = vld [vmem:[#allocation10 + $0x720] ss:$16 sps:$4 sm:$0xff]   ;;  %v10424_v44 = vld [vmem:[#allocation10 + $0x744] ss:$16 sps:$4 sm:$0xff]  }
 0x216   : > { %3778 = vmatprep.subr.bf16.mxu0 %v10403_v23  ;;  %4549 = vmatpush1.bf16.msra.mxu1 %v10434_v58  ;;  %v8475_v23 = vcombine.low %v901_v9, %v905_v4  ;;  %v8484_v58 = vcombine.high %v909_v41, %v913_v15 }
 0x217   : > { %4550 = vmatprep.subr.bf16.mxu1 %v10439_v32  ;;  %v693_v32 = vld [vmem:[%s11630_s29 + $0x1d0] sm:$0xff] }
 0x218   : > { %v917_v9 = vsel %vm15206_vm1, %v693_v32, 0  ;;  %v10466_v32 = vld [vmem:[#allocation10 + $0x7ac] ss:$16 sps:$4 sm:$0xff]   ;;  %vm15209_vm1 = vnez %v15142_v54 }
 0x219   : > { %3779 = vmatpush1.bf16.msra.mxu0 %v10401_v34  ;;  %v10422_v34 = vld [vmem:[#allocation10 + $0x740] ss:$16 sps:$4 sm:$0xff]  }
 0x21a   : > { %3780 = vmatprep.subr.bf16.mxu0 %v10406_v36  ;;  %4551 = vmatpush1.bf16.msra.mxu1 %v10437_v21  ;;  %v10454_v36 = vld [vmem:[#allocation10 + $0x74c] ss:$16 sps:$4 sm:$0xff]   ;;  %v697_v21 = vld [vmem:[%s11630_s29 + $0x1f0] sm:$0xff] }
 0x21b   : > { %3644 = vmatmul.mubr.bf16.gmra.mrb[16].mxu0 %v8467_v35  ;;  %4416 = vmatmul.mubr.bf16.gmra.mrb[16].mxu1 %v8467_v35  ;;  %v10433_v35 = vld [vmem:[#allocation10 + $0x764] ss:$16 sps:$4 sm:$0xff]   ;;  %v921_v4 = vsel %vm15207_vm15, %v697_v21, 0  ;;  %vm15208_vm15 = vnez %v15139_v49  ;;  %v10464_v21 = vld [vmem:[#allocation10 + $0x7a8] ss:$16 sps:$4 sm:$0xff]  }
 0x21c   : > { %3653 = vmatprep.mubr.bf16.mxu0 %v8476_v1  ;;  %4425 = vmatprep.mubr.bf16.mxu1 %v8476_v1  ;;  %v10452_v1 = vld [vmem:[#allocation10 + $0x748] ss:$16 sps:$4 sm:$0xff]  }
 0x21d   : > { %3781 = vmatpush1.bf16.msra.mxu0 %v10404_v39  ;;  %4552 = vmatprep.subr.bf16.mxu1 %v10445_v38  ;;  %v10431_v39 = vld [vmem:[#allocation10 + $0x760] ss:$16 sps:$4 sm:$0xff]   ;;  %v10442_v38 = vld [vmem:[#allocation10 + $0x784] ss:$16 sps:$4 sm:$0xff]  }
 0x21e   : > { %3782 = vmatprep.subr.bf16.mxu0 %v10415_v8  ;;  %4553 = vmatpush1.bf16.msra.mxu1 %v10443_v28  ;;  %v8483_v8 = vcombine.low %v909_v41, %v913_v15  ;;  %v8492_v28 = vcombine.high %v917_v9, %v921_v4 }
 0x21f   : > { %4554 = vmatprep.subr.bf16.mxu1 %v10448_v0  ;;  %v701_v0 = vld [vmem:[%s11630_s29 + $0x210] sm:$0xff] }
 0x220   : > { %v925_v41 = vsel %vm15208_vm15, %v701_v0, 0  ;;  %v10475_v0 = vld [vmem:[#allocation10 + $0x7ec] ss:$16 sps:$4 sm:$0xff]   ;;  %vm15211_vm15 = vnez %v15148_v30 }
 0x221   : > { %3783 = vmatpush1.bf16.msra.mxu0 %v10413_v13  ;;  %v10440_v13 = vld [vmem:[#allocation10 + $0x780] ss:$16 sps:$4 sm:$0xff]  }
 0x222   : > { %3784 = vmatprep.subr.bf16.mxu0 %v10424_v44  ;;  %4555 = vmatpush1.bf16.msra.mxu1 %v10446_v56  ;;  %v10463_v44 = vld [vmem:[#allocation10 + $0x78c] ss:$16 sps:$4 sm:$0xff]   ;;  %v705_v56 = vld [vmem:[%s11630_s29 + $0x230] sm:$0xff] }
 0x223   : > { %3654 = vmatmul.mubr.bf16.gmra.mrb[20].mxu0 %v8475_v23  ;;  %4426 = vmatmul.mubr.bf16.gmra.mrb[20].mxu1 %v8475_v23  ;;  %v10451_v23 = vld [vmem:[#allocation10 + $0x7a4] ss:$16 sps:$4 sm:$0xff]   ;;  %v929_v15 = vsel %vm15209_vm1, %v705_v56, 0  ;;  %vm15210_vm1 = vnez %v15146_v14 }
 0x224   : > { %3663 = vmatprep.mubr.bf16.mxu0 %v8484_v58  ;;  %4435 = vmatprep.mubr.bf16.mxu1 %v8484_v58  ;;  %v10461_v58 = vld [vmem:[#allocation10 + $0x788] ss:$16 sps:$4 sm:$0xff]   ;;  %v8499_v56 = vcombine.low %v925_v41, %v929_v15 }
 0x225   : > { %3785 = vmatpush1.bf16.msra.mxu0 %v10422_v34  ;;  %4556 = vmatprep.subr.bf16.mxu1 %v10454_v36  ;;  %v10449_v34 = vld [vmem:[#allocation10 + $0x7a0] ss:$16 sps:$4 sm:$0xff]   ;;  %v10460_v36 = vld [vmem:[#allocation10 + $0x7c4] ss:$16 sps:$4 sm:$0xff]  }
 0x226   : > { %3786 = vmatprep.subr.bf16.mxu0 %v10433_v35  ;;  %4557 = vmatpush1.bf16.msra.mxu1 %v10452_v1  ;;  %v8491_v35 = vcombine.low %v917_v9, %v921_v4  ;;  %v8500_v1 = vcombine.high %v925_v41, %v929_v15 }
 0x227   : > { %4558 = vmatprep.subr.bf16.mxu1 %v10457_v57  ;;  %v709_v57 = vld [vmem:[%s11630_s29 + $0x250] sm:$0xff] }
 0x228   : > { %v933_v9 = vsel %vm15210_vm1, %v709_v57, 0  ;;  %vm15213_vm1 = vnez %v15152_v37 }
 0x229   : > { %3787 = vmatpush1.bf16.msra.mxu0 %v10431_v39  ;;  %v10458_v39 = vld [vmem:[#allocation10 + $0x7c0] ss:$16 sps:$4 sm:$0xff]  }
 0x22a   : > { %3788 = vmatprep.subr.bf16.mxu0 %v10442_v38  ;;  %4559 = vmatpush1.bf16.msra.mxu1 %v10455_v16  ;;  %v10472_v38 = vld [vmem:[#allocation10 + $0x7cc] ss:$16 sps:$4 sm:$0xff]   ;;  %v713_v16 = vld [vmem:[%s11630_s29 + $0x270] sm:$0xff] }
 0x22b   : > { %3664 = vmatmul.mubr.bf16.gmra.mrb[24].mxu0 %v8483_v8  ;;  %4436 = vmatmul.mubr.bf16.gmra.mrb[24].mxu1 %v8483_v8  ;;  %v10469_v8 = vld [vmem:[#allocation10 + $0x7e4] ss:$16 sps:$4 sm:$0xff]   ;;  %v937_v4 = vsel %vm15211_vm15, %v713_v16, 0  ;;  %vm15212_vm15 = vnez %v15150_v18 }
 0x22c   : > { %3673 = vmatprep.mubr.bf16.mxu0 %v8492_v28  ;;  %4445 = vmatprep.mubr.bf16.mxu1 %v8492_v28  ;;  %v10470_v28 = vld [vmem:[#allocation10 + $0x7c8] ss:$16 sps:$4 sm:$0xff]   ;;  %v8507_v41 = vcombine.low %v933_v9, %v937_v4  ;;  %v733_v16 = vld [vmem:[%s11630_s29 + $0x310] sm:$0xff] }
 0x22d   : > { %3789 = vmatpush1.bf16.msra.mxu0 %v10440_v13  ;;  %4560 = vmatprep.subr.bf16.mxu1 %v10463_v44  ;;  %v10467_v13 = vld [vmem:[#allocation10 + $0x7e0] ss:$16 sps:$4 sm:$0xff]   ;;  %v10473_v44 = vld [vmem:[#allocation10 + $0x7e8] ss:$16 sps:$4 sm:$0xff]  }
 0x22e   : > { %3790 = vmatprep.subr.bf16.mxu0 %v10451_v23  ;;  %4561 = vmatpush1.bf16.msra.mxu1 %v10461_v58  ;;  %v8508_v23 = vcombine.high %v933_v9, %v937_v4  ;;  %v717_v58 = vld [vmem:[%s11630_s29 + $0x290] sm:$0xff] }
 0x22f   : > { %4562 = vmatprep.subr.bf16.mxu1 %v10466_v32  ;;  %v721_v32 = vld [vmem:[%s11630_s29 + $0x2b0] sm:$0xff] }
 0x231   : > { %3791 = vmatpush1.bf16.msra.mxu0 %v10449_v34  ;;  %v941_v34 = vsel %vm15212_vm15, %v717_v58, 0 }
 0x232   : > { %3792 = vmatprep.subr.bf16.mxu0 %v10460_v36  ;;  %4563 = vmatpush1.bf16.msra.mxu1 %v10464_v21  ;;  %v945_v36 = vsel %vm15213_vm1, %v721_v32, 0  ;;  %v725_v21 = vld [vmem:[%s11630_s29 + $0x2d0] sm:$0xff]  ;;  %vm15216_vm1 = vnez %v15164_v12 }
 0x233   : > { %3674 = vmatmul.mubr.bf16.gmra.mrb[28].mxu0 %v8491_v35  ;;  %4446 = vmatmul.mubr.bf16.gmra.mrb[28].mxu1 %v8491_v35  ;;  %v8516_v15 = vcombine.high %v941_v34, %v945_v36  ;;  %v729_v35 = vld [vmem:[%s11630_s29 + $0x2f0] sm:$0xff] }
 0x234   : > { %3683 = vmatprep.mubr.bf16.mxu0 %v8500_v1  ;;  %4455 = vmatprep.mubr.bf16.mxu1 %v8500_v1  ;;  %v949_v1 = vsel %vm15214_vm0, %v725_v21, 0  ;;  %v953_v57 = vsel %vm15215_vm13, %v729_v35, 0 }
 0x235   : > { %3793 = vmatpush1.bf16.msra.mxu0 %v10458_v39  ;;  %4564 = vmatprep.subr.bf16.mxu1 %v10472_v38  ;;  %v8515_v39 = vcombine.low %v941_v34, %v945_v36  ;;  %v8524_v38 = vcombine.high %v949_v1, %v953_v57  ;;  %v8523_v9 = vcombine.low %v949_v1, %v953_v57  ;;  %v749_v36 = vld [vmem:[%s11630_s29 + $0x390] sm:$0xff] }
 0x236   : > { %3794 = vmatprep.subr.bf16.mxu0 %v10469_v8  ;;  %4565 = vmatpush1.bf16.msra.mxu1 %v10470_v28  ;;  %v737_v8 = vld [vmem:[%s11630_s29 + $0x330] sm:$0xff]  ;;  %v957_v28 = vsel %vm15196_vm14, %v733_v16, 0 }
 0x237   : > { %4566 = vmatprep.subr.bf16.mxu1 %v10475_v0  ;;  %v961_v0 = vsel %vm15216_vm1, %v737_v8, 0  ;;  %v757_v57 = vld [vmem:[%s11630_s29 + $0x3d0] sm:$0xff] }
 0x238   : > { %v8532_v4 = vcombine.high %v957_v28, %v961_v0  ;;  %v8531_v32 = vcombine.low %v957_v28, %v961_v0  ;;  %v981_v16 = vsel %vm12117_vm11, %v757_v57, 0  ;;  %v10490_v57 = vld [vmem:[#allocation12 + $0x14] ss:$8 sps:$4 sm:$0xff]  }
 0x239   : > { %3795 = vmatpush1.bf16.msra.mxu0 %v10467_v13  ;;  %v741_v13 = vld [vmem:[%s11630_s29 + $0x350] sm:$0xff] }
 0x23a   : > { %4567 = vmatpush1.bf16.msra.mxu1 %v10473_v44  ;;  %v745_v44 = vld [vmem:[%s11630_s29 + $0x370] sm:$0xff] }
 0x23b   : > { %3684 = vmatmul.mubr.bf16.gmra.mrb[32].mxu0 %v8499_v56  ;;  %4456 = vmatmul.mubr.bf16.gmra.mrb[32].mxu1 %v8499_v56  ;;  %v10478_v56 = vld [vmem:[#allocation13 + $0x4] ss:$8 sps:$4 sm:$0xff]   ;;  %v969_v58 = vsel %vm15199_vm6, %v745_v44, 0 }
 0x23c   : > { %3693 = vmatprep.mubr.bf16.mxu0 %v8508_v23  ;;  %4465 = vmatprep.mubr.bf16.mxu1 %v8508_v23  ;;  %v965_v23 = vsel %vm15198_vm10, %v741_v13, 0 }
 0x23d   : > { %6163 = vmatprep.subr.bf16.mxu1 %v10478_v56  ;;  %v8540_v34 = vcombine.high %v965_v23, %v969_v58  ;;  %v8539_v35 = vcombine.low %v965_v23, %v969_v58  ;;  %v646_v58 = vld [vmem:[%s11630_s29 + $0x58] sm:$0xff] }
 0x243   : > { %3694 = vmatmul.mubr.bf16.gmra.mrb[36].mxu0 %v8507_v41  ;;  %4466 = vmatmul.mubr.bf16.gmra.mrb[36].mxu1 %v8507_v41  ;;  %v753_v41 = vld [vmem:[%s11630_s29 + $0x3b0] sm:$0xff] }
 0x244   : > { %3703 = vmatprep.mubr.bf16.mxu0 %v8516_v15  ;;  %4475 = vmatprep.mubr.bf16.mxu1 %v8516_v15  ;;  %v973_v15 = vsel %vm12089_vm3, %v749_v36, 0  ;;  %v977_v21 = vsel %vm15200_vm7, %v753_v41, 0 }
 0x245   : > { %v8548_v1 = vcombine.high %v973_v15, %v977_v21  ;;  %v8547_v28 = vcombine.low %v973_v15, %v977_v21  ;;  %v654_v15 = vld [vmem:[%s11630_s29 + $0x98] sm:$0xff]  ;;  %v10482_v21 = vld [vmem:[#allocation12] ss:$8 sps:$4 sm:$0xff]  }
 0x246   : > { %v878_v22 = vsel %vm11731_vm12, %v654_v15, 0  ;;  %v670_v15 = vld [vmem:[%s11630_s29 + $0x118] sm:$0xff]  ;;  %vm15221_vm12 = vnez %v15117_v29 }
 0x247   : > { %v10517_v29 = vld [vmem:[#allocation13 + $0x74] ss:$8 sps:$4 sm:$0xff]  }
 0x24b   : > { %3704 = vmatmul.mubr.bf16.gmra.mrb[40].mxu0 %v8515_v39  ;;  %4476 = vmatmul.mubr.bf16.gmra.mrb[40].mxu1 %v8515_v39  ;;  %v761_v39 = vld [vmem:[%s11630_s29 + $0x3f0] sm:$0xff] }
 0x24c   : > { %3713 = vmatprep.mubr.bf16.mxu0 %v8524_v38  ;;  %4485 = vmatprep.mubr.bf16.mxu1 %v8524_v38  ;;  %v10484_v38 = vld [vmem:[#allocation12 + $0x4] ss:$8 sps:$4 sm:$0xff]   ;;  %v985_v8 = vsel %vm12124_vm2, %v761_v39, 0  ;;  %v10479_v39 = vld [vmem:[#allocation13 + $0x10] ss:$8 sps:$4 sm:$0xff]  }
 0x24d   : > { %5317 = vmatprep.subr.bf16.mxu0 %v10484_v38  ;;  %v8556_v0 = vcombine.high %v981_v16, %v985_v8  ;;  %v8555_v56 = vcombine.low %v981_v16, %v985_v8  ;;  %v10488_v38 = vld [vmem:[#allocation12 + $0x10] ss:$8 sps:$4 sm:$0xff]   ;;  %v10487_v16 = vld [vmem:[#allocation13 + $0x24] ss:$8 sps:$4 sm:$0xff]  }
 0x24e   : > { %v10496_v8 = vld [vmem:[#allocation12 + $0x24] ss:$8 sps:$4 sm:$0xff]  }
 0x253   : > { %3714 = vmatmul.mubr.bf16.gmra.mrb[44].mxu0 %v8523_v9  ;;  %4486 = vmatmul.mubr.bf16.gmra.mrb[44].mxu1 %v8523_v9  ;;  %v638_v9 = vld [vmem:[%s11630_s29 + $0x18] sm:$0xff] }
 0x254   : > { %3723 = vmatprep.mubr.bf16.mxu0 %v8532_v4  ;;  %4495 = vmatprep.mubr.bf16.mxu1 %v8532_v4  ;;  %v642_v4 = vld [vmem:[%s11630_s29 + $0x38] sm:$0xff]  ;;  %v862_v13 = vsel %vm11667_vm4, %v638_v9, 0  ;;  %vm15217_vm4 = vnez %v15105_v45 }
 0x255   : > { %v866_v44 = vsel %vm11674_vm5, %v642_v4, 0  ;;  %v662_v9 = vld [vmem:[%s11630_s29 + $0xd8] sm:$0xff]  ;;  %v10485_v4 = vld [vmem:[#allocation13 + $0x20] ss:$8 sps:$4 sm:$0xff]   ;;  %vm15218_vm5 = vnez %v15108_v2 }
 0x256   : > { %v8438_v23 = vcombine.high %v862_v13, %v866_v44  ;;  %v8437_v60 = vcombine.low %v862_v13, %v866_v44  ;;  %v666_v13 = vld [vmem:[%s11630_s29 + $0xf8] sm:$0xff]  ;;  %v10506_v2 = vld [vmem:[#allocation12 + $0x40] ss:$8 sps:$4 sm:$0xff]  }
 0x257   : > { %v10493_v45 = vld [vmem:[#allocation13 + $0x34] ss:$8 sps:$4 sm:$0xff]  }
 0x258   : > { %v10502_v44 = vld [vmem:[#allocation12 + $0x34] ss:$8 sps:$4 sm:$0xff]  }
 0x25b   : > { %3724 = vmatmul.mubr.bf16.gmra.mrb[48].mxu0 %v8531_v32  ;;  %4496 = vmatmul.mubr.bf16.gmra.mrb[48].mxu1 %v8531_v32  ;;  %v650_v32 = vld [vmem:[%s11630_s29 + $0x78] sm:$0xff] }
 0x25c   : > { %3733 = vmatprep.mubr.bf16.mxu0 %v8540_v34  ;;  %4505 = vmatprep.mubr.bf16.mxu1 %v8540_v34  ;;  %v870_v34 = vsel %vm11697_vm8, %v646_v58, 0  ;;  %v874_v36 = vsel %vm11706_vm9, %v650_v32, 0  ;;  %vm15219_vm8 = vnez %v15112_v6  ;;  %v10491_v58 = vld [vmem:[#allocation13 + $0x30] ss:$8 sps:$4 sm:$0xff]   ;;  %v10505_v6 = vld [vmem:[#allocation13 + $0x54] ss:$8 sps:$4 sm:$0xff]   ;;  %vm15220_vm9 = vnez %v15114_v20 }
 0x25d   : > { %v8446_v41 = vcombine.high %v870_v34, %v874_v36  ;;  %v10500_v32 = vld [vmem:[#allocation12 + $0x30] ss:$8 sps:$4 sm:$0xff]   ;;  %v10518_v20 = vld [vmem:[#allocation12 + $0x60] ss:$8 sps:$4 sm:$0xff]  }
 0x263   : > { %3734 = vmatmul.mubr.bf16.gmra.mrb[52].mxu0 %v8539_v35  ;;  %4506 = vmatmul.mubr.bf16.gmra.mrb[52].mxu1 %v8539_v35  ;;  %v658_v35 = vld [vmem:[%s11630_s29 + $0xb8] sm:$0xff] }
 0x264   : > { %3743 = vmatprep.mubr.bf16.mxu0 %v8548_v1  ;;  %4515 = vmatprep.mubr.bf16.mxu1 %v8548_v1  ;;  %v10481_v1 = vld [vmem:[#allocation13 + $0x14] ss:$8 sps:$4 sm:$0xff]   ;;  %v882_v25 = vsel %vm15217_vm4, %v658_v35, 0  ;;  %vm15222_vm4 = vnez %v15120_v53  ;;  %v10530_v53 = vld [vmem:[#allocation12 + $0x80] ss:$8 sps:$4 sm:$0xff]  }
 0x265   : > { %v10514_v35 = vld [vmem:[#allocation12 + $0x54] ss:$8 sps:$4 sm:$0xff]  }
 0x26b   : > { %3744 = vmatmul.mubr.bf16.gmra.mrb[56].mxu0 %v8547_v28  ;;  %4516 = vmatmul.mubr.bf16.gmra.mrb[56].mxu1 %v8547_v28  ;;  %v8445_v28 = vcombine.low %v870_v34, %v874_v36  ;;  %v10499_v34 = vld [vmem:[#allocation13 + $0x44] ss:$8 sps:$4 sm:$0xff]  }
 0x26c   : > { %3753 = vmatprep.mubr.bf16.mxu0 %v8556_v0  ;;  %4525 = vmatprep.mubr.bf16.mxu1 %v8556_v0  ;;  %v8454_v0 = vcombine.high %v878_v22, %v882_v25  ;;  %v10508_v36 = vld [vmem:[#allocation12 + $0x44] ss:$8 sps:$4 sm:$0xff]  }
 0x273   : > { %3754 = vmatmul.mubr.bf16.gmra.mrb[60].mxu0 %v8555_v56  ;;  %4526 = vmatmul.mubr.bf16.gmra.mrb[60].mxu1 %v8555_v56  ;;  %v886_v56 = vsel %vm15218_vm5, %v662_v9, 0  ;;  %v682_v9 = vld [vmem:[%s11630_s29 + $0x178] sm:$0xff]  ;;  %vm15223_vm5 = vnez %v15124_v63 }
 0x274   : > { %3796 = vmatprep.mubr.bf16.mxu0 %v8438_v23  ;;  %4568 = vmatprep.mubr.bf16.mxu1 %v8438_v23  ;;  %v890_v23 = vsel %vm15219_vm8, %v666_v13, 0  ;;  %v906_v13 = vsel %vm15223_vm5, %v682_v9, 0  ;;  %v10529_v63 = vld [vmem:[#allocation13 + $0x94] ss:$8 sps:$4 sm:$0xff]   ;;  %vm15224_vm8 = vnez %v15126_v17  ;;  %v10542_v17 = vld [vmem:[#allocation12 + $0xa0] ss:$8 sps:$4 sm:$0xff]   ;;  %vm15228_vm5 = vnez %v15139_v49 }
 0x275   : > { %v10556_v9 = vld [vmem:[#allocation12 + $0xc4] ss:$8 sps:$4 sm:$0xff]   ;;  %v710_v49 = vld [vmem:[%s11630_s29 + $0x258] sm:$0xff] }
 0x27b   : > { %3797 = vmatmul.mubr.bf16.vlgmr.msra.gmra.mrb[0].mxu0 %v8437_v60  ;;  %4569 = vmatmul.mubr.bf16.vlgmr.msra.gmra.mrb[0].mxu1 %v8437_v60  ;;  %v8453_v60 = vcombine.low %v878_v22, %v882_v25  ;;  %v10503_v22 = vld [vmem:[#allocation13 + $0x50] ss:$8 sps:$4 sm:$0xff]  }
 0x27c   : > { %3806 = vmatprep.mubr.bf16.mxu0 %v8446_v41  ;;  %4578 = vmatprep.mubr.bf16.mxu1 %v8446_v41  ;;  %v8462_v41 = vcombine.high %v886_v56, %v890_v23  ;;  %v10512_v25 = vld [vmem:[#allocation12 + $0x50] ss:$8 sps:$4 sm:$0xff]  }
 0x27d   : > { %6164 = vmatpush1.bf16.msra.mxu1 %v10476_v62  ;;  %5318 = vmatpush1.bf16.msra.mxu0 %v10482_v21  ;;  %v10497_v62 = vld [vmem:[#allocation13 + $0x40] ss:$8 sps:$4 sm:$0xff]   ;;  %v674_v21 = vld [vmem:[%s11630_s29 + $0x138] sm:$0xff] }
 0x27e   : > { %6165 = vmatprep.subr.bf16.mxu1 %v10481_v1  ;;  %5319 = vmatprep.subr.bf16.mxu0 %v10490_v57  ;;  %v894_v1 = vsel %vm15220_vm9, %v670_v15, 0  ;;  %v898_v57 = vsel %vm15221_vm12, %v674_v21, 0  ;;  %vm15225_vm9 = vnez %v15128_v24  ;;  %v10536_v21 = vld [vmem:[#allocation12 + $0x90] ss:$8 sps:$4 sm:$0xff]   ;;  %v10541_v24 = vld [vmem:[#allocation13 + $0xb4] ss:$8 sps:$4 sm:$0xff]   ;;  %vm15226_vm12 = vnez %v15132_v55 }
 0x27f   : > { %v10554_v55 = vld [vmem:[#allocation12 + $0xc0] ss:$8 sps:$4 sm:$0xff]  }
 0x281   : > { %6166 = vmatpush1.bf16.msra.mxu1 %v10479_v39  ;;  %5320 = vmatpush1.bf16.msra.mxu0 %v10488_v38  ;;  %v10511_v39 = vld [vmem:[#allocation13 + $0x64] ss:$8 sps:$4 sm:$0xff]  }
 0x282   : > { %6167 = vmatprep.subr.bf16.mxu1 %v10487_v16  ;;  %5321 = vmatprep.subr.bf16.mxu0 %v10496_v8  ;;  %v10520_v38 = vld [vmem:[#allocation12 + $0x64] ss:$8 sps:$4 sm:$0xff]   ;;  %v8461_v16 = vcombine.low %v886_v56, %v890_v23  ;;  %v8470_v8 = vcombine.high %v894_v1, %v898_v57 }
 0x283   : > { %3807 = vmatmul.mubr.bf16.gmra.mrb[4].mxu0 %v8445_v28  ;;  %4579 = vmatmul.mubr.bf16.gmra.mrb[4].mxu1 %v8445_v28  ;;  %v678_v28 = vld [vmem:[%s11630_s29 + $0x158] sm:$0xff]  ;;  %v10523_v56 = vld [vmem:[#allocation13 + $0x84] ss:$8 sps:$4 sm:$0xff]  }
 0x284   : > { %3816 = vmatprep.mubr.bf16.mxu0 %v8454_v0  ;;  %4588 = vmatprep.mubr.bf16.mxu1 %v8454_v0  ;;  %v10509_v0 = vld [vmem:[#allocation13 + $0x60] ss:$8 sps:$4 sm:$0xff]   ;;  %v10532_v23 = vld [vmem:[#allocation12 + $0x84] ss:$8 sps:$4 sm:$0xff]  }
 0x285   : > { %6168 = vmatpush1.bf16.msra.mxu1 %v10485_v4  ;;  %5322 = vmatpush1.bf16.msra.mxu0 %v10494_v43  ;;  %v10526_v4 = vld [vmem:[#allocation12 + $0x74] ss:$8 sps:$4 sm:$0xff]   ;;  %v902_v43 = vsel %vm15222_vm4, %v678_v28, 0  ;;  %vm15227_vm4 = vnez %v15135_v7  ;;  %v10539_v28 = vld [vmem:[#allocation13 + $0xb0] ss:$8 sps:$4 sm:$0xff]  }
 0x286   : > { %6169 = vmatprep.subr.bf16.mxu1 %v10493_v45  ;;  %5323 = vmatprep.subr.bf16.mxu0 %v10502_v44  ;;  %v10515_v45 = vld [vmem:[#allocation13 + $0x70] ss:$8 sps:$4 sm:$0xff]   ;;  %v10553_v7 = vld [vmem:[#allocation13 + $0xd4] ss:$8 sps:$4 sm:$0xff]  }
 0x287   : > { %v10524_v44 = vld [vmem:[#allocation12 + $0x70] ss:$8 sps:$4 sm:$0xff]  }
 0x289   : > { %6170 = vmatpush1.bf16.msra.mxu1 %v10491_v58  ;;  %5324 = vmatpush1.bf16.msra.mxu0 %v10500_v32  ;;  %v8469_v58 = vcombine.low %v894_v1, %v898_v57  ;;  %v8478_v32 = vcombine.high %v902_v43, %v906_v13  ;;  %v8477_v1 = vcombine.low %v902_v43, %v906_v13  ;;  %v702_v43 = vld [vmem:[%s11630_s29 + $0x218] sm:$0xff]  ;;  %v10545_v13 = vld [vmem:[#allocation13 + $0xc0] ss:$8 sps:$4 sm:$0xff]  }
 0x28a   : > { %6171 = vmatprep.subr.bf16.mxu1 %v10499_v34  ;;  %5325 = vmatprep.subr.bf16.mxu0 %v10508_v36  ;;  %v686_v34 = vld [vmem:[%s11630_s29 + $0x198] sm:$0xff]  ;;  %v10521_v36 = vld [vmem:[#allocation13 + $0x80] ss:$8 sps:$4 sm:$0xff]  }
 0x28b   : > { %3817 = vmatmul.mubr.bf16.gmra.mrb[8].mxu0 %v8453_v60  ;;  %4589 = vmatmul.mubr.bf16.gmra.mrb[8].mxu1 %v8453_v60  ;;  %v690_v60 = vld [vmem:[%s11630_s29 + $0x1b8] sm:$0xff]  ;;  %v910_v15 = vsel %vm15224_vm8, %v686_v34, 0  ;;  %vm15229_vm8 = vnez %v15142_v54  ;;  %v10559_v34 = vld [vmem:[#allocation13 + $0xe4] ss:$8 sps:$4 sm:$0xff]  }
 0x28c   : > { %3826 = vmatprep.mubr.bf16.mxu0 %v8462_v41  ;;  %4598 = vmatprep.mubr.bf16.mxu1 %v8462_v41  ;;  %v10538_v41 = vld [vmem:[#allocation12 + $0x94] ss:$8 sps:$4 sm:$0xff]  }
 0x28d   : > { %6172 = vmatpush1.bf16.msra.mxu1 %v10497_v62  ;;  %5326 = vmatpush1.bf16.msra.mxu0 %v10506_v2  ;;  %v914_v62 = vsel %vm15225_vm9, %v690_v60, 0  ;;  %v10527_v2 = vld [vmem:[#allocation13 + $0x90] ss:$8 sps:$4 sm:$0xff]   ;;  %v10557_v60 = vld [vmem:[#allocation13 + $0xe0] ss:$8 sps:$4 sm:$0xff]   ;;  %vm15230_vm9 = vnez %v15146_v14 }
 0x28e   : > { %6173 = vmatprep.subr.bf16.mxu1 %v10505_v6  ;;  %5327 = vmatprep.subr.bf16.mxu0 %v10514_v35  ;;  %v10535_v6 = vld [vmem:[#allocation13 + $0xa4] ss:$8 sps:$4 sm:$0xff]   ;;  %v8486_v57 = vcombine.high %v910_v15, %v914_v62  ;;  %v934_v54 = vsel %vm15230_vm9, %v710_v49, 0 }
 0x28f   : > { %v10544_v35 = vld [vmem:[#allocation12 + $0xa4] ss:$8 sps:$4 sm:$0xff]  }
 0x291   : > { %6174 = vmatpush1.bf16.msra.mxu1 %v10503_v22  ;;  %5328 = vmatpush1.bf16.msra.mxu0 %v10512_v25  ;;  %v694_v22 = vld [vmem:[%s11630_s29 + $0x1d8] sm:$0xff]  ;;  %v10533_v25 = vld [vmem:[#allocation13 + $0xa0] ss:$8 sps:$4 sm:$0xff]  }
 0x292   : > { %6175 = vmatprep.subr.bf16.mxu1 %v10511_v39  ;;  %5329 = vmatprep.subr.bf16.mxu0 %v10520_v38  ;;  %v698_v39 = vld [vmem:[%s11630_s29 + $0x1f8] sm:$0xff] }
 0x293   : > { %3827 = vmatmul.mubr.bf16.gmra.mrb[12].mxu0 %v8461_v16  ;;  %4599 = vmatmul.mubr.bf16.gmra.mrb[12].mxu1 %v8461_v16  ;;  %v10550_v38 = vld [vmem:[#allocation12 + $0xb4] ss:$8 sps:$4 sm:$0xff]   ;;  %v918_v16 = vsel %vm15226_vm12, %v694_v22, 0  ;;  %vm15231_vm12 = vnez %v15148_v30 }
 0x294   : > { %3836 = vmatprep.mubr.bf16.mxu0 %v8470_v8  ;;  %4608 = vmatprep.mubr.bf16.mxu1 %v8470_v8  ;;  %v922_v8 = vsel %vm15227_vm4, %v698_v39, 0  ;;  %vm15232_vm4 = vnez %v15152_v37  ;;  %v734_v37 = vld [vmem:[%s11630_s29 + $0x318] sm:$0xff] }
 0x295   : > { %6176 = vmatpush1.bf16.msra.mxu1 %v10509_v0  ;;  %5330 = vmatpush1.bf16.msra.mxu0 %v10518_v20  ;;  %v10548_v0 = vld [vmem:[#allocation12 + $0xb0] ss:$8 sps:$4 sm:$0xff]   ;;  %v10547_v20 = vld [vmem:[#allocation13 + $0xc4] ss:$8 sps:$4 sm:$0xff]  }
 0x296   : > { %6177 = vmatprep.subr.bf16.mxu1 %v10517_v29  ;;  %5331 = vmatprep.subr.bf16.mxu0 %v10526_v4  ;;  %v8485_v29 = vcombine.low %v910_v15, %v914_v62  ;;  %v8494_v4 = vcombine.high %v918_v16, %v922_v8  ;;  %v738_v39 = vld [vmem:[%s11630_s29 + $0x338] sm:$0xff] }
 0x297   : > { %v962_v61 = vsel %vm15216_vm1, %v738_v39, 0 }
 0x299   : > { %6178 = vmatpush1.bf16.msra.mxu1 %v10515_v45  ;;  %5332 = vmatpush1.bf16.msra.mxu0 %v10524_v44  ;;  %v706_v45 = vld [vmem:[%s11630_s29 + $0x238] sm:$0xff] }
 0x29a   : > { %6179 = vmatprep.subr.bf16.mxu1 %v10523_v56  ;;  %5333 = vmatprep.subr.bf16.mxu0 %v10532_v23  ;;  %v10562_v44 = vld [vmem:[#allocation12 + $0xd4] ss:$8 sps:$4 sm:$0xff]   ;;  %v926_v56 = vsel %vm15228_vm5, %v702_v43, 0  ;;  %v930_v23 = vsel %vm15229_vm8, %v706_v45, 0 }
 0x29b   : > { %3837 = vmatmul.mubr.bf16.gmra.mrb[16].mxu0 %v8469_v58  ;;  %4609 = vmatmul.mubr.bf16.gmra.mrb[16].mxu1 %v8469_v58  ;;  %v10551_v58 = vld [vmem:[#allocation13 + $0xd0] ss:$8 sps:$4 sm:$0xff]   ;;  %v8501_v15 = vcombine.low %v926_v56, %v930_v23 }
 0x29c   : > { %3846 = vmatprep.mubr.bf16.mxu0 %v8478_v32  ;;  %4618 = vmatprep.mubr.bf16.mxu1 %v8478_v32  ;;  %v10560_v32 = vld [vmem:[#allocation12 + $0xd0] ss:$8 sps:$4 sm:$0xff]  }
 0x29d   : > { %6180 = vmatpush1.bf16.msra.mxu1 %v10521_v36  ;;  %5334 = vmatpush1.bf16.msra.mxu0 %v10530_v53  ;;  %v8493_v36 = vcombine.low %v918_v16, %v922_v8  ;;  %v8502_v53 = vcombine.high %v926_v56, %v930_v23  ;;  %v10565_v16 = vld [vmem:[#allocation12 + $0xe4] ss:$8 sps:$4 sm:$0xff]   ;;  %v10563_v8 = vld [vmem:[#allocation12 + $0xe0] ss:$8 sps:$4 sm:$0xff]   ;;  %v754_v45 = vld [vmem:[%s11630_s29 + $0x3b8] sm:$0xff] }
 0x29e   : > { %6181 = vmatprep.subr.bf16.mxu1 %v10529_v63  ;;  %5335 = vmatprep.subr.bf16.mxu0 %v10538_v41  ;;  %v714_v63 = vld [vmem:[%s11630_s29 + $0x278] sm:$0xff]  ;;  %v978_v5 = vsel %vm15200_vm7, %v754_v45, 0 }
 0x29f   : > { %v938_v41 = vsel %vm15231_vm12, %v714_v63, 0  ;;  %v758_v23 = vld [vmem:[%s11630_s29 + $0x3d8] sm:$0xff]  ;;  %v12437_v63 = vrot.slane %v12426_v46, %v12429_v33 }
 0x2a0   : > { %v8510_v62 = vcombine.high %v934_v54, %v938_v41  ;;  %v8509_v30 = vcombine.low %v934_v54, %v938_v41  ;;  %v10584_v45 = vld [vmem:[#allocation12 + $0x110] ss:$8 sps:$4 sm:$0xff]  }
 0x2a1   : > { %6182 = vmatpush1.bf16.msra.mxu1 %v10527_v2  ;;  %5336 = vmatpush1.bf16.msra.mxu0 %v10536_v21  ;;  %v718_v2 = vld [vmem:[%s11630_s29 + $0x298] sm:$0xff] }
 0x2a2   : > { %6183 = vmatprep.subr.bf16.mxu1 %v10535_v6  ;;  %5337 = vmatprep.subr.bf16.mxu0 %v10544_v35  ;;  %v722_v21 = vld [vmem:[%s11630_s29 + $0x2b8] sm:$0xff]  ;;  %v942_v14 = vsel %vm15212_vm15, %v718_v2, 0 }
 0x2a3   : > { %3847 = vmatmul.mubr.bf16.gmra.mrb[20].mxu0 %v8477_v1  ;;  %4619 = vmatmul.mubr.bf16.gmra.mrb[20].mxu1 %v8477_v1  ;;  %v946_v6 = vsel %vm15232_vm4, %v722_v21, 0  ;;  %v726_v1 = vld [vmem:[%s11630_s29 + $0x2d8] sm:$0xff] }
 0x2a4   : > { %3856 = vmatprep.mubr.bf16.mxu0 %v8486_v57  ;;  %4628 = vmatprep.mubr.bf16.mxu1 %v8486_v57  ;;  %v8518_v35 = vcombine.high %v942_v14, %v946_v6  ;;  %v730_v57 = vld [vmem:[%s11630_s29 + $0x2f8] sm:$0xff]  ;;  %v950_v22 = vsel %vm15214_vm0, %v726_v1, 0  ;;  %v8517_v18 = vcombine.low %v942_v14, %v946_v6 }
 0x2a5   : > { %6184 = vmatpush1.bf16.msra.mxu1 %v10533_v25  ;;  %5338 = vmatpush1.bf16.msra.mxu0 %v10542_v17  ;;  %v954_v25 = vsel %vm15215_vm13, %v730_v57, 0 }
 0x2a6   : > { %6185 = vmatprep.subr.bf16.mxu1 %v10541_v24  ;;  %5339 = vmatprep.subr.bf16.mxu0 %v10550_v38  ;;  %v8526_v17 = vcombine.high %v950_v22, %v954_v25  ;;  %v958_v24 = vsel %vm15196_vm14, %v734_v37, 0  ;;  %v8525_v38 = vcombine.low %v950_v22, %v954_v25 }
 0x2a7   : > { %v8534_v51 = vcombine.high %v958_v24, %v962_v61  ;;  %v8533_v43 = vcombine.low %v958_v24, %v962_v61  ;;  %v10572_v61 = vld [vmem:[#allocation13 + $0x100] ss:$8 sps:$4 sm:$0xff]  }
 0x2a9   : > { %6186 = vmatpush1.bf16.msra.mxu1 %v10539_v28  ;;  %5340 = vmatpush1.bf16.msra.mxu0 %v10548_v0  ;;  %v742_v28 = vld [vmem:[%s11630_s29 + $0x358] sm:$0xff] }
 0x2aa   : > { %6187 = vmatprep.subr.bf16.mxu1 %v10547_v20  ;;  %5341 = vmatprep.subr.bf16.mxu0 %v10556_v9  ;;  %v746_v0 = vld [vmem:[%s11630_s29 + $0x378] sm:$0xff]  ;;  %v966_v12 = vsel %vm15198_vm10, %v742_v28, 0 }
 0x2ab   : > { %3857 = vmatmul.mubr.bf16.gmra.mrb[24].mxu0 %v8485_v29  ;;  %4629 = vmatmul.mubr.bf16.gmra.mrb[24].mxu1 %v8485_v29  ;;  %v10568_v20 = vld [vmem:[#allocation13 + $0xf4] ss:$8 sps:$4 sm:$0xff]   ;;  %v10569_v29 = vld [vmem:[#allocation12 + $0xf0] ss:$8 sps:$4 sm:$0xff]  }
 0x2ac   : > { %3866 = vmatprep.mubr.bf16.mxu0 %v8494_v4  ;;  %4638 = vmatprep.mubr.bf16.mxu1 %v8494_v4  ;;  %v10571_v9 = vld [vmem:[#allocation12 + $0xf4] ss:$8 sps:$4 sm:$0xff]   ;;  %v970_v4 = vsel %vm15199_vm6, %v746_v0, 0 }
 0x2ad   : > { %6188 = vmatpush1.bf16.msra.mxu1 %v10545_v13  ;;  %5342 = vmatpush1.bf16.msra.mxu0 %v10554_v55  ;;  %v8542_v13 = vcombine.high %v966_v12, %v970_v4  ;;  %v750_v55 = vld [vmem:[%s11630_s29 + $0x398] sm:$0xff] }
 0x2ae   : > { %6189 = vmatprep.subr.bf16.mxu1 %v10553_v7  ;;  %5343 = vmatprep.subr.bf16.mxu0 %v10562_v44  ;;  %v974_v31 = vsel %vm12089_vm3, %v750_v55, 0  ;;  %v10574_v7 = vld [vmem:[#allocation13 + $0x104] ss:$8 sps:$4 sm:$0xff]   ;;  %v8541_v44 = vcombine.low %v966_v12, %v970_v4  ;;  %v10577_v28 = vld [vmem:[#allocation13 + $0x114] ss:$8 sps:$4 sm:$0xff]   ;;  %vm7241_vm3 = vcmask 7168  }
 0x2af   : > { %v8550_v56 = vcombine.high %v974_v31, %v978_v5  ;;  %v10586_v0 = vld [vmem:[#allocation12 + $0x114] ss:$8 sps:$4 sm:$0xff]   ;;  %v10575_v55 = vld [vmem:[#allocation13 + $0x110] ss:$8 sps:$4 sm:$0xff]  }
 0x2b1   : > { %6190 = vmatpush1.bf16.msra.mxu1 %v10551_v58  ;;  %5344 = vmatpush1.bf16.msra.mxu0 %v10560_v32  ;;  %v762_v58 = vld [vmem:[%s11630_s29 + $0x3f8] sm:$0xff]  ;;  %v982_v32 = vsel %vm12117_vm11, %v758_v23, 0 }
 0x2b2   : > { %6191 = vmatprep.subr.bf16.mxu1 %v10559_v34  ;;  %5345 = vmatprep.subr.bf16.mxu0 %v10565_v16  ;;  %v986_v19 = vsel %vm12124_vm2, %v762_v58, 0  ;;  %v8549_v34 = vcombine.low %v974_v31, %v978_v5  ;;  %v10583_v5 = vld [vmem:[#allocation13 + $0x124] ss:$8 sps:$4 sm:$0xff]  }
 0x2b3   : > { %3867 = vmatmul.mubr.bf16.gmra.mrb[28].mxu0 %v8493_v36  ;;  %4639 = vmatmul.mubr.bf16.gmra.mrb[28].mxu1 %v8493_v36  ;;  %v8558_v36 = vcombine.high %v982_v32, %v986_v19 }
 0x2b4   : > { %3876 = vmatprep.mubr.bf16.mxu0 %v8502_v53  ;;  %4648 = vmatprep.mubr.bf16.mxu1 %v8502_v53  ;;  %v8557_v53 = vcombine.low %v982_v32, %v986_v19 }
 0x2b5   : > { %6192 = vmatpush1.bf16.msra.mxu1 %v10557_v60  ;;  %5346 = vmatpush1.bf16.msra.mxu0 %v10563_v8  ;;  %v12421_v60 = vsub.s32 1, %v11647_v40 }
 0x2b6   : > { %6193 = vmatprep.subr.bf16.mxu1 %v10568_v20  ;;  %5347 = vmatprep.subr.bf16.mxu0 %v10571_v9 }
 0x2b7   : > { %15233 = vst [vmem:[#allocation56_spill] sm:$0xff] %v12421_v60  ;;  %v12433_v49 = vrot.slane %v12426_v46, %v12421_v60 }
 0x2b9   : > { %6194 = vmatpush1.bf16.msra.mxu1 %v10566_v48  ;;  %5348 = vmatpush1.bf16.msra.mxu0 %v10569_v29 }
 0x2ba   : > { %6356 = vmatprep.subr.bf16.mxu1 %v10574_v7  ;;  %5510 = vmatprep.subr.bf16.mxu0 %v10580_v59  ;;  %v10592_v7 = vld [vmem:[#allocation12 + $0x124] ss:$8 sps:$4 sm:$0xff]  }
 0x2bb   : > { %3877 = vmatmul.mubr.bf16.gmra.mrb[32].mxu0 %v8501_v15  ;;  %4649 = vmatmul.mubr.bf16.gmra.mrb[32].mxu1 %v8501_v15 }
 0x2bc   : > { %3886 = vmatprep.mubr.bf16.mxu0 %v8510_v62  ;;  %4658 = vmatprep.mubr.bf16.mxu1 %v8510_v62 }
 0x2c3   : > { %3887 = vmatmul.mubr.bf16.gmra.mrb[36].mxu0 %v8509_v30  ;;  %4659 = vmatmul.mubr.bf16.gmra.mrb[36].mxu1 %v8509_v30 }
 0x2c4   : > { %3896 = vmatprep.mubr.bf16.mxu0 %v8518_v35  ;;  %4668 = vmatprep.mubr.bf16.mxu1 %v8518_v35 }
 0x2cb   : > { %3897 = vmatmul.mubr.bf16.gmra.mrb[40].mxu0 %v8517_v18  ;;  %4669 = vmatmul.mubr.bf16.gmra.mrb[40].mxu1 %v8517_v18 }
 0x2cc   : > { %3906 = vmatprep.mubr.bf16.mxu0 %v8526_v17  ;;  %4678 = vmatprep.mubr.bf16.mxu1 %v8526_v17 }
 0x2d3   : > { %3907 = vmatmul.mubr.bf16.gmra.mrb[44].mxu0 %v8525_v38  ;;  %4679 = vmatmul.mubr.bf16.gmra.mrb[44].mxu1 %v8525_v38  ;;  %v10578_v38 = vld [vmem:[#allocation12 + $0x100] ss:$8 sps:$4 sm:$0xff]  }
 0x2d4   : > { %3916 = vmatprep.mubr.bf16.mxu0 %v8534_v51  ;;  %4688 = vmatprep.mubr.bf16.mxu1 %v8534_v51 }
 0x2db   : > { %3917 = vmatmul.mubr.bf16.gmra.mrb[48].mxu0 %v8533_v43  ;;  %4689 = vmatmul.mubr.bf16.gmra.mrb[48].mxu1 %v8533_v43 }
 0x2dc   : > { %3926 = vmatprep.mubr.bf16.mxu0 %v8542_v13  ;;  %4698 = vmatprep.mubr.bf16.mxu1 %v8542_v13 }
 0x2e3   : > { %3927 = vmatmul.mubr.bf16.gmra.mrb[52].mxu0 %v8541_v44  ;;  %4699 = vmatmul.mubr.bf16.gmra.mrb[52].mxu1 %v8541_v44 }
 0x2e4   : > { %3936 = vmatprep.mubr.bf16.mxu0 %v8550_v56  ;;  %4708 = vmatprep.mubr.bf16.mxu1 %v8550_v56 }
 0x2eb   : > { %3937 = vmatmul.mubr.bf16.gmra.mrb[56].mxu0 %v8549_v34  ;;  %4709 = vmatmul.mubr.bf16.gmra.mrb[56].mxu1 %v8549_v34  ;;  %v10581_v34 = vld [vmem:[#allocation13 + $0x120] ss:$8 sps:$4 sm:$0xff]  }
 0x2ec   : > { %3946 = vmatprep.mubr.bf16.mxu0 %v8558_v36  ;;  %4718 = vmatprep.mubr.bf16.mxu1 %v8558_v36  ;;  %v10590_v36 = vld [vmem:[#allocation12 + $0x120] ss:$8 sps:$4 sm:$0xff]  }
 0x2f3   : > { %3947 = vmatmul.mubr.bf16.gmra.mrb[60].mxu0 %v8557_v53  ;;  %4719 = vmatmul.mubr.bf16.gmra.mrb[60].mxu1 %v8557_v53 }
 0x34e   : > { %v3798_v54 = vpop.f32.mrb[0].mxu0  ;;  %v12439_v41 = vpop.f32.mrb[0].mxu1 }
 0x34f   : > { %v3800_v15 = vpop.f32.mrb[1].mxu0  ;;  %v12441_v62 = vpop.f32.mrb[1].mxu1  ;;  %v12449_v6 = vadd.f32 %v3798_v54, %v12437_v63 }
 0x350   : > { %v12444_v2 = vadd.f32 %v3800_v15, %v12433_v49  ;;  %v3802_v21 = vpop.f32.mrb[2].mxu0  ;;  %v12446_v14 = vpop.f32.mrb[2].mxu1  ;;  %v10589_v15 = vld [vmem:[#allocation13 + $0x134] ss:$8 sps:$4 sm:$0xff]  }
 0x351   : > { %15236 = vst [vmem:[#allocation59_spill] sm:$0xff] %v12449_v6  ;;  %v12452_v30 = vadd.f32 %v3802_v21, %v12437_v63  ;;  %v3804_v35 = vpop.f32.mrb[3].mxu0  ;;  %v12454_v1 = vpop.f32.mrb[3].mxu1  ;;  %v14804_v17 = vmax.f32 %v12449_v6, 0.0  ;;  %v10598_v21 = vld [vmem:[#allocation12 + $0x134] ss:$8 sps:$4 sm:$0xff]  }
 0x352   : > { %15235 = vst [vmem:[#allocation58_spill] sm:$0xff] %v12444_v2  ;;  %v12457_v57 = vadd.f32 %v3804_v35, %v12433_v49  ;;  %v14803_v25 = vmax.f32 %v12444_v2, 0.0 }
 0x353   : > { %15237 = vst [vmem:[#allocation60_spill] sm:$0xff] %v12452_v30  ;;  %v14802_v22 = vmax.f32 %v12452_v30, 0.0 }
 0x354   : > { %15238 = vst [vmem:[#allocation61_spill] sm:$0xff] %v12457_v57  ;;  %v14801_v18 = vmax.f32 %v12457_v57, 0.0 }
 0x355   : > { %v4857_v16 = vpack.c.bf16 %v14802_v22, %v14804_v17  ;;  %v10613_v17 = vld [vmem:[#allocation13 + $0x174] ss:$8 sps:$4 sm:$0xff]  }
 0x356   : > { %v4858_v37 = vpack.c.bf16 %v14801_v18, %v14803_v25  ;;  %v3808_v39 = vpop.f32.mrb[4].mxu0  ;;  %v12467_v24 = vpop.f32.mrb[4].mxu1 }
 0x357   : > { %v3810_v51 = vpop.f32.mrb[5].mxu0  ;;  %v12473_v8 = vpop.f32.mrb[5].mxu1  ;;  %v12481_v29 = vadd.f32 %v3808_v39, %v12437_v63 }
 0x358   : > { %v12476_v20 = vadd.f32 %v3810_v51, %v12433_v49  ;;  %v3812_v9 = vpop.f32.mrb[6].mxu0  ;;  %v12478_v48 = vpop.f32.mrb[6].mxu1  ;;  %5349 = vmatprep.mubr.bf16.mxu0 %v4858_v37  ;;  %6195 = vmatprep.mubr.bf16.mxu1 %v4858_v37 }
 0x359   : > { %15240 = vst [vmem:[#allocation63_spill] sm:$0xff] %v12481_v29  ;;  %v12484_v12 = vadd.f32 %v3812_v9, %v12437_v63  ;;  %v3814_v4 = vpop.f32.mrb[7].mxu0  ;;  %v12486_v43 = vpop.f32.mrb[7].mxu1  ;;  %5350 = vmatmul.mubr.bf16.vlgmr.msra.gmra.mrb[64].mxu0 %v4857_v16  ;;  %6196 = vmatmul.mubr.bf16.vlgmr.msra.gmra.mrb[64].mxu1 %v4857_v16  ;;  %v14800_v23 = vmax.f32 %v12481_v29, 0.0  ;;  %v10596_v9 = vld [vmem:[#allocation12 + $0x130] ss:$8 sps:$4 sm:$0xff]  }
 0x35a   : > { %15239 = vst [vmem:[#allocation62_spill] sm:$0xff] %v12476_v20  ;;  %v12489_v13 = vadd.f32 %v3814_v4, %v12433_v49  ;;  %6357 = vmatpush1.bf16.msra.mxu1 %v10572_v61  ;;  %5511 = vmatpush1.bf16.msra.mxu0 %v10578_v38  ;;  %v14799_v44 = vmax.f32 %v12476_v20, 0.0 }
 0x35b   : > { %15241 = vst [vmem:[#allocation64_spill] sm:$0xff] %v12484_v12  ;;  %v14798_v31 = vmax.f32 %v12484_v12, 0.0  ;;  %6358 = vmatprep.subr.bf16.mxu1 %v10577_v28  ;;  %5512 = vmatprep.subr.bf16.mxu0 %v10586_v0  ;;  %v10587_v0 = vld [vmem:[#allocation13 + $0x130] ss:$8 sps:$4 sm:$0xff]  }
 0x35c   : > { %15242 = vst [vmem:[#allocation65_spill] sm:$0xff] %v12489_v13  ;;  %v14793_v56 = vmax.f32 %v12489_v13, 0.0 }
 0x35d   : > { %v4861_v59 = vpack.c.bf16 %v14798_v31, %v14800_v23 }
 0x35e   : > { %v4862_v58 = vpack.c.bf16 %v14793_v56, %v14799_v44  ;;  %v3818_v32 = vpop.f32.mrb[8].mxu0  ;;  %v12499_v19 = vpop.f32.mrb[8].mxu1  ;;  %6359 = vmatpush1.bf16.msra.mxu1 %v10575_v55  ;;  %5513 = vmatpush1.bf16.msra.mxu0 %v10584_v45  ;;  %v10595_v55 = vld [vmem:[#allocation13 + $0x144] ss:$8 sps:$4 sm:$0xff]   ;;  %v10610_v56 = vld [vmem:[#allocation12 + $0x154] ss:$8 sps:$4 sm:$0xff]  }
 0x35f   : > { %v3820_v53 = vpop.f32.mrb[9].mxu0  ;;  %v12505_v54 = vpop.f32.mrb[9].mxu1  ;;  %6360 = vmatprep.subr.bf16.mxu1 %v10583_v5  ;;  %5514 = vmatprep.subr.bf16.mxu0 %v10592_v7  ;;  %v12513_v61 = vadd.f32 %v3818_v32, %v12437_v63  ;;  %v10604_v45 = vld [vmem:[#allocation12 + $0x144] ss:$8 sps:$4 sm:$0xff]  }
 0x360   : > { %v12508_v35 = vadd.f32 %v3820_v53, %v12433_v49  ;;  %v3822_v37 = vpop.f32.mrb[10].mxu0  ;;  %v12510_v39 = vpop.f32.mrb[10].mxu1  ;;  %5359 = vmatprep.mubr.bf16.mxu0 %v4862_v58  ;;  %6205 = vmatprep.mubr.bf16.mxu1 %v4862_v58  ;;  %v10602_v53 = vld [vmem:[#allocation12 + $0x140] ss:$8 sps:$4 sm:$0xff]   ;;  %v10616_v44 = vld [vmem:[#allocation12 + $0x164] ss:$8 sps:$4 sm:$0xff]  }
 0x361   : > { %15244 = vst [vmem:[#allocation67_spill] sm:$0xff] %v12513_v61  ;;  %v12516_v38 = vadd.f32 %v3822_v37, %v12437_v63  ;;  %v3824_v16 = vpop.f32.mrb[11].mxu0  ;;  %v12518_v51 = vpop.f32.mrb[11].mxu1  ;;  %5360 = vmatmul.mubr.bf16.gmra.mrb[68].mxu0 %v4861_v59  ;;  %6206 = vmatmul.mubr.bf16.gmra.mrb[68].mxu1 %v4861_v59  ;;  %v14797_v58 = vmax.f32 %v12513_v61, 0.0  ;;  %v10593_v59 = vld [vmem:[#allocation13 + $0x140] ss:$8 sps:$4 sm:$0xff]  }
 0x362   : > { %15243 = vst [vmem:[#allocation66_spill] sm:$0xff] %v12508_v35  ;;  %v12521_v28 = vadd.f32 %v3824_v16, %v12433_v49  ;;  %6361 = vmatpush1.bf16.msra.mxu1 %v10581_v34  ;;  %5515 = vmatpush1.bf16.msra.mxu0 %v10590_v36  ;;  %v14795_v5 = vmax.f32 %v12508_v35, 0.0  ;;  %v10601_v16 = vld [vmem:[#allocation13 + $0x154] ss:$8 sps:$4 sm:$0xff]  }
 0x363   : > { %15245 = vst [vmem:[#allocation68_spill] sm:$0xff] %v12516_v38  ;;  %v14796_v4 = vmax.f32 %v12516_v38, 0.0  ;;  %6362 = vmatprep.subr.bf16.mxu1 %v10589_v15  ;;  %5516 = vmatprep.subr.bf16.mxu0 %v10598_v21 }
 0x364   : > { %15246 = vst [vmem:[#allocation69_spill] sm:$0xff] %v12521_v28  ;;  %v14794_v7 = vmax.f32 %v12521_v28, 0.0 }
 0x365   : > { %v4865_v15 = vpack.c.bf16 %v14796_v4, %v14797_v58 }
 0x366   : > { %v4866_v32 = vpack.c.bf16 %v14794_v7, %v14795_v5  ;;  %v3828_v34 = vpop.f32.mrb[12].mxu0  ;;  %v12531_v36 = vpop.f32.mrb[12].mxu1  ;;  %6363 = vmatpush1.bf16.msra.mxu1 %v10587_v0  ;;  %5517 = vmatpush1.bf16.msra.mxu0 %v10596_v9 }
 0x367   : > { %v3830_v21 = vpop.f32.mrb[13].mxu0  ;;  %v12537_v37 = vpop.f32.mrb[13].mxu1  ;;  %6364 = vmatprep.subr.bf16.mxu1 %v10595_v55  ;;  %5518 = vmatprep.subr.bf16.mxu0 %v10604_v45  ;;  %v12545_v9 = vadd.f32 %v3828_v34, %v12437_v63  ;;  %v10599_v45 = vld [vmem:[#allocation13 + $0x150] ss:$8 sps:$4 sm:$0xff]   ;;  %v10607_v34 = vld [vmem:[#allocation13 + $0x164] ss:$8 sps:$4 sm:$0xff]  }
 0x368   : > { %v12540_v7 = vadd.f32 %v3830_v21, %v12433_v49  ;;  %v3832_v5 = vpop.f32.mrb[14].mxu0  ;;  %v12542_v0 = vpop.f32.mrb[14].mxu1  ;;  %5369 = vmatprep.mubr.bf16.mxu0 %v4866_v32  ;;  %6215 = vmatprep.mubr.bf16.mxu1 %v4866_v32  ;;  %v10608_v21 = vld [vmem:[#allocation12 + $0x150] ss:$8 sps:$4 sm:$0xff]  }
 0x369   : > { %15248 = vst [vmem:[#allocation71_spill] sm:$0xff] %v12545_v9  ;;  %v12548_v4 = vadd.f32 %v3832_v5, %v12437_v63  ;;  %v3834_v58 = vpop.f32.mrb[15].mxu0  ;;  %v12550_v31 = vpop.f32.mrb[15].mxu1  ;;  %5370 = vmatmul.mubr.bf16.gmra.mrb[72].mxu0 %v4865_v15  ;;  %6216 = vmatmul.mubr.bf16.gmra.mrb[72].mxu1 %v4865_v15  ;;  %v14809_v18 = vmax.f32 %v12545_v9, 0.0  ;;  %v10605_v15 = vld [vmem:[#allocation13 + $0x160] ss:$8 sps:$4 sm:$0xff]  }
 0x36a   : > { %15247 = vst [vmem:[#allocation70_spill] sm:$0xff] %v12540_v7  ;;  %v12553_v55 = vadd.f32 %v3834_v58, %v12433_v49  ;;  %6365 = vmatpush1.bf16.msra.mxu1 %v10593_v59  ;;  %5519 = vmatpush1.bf16.msra.mxu0 %v10602_v53  ;;  %v14807_v5 = vmax.f32 %v12540_v7, 0.0  ;;  %v10628_v7 = vld [vmem:[#allocation12 + $0x184] ss:$8 sps:$4 sm:$0xff]  }
 0x36b   : > { %15249 = vst [vmem:[#allocation72_spill] sm:$0xff] %v12548_v4  ;;  %v14808_v32 = vmax.f32 %v12548_v4, 0.0  ;;  %6366 = vmatprep.subr.bf16.mxu1 %v10601_v16  ;;  %5520 = vmatprep.subr.bf16.mxu0 %v10610_v56  ;;  %v10614_v16 = vld [vmem:[#allocation12 + $0x160] ss:$8 sps:$4 sm:$0xff]  }
 0x36c   : > { %15250 = vst [vmem:[#allocation73_spill] sm:$0xff] %v12553_v55  ;;  %v14806_v23 = vmax.f32 %v12553_v55, 0.0  ;;  %v10622_v55 = vld [vmem:[#allocation12 + $0x174] ss:$8 sps:$4 sm:$0xff]  }
 0x36d   : > { %v4869_v56 = vpack.c.bf16 %v14808_v32, %v14809_v18 }
 0x36e   : > { %v4870_v58 = vpack.c.bf16 %v14806_v23, %v14807_v5  ;;  %v3838_v59 = vpop.f32.mrb[16].mxu0  ;;  %v12563_v53 = vpop.f32.mrb[16].mxu1  ;;  %6367 = vmatpush1.bf16.msra.mxu1 %v10599_v45  ;;  %5521 = vmatpush1.bf16.msra.mxu0 %v10608_v21 }
 0x36f   : > { %v3840_v22 = vpop.f32.mrb[17].mxu0  ;;  %v12569_v25 = vpop.f32.mrb[17].mxu1  ;;  %6368 = vmatprep.subr.bf16.mxu1 %v10607_v34  ;;  %5522 = vmatprep.subr.bf16.mxu0 %v10616_v44  ;;  %v12577_v21 = vadd.f32 %v3838_v59, %v12437_v63  ;;  %v10620_v34 = vld [vmem:[#allocation12 + $0x170] ss:$8 sps:$4 sm:$0xff]   ;;  %v10619_v59 = vld [vmem:[#allocation13 + $0x184] ss:$8 sps:$4 sm:$0xff]  }
 0x370   : > { %v12572_v23 = vadd.f32 %v3840_v22, %v12433_v49  ;;  %v3842_v5 = vpop.f32.mrb[18].mxu0  ;;  %v12574_v45 = vpop.f32.mrb[18].mxu1  ;;  %5379 = vmatprep.mubr.bf16.mxu0 %v4870_v58  ;;  %6225 = vmatprep.mubr.bf16.mxu1 %v4870_v58  ;;  %v10611_v22 = vld [vmem:[#allocation13 + $0x170] ss:$8 sps:$4 sm:$0xff]  }
 0x371   : > { %15252 = vst [vmem:[#allocation75_spill] sm:$0xff] %v12577_v21  ;;  %v12580_v32 = vadd.f32 %v3842_v5, %v12437_v63  ;;  %v3844_v18 = vpop.f32.mrb[19].mxu0  ;;  %v12582_v4 = vpop.f32.mrb[19].mxu1  ;;  %5380 = vmatmul.mubr.bf16.gmra.mrb[76].mxu0 %v4869_v56  ;;  %6226 = vmatmul.mubr.bf16.gmra.mrb[76].mxu1 %v4869_v56  ;;  %v14821_v28 = vmax.f32 %v12577_v21, 0.0  ;;  %v10617_v56 = vld [vmem:[#allocation13 + $0x180] ss:$8 sps:$4 sm:$0xff]  }
 0x372   : > { %15251 = vst [vmem:[#allocation74_spill] sm:$0xff] %v12572_v23  ;;  %v12585_v44 = vadd.f32 %v3844_v18, %v12433_v49  ;;  %6369 = vmatpush1.bf16.msra.mxu1 %v10605_v15  ;;  %5523 = vmatpush1.bf16.msra.mxu0 %v10614_v16  ;;  %v14819_v5 = vmax.f32 %v12572_v23, 0.0  ;;  %v10625_v23 = vld [vmem:[#allocation13 + $0x194] ss:$8 sps:$4 sm:$0xff]   ;;  %v10640_v21 = vld [vmem:[#allocation12 + $0x1a4] ss:$8 sps:$4 sm:$0xff]  }
 0x373   : > { %15253 = vst [vmem:[#allocation76_spill] sm:$0xff] %v12580_v32  ;;  %v14820_v58 = vmax.f32 %v12580_v32, 0.0  ;;  %6370 = vmatprep.subr.bf16.mxu1 %v10613_v17  ;;  %5524 = vmatprep.subr.bf16.mxu0 %v10622_v55  ;;  %v10626_v17 = vld [vmem:[#allocation12 + $0x180] ss:$8 sps:$4 sm:$0xff]  }
 0x374   : > { %15254 = vst [vmem:[#allocation77_spill] sm:$0xff] %v12585_v44  ;;  %v14818_v9 = vmax.f32 %v12585_v44, 0.0  ;;  %v10634_v44 = vld [vmem:[#allocation12 + $0x194] ss:$8 sps:$4 sm:$0xff]  }
 0x375   : > { %v4873_v55 = vpack.c.bf16 %v14820_v58, %v14821_v28 }
 0x376   : > { %v4874_v18 = vpack.c.bf16 %v14818_v9, %v14819_v5  ;;  %v3848_v15 = vpop.f32.mrb[20].mxu0  ;;  %v12595_v16 = vpop.f32.mrb[20].mxu1  ;;  %6371 = vmatpush1.bf16.msra.mxu1 %v10611_v22  ;;  %5525 = vmatpush1.bf16.msra.mxu0 %v10620_v34 }
 0x377   : > { %v3850_v38 = vpop.f32.mrb[21].mxu0  ;;  %v12601_v35 = vpop.f32.mrb[21].mxu1  ;;  %6372 = vmatprep.subr.bf16.mxu1 %v10619_v59  ;;  %5526 = vmatprep.subr.bf16.mxu0 %v10628_v7  ;;  %v12609_v34 = vadd.f32 %v3848_v15, %v12437_v63  ;;  %v10632_v59 = vld [vmem:[#allocation12 + $0x190] ss:$8 sps:$4 sm:$0xff]   ;;  %v10631_v15 = vld [vmem:[#allocation13 + $0x1a4] ss:$8 sps:$4 sm:$0xff]  }
 0x378   : > { %v12604_v9 = vadd.f32 %v3850_v38, %v12433_v49  ;;  %v3852_v5 = vpop.f32.mrb[22].mxu0  ;;  %v12606_v22 = vpop.f32.mrb[22].mxu1  ;;  %5389 = vmatprep.mubr.bf16.mxu0 %v4874_v18  ;;  %6235 = vmatprep.mubr.bf16.mxu1 %v4874_v18  ;;  %v10623_v38 = vld [vmem:[#allocation13 + $0x190] ss:$8 sps:$4 sm:$0xff]  }
 0x379   : > { %15256 = vst [vmem:[#allocation79_spill] sm:$0xff] %v12609_v34  ;;  %v12612_v58 = vadd.f32 %v3852_v5, %v12437_v63  ;;  %v3854_v28 = vpop.f32.mrb[23].mxu0  ;;  %v12614_v32 = vpop.f32.mrb[23].mxu1  ;;  %5390 = vmatmul.mubr.bf16.gmra.mrb[80].mxu0 %v4873_v55  ;;  %6236 = vmatmul.mubr.bf16.gmra.mrb[80].mxu1 %v4873_v55  ;;  %v14833_v13 = vmax.f32 %v12609_v34, 0.0  ;;  %v10629_v55 = vld [vmem:[#allocation13 + $0x1a0] ss:$8 sps:$4 sm:$0xff]  }
 0x37a   : > { %15255 = vst [vmem:[#allocation78_spill] sm:$0xff] %v12604_v9  ;;  %v12617_v7 = vadd.f32 %v3854_v28, %v12433_v49  ;;  %6373 = vmatpush1.bf16.msra.mxu1 %v10617_v56  ;;  %5527 = vmatpush1.bf16.msra.mxu0 %v10626_v17  ;;  %v14831_v5 = vmax.f32 %v12604_v9, 0.0  ;;  %v10637_v9 = vld [vmem:[#allocation13 + $0x1b4] ss:$8 sps:$4 sm:$0xff]   ;;  %v10652_v34 = vld [vmem:[#allocation12 + $0x1c4] ss:$8 sps:$4 sm:$0xff]  }
 0x37b   : > { %15257 = vst [vmem:[#allocation80_spill] sm:$0xff] %v12612_v58  ;;  %v14832_v18 = vmax.f32 %v12612_v58, 0.0  ;;  %6374 = vmatprep.subr.bf16.mxu1 %v10625_v23  ;;  %5528 = vmatprep.subr.bf16.mxu0 %v10634_v44  ;;  %v10638_v23 = vld [vmem:[#allocation12 + $0x1a0] ss:$8 sps:$4 sm:$0xff]  }
 0x37c   : > { %15258 = vst [vmem:[#allocation81_spill] sm:$0xff] %v12617_v7  ;;  %v14830_v61 = vmax.f32 %v12617_v7, 0.0  ;;  %v10646_v7 = vld [vmem:[#allocation12 + $0x1b4] ss:$8 sps:$4 sm:$0xff]  }
 0x37d   : > { %v4877_v44 = vpack.c.bf16 %v14832_v18, %v14833_v13 }
 0x37e   : > { %v4878_v28 = vpack.c.bf16 %v14830_v61, %v14831_v5  ;;  %v3858_v56 = vpop.f32.mrb[24].mxu0  ;;  %v12627_v17 = vpop.f32.mrb[24].mxu1  ;;  %6375 = vmatpush1.bf16.msra.mxu1 %v10623_v38  ;;  %5529 = vmatpush1.bf16.msra.mxu0 %v10632_v59 }
 0x37f   : > { %v3860_v12 = vpop.f32.mrb[25].mxu0  ;;  %v12633_v20 = vpop.f32.mrb[25].mxu1  ;;  %6376 = vmatprep.subr.bf16.mxu1 %v10631_v15  ;;  %5530 = vmatprep.subr.bf16.mxu0 %v10640_v21  ;;  %v12641_v59 = vadd.f32 %v3858_v56, %v12437_v63  ;;  %v10644_v15 = vld [vmem:[#allocation12 + $0x1b0] ss:$8 sps:$4 sm:$0xff]   ;;  %v10643_v56 = vld [vmem:[#allocation13 + $0x1c4] ss:$8 sps:$4 sm:$0xff]  }
 0x380   : > { %v12636_v61 = vadd.f32 %v3860_v12, %v12433_v49  ;;  %v3862_v5 = vpop.f32.mrb[26].mxu0  ;;  %v12638_v38 = vpop.f32.mrb[26].mxu1  ;;  %5399 = vmatprep.mubr.bf16.mxu0 %v4878_v28  ;;  %6245 = vmatprep.mubr.bf16.mxu1 %v4878_v28  ;;  %v10635_v12 = vld [vmem:[#allocation13 + $0x1b0] ss:$8 sps:$4 sm:$0xff]  }
 0x381   : > { %15260 = vst [vmem:[#allocation83_spill] sm:$0xff] %v12641_v59  ;;  %v12644_v18 = vadd.f32 %v3862_v5, %v12437_v63  ;;  %v3864_v13 = vpop.f32.mrb[27].mxu0  ;;  %v12646_v58 = vpop.f32.mrb[27].mxu1  ;;  %5400 = vmatmul.mubr.bf16.gmra.mrb[84].mxu0 %v4877_v44  ;;  %6246 = vmatmul.mubr.bf16.gmra.mrb[84].mxu1 %v4877_v44  ;;  %v14844_v57 = vmax.f32 %v12641_v59, 0.0  ;;  %v10641_v44 = vld [vmem:[#allocation13 + $0x1c0] ss:$8 sps:$4 sm:$0xff]  }
 0x382   : > { %15259 = vst [vmem:[#allocation82_spill] sm:$0xff] %v12636_v61  ;;  %v12649_v21 = vadd.f32 %v3864_v13, %v12433_v49  ;;  %6377 = vmatpush1.bf16.msra.mxu1 %v10629_v55  ;;  %5531 = vmatpush1.bf16.msra.mxu0 %v10638_v23  ;;  %v14842_v5 = vmax.f32 %v12636_v61, 0.0  ;;  %v10649_v61 = vld [vmem:[#allocation13 + $0x1d4] ss:$8 sps:$4 sm:$0xff]  }
 0x383   : > { %15261 = vst [vmem:[#allocation84_spill] sm:$0xff] %v12644_v18  ;;  %v14845_v28 = vmax.f32 %v12644_v18, 0.0  ;;  %6378 = vmatprep.subr.bf16.mxu1 %v10637_v9  ;;  %5532 = vmatprep.subr.bf16.mxu0 %v10646_v7  ;;  %v10650_v9 = vld [vmem:[#allocation12 + $0x1c0] ss:$8 sps:$4 sm:$0xff]   ;;  %v10661_v18 = vld [vmem:[#allocation12 + $0x1e4] ss:$8 sps:$4 sm:$0xff]  }
 0x384   : > { %15262 = vst [vmem:[#allocation85_spill] sm:$0xff] %v12649_v21  ;;  %v14843_v29 = vmax.f32 %v12649_v21, 0.0  ;;  %v10658_v21 = vld [vmem:[#allocation12 + $0x1d4] ss:$8 sps:$4 sm:$0xff]  }
 0x385   : > { %v4881_v7 = vpack.c.bf16 %v14845_v28, %v14844_v57 }
 0x386   : > { %v4882_v13 = vpack.c.bf16 %v14843_v29, %v14842_v5  ;;  %v3868_v55 = vpop.f32.mrb[28].mxu0  ;;  %v12659_v23 = vpop.f32.mrb[28].mxu1  ;;  %6379 = vmatpush1.bf16.msra.mxu1 %v10635_v12  ;;  %5533 = vmatpush1.bf16.msra.mxu0 %v10644_v15 }
 0x387   : > { %v3870_v30 = vpop.f32.mrb[29].mxu0  ;;  %v12665_v2 = vpop.f32.mrb[29].mxu1  ;;  %6380 = vmatprep.subr.bf16.mxu1 %v10643_v56  ;;  %5534 = vmatprep.subr.bf16.mxu0 %v10652_v34  ;;  %v12673_v15 = vadd.f32 %v3868_v55, %v12437_v63  ;;  %v10656_v56 = vld [vmem:[#allocation12 + $0x1d0] ss:$8 sps:$4 sm:$0xff]   ;;  %v10655_v55 = vld [vmem:[#allocation13 + $0x1e4] ss:$8 sps:$4 sm:$0xff]  }
 0x388   : > { %v12668_v5 = vadd.f32 %v3870_v30, %v12433_v49  ;;  %v3872_v29 = vpop.f32.mrb[30].mxu0  ;;  %v12670_v12 = vpop.f32.mrb[30].mxu1  ;;  %5409 = vmatprep.mubr.bf16.mxu0 %v4882_v13  ;;  %6255 = vmatprep.mubr.bf16.mxu1 %v4882_v13  ;;  %v10647_v30 = vld [vmem:[#allocation13 + $0x1d0] ss:$8 sps:$4 sm:$0xff]  }
 0x389   : > { %15264 = vst [vmem:[#allocation87_spill] sm:$0xff] %v12673_v15  ;;  %v12676_v57 = vadd.f32 %v3872_v29, %v12437_v63  ;;  %v3874_v28 = vpop.f32.mrb[31].mxu0  ;;  %v12678_v59 = vpop.f32.mrb[31].mxu1  ;;  %5410 = vmatmul.mubr.bf16.gmra.mrb[88].mxu0 %v4881_v7  ;;  %6256 = vmatmul.mubr.bf16.gmra.mrb[88].mxu1 %v4881_v7  ;;  %v14856_v3 = vmax.f32 %v12673_v15, 0.0  ;;  %v10653_v7 = vld [vmem:[#allocation13 + $0x1e0] ss:$8 sps:$4 sm:$0xff]  }
 0x38a   : > { %15263 = vst [vmem:[#allocation86_spill] sm:$0xff] %v12668_v5  ;;  %v12681_v34 = vadd.f32 %v3874_v28, %v12433_v49  ;;  %6381 = vmatpush1.bf16.msra.mxu1 %v10641_v44  ;;  %5535 = vmatpush1.bf16.msra.mxu0 %v10650_v9  ;;  %v14854_v29 = vmax.f32 %v12668_v5, 0.0  ;;  %v10664_v5 = vld [vmem:[#allocation13 + $0x1f4] ss:$8 sps:$4 sm:$0xff]  }
 0x38b   : > { %15265 = vst [vmem:[#allocation88_spill] sm:$0xff] %v12676_v57  ;;  %v14857_v13 = vmax.f32 %v12676_v57, 0.0  ;;  %6382 = vmatprep.subr.bf16.mxu1 %v10649_v61  ;;  %5536 = vmatprep.subr.bf16.mxu0 %v10658_v21  ;;  %v10659_v61 = vld [vmem:[#allocation12 + $0x1e0] ss:$8 sps:$4 sm:$0xff]  }
 0x38c   : > { %15266 = vst [vmem:[#allocation89_spill] sm:$0xff] %v12681_v34  ;;  %v14855_v6 = vmax.f32 %v12681_v34, 0.0  ;;  %v10667_v34 = vld [vmem:[#allocation12 + $0x1f4] ss:$8 sps:$4 sm:$0xff]  }
 0x38d   : > { %v4885_v21 = vpack.c.bf16 %v14857_v13, %v14856_v3 }
 0x38e   : > { %v4886_v28 = vpack.c.bf16 %v14855_v6, %v14854_v29  ;;  %v3878_v44 = vpop.f32.mrb[32].mxu0  ;;  %v12691_v9 = vpop.f32.mrb[32].mxu1  ;;  %6383 = vmatpush1.bf16.msra.mxu1 %v10647_v30  ;;  %5537 = vmatpush1.bf16.msra.mxu0 %v10656_v56 }
 0x38f   : > { %v3880_v47 = vpop.f32.mrb[33].mxu0  ;;  %v12697_v42 = vpop.f32.mrb[33].mxu1  ;;  %6384 = vmatprep.subr.bf16.mxu1 %v10655_v55  ;;  %5538 = vmatprep.subr.bf16.mxu0 %v10661_v18  ;;  %v12705_v56 = vadd.f32 %v3878_v44, %v12437_v63  ;;  %v10665_v55 = vld [vmem:[#allocation12 + $0x1f0] ss:$8 sps:$4 sm:$0xff]  }
 0x390   : > { %v12700_v29 = vadd.f32 %v3880_v47, %v12433_v49  ;;  %v3882_v6 = vpop.f32.mrb[34].mxu0  ;;  %v12702_v30 = vpop.f32.mrb[34].mxu1  ;;  %5419 = vmatprep.mubr.bf16.mxu0 %v4886_v28  ;;  %6265 = vmatprep.mubr.bf16.mxu1 %v4886_v28  ;;  %v10662_v47 = vld [vmem:[#allocation13 + $0x1f0] ss:$8 sps:$4 sm:$0xff]  }
 0x391   : > { %15268 = vst [vmem:[#allocation91_spill] sm:$0xff] %v12705_v56  ;;  %v12708_v3 = vadd.f32 %v3882_v6, %v12437_v63  ;;  %v3884_v13 = vpop.f32.mrb[35].mxu0  ;;  %v12710_v15 = vpop.f32.mrb[35].mxu1  ;;  %5420 = vmatmul.mubr.bf16.gmra.mrb[92].mxu0 %v4885_v21  ;;  %6266 = vmatmul.mubr.bf16.gmra.mrb[92].mxu1 %v4885_v21  ;;  %v14865_v57 = vmax.f32 %v12705_v56, 0.0 }
 0x392   : > { %15267 = vst [vmem:[#allocation90_spill] sm:$0xff] %v12700_v29  ;;  %v12713_v18 = vadd.f32 %v3884_v13, %v12433_v49  ;;  %6385 = vmatpush1.bf16.msra.mxu1 %v10653_v7  ;;  %5539 = vmatpush1.bf16.msra.mxu0 %v10659_v61  ;;  %v14863_v44 = vmax.f32 %v12700_v29, 0.0 }
 0x393   : > { %15269 = vst [vmem:[#allocation92_spill] sm:$0xff] %v12708_v3  ;;  %v14866_v28 = vmax.f32 %v12708_v3, 0.0  ;;  %6386 = vmatprep.subr.bf16.mxu1 %v10664_v5  ;;  %5540 = vmatprep.subr.bf16.mxu0 %v10667_v34 }
 0x394   : > { %15270 = vst [vmem:[#allocation93_spill] sm:$0xff] %v12713_v18  ;;  %v14864_v6 = vmax.f32 %v12713_v18, 0.0 }
 0x395   : > { %v4889_v5 = vpack.c.bf16 %v14866_v28, %v14865_v57 }
 0x396   : > { %v4890_v13 = vpack.c.bf16 %v14864_v6, %v14863_v44  ;;  %v3888_v21 = vpop.f32.mrb[36].mxu0  ;;  %v12723_v7 = vpop.f32.mrb[36].mxu1  ;;  %6387 = vmatpush1.bf16.msra.mxu1 %v10662_v47  ;;  %5541 = vmatpush1.bf16.msra.mxu0 %v10665_v55 }
 0x397   : > { %v3890_v34 = vpop.f32.mrb[37].mxu0  ;;  %v12729_v61 = vpop.f32.mrb[37].mxu1  ;;  %v12737_v44 = vadd.f32 %v3888_v21, %v12437_v63 }
 0x398   : > { %v12732_v27 = vadd.f32 %v3890_v34, %v12433_v49  ;;  %v3892_v29 = vpop.f32.mrb[38].mxu0  ;;  %v12734_v11 = vpop.f32.mrb[38].mxu1  ;;  %5429 = vmatprep.mubr.bf16.mxu0 %v4890_v13  ;;  %6275 = vmatprep.mubr.bf16.mxu1 %v4890_v13 }
 0x399   : > { %15272 = vst [vmem:[#allocation95_spill] sm:$0xff] %v12737_v44  ;;  %v12740_v47 = vadd.f32 %v3892_v29, %v12437_v63  ;;  %v3894_v55 = vpop.f32.mrb[39].mxu0  ;;  %v12742_v6 = vpop.f32.mrb[39].mxu1  ;;  %5430 = vmatmul.mubr.bf16.gmra.mrb[96].mxu0 %v4889_v5  ;;  %6276 = vmatmul.mubr.bf16.gmra.mrb[96].mxu1 %v4889_v5  ;;  %v14877_v21 = vmax.f32 %v12737_v44, 0.0 }
 0x39a   : > { %15271 = vst [vmem:[#allocation94_spill] sm:$0xff] %v12732_v27  ;;  %v12745_v57 = vadd.f32 %v3894_v55, %v12433_v49  ;;  %v14873_v28 = vmax.f32 %v12732_v27, 0.0 }
 0x39b   : > { %15273 = vst [vmem:[#allocation96_spill] sm:$0xff] %v12740_v47  ;;  %v14878_v34 = vmax.f32 %v12740_v47, 0.0 }
 0x39c   : > { %15274 = vst [vmem:[#allocation97_spill] sm:$0xff] %v12745_v57  ;;  %v14874_v13 = vmax.f32 %v12745_v57, 0.0 }
 0x39d   : > { %v4893_v5 = vpack.c.bf16 %v14878_v34, %v14877_v21 }
 0x39e   : > { %v4894_v29 = vpack.c.bf16 %v14874_v13, %v14873_v28  ;;  %v3898_v56 = vpop.f32.mrb[40].mxu0  ;;  %v12755_v18 = vpop.f32.mrb[40].mxu1 }
 0x39f   : > { %15275 = vst [vmem:[#allocation98_spill] sm:$0xff] %v12755_v18  ;;  %v3900_v55 = vpop.f32.mrb[41].mxu0  ;;  %v12761_v3 = vpop.f32.mrb[41].mxu1  ;;  %v12769_v28 = vadd.f32 %v3898_v56, %v12437_v63 }
 0x3a0   : > { %v12764_v10 = vadd.f32 %v3900_v55, %v12433_v49  ;;  %v3902_v52 = vpop.f32.mrb[42].mxu0  ;;  %v12766_v50 = vpop.f32.mrb[42].mxu1  ;;  %5439 = vmatprep.mubr.bf16.mxu0 %v4894_v29  ;;  %6285 = vmatprep.mubr.bf16.mxu1 %v4894_v29 }
 0x3a1   : > { %15277 = vst [vmem:[#allocation100_spill] sm:$0xff] %v12769_v28  ;;  %v12772_v13 = vadd.f32 %v3902_v52, %v12437_v63  ;;  %v3904_v27 = vpop.f32.mrb[43].mxu0  ;;  %v12774_v44 = vpop.f32.mrb[43].mxu1  ;;  %5440 = vmatmul.mubr.bf16.gmra.mrb[100].mxu0 %v4893_v5  ;;  %6286 = vmatmul.mubr.bf16.gmra.mrb[100].mxu1 %v4893_v5  ;;  %v14891_v56 = vmax.f32 %v12769_v28, 0.0 }
 0x3a2   : > { %15276 = vst [vmem:[#allocation99_spill] sm:$0xff] %v12764_v10  ;;  %v12777_v21 = vadd.f32 %v3904_v27, %v12433_v49  ;;  %v14887_v34 = vmax.f32 %v12764_v10, 0.0 }
 0x3a3   : > { %15278 = vst [vmem:[#allocation101_spill] sm:$0xff] %v12772_v13  ;;  %v14892_v55 = vmax.f32 %v12772_v13, 0.0 }
 0x3a4   : > { %15279 = vst [vmem:[#allocation102_spill] sm:$0xff] %v12777_v21  ;;  %v14888_v29 = vmax.f32 %v12777_v21, 0.0 }
 0x3a5   : > { %v4897_v27 = vpack.c.bf16 %v14892_v55, %v14891_v56 }
 0x3a6   : > { %v4898_v52 = vpack.c.bf16 %v14888_v29, %v14887_v34  ;;  %v3908_v57 = vpop.f32.mrb[44].mxu0  ;;  %v12787_v47 = vpop.f32.mrb[44].mxu1 }
 0x3a7   : > { %15280 = vst [vmem:[#allocation103_spill] sm:$0xff] %v12787_v47  ;;  %v3910_v5 = vpop.f32.mrb[45].mxu0  ;;  %v12793_v26 = vpop.f32.mrb[45].mxu1  ;;  %v12801_v34 = vadd.f32 %v3908_v57, %v12437_v63 }
 0x3a8   : > { %15281 = vst [vmem:[#allocation104_spill] sm:$0xff] %v12793_v26  ;;  %v12796_v60 = vadd.f32 %v3910_v5, %v12433_v49  ;;  %v3912_v33 = vpop.f32.mrb[46].mxu0  ;;  %v12798_v18 = vpop.f32.mrb[46].mxu1  ;;  %5449 = vmatprep.mubr.bf16.mxu0 %v4898_v52  ;;  %6295 = vmatprep.mubr.bf16.mxu1 %v4898_v52 }
 0x3a9   : > { %15283 = vst [vmem:[#allocation106_spill] sm:$0xff] %v12798_v18  ;;  %15284 = vst [vmem:[#allocation107_spill] sm:$0xff] %v12801_v34  ;;  %v12804_v29 = vadd.f32 %v3912_v33, %v12437_v63  ;;  %v3914_v10 = vpop.f32.mrb[47].mxu0  ;;  %v12806_v28 = vpop.f32.mrb[47].mxu1  ;;  %5450 = vmatmul.mubr.bf16.gmra.mrb[104].mxu0 %v4897_v27  ;;  %6296 = vmatmul.mubr.bf16.gmra.mrb[104].mxu1 %v4897_v27  ;;  %v14900_v57 = vmax.f32 %v12801_v34, 0.0 }
 0x3aa   : > { %15282 = vst [vmem:[#allocation105_spill] sm:$0xff] %v12796_v60  ;;  %15286 = vst [vmem:[#allocation109_spill] sm:$0xff] %v12806_v28  ;;  %v12809_v56 = vadd.f32 %v3914_v10, %v12433_v49  ;;  %v14896_v55 = vmax.f32 %v12796_v60, 0.0 }
 0x3ab   : > { %15285 = vst [vmem:[#allocation108_spill] sm:$0xff] %v12804_v29  ;;  %v14899_v5 = vmax.f32 %v12804_v29, 0.0 }
 0x3ac   : > { %15287 = vst [vmem:[#allocation110_spill] sm:$0xff] %v12809_v56  ;;  %v14895_v52 = vmax.f32 %v12809_v56, 0.0 }
 0x3ad   : > { %v4901_v10 = vpack.c.bf16 %v14899_v5, %v14900_v57 }
 0x3ae   : > { %v4902_v33 = vpack.c.bf16 %v14895_v52, %v14896_v55  ;;  %v3918_v21 = vpop.f32.mrb[48].mxu0  ;;  %v12819_v13 = vpop.f32.mrb[48].mxu1 }
 0x3af   : > { %15288 = vst [vmem:[#allocation111_spill] sm:$0xff] %v12819_v13  ;;  %v3920_v27 = vpop.f32.mrb[49].mxu0  ;;  %v12825_v47 = vpop.f32.mrb[49].mxu1  ;;  %v12833_v52 = vadd.f32 %v3918_v21, %v12437_v63 }
 0x3b0   : > { %15289 = vst [vmem:[#allocation112_spill] sm:$0xff] %v12825_v47  ;;  %v12828_v18 = vadd.f32 %v3920_v27, %v12433_v49  ;;  %v3922_v26 = vpop.f32.mrb[50].mxu0  ;;  %v12830_v28 = vpop.f32.mrb[50].mxu1  ;;  %5459 = vmatprep.mubr.bf16.mxu0 %v4902_v33  ;;  %6305 = vmatprep.mubr.bf16.mxu1 %v4902_v33 }
 0x3b1   : > { %15291 = vst [vmem:[#allocation114_spill] sm:$0xff] %v12830_v28  ;;  %15292 = vst [vmem:[#allocation115_spill] sm:$0xff] %v12833_v52  ;;  %v12836_v55 = vadd.f32 %v3922_v26, %v12437_v63  ;;  %v3924_v56 = vpop.f32.mrb[51].mxu0  ;;  %v12838_v29 = vpop.f32.mrb[51].mxu1  ;;  %5460 = vmatmul.mubr.bf16.gmra.mrb[108].mxu0 %v4901_v10  ;;  %6306 = vmatmul.mubr.bf16.gmra.mrb[108].mxu1 %v4901_v10  ;;  %v14908_v21 = vmax.f32 %v12833_v52, 0.0 }
 0x3b2   : > { %15290 = vst [vmem:[#allocation113_spill] sm:$0xff] %v12828_v18  ;;  %15294 = vst [vmem:[#allocation117_spill] sm:$0xff] %v12838_v29  ;;  %v12841_v5 = vadd.f32 %v3924_v56, %v12433_v49  ;;  %v14904_v57 = vmax.f32 %v12828_v18, 0.0 }
 0x3b3   : > { %15293 = vst [vmem:[#allocation116_spill] sm:$0xff] %v12836_v55  ;;  %v14907_v27 = vmax.f32 %v12836_v55, 0.0 }
 0x3b4   : > { %15295 = vst [vmem:[#allocation118_spill] sm:$0xff] %v12841_v5  ;;  %v14903_v33 = vmax.f32 %v12841_v5, 0.0 }
 0x3b5   : > { %v4905_v56 = vpack.c.bf16 %v14907_v27, %v14908_v21 }
 0x3b6   : > { %v4906_v26 = vpack.c.bf16 %v14903_v33, %v14904_v57  ;;  %v3928_v60 = vpop.f32.mrb[52].mxu0  ;;  %v12851_v34 = vpop.f32.mrb[52].mxu1 }
 0x3b7   : > { %15296 = vst [vmem:[#allocation119_spill] sm:$0xff] %v12851_v34  ;;  %v3930_v10 = vpop.f32.mrb[53].mxu0  ;;  %v12857_v13 = vpop.f32.mrb[53].mxu1  ;;  %v12865_v33 = vadd.f32 %v3928_v60, %v12437_v63 }
 0x3b8   : > { %15297 = vst [vmem:[#allocation120_spill] sm:$0xff] %v12857_v13  ;;  %v12860_v28 = vadd.f32 %v3930_v10, %v12433_v49  ;;  %v3932_v47 = vpop.f32.mrb[54].mxu0  ;;  %v12862_v29 = vpop.f32.mrb[54].mxu1  ;;  %5469 = vmatprep.mubr.bf16.mxu0 %v4906_v26  ;;  %6315 = vmatprep.mubr.bf16.mxu1 %v4906_v26 }
 0x3b9   : > { %15299 = vst [vmem:[#allocation122_spill] sm:$0xff] %v12862_v29  ;;  %15300 = vst [vmem:[#allocation123_spill] sm:$0xff] %v12865_v33  ;;  %v12868_v57 = vadd.f32 %v3932_v47, %v12437_v63  ;;  %v3934_v5 = vpop.f32.mrb[55].mxu0  ;;  %v12870_v55 = vpop.f32.mrb[55].mxu1  ;;  %5470 = vmatmul.mubr.bf16.gmra.mrb[112].mxu0 %v4905_v56  ;;  %6316 = vmatmul.mubr.bf16.gmra.mrb[112].mxu1 %v4905_v56  ;;  %v14916_v60 = vmax.f32 %v12865_v33, 0.0 }
 0x3ba   : > { %15298 = vst [vmem:[#allocation121_spill] sm:$0xff] %v12860_v28  ;;  %15302 = vst [vmem:[#allocation125_spill] sm:$0xff] %v12870_v55  ;;  %v12873_v27 = vadd.f32 %v3934_v5, %v12433_v49  ;;  %v14912_v21 = vmax.f32 %v12860_v28, 0.0 }
 0x3bb   : > { %15301 = vst [vmem:[#allocation124_spill] sm:$0xff] %v12868_v57  ;;  %v14915_v10 = vmax.f32 %v12868_v57, 0.0 }
 0x3bc   : > { %15303 = vst [vmem:[#allocation126_spill] sm:$0xff] %v12873_v27  ;;  %v14911_v26 = vmax.f32 %v12873_v27, 0.0 }
 0x3bd   : > { %v4909_v5 = vpack.c.bf16 %v14915_v10, %v14916_v60  ;;  %v14919_v10 = vsub.s32 3, %v11647_v40 }
 0x3be   : > { %v4910_v47 = vpack.c.bf16 %v14911_v26, %v14912_v21  ;;  %v3938_v18 = vpop.f32.mrb[56].mxu0  ;;  %v12883_v52 = vpop.f32.mrb[56].mxu1 }
 0x3bf   : > { %15304 = vst [vmem:[#allocation127_spill] sm:$0xff] %v12883_v52  ;;  %v3940_v56 = vpop.f32.mrb[57].mxu0  ;;  %v12889_v34 = vpop.f32.mrb[57].mxu1  ;;  %v12897_v26 = vadd.f32 %v3938_v18, %v12437_v63 }
 0x3c0   : > { %15305 = vst [vmem:[#allocation128_spill] sm:$0xff] %v12889_v34  ;;  %v12892_v29 = vadd.f32 %v3940_v56, %v12433_v49  ;;  %v3942_v13 = vpop.f32.mrb[58].mxu0  ;;  %v12894_v55 = vpop.f32.mrb[58].mxu1  ;;  %5479 = vmatprep.mubr.bf16.mxu0 %v4910_v47  ;;  %6325 = vmatprep.mubr.bf16.mxu1 %v4910_v47 }
 0x3c1   : > { %15307 = vst [vmem:[#allocation130_spill] sm:$0xff] %v12894_v55  ;;  %15308 = vst [vmem:[#allocation131_spill] sm:$0xff] %v12897_v26  ;;  %v12900_v21 = vadd.f32 %v3942_v13, %v12437_v63  ;;  %v3944_v27 = vpop.f32.mrb[59].mxu0  ;;  %v12902_v57 = vpop.f32.mrb[59].mxu1  ;;  %5480 = vmatmul.mubr.bf16.gmra.mrb[116].mxu0 %v4909_v5  ;;  %6326 = vmatmul.mubr.bf16.gmra.mrb[116].mxu1 %v4909_v5  ;;  %v14926_v28 = vmax.f32 %v12897_v26, 0.0  ;;  %v12915_v13 = vrot.slane %v12426_v46, %v14919_v10 }
 0x3c2   : > { %15306 = vst [vmem:[#allocation129_spill] sm:$0xff] %v12892_v29  ;;  %v12906_v56 = vadd.f32 %v3944_v27, %v12433_v49  ;;  %v14923_v47 = vmax.f32 %v12892_v29, 0.0 }
 0x3c3   : > { %15309 = vst [vmem:[#allocation132_spill] sm:$0xff] %v12900_v21  ;;  %v14925_v60 = vmax.f32 %v12900_v21, 0.0  ;;  %v12931_v10 = vadd.f32 %v12454_v1, %v12915_v13  ;;  %v12949_v1 = vadd.f32 %v12441_v62, %v12915_v13 }
 0x3c4   : > { %15310 = vst [vmem:[#allocation133_spill] sm:$0xff] %v12906_v56  ;;  %v14922_v18 = vmax.f32 %v12906_v56, 0.0 }
 0x3c5   : > { %v4913_v52 = vpack.c.bf16 %v14925_v60, %v14926_v28  ;;  %15312 = vst [vmem:[#allocation135_spill] sm:$0xff] %v12931_v10  ;;  %15316 = vst [vmem:[#allocation139_spill] sm:$0xff] %v12949_v1  ;;  %v14969_v62 = vmax.f32 %v12949_v1, 0.0 }
 0x3c6   : > { %v4914_v5 = vpack.c.bf16 %v14922_v18, %v14923_v47  ;;  %v3948_v27 = vpop.f32.mrb[60].mxu0  ;;  %v12921_v33 = vpop.f32.mrb[60].mxu1 }
 0x3c7   : > { %15311 = vst [vmem:[#allocation134_spill] sm:$0xff] %v12921_v33  ;;  %v3950_v55 = vpop.f32.mrb[61].mxu0  ;;  %v12927_v34 = vpop.f32.mrb[61].mxu1  ;;  %v12940_v21 = vadd.f32 %v3948_v27, %v12437_v63 }
 0x3c8   : > { %v12934_v29 = vadd.f32 %v3950_v55, %v12433_v49  ;;  %v3952_v56 = vpop.f32.mrb[62].mxu0  ;;  %v12936_v18 = vpop.f32.mrb[62].mxu1  ;;  %5489 = vmatprep.mubr.bf16.mxu0 %v4914_v5  ;;  %6335 = vmatprep.mubr.bf16.mxu1 %v4914_v5 }
 0x3c9   : > { %15314 = vst [vmem:[#allocation137_spill] sm:$0xff] %v12940_v21  ;;  %v12943_v60 = vadd.f32 %v3952_v56, %v12437_v63  ;;  %v3954_v28 = vpop.f32.mrb[63].mxu0  ;;  %v12945_v26 = vpop.f32.mrb[63].mxu1  ;;  %5490 = vmatmul.mubr.bf16.gmra.mrb[120].mxu0 %v4913_v52  ;;  %6336 = vmatmul.mubr.bf16.gmra.mrb[120].mxu1 %v4913_v52  ;;  %v15318_v56 = vsub.s32 2, %v11647_v40  ;;  %v14933_v52 = vmax.f32 %v12940_v21, 0.0  ;;  %v12983_v40 = vadd.f32 %v12486_v43, %v12915_v13 }
 0x3ca   : > { %15313 = vst [vmem:[#allocation136_spill] sm:$0xff] %v12934_v29  ;;  %v12952_v55 = vadd.f32 %v3954_v28, %v12433_v49  ;;  %v14932_v47 = vmax.f32 %v12934_v29, 0.0  ;;  %v15371_v29 = vld [vmem:[#allocation103_spill] sm:$0xff] }
 0x3cb   : > { %15315 = vst [vmem:[#allocation138_spill] sm:$0xff] %v12943_v60  ;;  %v14931_v5 = vmax.f32 %v12943_v60, 0.0  ;;  %v12961_v33 = vrot.slane %v12426_v46, %v15318_v56  ;;  %v15320_v46 = vmax.f32 %v12931_v10, 0.0  ;;  %15321 = vst [vmem:[#allocation142_spill] sm:$0xff] %v12983_v40 }
 0x3cc   : > { %15317 = vst [vmem:[#allocation140_spill] sm:$0xff] %v12952_v55  ;;  %v14930_v63 = vmax.f32 %v12952_v55, 0.0 }
 0x3cd   : > { %v12971_v28 = vadd.f32 %v12446_v14, %v12961_v33  ;;  %v4917_v27 = vpack.c.bf16 %v14931_v5, %v14933_v52  ;;  %v4860_v56 = vpack.c.bf16 %v15320_v46, %v14969_v62  ;;  %v12987_v14 = vadd.f32 %v12439_v41, %v12961_v33  ;;  %v15363_v62 = vld [vmem:[#allocation98_spill] sm:$0xff] }
 0x3ce   : > { %v4918_v49 = vpack.c.bf16 %v14930_v63, %v14932_v47  ;;  %v12991_v63 = vadd.f32 %v12473_v8, %v12915_v13  ;;  %v14934_v5 = vmax.f32 %v12983_v40, 0.0  ;;  %v13015_v47 = vadd.f32 %v12467_v24, %v12961_v33 }
 0x3cf   : > { %15319 = vst [vmem:[#allocation141_spill] sm:$0xff] %v12971_v28  ;;  %15322 = vst [vmem:[#allocation143_spill] sm:$0xff] %v12987_v14  ;;  %v14936_v46 = vmax.f32 %v12971_v28, 0.0  ;;  %v14970_v43 = vmax.f32 %v12987_v14, 0.0  ;;  %v13019_v52 = vadd.f32 %v12505_v54, %v12915_v13  ;;  %v13295_v21 = vadd.f32 %v15371_v29, %v12961_v33 }
 0x3d0   : > { %5499 = vmatprep.mubr.bf16.mxu0 %v4918_v49  ;;  %6345 = vmatprep.mubr.bf16.mxu1 %v4918_v49  ;;  %15323 = vst [vmem:[#allocation144_spill] sm:$0xff] %v12991_v63  ;;  %v14935_v49 = vmax.f32 %v12991_v63, 0.0  ;;  %15326 = vst [vmem:[#allocation147_spill] sm:$0xff] %v13015_v47 }
 0x3d1   : > { %5500 = vmatmul.mubr.bf16.gmra.mrb[124].mxu0 %v4917_v27  ;;  %6346 = vmatmul.mubr.bf16.gmra.mrb[124].mxu1 %v4917_v27  ;;  %v4859_v41 = vpack.c.bf16 %v14936_v46, %v14970_v43  ;;  %v13003_v27 = vadd.f32 %v12478_v48, %v12961_v33  ;;  %15327 = vst [vmem:[#allocation148_spill] sm:$0xff] %v13019_v52  ;;  %15372 = vst [vmem:[#allocation103_spill] sm:$0xff] %v13295_v21 }
 0x3d2   : > { %5542 = vmatprep.mubr.bf16.mxu0 %v4860_v56  ;;  %6388 = vmatprep.mubr.bf16.mxu1 %v4860_v56  ;;  %v4864_v8 = vpack.c.bf16 %v14934_v5, %v14935_v49  ;;  %v13011_v56 = vadd.f32 %v12518_v51, %v12915_v13  ;;  %v14940_v49 = vmax.f32 %v13015_v47, 0.0  ;;  %v14939_v51 = vmax.f32 %v13019_v52, 0.0 }
 0x3d3   : > { %15324 = vst [vmem:[#allocation145_spill] sm:$0xff] %v13003_v27  ;;  %v14937_v48 = vmax.f32 %v13003_v27, 0.0  ;;  %v13043_v46 = vadd.f32 %v12499_v19, %v12961_v33  ;;  %v13267_v43 = vadd.f32 %v15363_v62, %v12961_v33 }
 0x3d4   : > { %15325 = vst [vmem:[#allocation146_spill] sm:$0xff] %v13011_v56  ;;  %v14938_v5 = vmax.f32 %v13011_v56, 0.0 }
 0x3d5   : > { %v4863_v24 = vpack.c.bf16 %v14937_v48, %v14940_v49  ;;  %15330 = vst [vmem:[#allocation151_spill] sm:$0xff] %v13043_v46  ;;  %v13047_v48 = vadd.f32 %v12537_v37, %v12915_v13  ;;  %v13071_v49 = vadd.f32 %v12531_v36, %v12961_v33  ;;  %15364 = vst [vmem:[#allocation98_spill] sm:$0xff] %v13267_v43 }
 0x3d6   : > { %v4868_v54 = vpack.c.bf16 %v14938_v5, %v14939_v51  ;;  %v14944_v51 = vmax.f32 %v13043_v46, 0.0 }
 0x3d7   : > { %15331 = vst [vmem:[#allocation152_spill] sm:$0xff] %v13047_v48  ;;  %15334 = vst [vmem:[#allocation155_spill] sm:$0xff] %v13071_v49 }
 0x3d9   : > { %5543 = vmatmul.mubr.bf16.vlgmr.msra.gmra.mrb[64].mxu0 %v4859_v41  ;;  %6389 = vmatmul.mubr.bf16.vlgmr.msra.gmra.mrb[64].mxu1 %v4859_v41  ;;  %v13031_v41 = vadd.f32 %v12510_v39, %v12961_v33 }
 0x3da   : > { %5552 = vmatprep.mubr.bf16.mxu0 %v4864_v8  ;;  %6398 = vmatprep.mubr.bf16.mxu1 %v4864_v8  ;;  %v13039_v8 = vadd.f32 %v12550_v31, %v12915_v13  ;;  %v14943_v31 = vmax.f32 %v13047_v48, 0.0 }
 0x3db   : > { %15328 = vst [vmem:[#allocation149_spill] sm:$0xff] %v13031_v41  ;;  %v14941_v39 = vmax.f32 %v13031_v41, 0.0 }
 0x3dc   : > { %15329 = vst [vmem:[#allocation150_spill] sm:$0xff] %v13039_v8  ;;  %v14942_v5 = vmax.f32 %v13039_v8, 0.0 }
 0x3dd   : > { %v4867_v19 = vpack.c.bf16 %v14941_v39, %v14944_v51  ;;  %v13075_v39 = vadd.f32 %v12569_v25, %v12915_v13  ;;  %v13099_v51 = vadd.f32 %v12563_v53, %v12961_v33 }
 0x3de   : > { %v4872_v37 = vpack.c.bf16 %v14942_v5, %v14943_v31  ;;  %v14948_v31 = vmax.f32 %v13071_v49, 0.0 }
 0x3df   : > { %15335 = vst [vmem:[#allocation156_spill] sm:$0xff] %v13075_v39  ;;  %15338 = vst [vmem:[#allocation159_spill] sm:$0xff] %v13099_v51 }
 0x3e1   : > { %5553 = vmatmul.mubr.bf16.gmra.mrb[68].mxu0 %v4863_v24  ;;  %6399 = vmatmul.mubr.bf16.gmra.mrb[68].mxu1 %v4863_v24  ;;  %v13059_v24 = vadd.f32 %v12542_v0, %v12961_v33 }
 0x3e2   : > { %5562 = vmatprep.mubr.bf16.mxu0 %v4868_v54  ;;  %6408 = vmatprep.mubr.bf16.mxu1 %v4868_v54  ;;  %v13067_v54 = vadd.f32 %v12582_v4, %v12915_v13  ;;  %v14947_v4 = vmax.f32 %v13075_v39, 0.0 }
 0x3e3   : > { %15332 = vst [vmem:[#allocation153_spill] sm:$0xff] %v13059_v24  ;;  %v14945_v0 = vmax.f32 %v13059_v24, 0.0 }
 0x3e4   : > { %15333 = vst [vmem:[#allocation154_spill] sm:$0xff] %v13067_v54  ;;  %v14946_v5 = vmax.f32 %v13067_v54, 0.0 }
 0x3e5   : > { %v4871_v36 = vpack.c.bf16 %v14945_v0, %v14948_v31  ;;  %v13103_v0 = vadd.f32 %v12601_v35, %v12915_v13  ;;  %v13127_v31 = vadd.f32 %v12595_v16, %v12961_v33 }
 0x3e6   : > { %v4876_v25 = vpack.c.bf16 %v14946_v5, %v14947_v4  ;;  %v14952_v4 = vmax.f32 %v13099_v51, 0.0 }
 0x3e7   : > { %15339 = vst [vmem:[#allocation160_spill] sm:$0xff] %v13103_v0  ;;  %15342 = vst [vmem:[#allocation163_spill] sm:$0xff] %v13127_v31 }
 0x3e9   : > { %5563 = vmatmul.mubr.bf16.gmra.mrb[72].mxu0 %v4867_v19  ;;  %6409 = vmatmul.mubr.bf16.gmra.mrb[72].mxu1 %v4867_v19  ;;  %v13087_v19 = vadd.f32 %v12574_v45, %v12961_v33 }
 0x3ea   : > { %5572 = vmatprep.mubr.bf16.mxu0 %v4872_v37  ;;  %6418 = vmatprep.mubr.bf16.mxu1 %v4872_v37  ;;  %v13095_v37 = vadd.f32 %v12614_v32, %v12915_v13  ;;  %v14951_v32 = vmax.f32 %v13103_v0, 0.0 }
 0x3eb   : > { %15336 = vst [vmem:[#allocation157_spill] sm:$0xff] %v13087_v19  ;;  %v14949_v45 = vmax.f32 %v13087_v19, 0.0 }
 0x3ec   : > { %15337 = vst [vmem:[#allocation158_spill] sm:$0xff] %v13095_v37  ;;  %v14950_v5 = vmax.f32 %v13095_v37, 0.0 }
 0x3ed   : > { %v4875_v53 = vpack.c.bf16 %v14949_v45, %v14952_v4  ;;  %v13131_v45 = vadd.f32 %v12633_v20, %v12915_v13  ;;  %v13155_v4 = vadd.f32 %v12627_v17, %v12961_v33 }
 0x3ee   : > { %v4880_v35 = vpack.c.bf16 %v14950_v5, %v14951_v32  ;;  %v14956_v32 = vmax.f32 %v13127_v31, 0.0 }
 0x3ef   : > { %15343 = vst [vmem:[#allocation164_spill] sm:$0xff] %v13131_v45  ;;  %15346 = vst [vmem:[#allocation167_spill] sm:$0xff] %v13155_v4 }
 0x3f1   : > { %5573 = vmatmul.mubr.bf16.gmra.mrb[76].mxu0 %v4871_v36  ;;  %6419 = vmatmul.mubr.bf16.gmra.mrb[76].mxu1 %v4871_v36  ;;  %v13115_v36 = vadd.f32 %v12606_v22, %v12961_v33 }
 0x3f2   : > { %5582 = vmatprep.mubr.bf16.mxu0 %v4876_v25  ;;  %6428 = vmatprep.mubr.bf16.mxu1 %v4876_v25  ;;  %v13123_v25 = vadd.f32 %v12646_v58, %v12915_v13  ;;  %v14954_v58 = vmax.f32 %v13131_v45, 0.0 }
 0x3f3   : > { %15340 = vst [vmem:[#allocation161_spill] sm:$0xff] %v13115_v36  ;;  %v14953_v22 = vmax.f32 %v13115_v36, 0.0 }
 0x3f4   : > { %15341 = vst [vmem:[#allocation162_spill] sm:$0xff] %v13123_v25  ;;  %v14955_v5 = vmax.f32 %v13123_v25, 0.0 }
 0x3f5   : > { %v4879_v16 = vpack.c.bf16 %v14953_v22, %v14956_v32  ;;  %v13159_v22 = vadd.f32 %v12665_v2, %v12915_v13  ;;  %v13183_v32 = vadd.f32 %v12659_v23, %v12961_v33 }
 0x3f6   : > { %v4884_v20 = vpack.c.bf16 %v14955_v5, %v14954_v58  ;;  %v14957_v5 = vmax.f32 %v13155_v4, 0.0 }
 0x3f7   : > { %15347 = vst [vmem:[#allocation168_spill] sm:$0xff] %v13159_v22  ;;  %15350 = vst [vmem:[#allocation171_spill] sm:$0xff] %v13183_v32 }
 0x3f9   : > { %5583 = vmatmul.mubr.bf16.gmra.mrb[80].mxu0 %v4875_v53  ;;  %6429 = vmatmul.mubr.bf16.gmra.mrb[80].mxu1 %v4875_v53  ;;  %v13143_v53 = vadd.f32 %v12638_v38, %v12961_v33 }
 0x3fa   : > { %5592 = vmatprep.mubr.bf16.mxu0 %v4880_v35  ;;  %6438 = vmatprep.mubr.bf16.mxu1 %v4880_v35  ;;  %v13151_v35 = vadd.f32 %v12678_v59, %v12915_v13  ;;  %v14958_v59 = vmax.f32 %v13159_v22, 0.0 }
 0x3fb   : > { %15344 = vst [vmem:[#allocation165_spill] sm:$0xff] %v13143_v53  ;;  %v14960_v38 = vmax.f32 %v13143_v53, 0.0 }
 0x3fc   : > { %15345 = vst [vmem:[#allocation166_spill] sm:$0xff] %v13151_v35  ;;  %v14959_v58 = vmax.f32 %v13151_v35, 0.0 }
 0x3fd   : > { %v4883_v17 = vpack.c.bf16 %v14960_v38, %v14957_v5  ;;  %v13187_v5 = vadd.f32 %v12697_v42, %v12915_v13  ;;  %v13211_v38 = vadd.f32 %v12691_v9, %v12961_v33 }
 0x3fe   : > { %v4888_v2 = vpack.c.bf16 %v14959_v58, %v14958_v59  ;;  %v14961_v58 = vmax.f32 %v13183_v32, 0.0 }
 0x3ff   : > { %15351 = vst [vmem:[#allocation172_spill] sm:$0xff] %v13187_v5  ;;  %15354 = vst [vmem:[#allocation175_spill] sm:$0xff] %v13211_v38 }
 0x401   : > { %5593 = vmatmul.mubr.bf16.gmra.mrb[84].mxu0 %v4879_v16  ;;  %6439 = vmatmul.mubr.bf16.gmra.mrb[84].mxu1 %v4879_v16  ;;  %v13171_v16 = vadd.f32 %v12670_v12, %v12961_v33 }
 0x402   : > { %5602 = vmatprep.mubr.bf16.mxu0 %v4884_v20  ;;  %6448 = vmatprep.mubr.bf16.mxu1 %v4884_v20  ;;  %v13179_v20 = vadd.f32 %v12710_v15, %v12915_v13  ;;  %v14962_v15 = vmax.f32 %v13187_v5, 0.0 }
 0x403   : > { %15348 = vst [vmem:[#allocation169_spill] sm:$0xff] %v13171_v16  ;;  %v14964_v12 = vmax.f32 %v13171_v16, 0.0 }
 0x404   : > { %15349 = vst [vmem:[#allocation170_spill] sm:$0xff] %v13179_v20  ;;  %v14963_v59 = vmax.f32 %v13179_v20, 0.0 }
 0x405   : > { %v4887_v23 = vpack.c.bf16 %v14964_v12, %v14961_v58  ;;  %v13215_v58 = vadd.f32 %v12729_v61, %v12915_v13  ;;  %v13239_v12 = vadd.f32 %v12723_v7, %v12961_v33 }
 0x406   : > { %v4892_v42 = vpack.c.bf16 %v14963_v59, %v14962_v15  ;;  %v14965_v59 = vmax.f32 %v13211_v38, 0.0 }
 0x407   : > { %15355 = vst [vmem:[#allocation176_spill] sm:$0xff] %v13215_v58  ;;  %15358 = vst [vmem:[#allocation179_spill] sm:$0xff] %v13239_v12 }
 0x409   : > { %5603 = vmatmul.mubr.bf16.gmra.mrb[88].mxu0 %v4883_v17  ;;  %6449 = vmatmul.mubr.bf16.gmra.mrb[88].mxu1 %v4883_v17  ;;  %v13199_v17 = vadd.f32 %v12702_v30, %v12961_v33 }
 0x40a   : > { %5612 = vmatprep.mubr.bf16.mxu0 %v4888_v2  ;;  %6458 = vmatprep.mubr.bf16.mxu1 %v4888_v2  ;;  %v13207_v2 = vadd.f32 %v12742_v6, %v12915_v13  ;;  %v14966_v6 = vmax.f32 %v13215_v58, 0.0 }
 0x40b   : > { %15352 = vst [vmem:[#allocation173_spill] sm:$0xff] %v13199_v17  ;;  %v14968_v30 = vmax.f32 %v13199_v17, 0.0 }
 0x40c   : > { %15353 = vst [vmem:[#allocation174_spill] sm:$0xff] %v13207_v2  ;;  %v14967_v15 = vmax.f32 %v13207_v2, 0.0 }
 0x40d   : > { %v4891_v9 = vpack.c.bf16 %v14968_v30, %v14965_v59  ;;  %v13243_v59 = vadd.f32 %v12761_v3, %v12915_v13 }
 0x40e   : > { %v4896_v61 = vpack.c.bf16 %v14967_v15, %v14966_v6  ;;  %v14971_v15 = vmax.f32 %v13239_v12, 0.0 }
 0x40f   : > { %15359 = vst [vmem:[#allocation180_spill] sm:$0xff] %v13243_v59 }
 0x411   : > { %5613 = vmatmul.mubr.bf16.gmra.mrb[92].mxu0 %v4887_v23  ;;  %6459 = vmatmul.mubr.bf16.gmra.mrb[92].mxu1 %v4887_v23  ;;  %v13227_v23 = vadd.f32 %v12734_v11, %v12961_v33 }
 0x412   : > { %5622 = vmatprep.mubr.bf16.mxu0 %v4892_v42  ;;  %6468 = vmatprep.mubr.bf16.mxu1 %v4892_v42  ;;  %v13235_v42 = vadd.f32 %v12774_v44, %v12915_v13  ;;  %v14973_v44 = vmax.f32 %v13243_v59, 0.0  ;;  %v15379_v59 = vld [vmem:[#allocation111_spill] sm:$0xff] }
 0x413   : > { %15356 = vst [vmem:[#allocation177_spill] sm:$0xff] %v13227_v23  ;;  %v14972_v11 = vmax.f32 %v13227_v23, 0.0 }
 0x414   : > { %15357 = vst [vmem:[#allocation178_spill] sm:$0xff] %v13235_v42  ;;  %v14974_v6 = vmax.f32 %v13235_v42, 0.0 }
 0x415   : > { %v4895_v7 = vpack.c.bf16 %v14972_v11, %v14971_v15  ;;  %v15365_v15 = vld [vmem:[#allocation104_spill] sm:$0xff] }
 0x416   : > { %v4900_v3 = vpack.c.bf16 %v14974_v6, %v14973_v44  ;;  %v13271_v11 = vadd.f32 %v15365_v15, %v12915_v13  ;;  %v14979_v6 = vmax.f32 %v13267_v43, 0.0  ;;  %v13323_v43 = vadd.f32 %v15379_v59, %v12961_v33 }
 0x418   : > { %15366 = vst [vmem:[#allocation104_spill] sm:$0xff] %v13271_v11  ;;  %15380 = vst [vmem:[#allocation111_spill] sm:$0xff] %v13323_v43 }
 0x419   : > { %5623 = vmatmul.mubr.bf16.gmra.mrb[96].mxu0 %v4891_v9  ;;  %6469 = vmatmul.mubr.bf16.gmra.mrb[96].mxu1 %v4891_v9  ;;  %v13255_v9 = vadd.f32 %v12766_v50, %v12961_v33 }
 0x41a   : > { %5632 = vmatprep.mubr.bf16.mxu0 %v4896_v61  ;;  %6478 = vmatprep.mubr.bf16.mxu1 %v4896_v61  ;;  %v15361_v61 = vld [vmem:[#allocation109_spill] sm:$0xff] }
 0x41b   : > { %15360 = vst [vmem:[#allocation181_spill] sm:$0xff] %v13255_v9  ;;  %v13263_v30 = vadd.f32 %v15361_v61, %v12915_v13  ;;  %v14980_v50 = vmax.f32 %v13255_v9, 0.0  ;;  %v14982_v61 = vmax.f32 %v13271_v11, 0.0 }
 0x41d   : > { %15362 = vst [vmem:[#allocation109_spill] sm:$0xff] %v13263_v30  ;;  %v14981_v44 = vmax.f32 %v13263_v30, 0.0  ;;  %v4899_v62 = vpack.c.bf16 %v14980_v50, %v14979_v6  ;;  %v15373_v6 = vld [vmem:[#allocation112_spill] sm:$0xff] }
 0x41e   : > { %v13299_v50 = vadd.f32 %v15373_v6, %v12915_v13 }
 0x41f   : > { %v4904_v15 = vpack.c.bf16 %v14981_v44, %v14982_v61  ;;  %v14988_v61 = vmax.f32 %v13295_v21, 0.0 }
 0x420   : > { %15374 = vst [vmem:[#allocation112_spill] sm:$0xff] %v13299_v50 }
 0x421   : > { %5633 = vmatmul.mubr.bf16.gmra.mrb[100].mxu0 %v4895_v7  ;;  %6479 = vmatmul.mubr.bf16.gmra.mrb[100].mxu1 %v4895_v7  ;;  %v15367_v7 = vld [vmem:[#allocation106_spill] sm:$0xff] }
 0x422   : > { %5642 = vmatprep.mubr.bf16.mxu0 %v4900_v3  ;;  %6488 = vmatprep.mubr.bf16.mxu1 %v4900_v3  ;;  %v13283_v55 = vadd.f32 %v15367_v7, %v12961_v33  ;;  %v15369_v3 = vld [vmem:[#allocation117_spill] sm:$0xff] }
 0x423   : > { %v13291_v60 = vadd.f32 %v15369_v3, %v12915_v13  ;;  %v14990_v3 = vmax.f32 %v13299_v50, 0.0  ;;  %v15386_v50 = vld [vmem:[#allocation119_spill] sm:$0xff] }
 0x424   : > { %15368 = vst [vmem:[#allocation106_spill] sm:$0xff] %v13283_v55  ;;  %v14987_v7 = vmax.f32 %v13283_v55, 0.0  ;;  %v13351_v55 = vadd.f32 %v15386_v50, %v12961_v33 }
 0x425   : > { %15370 = vst [vmem:[#allocation117_spill] sm:$0xff] %v13291_v60  ;;  %v14989_v44 = vmax.f32 %v13291_v60, 0.0 }
 0x426   : > { %v4903_v29 = vpack.c.bf16 %v14987_v7, %v14988_v61  ;;  %v15381_v7 = vld [vmem:[#allocation120_spill] sm:$0xff]  ;;  %15387 = vst [vmem:[#allocation119_spill] sm:$0xff] %v13351_v55 }
 0x427   : > { %v4908_v6 = vpack.c.bf16 %v14989_v44, %v14990_v3  ;;  %v13327_v61 = vadd.f32 %v15381_v7, %v12915_v13  ;;  %v14995_v3 = vmax.f32 %v13323_v43, 0.0 }
 0x429   : > { %5643 = vmatmul.mubr.bf16.gmra.mrb[104].mxu0 %v4899_v62  ;;  %6489 = vmatmul.mubr.bf16.gmra.mrb[104].mxu1 %v4899_v62  ;;  %v15375_v62 = vld [vmem:[#allocation114_spill] sm:$0xff]  ;;  %15382 = vst [vmem:[#allocation120_spill] sm:$0xff] %v13327_v61 }
 0x42a   : > { %5652 = vmatprep.mubr.bf16.mxu0 %v4904_v15  ;;  %6498 = vmatprep.mubr.bf16.mxu1 %v4904_v15  ;;  %v13311_v30 = vadd.f32 %v15375_v62, %v12961_v33  ;;  %v15377_v15 = vld [vmem:[#allocation125_spill] sm:$0xff] }
 0x42b   : > { %v13319_v11 = vadd.f32 %v15377_v15, %v12915_v13  ;;  %v14997_v15 = vmax.f32 %v13327_v61, 0.0  ;;  %v15393_v61 = vld [vmem:[#allocation127_spill] sm:$0xff] }
 0x42c   : > { %15376 = vst [vmem:[#allocation114_spill] sm:$0xff] %v13311_v30  ;;  %v14994_v62 = vmax.f32 %v13311_v30, 0.0  ;;  %v13379_v30 = vadd.f32 %v15393_v61, %v12961_v33 }
 0x42d   : > { %15378 = vst [vmem:[#allocation125_spill] sm:$0xff] %v13319_v11  ;;  %v14996_v44 = vmax.f32 %v13319_v11, 0.0 }
 0x42e   : > { %v4907_v59 = vpack.c.bf16 %v14994_v62, %v14995_v3  ;;  %v15388_v62 = vld [vmem:[#allocation128_spill] sm:$0xff]  ;;  %15394 = vst [vmem:[#allocation127_spill] sm:$0xff] %v13379_v30 }
 0x42f   : > { %v4912_v7 = vpack.c.bf16 %v14996_v44, %v14997_v15  ;;  %v13355_v3 = vadd.f32 %v15388_v62, %v12915_v13  ;;  %v15004_v15 = vmax.f32 %v13351_v55, 0.0 }
 0x431   : > { %5653 = vmatmul.mubr.bf16.gmra.mrb[108].mxu0 %v4903_v29  ;;  %6499 = vmatmul.mubr.bf16.gmra.mrb[108].mxu1 %v4903_v29  ;;  %v15383_v29 = vld [vmem:[#allocation122_spill] sm:$0xff]  ;;  %15389 = vst [vmem:[#allocation128_spill] sm:$0xff] %v13355_v3 }
 0x432   : > { %5662 = vmatprep.mubr.bf16.mxu0 %v4908_v6  ;;  %6508 = vmatprep.mubr.bf16.mxu1 %v4908_v6  ;;  %v13339_v60 = vadd.f32 %v15383_v29, %v12961_v33  ;;  %v13347_v6 = vadd.f32 %v12902_v57, %v12915_v13  ;;  %v15003_v57 = vmax.f32 %v13355_v3, 0.0 }
 0x434   : > { %15384 = vst [vmem:[#allocation122_spill] sm:$0xff] %v13339_v60  ;;  %15385 = vst [vmem:[#allocation182_spill] sm:$0xff] %v13347_v6  ;;  %v15001_v29 = vmax.f32 %v13339_v60, 0.0  ;;  %v15002_v44 = vmax.f32 %v13347_v6, 0.0 }
 0x436   : > { %v4911_v50 = vpack.c.bf16 %v15001_v29, %v15004_v15  ;;  %v4916_v62 = vpack.c.bf16 %v15002_v44, %v15003_v57  ;;  %v13383_v29 = vadd.f32 %v12927_v34, %v12915_v13  ;;  %v15008_v57 = vmax.f32 %v13379_v30, 0.0 }
 0x438   : > { %15395 = vst [vmem:[#allocation184_spill] sm:$0xff] %v13383_v29 }
 0x439   : > { %5663 = vmatmul.mubr.bf16.gmra.mrb[112].mxu0 %v4907_v59  ;;  %6509 = vmatmul.mubr.bf16.gmra.mrb[112].mxu1 %v4907_v59  ;;  %v15390_v59 = vld [vmem:[#allocation130_spill] sm:$0xff] }
 0x43a   : > { %5672 = vmatprep.mubr.bf16.mxu0 %v4912_v7  ;;  %6518 = vmatprep.mubr.bf16.mxu1 %v4912_v7  ;;  %v13367_v11 = vadd.f32 %v15390_v59, %v12961_v33  ;;  %v13375_v7 = vadd.f32 %v12945_v26, %v12915_v13  ;;  %v15007_v26 = vmax.f32 %v13383_v29, 0.0  ;;  %v15397_v13 = vld [vmem:[#allocation134_spill] sm:$0xff] }
 0x43c   : > { %15391 = vst [vmem:[#allocation130_spill] sm:$0xff] %v13367_v11  ;;  %15392 = vst [vmem:[#allocation183_spill] sm:$0xff] %v13375_v7  ;;  %v15005_v59 = vmax.f32 %v13367_v11, 0.0  ;;  %v15006_v44 = vmax.f32 %v13375_v7, 0.0 }
 0x43e   : > { %v4915_v61 = vpack.c.bf16 %v15005_v59, %v15008_v57  ;;  %v4920_v34 = vpack.c.bf16 %v15006_v44, %v15007_v26 }
 0x441   : > { %5673 = vmatmul.mubr.bf16.gmra.mrb[116].mxu0 %v4911_v50  ;;  %6519 = vmatmul.mubr.bf16.gmra.mrb[116].mxu1 %v4911_v50  ;;  %v13395_v50 = vadd.f32 %v12936_v18, %v12961_v33 }
 0x442   : > { %5682 = vmatprep.mubr.bf16.mxu0 %v4916_v62  ;;  %6528 = vmatprep.mubr.bf16.mxu1 %v4916_v62  ;;  %v13403_v62 = vadd.f32 %v15397_v13, %v12961_v33  ;;  %v5831_v33 = vld [vmem:[%s14678_s6] sm:$0x3] }
 0x443   : > { %15396 = vst [vmem:[#allocation185_spill] sm:$0xff] %v13395_v50  ;;  %v15010_v15 = vmax.f32 %v13395_v50, 0.0  ;;  %v15399_v13 = vld [vmem:[#allocation57_spill] sm:$0xff] }
 0x444   : > { %15398 = vst [vmem:[#allocation134_spill] sm:$0xff] %v13403_v62  ;;  %v15011_v59 = vmax.f32 %v13403_v62, 0.0  ;;  %v13415_v44 = vrot.slane %v5831_v33, %v15399_v13 }
 0x446   : > { %v4919_v18 = vpack.c.bf16 %v15010_v15, %v15011_v59 }
 0x449   : > { %5683 = vmatmul.mubr.bf16.gmra.mrb[120].mxu0 %v4915_v61  ;;  %6529 = vmatmul.mubr.bf16.gmra.mrb[120].mxu1 %v4915_v61  ;;  %v4985_v61 = vld [vmem:[%s15400_s16] sm:$0x3] }
 0x44a   : > { %5692 = vmatprep.mubr.bf16.mxu0 %v4920_v34  ;;  %6538 = vmatprep.mubr.bf16.mxu1 %v4920_v34  ;;  %v15401_v34 = vld [vmem:[#allocation56_spill] sm:$0xff]  ;;  %v13424_v15 = vrot.slane %v4985_v61, %v15399_v13 }
 0x44b   : > { %v13421_v26 = vrot.slane %v5831_v33, %v15401_v34  ;;  %v13429_v3 = vrot.slane %v4985_v61, %v15401_v34 }
 0x451   : > { %5693 = vmatmul.mubr.bf16.gmra.mrb[124].mxu0 %v4919_v18  ;;  %6539 = vmatmul.mubr.bf16.gmra.mrb[124].mxu1 %v4919_v18 }
 0x4ac   : > { %v5544_v57 = vpop.f32.mrb[64].mxu0  ;;  %v6390_v7 = vpop.f32.mrb[64].mxu1 }
 0x4ad   : > { %v9419_v18 = vadd.f32 %v6390_v7, %v13415_v44  ;;  %v5546_v59 = vpop.f32.mrb[65].mxu0  ;;  %v6392_v50 = vpop.f32.mrb[65].mxu1  ;;  %v9355_v21 = vadd.f32 %v5544_v57, %v13424_v15 }
 0x4ae   : > { %v9420_v29 = vadd.f32 %v6392_v50, %v13421_v26  ;;  %v5548_v62 = vpop.f32.mrb[66].mxu0  ;;  %v6394_v6 = vpop.f32.mrb[66].mxu1  ;;  %v9356_v50 = vadd.f32 %v5546_v59, %v13429_v3 }
 0x4af   : > { %v8943_v11 = vmul.f32 -1.442695, %v9419_v18  ;;  %v9421_v33 = vadd.f32 %v6394_v6, %v13415_v44  ;;  %v5550_v30 = vpop.f32.mrb[67].mxu0  ;;  %v6396_v60 = vpop.f32.mrb[67].mxu1  ;;  %v9357_v18 = vadd.f32 %v5548_v62, %v13424_v15 }
 0x4b0   : > { %v8944_v55 = vmul.f32 -1.442695, %v9420_v29  ;;  %v9422_v43 = vadd.f32 %v6396_v60, %v13421_v26 }
 0x4b1   : > { %10668 = vpow2.f32 %v8943_v11  ;;  %v8945_v7 = vmul.f32 -1.442695, %v9421_v33 }
 0x4b2   : > { %10670 = vpow2.f32 %v8944_v55  ;;  %v8946_v42 = vmul.f32 -1.442695, %v9422_v43  ;;  %v9358_v55 = vadd.f32 %v5550_v30, %v13429_v3 }
 0x4b3   : > { %10672 = vpow2.f32 %v8945_v7 }
 0x4b4   : > { %v5554_v61 = vpop.f32.mrb[68].mxu0  ;;  %v6400_v9 = vpop.f32.mrb[68].mxu1  ;;  %10674 = vtanh.f32 %v9355_v21 }
 0x4b5   : > { %v9423_v6 = vadd.f32 %v6400_v9, %v13415_v44  ;;  %v5556_v58 = vpop.f32.mrb[69].mxu0  ;;  %v6402_v29 = vpop.f32.mrb[69].mxu1  ;;  %10676 = vpow2.f32 %v8946_v42  ;;  %v9359_v7 = vadd.f32 %v5554_v61, %v13424_v15 }
 0x4b6   : > { %v9424_v60 = vadd.f32 %v6402_v29, %v13421_v26  ;;  %v5558_v57 = vpop.f32.mrb[70].mxu0  ;;  %v6404_v11 = vpop.f32.mrb[70].mxu1  ;;  %10678 = vtanh.f32 %v9356_v50 }
 0x4b7   : > { %v8947_v43 = vmul.f32 -1.442695, %v9423_v6  ;;  %v9425_v59 = vadd.f32 %v6404_v11, %v13415_v44  ;;  %v13440_v62 = vpop.f32.mrb[71].mxu0  ;;  %v6406_v33 = vpop.f32.mrb[71].mxu1  ;;  %10680 = vtanh.f32 %v9357_v18 }
 0x4b8   : > { %v8948_v21 = vmul.f32 -1.442695, %v9424_v60  ;;  %v9426_v9 = vadd.f32 %v6406_v33, %v13421_v26  ;;  %v9362_v45 = vadd.f32 %v13440_v62, %v13429_v3 }
 0x4b9   : > { %10682 = vpow2.f32 %v8947_v43  ;;  %v8949_v42 = vmul.f32 -1.442695, %v9425_v59  ;;  %v9360_v43 = vadd.f32 %v5556_v58, %v13429_v3 }
 0x4ba   : > { %10684 = vpow2.f32 %v8948_v21  ;;  %v8950_v30 = vmul.f32 -1.442695, %v9426_v9 }
 0x4bb   : > { %v10669_v29 = vpop.eup %10668  ;;  %10686 = vtanh.f32 %v9358_v55 }
 0x4bc   : > { %v10671_v50 = vpop.eup %10670  ;;  %v6741_v12 = vadd.f32 1.0, %v10669_v29  ;;  %10688 = vpow2.f32 %v8949_v42  ;;  %v13444_v6 = vpop.f32.mrb[72].mxu0 }
 0x4bd   : > { %v6410_v11 = vpop.f32.mrb[72].mxu1  ;;  %v6742_v2 = vadd.f32 1.0, %v10671_v50  ;;  %10690 = vtanh.f32 %v9359_v7  ;;  %v13447_v60 = vpop.f32.mrb[73].mxu0 }
 0x4be   : > { %v9427_v18 = vadd.f32 %v6410_v11, %v13415_v44  ;;  %v6412_v33 = vpop.f32.mrb[73].mxu1  ;;  %v10673_v61 = vpop.eup %10672  ;;  %10692 = vrcp.f32 %v6741_v12  ;;  %v9361_v12 = vadd.f32 %v5558_v57, %v13424_v15 }
 0x4bf   : > { %v13450_v59 = vpop.f32.mrb[74].mxu0  ;;  %v6414_v55 = vpop.f32.mrb[74].mxu1  ;;  %10694 = vrcp.f32 %v6742_v2  ;;  %v6743_v9 = vadd.f32 1.0, %v10673_v61  ;;  %v9428_v11 = vadd.f32 %v6412_v33, %v13421_v26  ;;  %v6997_v61 = vld [vmem:[%s15402_s26] sm:$0x3] }
 0x4c0   : > { %v10675_v21 = vpop.eup %10674  ;;  %v13452_v42 = vpop.f32.mrb[75].mxu0  ;;  %10696 = vpow2.f32 %v8950_v30  ;;  %v8951_v7 = vmul.f32 -1.442695, %v9427_v18  ;;  %v9429_v2 = vadd.f32 %v6414_v55, %v13415_v44  ;;  %v9365_v31 = vadd.f32 %v13450_v59, %v13424_v15 }
 0x4c1   : > { %v6416_v29 = vpop.f32.mrb[75].mxu1  ;;  %v10677_v50 = vpop.eup %10676  ;;  %10698 = vrcp.f32 %v6743_v9  ;;  %v8952_v18 = vmul.f32 -1.442695, %v9428_v11  ;;  %v9366_v59 = vadd.f32 %v13452_v42, %v13429_v3 }
 0x4c2   : > { %v10679_v23 = vpop.eup %10678  ;;  %v6744_v5 = vadd.f32 1.0, %v10677_v50  ;;  %10700 = vtanh.f32 %v9360_v43  ;;  %v9430_v55 = vadd.f32 %v6416_v29, %v13421_v26  ;;  %v8953_v11 = vmul.f32 -1.442695, %v9429_v2 }
 0x4c3   : > { %v10681_v58 = vpop.eup %10680 }
 0x4c4   : > { %v10683_v38 = vpop.eup %10682  ;;  %10702 = vrcp.f32 %v6744_v5  ;;  %v13460_v33 = vpop.f32.mrb[76].mxu0  ;;  %v8954_v25 = vmul.f32 -1.442695, %v9430_v55 }
 0x4c5   : > { %v10685_v20 = vpop.eup %10684  ;;  %v6745_v30 = vadd.f32 1.0, %v10683_v38  ;;  %10704 = vpow2.f32 %v8951_v7  ;;  %v6420_v9 = vpop.f32.mrb[76].mxu1 }
 0x4c6   : > { %v13462_v50 = vpop.eup %10686  ;;  %v6746_v57 = vadd.f32 1.0, %v10685_v20  ;;  %10706 = vtanh.f32 %v9361_v12  ;;  %v13464_v43 = vpop.f32.mrb[77].mxu0  ;;  %v13472_v20 = vrot.slane %v6997_v61, %v15399_v13  ;;  %v9431_v29 = vadd.f32 %v6420_v9, %v13415_v44 }
 0x4c7   : > { %v6422_v5 = vpop.f32.mrb[77].mxu1  ;;  %v10689_v17 = vpop.eup %10688  ;;  %10708 = vrcp.f32 %v6745_v30  ;;  %v13478_v30 = vrot.slane %v6997_v61, %v15401_v34 }
 0x4c8   : > { %v13467_v22 = vpop.f32.mrb[78].mxu0  ;;  %v6424_v32 = vpop.f32.mrb[78].mxu1  ;;  %10710 = vrcp.f32 %v6746_v57  ;;  %v6747_v7 = vadd.f32 1.0, %v10689_v17  ;;  %v9363_v57 = vadd.f32 %v13444_v6, %v13424_v15  ;;  %v9432_v62 = vadd.f32 %v6422_v5, %v13421_v26 }
 0x4c9   : > { %v10691_v38 = vpop.eup %10690  ;;  %v13469_v35 = vpop.f32.mrb[79].mxu0  ;;  %10712 = vpow2.f32 %v8952_v18  ;;  %v8955_v34 = vmul.f32 -1.442695, %v9431_v29  ;;  %v9364_v5 = vadd.f32 %v13447_v60, %v13429_v3  ;;  %v9433_v55 = vadd.f32 %v6424_v32, %v13415_v44 }
 0x4ca   : > { %v6426_v16 = vpop.f32.mrb[79].mxu1  ;;  %v10693_v12 = vpop.eup %10692  ;;  %10714 = vrcp.f32 %v6747_v7 }
 0x4cb   : > { %v10695_v4 = vpop.eup %10694  ;;  %v6933_v17 = vmul.f32 %v10693_v12, %v10675_v21  ;;  %10716 = vpow2.f32 %v8953_v11 }
 0x4cc   : > { %v10697_v2 = vpop.eup %10696  ;;  %v6934_v53 = vmul.f32 %v10695_v4, %v10679_v23  ;;  %10718 = vtanh.f32 %v9362_v45  ;;  %v13484_v61 = vpop.f32.mrb[80].mxu0 }
 0x4cd   : > { %v10699_v37 = vpop.eup %10698  ;;  %v6748_v36 = vadd.f32 1.0, %v10697_v2  ;;  %v7009_v18 = vmul.f32 %v13472_v20, %v6933_v17  ;;  %v6430_v7 = vpop.f32.mrb[80].mxu1 }
 0x4ce   : > { %v10701_v9 = vpop.eup %10700  ;;  %v7010_v21 = vmul.f32 %v13478_v30, %v6934_v53  ;;  %v6935_v12 = vmul.f32 %v10699_v37, %v10681_v58  ;;  %v13487_v6 = vpop.f32.mrb[81].mxu0  ;;  %v8956_v37 = vmul.f32 -1.442695, %v9432_v62  ;;  %v8957_v62 = vmul.f32 -1.442695, %v9433_v55 }
 0x4cf   : > { %v10703_v0 = vpop.eup %10702  ;;  %10720 = vrcp.f32 %v6748_v36  ;;  %v6432_v4 = vpop.f32.mrb[81].mxu1 }
 0x4d0   : > { %v10705_v23 = vpop.eup %10704  ;;  %10722 = vpow2.f32 %v8954_v25  ;;  %v13492_v45 = vpop.f32.mrb[82].mxu0  ;;  %v7073_v29 = vadd.f32 %v7010_v21, %v7009_v18  ;;  %v9434_v25 = vadd.f32 %v6426_v16, %v13421_v26  ;;  %v6936_v60 = vmul.f32 %v10703_v0, %v13462_v50 }
 0x4d1   : > { %v6434_v11 = vpop.f32.mrb[82].mxu1  ;;  %v10707_v17 = vpop.eup %10706  ;;  %10724 = vtanh.f32 %v9363_v57  ;;  %v6749_v53 = vadd.f32 1.0, %v10705_v23  ;;  %v7011_v57 = vmul.f32 %v13472_v20, %v6935_v12 }
 0x4d2   : > { %v13494_v58 = vpop.f32.mrb[83].mxu0  ;;  %v13496_v36 = vpop.f32.mrb[83].mxu1  ;;  %10726 = vpow2.f32 %v8955_v34  ;;  %7074 = vadd.xlane.f32.xlu0 %v7073_v29  ;;  %v7012_v16 = vmul.f32 %v13478_v30, %v6936_v60  ;;  %v8958_v34 = vmul.f32 -1.442695, %v9434_v25  ;;  %v9435_v29 = vadd.f32 %v6430_v7, %v13415_v44 }
 0x4d3   : > { %v10709_v2 = vpop.eup %10708  ;;  %10728 = vrcp.f32 %v6749_v53  ;;  %v9367_v7 = vadd.f32 %v13460_v33, %v13424_v15  ;;  %v9368_v33 = vadd.f32 %v13464_v43, %v13429_v3 }
 0x4d4   : > { %v10711_v32 = vpop.eup %10710  ;;  %10730 = vtanh.f32 %v9364_v5  ;;  %v6937_v21 = vmul.f32 %v10709_v2, %v10691_v38  ;;  %v13507_v0 = vpop.f32.mrb[84].mxu0  ;;  %v7076_v38 = vadd.f32 %v7012_v16, %v7011_v57  ;;  %v8959_v57 = vmul.f32 -1.442695, %v9435_v29 }
 0x4d5   : > { %v10713_v18 = vpop.eup %10712  ;;  %v6938_v23 = vmul.f32 %v10711_v32, %v10701_v9  ;;  %10732 = vpow2.f32 %v8956_v37  ;;  %v13509_v50 = vpop.f32.mrb[84].mxu1 }
 0x4d6   : > { %v10715_v54 = vpop.eup %10714  ;;  %v6750_v19 = vadd.f32 1.0, %v10713_v18  ;;  %10734 = vtanh.f32 %v9365_v31  ;;  %v13511_v9 = vpop.f32.mrb[85].mxu0  ;;  %v7013_v42 = vmul.f32 %v13472_v20, %v6937_v21  ;;  %7077 = vadd.xlane.f32.xlu0 %v7076_v38 }
 0x4d7   : > { %v6939_v12 = vmul.f32 %v10715_v54, %v10707_v17  ;;  %v10717_v5 = vpop.eup %10716  ;;  %v13513_v55 = vpop.f32.mrb[85].mxu1  ;;  %v7014_v53 = vmul.f32 %v13478_v30, %v6938_v23  ;;  %v9436_v17 = vadd.f32 %v6432_v4, %v13421_v26 }
 0x4d8   : > { %10736 = vrcp.f32 %v6750_v19  ;;  %v10719_v31 = vpop.eup %10718  ;;  %v6751_v37 = vadd.f32 1.0, %v10717_v5  ;;  %v13519_v2 = vpop.f32.mrb[86].mxu0 }
 0x4d9   : > { %10738 = vpow2.f32 %v8957_v62  ;;  %v13521_v54 = vpop.f32.mrb[86].mxu1  ;;  %v10721_v19 = vpop.eup %10720  ;;  %v7079_v62 = vadd.f32 %v7014_v53, %v7013_v42  ;;  %v7015_v16 = vmul.f32 %v13472_v20, %v6939_v12  ;;  %v8960_v39 = vmul.f32 -1.442695, %v9436_v17 }
 0x4da   : > { %10740 = vtanh.f32 %v9366_v59  ;;  %v13524_v25 = vpop.f32.mrb[87].mxu0  ;;  %v13526_v32 = vpop.f32.mrb[87].mxu1  ;;  %v9437_v59 = vadd.f32 %v6434_v11, %v13415_v44  ;;  %v6940_v4 = vmul.f32 %v10721_v19, %v10719_v31  ;;  %v9369_v11 = vadd.f32 %v13467_v22, %v13424_v15 }
 0x4db   : > { %v10723_v60 = vpop.eup %10722  ;;  %10742 = vrcp.f32 %v6751_v37  ;;  %7080 = vadd.xlane.f32.xlu1 %v7079_v62  ;;  %v9438_v12 = vadd.f32 %v13496_v36, %v13421_v26 }
 0x4dc   : > { %v10725_v18 = vpop.eup %10724  ;;  %v6752_v21 = vadd.f32 1.0, %v10723_v60  ;;  %10744 = vpow2.f32 %v8958_v34  ;;  %v13532_v37 = vpop.f32.mrb[88].mxu0  ;;  %v7016_v43 = vmul.f32 %v13478_v30, %v6940_v4  ;;  %v8961_v17 = vmul.f32 -1.442695, %v9437_v59 }
 0x4dd   : > { %v10727_v23 = vpop.eup %10726  ;;  %10746 = vtanh.f32 %v9367_v7  ;;  %v13534_v60 = vpop.f32.mrb[88].mxu1  ;;  %v9439_v4 = vadd.f32 %v13509_v50, %v13415_v44 }
 0x4de   : > { %v10729_v5 = vpop.eup %10728  ;;  %10748 = vrcp.f32 %v6752_v21  ;;  %v6753_v38 = vadd.f32 1.0, %v10727_v23  ;;  %v13541_v53 = vpop.f32.mrb[89].mxu0  ;;  %v9370_v23 = vadd.f32 %v13469_v35, %v13429_v3  ;;  %v9440_v35 = vadd.f32 %v13513_v55, %v13421_v26 }
 0x4df   : > { %v10731_v29 = vpop.eup %10730  ;;  %10750 = vpow2.f32 %v8959_v57  ;;  %v6941_v34 = vmul.f32 %v10729_v5, %v10725_v18  ;;  %v13543_v31 = vpop.f32.mrb[89].mxu1  ;;  %v7082_v57 = vadd.f32 %v7016_v43, %v7015_v16  ;;  %v8962_v5 = vmul.f32 -1.442695, %v9438_v12 }
 0x4e0   : > { %v10733_v42 = vpop.eup %10732  ;;  %10752 = vtanh.f32 %v9368_v33  ;;  %v13545_v21 = vpop.f32.mrb[90].mxu0  ;;  %v8963_v12 = vmul.f32 -1.442695, %v9439_v4 }
 0x4e1   : > { %v10735_v7 = vpop.eup %10734  ;;  %10754 = vrcp.f32 %v6753_v38  ;;  %v6754_v19 = vadd.f32 1.0, %v10733_v42  ;;  %v13547_v18 = vpop.f32.mrb[90].mxu1  ;;  %7083 = vadd.xlane.f32.xlu1 %v7082_v57  ;;  %v7017_v42 = vmul.f32 %v13472_v20, %v6941_v34  ;;  %v9372_v34 = vadd.f32 %v13487_v6, %v13429_v3 }
 0x4e2   : > { %v10737_v33 = vpop.eup %10736  ;;  %10756 = vpow2.f32 %v8960_v39  ;;  %v13549_v62 = vpop.f32.mrb[91].mxu0  ;;  %v9371_v39 = vadd.f32 %v13484_v61, %v13424_v15 }
 0x4e3   : > { %v13551_v22 = vpop.f32.mrb[91].mxu1  ;;  %v10739_v36 = vpop.eup %10738  ;;  %10758 = vrcp.f32 %v6754_v19  ;;  %v6942_v38 = vmul.f32 %v10737_v33, %v10731_v29 }
 0x4e4   : > { %v10741_v59 = vpop.eup %10740  ;;  %10760 = vtanh.f32 %v9369_v11  ;;  %v6755_v16 = vadd.f32 1.0, %v10739_v36  ;;  %v13563_v29 = vpop.f32.mrb[92].mxu0 }
 0x4e5   : > { %v10743_v43 = vpop.eup %10742  ;;  %10762 = vpow2.f32 %v8961_v17  ;;  %v7018_v50 = vmul.f32 %v13478_v30, %v6942_v38  ;;  %v13565_v33 = vpop.f32.mrb[92].mxu1 }
 0x4e6   : > { %v10745_v19 = vpop.eup %10744  ;;  %10764 = vrcp.f32 %v6755_v16  ;;  %v6943_v57 = vmul.f32 %v10743_v43, %v10735_v7  ;;  %v13569_v36 = vpop.f32.mrb[93].mxu0  ;;  %v9441_v7 = vadd.f32 %v13521_v54, %v13415_v44  ;;  %v9442_v54 = vadd.f32 %v13526_v32, %v13421_v26 }
 0x4e7   : > { %v10747_v51 = vpop.eup %10746  ;;  %10766 = vtanh.f32 %v9370_v23  ;;  %v6756_v11 = vadd.f32 1.0, %v10745_v19  ;;  %v7085_v17 = vadd.f32 %v7018_v50, %v7017_v42  ;;  %v13571_v55 = vpop.f32.mrb[93].mxu1  ;;  %v9374_v32 = vadd.f32 %v13494_v58, %v13429_v3 }
 0x4e8   : > { %v10749_v61 = vpop.eup %10748  ;;  %10768 = vpow2.f32 %v8962_v5  ;;  %v7019_v4 = vmul.f32 %v13472_v20, %v6943_v57  ;;  %v13576_v38 = vpop.f32.mrb[94].mxu0  ;;  %v8964_v5 = vmul.f32 -1.442695, %v9440_v35 }
 0x4e9   : > { %v10751_v16 = vpop.eup %10750  ;;  %10770 = vrcp.f32 %v6756_v11  ;;  %v6944_v23 = vmul.f32 %v10749_v61, %v10741_v59  ;;  %v13578_v43 = vpop.f32.mrb[94].mxu1  ;;  %7086 = vadd.xlane.f32.xlu0 %v7085_v17  ;;  %v9373_v61 = vadd.f32 %v13492_v45, %v13424_v15  ;;  %v8965_v17 = vmul.f32 -1.442695, %v9441_v7 }
 0x4ea   : > { %v10753_v19 = vpop.eup %10752  ;;  %10772 = vtanh.f32 %v9371_v39  ;;  %v6757_v6 = vadd.f32 1.0, %v10751_v16  ;;  %v13580_v42 = vpop.f32.mrb[95].mxu0 }
 0x4eb   : > { %v13582_v50 = vpop.f32.mrb[95].mxu1  ;;  %v10755_v11 = vpop.eup %10754  ;;  %10774 = vpow2.f32 %v8963_v12  ;;  %v7020_v59 = vmul.f32 %v13478_v30, %v6944_v23  ;;  %v8966_v23 = vmul.f32 -1.442695, %v9442_v54 }
 0x4ec   : > { %v10757_v57 = vpop.eup %10756  ;;  %10776 = vrcp.f32 %v6757_v6  ;;  %v6945_v24 = vmul.f32 %v10755_v11, %v10747_v51  ;;  %v9443_v6 = vadd.f32 %v13534_v60, %v13415_v44  ;;  %v13593_v45 = vpop.f32.mrb[96].mxu0  ;;  %v9450_v46 = vadd.f32 %v13582_v50, %v13421_v26 }
 0x4ed   : > { %v10759_v39 = vpop.eup %10758  ;;  %10778 = vtanh.f32 %v9372_v34  ;;  %v6758_v35 = vadd.f32 1.0, %v10757_v57  ;;  %v7088_v16 = vadd.f32 %v7020_v59, %v7019_v4  ;;  %v13595_v34 = vpop.f32.mrb[96].mxu1 }
 0x4ee   : > { %v10761_v8 = vpop.eup %10760  ;;  %10780 = vpow2.f32 %v8964_v5  ;;  %v6946_v48 = vmul.f32 %v10759_v39, %v10753_v19  ;;  %v7021_v51 = vmul.f32 %v13472_v20, %v6945_v24  ;;  %v13599_v5 = vpop.f32.mrb[97].mxu0  ;;  %v9444_v24 = vadd.f32 %v13543_v31, %v13421_v26 }
 0x4ef   : > { %v10763_v12 = vpop.eup %10762  ;;  %10782 = vrcp.f32 %v6758_v35  ;;  %7089 = vadd.xlane.f32.xlu1 %v7088_v16  ;;  %v13601_v11 = vpop.f32.mrb[97].mxu1  ;;  %v9445_v31 = vadd.f32 %v13547_v18, %v13415_v44  ;;  %v9446_v18 = vadd.f32 %v13551_v22, %v13421_v26 }
 0x4f0   : > { %v10765_v7 = vpop.eup %10764  ;;  %10784 = vtanh.f32 %v9373_v61  ;;  %v6759_v4 = vadd.f32 1.0, %v10763_v12  ;;  %v7022_v19 = vmul.f32 %v13478_v30, %v6946_v48  ;;  %v13603_v60 = vpop.f32.mrb[98].mxu0  ;;  %v9375_v61 = vadd.f32 %v13507_v0, %v13424_v15 }
 0x4f1   : > { %v10767_v58 = vpop.eup %10766  ;;  %10786 = vpow2.f32 %v8965_v17  ;;  %v6947_v54 = vmul.f32 %v10765_v7, %v10761_v8  ;;  %v13605_v59 = vpop.f32.mrb[98].mxu1  ;;  %v8967_v17 = vmul.f32 -1.442695, %v9443_v6  ;;  %v9376_v0 = vadd.f32 %v13511_v9, %v13429_v3 }
 0x4f2   : > { %v10769_v57 = vpop.eup %10768  ;;  %10788 = vrcp.f32 %v6759_v4  ;;  %v7091_v48 = vadd.f32 %v7022_v19, %v7021_v51  ;;  %v13611_v39 = vpop.f32.mrb[99].mxu0  ;;  %v9377_v9 = vadd.f32 %v13519_v2, %v13424_v15 }
 0x4f3   : > { %v13613_v35 = vpop.f32.mrb[99].mxu1  ;;  %v10771_v16 = vpop.eup %10770  ;;  %10790 = vtanh.f32 %v9374_v32  ;;  %v6760_v8 = vadd.f32 1.0, %v10769_v57  ;;  %v7023_v4 = vmul.f32 %v13472_v20, %v6947_v54  ;;  %v8968_v32 = vmul.f32 -1.442695, %v9444_v24 }
 0x4f4   : > { %v10773_v12 = vpop.eup %10772  ;;  %10792 = vpow2.f32 %v8966_v23  ;;  %7092 = vadd.xlane.f32.xlu0 %v7091_v48  ;;  %v6948_v7 = vmul.f32 %v10771_v16, %v10767_v58  ;;  %v13621_v58 = vpop.f32.mrb[100].mxu0 }
 0x4f5   : > { %v10775_v49 = vpop.eup %10774  ;;  %10794 = vrcp.f32 %v6760_v8  ;;  %v13623_v54 = vpop.f32.mrb[100].mxu1 }
 0x4f6   : > { %v10777_v51 = vpop.eup %10776  ;;  %10796 = vtanh.f32 %v9375_v61  ;;  %v6761_v19 = vadd.f32 1.0, %v10775_v49  ;;  %v7024_v6 = vmul.f32 %v13478_v30, %v6948_v7  ;;  %v13629_v49 = vpop.f32.mrb[101].mxu0 }
 0x4f7   : > { %v10779_v57 = vpop.eup %10778  ;;  %10798 = vpow2.f32 %v8967_v17  ;;  %v6949_v23 = vmul.f32 %v10777_v51, %v10773_v12  ;;  %v13631_v24 = vpop.f32.mrb[101].mxu1  ;;  %v8969_v17 = vmul.f32 -1.442695, %v9445_v31  ;;  %v9447_v31 = vadd.f32 %v13565_v33, %v13415_v44 }
 0x4f8   : > { %v10781_v48 = vpop.eup %10780  ;;  %10800 = vrcp.f32 %v6761_v19  ;;  %v7094_v61 = vadd.f32 %v7024_v6, %v7023_v4  ;;  %v13633_v12 = vpop.f32.mrb[102].mxu0 }
 0x4f9   : > { %v10783_v16 = vpop.eup %10782  ;;  %10802 = vtanh.f32 %v9376_v0  ;;  %v6762_v8 = vadd.f32 1.0, %v10781_v48  ;;  %v13635_v7 = vpop.f32.mrb[102].mxu1  ;;  %v7025_v19 = vmul.f32 %v13472_v20, %v6949_v23  ;;  %v9378_v0 = vadd.f32 %v13524_v25, %v13429_v3 }
 0x4fa   : > { %v10785_v51 = vpop.eup %10784  ;;  %10804 = vpow2.f32 %v8968_v32  ;;  %7095 = vadd.xlane.f32.xlu1 %v7094_v61  ;;  %v6950_v2 = vmul.f32 %v10783_v16, %v10779_v57  ;;  %v13638_v22 = vpop.f32.mrb[103].mxu0  ;;  %v8970_v32 = vmul.f32 -1.442695, %v9446_v18  ;;  %v9448_v25 = vadd.f32 %v13571_v55, %v13421_v26 }
 0x4fb   : > { %v13640_v4 = vpop.f32.mrb[103].mxu1  ;;  %v10787_v6 = vpop.eup %10786  ;;  %10806 = vrcp.f32 %v6762_v8  ;;  %v9379_v8 = vadd.f32 %v13532_v37, %v13424_v15 }
 0x4fc   : > { %v10789_v48 = vpop.eup %10788  ;;  %10808 = vtanh.f32 %v9377_v9  ;;  %v6763_v56 = vadd.f32 1.0, %v10787_v6  ;;  %v7026_v57 = vmul.f32 %v13478_v30, %v6950_v2  ;;  %v8971_v9 = vmul.f32 -1.442695, %v9447_v31  ;;  %v13651_v6 = vpop.f32.mrb[104].mxu0 }
 0x4fd   : > { %v10791_v61 = vpop.eup %10790  ;;  %10810 = vpow2.f32 %v8969_v17  ;;  %v6951_v23 = vmul.f32 %v10789_v48, %v10785_v51  ;;  %v13653_v18 = vpop.f32.mrb[104].mxu1  ;;  %v9458_v14 = vadd.f32 %v13640_v4, %v13421_v26 }
 0x4fe   : > { %v10793_v16 = vpop.eup %10792  ;;  %10812 = vrcp.f32 %v6763_v56  ;;  %v7097_v41 = vadd.f32 %v7026_v57, %v7025_v19  ;;  %v13656_v51 = vpop.f32.mrb[105].mxu0  ;;  %v9380_v19 = vadd.f32 %v13541_v53, %v13429_v3 }
 0x4ff   : > { %v10795_v52 = vpop.eup %10794  ;;  %10814 = vtanh.f32 %v9378_v0  ;;  %v6764_v33 = vadd.f32 1.0, %v10793_v16  ;;  %v7027_v56 = vmul.f32 %v13472_v20, %v6951_v23  ;;  %v13658_v37 = vpop.f32.mrb[105].mxu1  ;;  %v9449_v0 = vadd.f32 %v13578_v43, %v13415_v44 }
 0x500   : > { %v10797_v2 = vpop.eup %10796  ;;  %10816 = vpow2.f32 %v8970_v32  ;;  %7098 = vadd.xlane.f32.xlu0 %v7097_v41  ;;  %v6952_v17 = vmul.f32 %v10795_v52, %v10791_v61  ;;  %v13664_v31 = vpop.f32.mrb[106].mxu0  ;;  %v8972_v32 = vmul.f32 -1.442695, %v9448_v25  ;;  %v9381_v43 = vadd.f32 %v13545_v21, %v13424_v15 }
 0x501   : > { %v10799_v55 = vpop.eup %10798  ;;  %10818 = vrcp.f32 %v6764_v33  ;;  %v13666_v48 = vpop.f32.mrb[106].mxu1  ;;  %v9451_v21 = vadd.f32 %v13595_v34, %v13415_v44 }
 0x502   : > { %v10801_v41 = vpop.eup %10800  ;;  %10820 = vtanh.f32 %v9379_v8  ;;  %v6765_v52 = vadd.f32 1.0, %v10799_v55  ;;  %v7028_v57 = vmul.f32 %v13478_v30, %v6952_v17  ;;  %v13669_v61 = vpop.f32.mrb[107].mxu0  ;;  %v8973_v17 = vmul.f32 -1.442695, %v9449_v0 }
 0x503   : > { %v13671_v23 = vpop.f32.mrb[107].mxu1  ;;  %v10803_v16 = vpop.eup %10802  ;;  %10822 = vpow2.f32 %v8971_v9  ;;  %v6953_v53 = vmul.f32 %v10801_v41, %v10797_v2  ;;  %v9382_v41 = vadd.f32 %v13549_v62, %v13429_v3 }
 0x504   : > { %v10805_v33 = vpop.eup %10804  ;;  %10824 = vrcp.f32 %v6765_v52  ;;  %v7100_v8 = vadd.f32 %v7028_v57, %v7027_v56  ;;  %v13682_v50 = vpop.f32.mrb[108].mxu0  ;;  %v8974_v52 = vmul.f32 -1.442695, %v9450_v46  ;;  %v9452_v46 = vadd.f32 %v13601_v11, %v13421_v26 }
 0x505   : > { %v10807_v55 = vpop.eup %10806  ;;  %10826 = vtanh.f32 %v9380_v19  ;;  %v6766_v25 = vadd.f32 1.0, %v10805_v33  ;;  %v7029_v9 = vmul.f32 %v13472_v20, %v6953_v53  ;;  %v13684_v56 = vpop.f32.mrb[108].mxu1  ;;  %v9453_v11 = vadd.f32 %v13605_v59, %v13415_v44 }
 0x506   : > { %v10809_v40 = vpop.eup %10808  ;;  %10828 = vpow2.f32 %v8972_v32  ;;  %7101 = vadd.xlane.f32.xlu1 %v7100_v8  ;;  %v6954_v27 = vmul.f32 %v10807_v55, %v10803_v16  ;;  %v13687_v57 = vpop.f32.mrb[109].mxu0  ;;  %v9454_v59 = vadd.f32 %v13613_v35, %v13421_v26 }
 0x507   : > { %v10811_v2 = vpop.eup %10810  ;;  %10830 = vrcp.f32 %v6766_v25  ;;  %v13689_v16 = vpop.f32.mrb[109].mxu1 }
 0x508   : > { %v10813_v19 = vpop.eup %10812  ;;  %10832 = vtanh.f32 %v9381_v43  ;;  %v6767_v0 = vadd.f32 1.0, %v10811_v2  ;;  %v7030_v32 = vmul.f32 %v13478_v30, %v6954_v27  ;;  %v13691_v33 = vpop.f32.mrb[110].mxu0  ;;  %v9383_v43 = vadd.f32 %v13563_v29, %v13424_v15 }
 0x509   : > { %v10815_v53 = vpop.eup %10814  ;;  %10834 = vpow2.f32 %v8973_v17  ;;  %v6955_v62 = vmul.f32 %v10813_v19, %v10809_v40  ;;  %v13693_v34 = vpop.f32.mrb[110].mxu1  ;;  %v8975_v17 = vmul.f32 -1.442695, %v9451_v21  ;;  %v9384_v29 = vadd.f32 %v13569_v36, %v13429_v3 }
 0x50a   : > { %v10817_v8 = vpop.eup %10816  ;;  %10836 = vrcp.f32 %v6767_v0  ;;  %v7103_v27 = vadd.f32 %v7030_v32, %v7029_v9  ;;  %v13699_v55 = vpop.f32.mrb[111].mxu0  ;;  %v9385_v36 = vadd.f32 %v13576_v38, %v13424_v15 }
 0x50b   : > { %v13701_v25 = vpop.f32.mrb[111].mxu1  ;;  %v10819_v2 = vpop.eup %10818  ;;  %10838 = vtanh.f32 %v9382_v41  ;;  %v6768_v40 = vadd.f32 1.0, %v10817_v8  ;;  %v7031_v0 = vmul.f32 %v13472_v20, %v6955_v62  ;;  %v8976_v41 = vmul.f32 -1.442695, %v9452_v46 }
 0x50c   : > { %v10821_v19 = vpop.eup %10820  ;;  %10840 = vpow2.f32 %v8974_v52  ;;  %7104 = vadd.xlane.f32.xlu0 %v7103_v27  ;;  %v6956_v63 = vmul.f32 %v10819_v2, %v10815_v53  ;;  %v13709_v53 = vpop.f32.mrb[112].mxu0 }
 0x50d   : > { %v10823_v47 = vpop.eup %10822  ;;  %10842 = vrcp.f32 %v6768_v40  ;;  %v13711_v62 = vpop.f32.mrb[112].mxu1  ;;  %v8977_v40 = vmul.f32 -1.442695, %v9453_v11  ;;  %v9455_v11 = vadd.f32 %v13623_v54, %v13415_v44 }
 0x50e   : > { %v10825_v9 = vpop.eup %10824  ;;  %10844 = vtanh.f32 %v9383_v43  ;;  %v6769_v32 = vadd.f32 1.0, %v10823_v47  ;;  %v7032_v21 = vmul.f32 %v13478_v30, %v6956_v63  ;;  %v13717_v47 = vpop.f32.mrb[113].mxu0 }
 0x50f   : > { %v10827_v8 = vpop.eup %10826  ;;  %10846 = vpow2.f32 %v8975_v17  ;;  %v6957_v52 = vmul.f32 %v10825_v9, %v10821_v19  ;;  %v13719_v46 = vpop.f32.mrb[113].mxu1 }
 0x510   : > { %v10829_v27 = vpop.eup %10828  ;;  %10848 = vrcp.f32 %v6769_v32  ;;  %v7106_v43 = vadd.f32 %v7032_v21, %v7031_v0  ;;  %v13721_v17 = vpop.f32.mrb[114].mxu0 }
 0x511   : > { %v10831_v63 = vpop.eup %10830  ;;  %10850 = vtanh.f32 %v9384_v29  ;;  %v6770_v2 = vadd.f32 1.0, %v10829_v27  ;;  %v13723_v19 = vpop.f32.mrb[114].mxu1  ;;  %v7033_v32 = vmul.f32 %v13472_v20, %v6957_v52  ;;  %v9386_v29 = vadd.f32 %v13580_v42, %v13429_v3 }
 0x512   : > { %v10833_v9 = vpop.eup %10832  ;;  %10852 = vpow2.f32 %v8976_v41  ;;  %7107 = vadd.xlane.f32.xlu1 %v7106_v43  ;;  %v6958_v38 = vmul.f32 %v10831_v63, %v10827_v8  ;;  %v13726_v35 = vpop.f32.mrb[115].mxu0  ;;  %v8978_v41 = vmul.f32 -1.442695, %v9454_v59  ;;  %v9456_v42 = vadd.f32 %v13631_v24, %v13421_v26 }
 0x513   : > { %v13728_v0 = vpop.f32.mrb[115].mxu1  ;;  %v10835_v21 = vpop.eup %10834  ;;  %10854 = vrcp.f32 %v6770_v2  ;;  %v9387_v2 = vadd.f32 %v13593_v45, %v13424_v15 }
 0x514   : > { %v10837_v27 = vpop.eup %10836  ;;  %10856 = vtanh.f32 %v9385_v36  ;;  %v6771_v10 = vadd.f32 1.0, %v10835_v21  ;;  %v7034_v8 = vmul.f32 %v13478_v30, %v6958_v38  ;;  %v8979_v36 = vmul.f32 -1.442695, %v9455_v11  ;;  %v13739_v21 = vpop.f32.mrb[116].mxu0 }
 0x515   : > { %v10839_v43 = vpop.eup %10838  ;;  %10858 = vpow2.f32 %v8977_v40  ;;  %v6959_v52 = vmul.f32 %v10837_v27, %v10833_v9  ;;  %v13741_v59 = vpop.f32.mrb[116].mxu1 }
 0x516   : > { %v10841_v63 = vpop.eup %10840  ;;  %10860 = vrcp.f32 %v6771_v10  ;;  %v7109_v28 = vadd.f32 %v7034_v8, %v7033_v32  ;;  %v13744_v9 = vpop.f32.mrb[117].mxu0  ;;  %v9388_v32 = vadd.f32 %v13599_v5, %v13429_v3 }
 0x517   : > { %v10843_v1 = vpop.eup %10842  ;;  %10862 = vtanh.f32 %v9386_v29  ;;  %v6772_v54 = vadd.f32 1.0, %v10841_v63  ;;  %v7035_v10 = vmul.f32 %v13472_v20, %v6959_v52  ;;  %v13746_v45 = vpop.f32.mrb[117].mxu1  ;;  %v9457_v29 = vadd.f32 %v13635_v7, %v13415_v44 }
 0x518   : > { %v10845_v38 = vpop.eup %10844  ;;  %10864 = vpow2.f32 %v8978_v41  ;;  %7110 = vadd.xlane.f32.xlu0 %v7109_v28  ;;  %v6960_v40 = vmul.f32 %v10843_v1, %v10839_v43  ;;  %v13752_v11 = vpop.f32.mrb[118].mxu0  ;;  %v8980_v41 = vmul.f32 -1.442695, %v9456_v42  ;;  %v9389_v7 = vadd.f32 %v13603_v60, %v13424_v15 }
 0x519   : > { %v10847_v24 = vpop.eup %10846  ;;  %10866 = vrcp.f32 %v6772_v54  ;;  %v13754_v27 = vpop.f32.mrb[118].mxu1  ;;  %v9459_v60 = vadd.f32 %v13653_v18, %v13415_v44 }
 0x51a   : > { %v10849_v28 = vpop.eup %10848  ;;  %10868 = vtanh.f32 %v9387_v2  ;;  %v6773_v1 = vadd.f32 1.0, %v10847_v24  ;;  %v7036_v8 = vmul.f32 %v13478_v30, %v6960_v40  ;;  %v13757_v43 = vpop.f32.mrb[119].mxu0  ;;  %v8981_v40 = vmul.f32 -1.442695, %v9457_v29 }
 0x51b   : > { %15403 = vst [vmem:[#allocation186_spill] sm:$0xff] %v13757_v43  ;;  %v13759_v52 = vpop.f32.mrb[119].mxu1  ;;  %v10851_v63 = vpop.eup %10850  ;;  %10870 = vpow2.f32 %v8979_v36  ;;  %v6961_v5 = vmul.f32 %v10849_v28, %v10845_v38  ;;  %v9390_v28 = vadd.f32 %v13611_v39, %v13429_v3 }
 0x51c   : > { %v10853_v54 = vpop.eup %10852  ;;  %10872 = vrcp.f32 %v6773_v1  ;;  %v7112_v2 = vadd.f32 %v7036_v8, %v7035_v10  ;;  %v13770_v4 = vpop.f32.mrb[120].mxu0  ;;  %v8982_v1 = vmul.f32 -1.442695, %v9458_v14  ;;  %v9460_v14 = vadd.f32 %v13658_v37, %v13421_v26 }
 0x51d   : > { %v10855_v24 = vpop.eup %10854  ;;  %10874 = vtanh.f32 %v9388_v32  ;;  %v6774_v42 = vadd.f32 1.0, %v10853_v54  ;;  %v7037_v36 = vmul.f32 %v13472_v20, %v6961_v5  ;;  %v13772_v10 = vpop.f32.mrb[120].mxu1  ;;  %v9461_v37 = vadd.f32 %v13666_v48, %v13415_v44 }
 0x51e   : > { %v10857_v13 = vpop.eup %10856  ;;  %10876 = vpow2.f32 %v8980_v41  ;;  %7113 = vadd.xlane.f32.xlu1 %v7112_v2  ;;  %v6962_v43 = vmul.f32 %v10855_v24, %v10851_v63  ;;  %v13775_v8 = vpop.f32.mrb[121].mxu0  ;;  %v9462_v48 = vadd.f32 %v13671_v23, %v13421_v26 }
 0x51f   : > { %v10859_v38 = vpop.eup %10858  ;;  %10878 = vrcp.f32 %v6774_v42  ;;  %15404 = vst [vmem:[#allocation187_spill] sm:$0xff] %v13775_v8  ;;  %v13777_v63 = vpop.f32.mrb[121].mxu1 }
 0x520   : > { %v10861_v32 = vpop.eup %10860  ;;  %10880 = vtanh.f32 %v9389_v7  ;;  %v6775_v29 = vadd.f32 1.0, %v10859_v38  ;;  %v7038_v41 = vmul.f32 %v13478_v30, %v6962_v43  ;;  %v13779_v54 = vpop.f32.mrb[122].mxu0  ;;  %v9391_v7 = vadd.f32 %v13621_v58, %v13424_v15 }
 0x521   : > { %v10863_v5 = vpop.eup %10862  ;;  %10882 = vpow2.f32 %v8981_v40  ;;  %v6963_v39 = vmul.f32 %v10861_v32, %v10857_v13  ;;  %15405 = vst [vmem:[#allocation188_spill] sm:$0xff] %v13779_v54  ;;  %v13781_v18 = vpop.f32.mrb[122].mxu1  ;;  %v8983_v40 = vmul.f32 -1.442695, %v9459_v60  ;;  %v9392_v58 = vadd.f32 %v13629_v49, %v13429_v3 }
 0x522   : > { %v10865_v2 = vpop.eup %10864  ;;  %10884 = vrcp.f32 %v6775_v29  ;;  %v7115_v43 = vadd.f32 %v7038_v41, %v7037_v36  ;;  %v13787_v24 = vpop.f32.mrb[123].mxu0  ;;  %v9393_v49 = vadd.f32 %v13633_v12, %v13424_v15 }
 0x523   : > { %v13789_v42 = vpop.f32.mrb[123].mxu1  ;;  %v10867_v38 = vpop.eup %10866  ;;  %10886 = vtanh.f32 %v9390_v28  ;;  %v6776_v13 = vadd.f32 1.0, %v10865_v2  ;;  %v7039_v29 = vmul.f32 %v13472_v20, %v6963_v39  ;;  %v8984_v28 = vmul.f32 -1.442695, %v9460_v14 }
 0x524   : > { %v10869_v32 = vpop.eup %10868  ;;  %10888 = vpow2.f32 %v8982_v1  ;;  %7116 = vadd.xlane.f32.xlu0 %v7115_v43  ;;  %v6964_v54 = vmul.f32 %v10867_v38, %v10863_v5  ;;  %v13797_v5 = vpop.f32.mrb[124].mxu0 }
 0x525   : > { %v10871_v8 = vpop.eup %10870  ;;  %10890 = vrcp.f32 %v6776_v13  ;;  %v13799_v39 = vpop.f32.mrb[124].mxu1  ;;  %v8985_v13 = vmul.f32 -1.442695, %v9461_v37  ;;  %v9463_v37 = vadd.f32 %v13684_v56, %v13415_v44 }
 0x526   : > { %v10873_v36 = vpop.eup %10872  ;;  %10892 = vtanh.f32 %v9391_v7  ;;  %v6777_v41 = vadd.f32 1.0, %v10871_v8  ;;  %v7040_v60 = vmul.f32 %v13478_v30, %v6964_v54  ;;  %v13805_v8 = vpop.f32.mrb[125].mxu0 }
 0x527   : > { %v10875_v2 = vpop.eup %10874  ;;  %10894 = vpow2.f32 %v8983_v40  ;;  %v6965_v1 = vmul.f32 %v10873_v36, %v10869_v32  ;;  %15406 = vst [vmem:[#allocation189_spill] sm:$0xff] %v13805_v8  ;;  %v13807_v14 = vpop.f32.mrb[125].mxu1 }
 0x528   : > { %v10877_v43 = vpop.eup %10876  ;;  %10896 = vrcp.f32 %v6777_v41  ;;  %v7118_v7 = vadd.f32 %v7040_v60, %v7039_v29  ;;  %v13809_v40 = vpop.f32.mrb[126].mxu0 }
 0x529   : > { %v10879_v54 = vpop.eup %10878  ;;  %10898 = vtanh.f32 %v9392_v58  ;;  %v6778_v38 = vadd.f32 1.0, %v10877_v43  ;;  %15407 = vst [vmem:[#allocation190_spill] sm:$0xff] %v13809_v40  ;;  %v13811_v32 = vpop.f32.mrb[126].mxu1  ;;  %v7041_v41 = vmul.f32 %v13472_v20, %v6965_v1  ;;  %v9394_v58 = vadd.f32 %v13638_v22, %v13429_v3 }
 0x52a   : > { %v10881_v36 = vpop.eup %10880  ;;  %10900 = vpow2.f32 %v8984_v28  ;;  %7119 = vadd.xlane.f32.xlu1 %v7118_v7  ;;  %v6966_v12 = vmul.f32 %v10879_v54, %v10875_v2  ;;  %v13814_v23 = vpop.f32.mrb[127].mxu0  ;;  %v8986_v28 = vmul.f32 -1.442695, %v9462_v48  ;;  %v9464_v22 = vadd.f32 %v13689_v16, %v13421_v26 }
 0x52b   : > { %15408 = vst [vmem:[#allocation191_spill] sm:$0xff] %v13814_v23  ;;  %v13816_v29 = vpop.f32.mrb[127].mxu1  ;;  %v10883_v60 = vpop.eup %10882  ;;  %10902 = vrcp.f32 %v6778_v38  ;;  %v9395_v38 = vadd.f32 %v13651_v6, %v13424_v15  ;;  %v9465_v6 = vadd.f32 %v13693_v34, %v13415_v44 }
 0x52c   : > { %v10885_v43 = vpop.eup %10884  ;;  %10904 = vtanh.f32 %v9393_v49  ;;  %v6779_v40 = vadd.f32 1.0, %v10883_v60  ;;  %v7042_v2 = vmul.f32 %v13478_v30, %v6966_v12  ;;  %v8987_v49 = vmul.f32 -1.442695, %v9463_v37 }
 0x52d   : > { %v10887_v7 = vpop.eup %10886  ;;  %10906 = vpow2.f32 %v8985_v13  ;;  %v6967_v1 = vmul.f32 %v10885_v43, %v10881_v36  ;;  %v9397_v43 = vadd.f32 %v13664_v31, %v13424_v15  ;;  %v9467_v31 = vadd.f32 %v13711_v62, %v13415_v44 }
 0x52e   : > { %v10889_v54 = vpop.eup %10888  ;;  %10908 = vrcp.f32 %v6779_v40  ;;  %v7121_v23 = vadd.f32 %v7042_v2, %v7041_v41  ;;  %v9396_v40 = vadd.f32 %v13656_v51, %v13429_v3  ;;  %v8988_v41 = vmul.f32 -1.442695, %v9464_v22 }
 0x52f   : > { %v10891_v8 = vpop.eup %10890  ;;  %10910 = vtanh.f32 %v9394_v58  ;;  %v6780_v56 = vadd.f32 1.0, %v10889_v54  ;;  %v7043_v13 = vmul.f32 %v13472_v20, %v6967_v1  ;;  %v9466_v51 = vadd.f32 %v13701_v25, %v13421_v26 }
 0x530   : > { %v10893_v60 = vpop.eup %10892  ;;  %10912 = vpow2.f32 %v8986_v28  ;;  %7122 = vadd.xlane.f32.xlu0 %v7121_v23  ;;  %v6968_v48 = vmul.f32 %v10891_v8, %v10887_v7  ;;  %v8989_v7 = vmul.f32 -1.442695, %v9465_v6  ;;  %v9399_v6 = vadd.f32 %v13682_v50, %v13424_v15 }
 0x531   : > { %v10895_v36 = vpop.eup %10894  ;;  %10914 = vrcp.f32 %v6780_v56  ;;  %v9398_v56 = vadd.f32 %v13669_v61, %v13429_v3  ;;  %v9468_v61 = vadd.f32 %v13719_v46, %v13421_v26  ;;  %v9469_v50 = vadd.f32 %v13723_v19, %v13415_v44 }
 0x532   : > { %v10897_v16 = vpop.eup %10896  ;;  %10916 = vtanh.f32 %v9395_v38  ;;  %v6781_v12 = vadd.f32 1.0, %v10895_v36  ;;  %v7044_v58 = vmul.f32 %v13478_v30, %v6968_v48 }
 0x533   : > { %v10899_v37 = vpop.eup %10898  ;;  %10918 = vpow2.f32 %v8987_v49  ;;  %v6969_v23 = vmul.f32 %v10897_v16, %v10893_v60  ;;  %v8990_v60 = vmul.f32 -1.442695, %v9466_v51 }
 0x534   : > { %v10901_v8 = vpop.eup %10900  ;;  %10920 = vrcp.f32 %v6781_v12  ;;  %v7124_v28 = vadd.f32 %v7044_v58, %v7043_v13 }
 0x535   : > { %v10903_v2 = vpop.eup %10902  ;;  %10922 = vtanh.f32 %v9396_v40  ;;  %v6782_v34 = vadd.f32 1.0, %v10901_v8  ;;  %v7045_v38 = vmul.f32 %v13472_v20, %v6969_v23 }
 0x536   : > { %v10905_v1 = vpop.eup %10904  ;;  %10924 = vpow2.f32 %v8988_v41  ;;  %7125 = vadd.xlane.f32.xlu1 %v7124_v28  ;;  %v6970_v54 = vmul.f32 %v10903_v2, %v10899_v37  ;;  %v8991_v41 = vmul.f32 -1.442695, %v9467_v31  ;;  %v8992_v28 = vmul.f32 -1.442695, %v9468_v61 }
 0x537   : > { %v10907_v22 = vpop.eup %10906  ;;  %10926 = vrcp.f32 %v6782_v34 }
 0x538   : > { %v10909_v25 = vpop.eup %10908  ;;  %10928 = vtanh.f32 %v9397_v43  ;;  %v6783_v49 = vadd.f32 1.0, %v10907_v22  ;;  %v7046_v48 = vmul.f32 %v13478_v30, %v6970_v54  ;;  %v9400_v43 = vadd.f32 %v13687_v57, %v13429_v3 }
 0x539   : > { %v10911_v13 = vpop.eup %10910  ;;  %10930 = vpow2.f32 %v8989_v7  ;;  %v6971_v36 = vmul.f32 %v10909_v25, %v10905_v1  ;;  %v9401_v54 = vadd.f32 %v13691_v33, %v13424_v15  ;;  %v9470_v57 = vadd.f32 %v13728_v0, %v13421_v26 }
 0x53a   : > { %v10913_v40 = vpop.eup %10912  ;;  %10932 = vrcp.f32 %v6783_v49  ;;  %v7127_v16 = vadd.f32 %v7046_v48, %v7045_v38  ;;  %v9402_v48 = vadd.f32 %v13699_v55, %v13429_v3  ;;  %v9471_v33 = vadd.f32 %v13741_v59, %v13415_v44 }
 0x53b   : > { %v10915_v12 = vpop.eup %10914  ;;  %10934 = vtanh.f32 %v9398_v56  ;;  %v6784_v62 = vadd.f32 1.0, %v10913_v40  ;;  %v7047_v23 = vmul.f32 %v13472_v20, %v6971_v36  ;;  %v8993_v56 = vmul.f32 -1.442695, %v9469_v50 }
 0x53c   : > { %v10917_v58 = vpop.eup %10916  ;;  %10936 = vpow2.f32 %v8990_v60  ;;  %7128 = vadd.xlane.f32.xlu0 %v7127_v16  ;;  %v6972_v37 = vmul.f32 %v10915_v12, %v10911_v13  ;;  %v8994_v36 = vmul.f32 -1.442695, %v9470_v57  ;;  %v9403_v12 = vadd.f32 %v13709_v53, %v13424_v15 }
 0x53d   : > { %v10919_v8 = vpop.eup %10918  ;;  %10938 = vrcp.f32 %v6784_v62  ;;  %v9472_v55 = vadd.f32 %v13746_v45, %v13421_v26  ;;  %v9404_v50 = vadd.f32 %v13717_v47, %v13429_v3  ;;  %v9473_v53 = vadd.f32 %v13754_v27, %v13415_v44 }
 0x53e   : > { %v10921_v46 = vpop.eup %10920  ;;  %10940 = vtanh.f32 %v9399_v6  ;;  %v6785_v51 = vadd.f32 1.0, %v10919_v8  ;;  %v7048_v2 = vmul.f32 %v13478_v30, %v6972_v37  ;;  %v9474_v47 = vadd.f32 %v13759_v52, %v13421_v26 }
 0x53f   : > { %v10923_v34 = vpop.eup %10922  ;;  %10942 = vpow2.f32 %v8991_v41  ;;  %v6973_v7 = vmul.f32 %v10921_v46, %v10917_v58  ;;  %v8995_v58 = vmul.f32 -1.442695, %v9471_v33 }
 0x540   : > { %v10925_v1 = vpop.eup %10924  ;;  %10944 = vrcp.f32 %v6785_v51  ;;  %v7130_v38 = vadd.f32 %v7048_v2, %v7047_v23  ;;  %v8996_v51 = vmul.f32 -1.442695, %v9472_v55 }
 0x541   : > { %v10927_v22 = vpop.eup %10926  ;;  %10946 = vtanh.f32 %v9400_v43  ;;  %v6786_v19 = vadd.f32 1.0, %v10925_v1  ;;  %v7049_v49 = vmul.f32 %v13472_v20, %v6973_v7  ;;  %v9405_v1 = vadd.f32 %v13721_v17, %v13424_v15 }
 0x542   : > { %v10929_v31 = vpop.eup %10928  ;;  %10948 = vpow2.f32 %v8992_v28  ;;  %7131 = vadd.xlane.f32.xlu1 %v7130_v38  ;;  %v6974_v25 = vmul.f32 %v10927_v22, %v10923_v34  ;;  %v8997_v38 = vmul.f32 -1.442695, %v9473_v53  ;;  %v9475_v17 = vadd.f32 %v13772_v10, %v13415_v44 }
 0x543   : > { %v10931_v60 = vpop.eup %10930  ;;  %10950 = vrcp.f32 %v6786_v19 }
 0x544   : > { %v10933_v0 = vpop.eup %10932  ;;  %10952 = vtanh.f32 %v9401_v54  ;;  %v6787_v13 = vadd.f32 1.0, %v10931_v60  ;;  %v7050_v40 = vmul.f32 %v13478_v30, %v6974_v25  ;;  %v9406_v25 = vadd.f32 %v13726_v35, %v13429_v3 }
 0x545   : > { %v10935_v6 = vpop.eup %10934  ;;  %10954 = vpow2.f32 %v8993_v56  ;;  %v6975_v61 = vmul.f32 %v10933_v0, %v10929_v31  ;;  %v8998_v60 = vmul.f32 -1.442695, %v9474_v47  ;;  %v9476_v35 = vadd.f32 %v13777_v63, %v13421_v26 }
 0x546   : > { %v10937_v16 = vpop.eup %10936  ;;  %10956 = vrcp.f32 %v6787_v13  ;;  %v7133_v62 = vadd.f32 %v7050_v40, %v7049_v49 }
 0x547   : > { %v10939_v41 = vpop.eup %10938  ;;  %10958 = vtanh.f32 %v9402_v48  ;;  %v6788_v59 = vadd.f32 1.0, %v10937_v16  ;;  %v7051_v8 = vmul.f32 %v13472_v20, %v6975_v61  ;;  %v8999_v61 = vmul.f32 -1.442695, %v9475_v17 }
 0x548   : > { %v10941_v37 = vpop.eup %10940  ;;  %10960 = vpow2.f32 %v8994_v36  ;;  %7134 = vadd.xlane.f32.xlu0 %v7133_v62  ;;  %v6976_v23 = vmul.f32 %v10939_v41, %v10935_v6  ;;  %v9407_v36 = vadd.f32 %v13739_v21, %v13424_v15  ;;  %v9408_v41 = vadd.f32 %v13744_v9, %v13429_v3 }
 0x549   : > { %v10943_v43 = vpop.eup %10942  ;;  %10962 = vrcp.f32 %v6788_v59  ;;  %v9477_v21 = vadd.f32 %v13781_v18, %v13415_v44  ;;  %v9478_v9 = vadd.f32 %v13789_v42, %v13421_v26 }
 0x54a   : > { %v10945_v45 = vpop.eup %10944  ;;  %10964 = vtanh.f32 %v9403_v12  ;;  %v6789_v46 = vadd.f32 1.0, %v10943_v43  ;;  %v7052_v28 = vmul.f32 %v13478_v30, %v6976_v23 }
 0x54b   : > { %v10947_v2 = vpop.eup %10946  ;;  %10966 = vpow2.f32 %v8995_v58  ;;  %v6977_v34 = vmul.f32 %v10945_v45, %v10941_v37  ;;  %v9000_v58 = vmul.f32 -1.442695, %v9476_v35 }
 0x54c   : > { %v10949_v7 = vpop.eup %10948  ;;  %10968 = vrcp.f32 %v6789_v46  ;;  %v7136_v54 = vadd.f32 %v7052_v28, %v7051_v8  ;;  %v9001_v46 = vmul.f32 -1.442695, %v9477_v21 }
 0x54d   : > { %v10951_v57 = vpop.eup %10950  ;;  %10970 = vtanh.f32 %v9404_v50  ;;  %v6790_v27 = vadd.f32 1.0, %v10949_v7  ;;  %v7053_v56 = vmul.f32 %v13472_v20, %v6977_v34  ;;  %v9409_v50 = vadd.f32 %v13752_v11, %v13424_v15  ;;  %v15409_v7 = vld [vmem:[#allocation186_spill] sm:$0xff] }
 0x54e   : > { %v10953_v22 = vpop.eup %10952  ;;  %10972 = vpow2.f32 %v8996_v51  ;;  %7137 = vadd.xlane.f32.xlu1 %v7136_v54  ;;  %v6978_v19 = vmul.f32 %v10951_v57, %v10947_v2  ;;  %v9479_v11 = vadd.f32 %v13799_v39, %v13415_v44  ;;  %v9002_v54 = vmul.f32 -1.442695, %v9478_v9 }
 0x54f   : > { %v10955_v31 = vpop.eup %10954  ;;  %10974 = vrcp.f32 %v6790_v27 }
 0x550   : > { %v10957_v52 = vpop.eup %10956  ;;  %10976 = vtanh.f32 %v9405_v1  ;;  %v6791_v49 = vadd.f32 1.0, %v10955_v31  ;;  %v7054_v48 = vmul.f32 %v13478_v30, %v6978_v19  ;;  %v9410_v1 = vadd.f32 %v15409_v7, %v13429_v3  ;;  %v15412_v7 = vld [vmem:[#allocation189_spill] sm:$0xff] }
 0x551   : > { %v10959_v33 = vpop.eup %10958  ;;  %10978 = vpow2.f32 %v8997_v38  ;;  %v6979_v0 = vmul.f32 %v10957_v52, %v10953_v22  ;;  %v9411_v19 = vadd.f32 %v13770_v4, %v13424_v15  ;;  %v9003_v17 = vmul.f32 -1.442695, %v9479_v11 }
 0x552   : > { %v10961_v13 = vpop.eup %10960  ;;  %10980 = vrcp.f32 %v6791_v49  ;;  %v7139_v40 = vadd.f32 %v7054_v48, %v7053_v56  ;;  %v9480_v56 = vadd.f32 %v13807_v14, %v13421_v26  ;;  %v9481_v4 = vadd.f32 %v13811_v32, %v13415_v44 }
 0x553   : > { %v10963_v6 = vpop.eup %10962  ;;  %10982 = vtanh.f32 %v9406_v25  ;;  %v6792_v10 = vadd.f32 1.0, %v10961_v13  ;;  %v7055_v55 = vmul.f32 %v13472_v20, %v6979_v0 }
 0x554   : > { %v10965_v16 = vpop.eup %10964  ;;  %10984 = vpow2.f32 %v8998_v60  ;;  %7140 = vadd.xlane.f32.xlu0 %v7139_v40  ;;  %v6980_v12 = vmul.f32 %v10963_v6, %v10959_v33  ;;  %v15410_v33 = vld [vmem:[#allocation187_spill] sm:$0xff]  ;;  %v9005_v32 = vmul.f32 -1.442695, %v9481_v4 }
 0x555   : > { %v10967_v62 = vpop.eup %10966  ;;  %10986 = vrcp.f32 %v6792_v10  ;;  %v9412_v0 = vadd.f32 %v15410_v33, %v13429_v3 }
 0x556   : > { %v10969_v63 = vpop.eup %10968  ;;  %10988 = vtanh.f32 %v9407_v36  ;;  %v6793_v59 = vadd.f32 1.0, %v10967_v62  ;;  %v7056_v37 = vmul.f32 %v13478_v30, %v6980_v12  ;;  %v9004_v36 = vmul.f32 -1.442695, %v9480_v56 }
 0x557   : > { %v10971_v23 = vpop.eup %10970  ;;  %10990 = vpow2.f32 %v8999_v61  ;;  %v6981_v8 = vmul.f32 %v10969_v63, %v10965_v16  ;;  %v15411_v61 = vld [vmem:[#allocation188_spill] sm:$0xff]  ;;  %v9482_v12 = vadd.f32 %v13816_v29, %v13421_v26 }
 0x558   : > { %v10973_v43 = vpop.eup %10972  ;;  %10992 = vrcp.f32 %v6793_v59  ;;  %v7142_v53 = vadd.f32 %v7056_v37, %v7055_v55  ;;  %v9413_v16 = vadd.f32 %v15411_v61, %v13424_v15 }
 0x559   : > { %v10975_v45 = vpop.eup %10974  ;;  %10994 = vtanh.f32 %v9408_v41  ;;  %v6794_v18 = vadd.f32 1.0, %v10973_v43  ;;  %v7057_v2 = vmul.f32 %v13472_v20, %v6981_v8  ;;  %v9006_v26 = vmul.f32 -1.442695, %v9482_v12 }
 0x55a   : > { %v10977_v51 = vpop.eup %10976  ;;  %10996 = vpow2.f32 %v9000_v58  ;;  %7143 = vadd.xlane.f32.xlu1 %v7142_v53  ;;  %v6982_v28 = vmul.f32 %v10975_v45, %v10971_v23  ;;  %v9414_v58 = vadd.f32 %v13787_v24, %v13429_v3 }
 0x55b   : > { %v10979_v34 = vpop.eup %10978  ;;  %10998 = vrcp.f32 %v6794_v18  ;;  %v9415_v18 = vadd.f32 %v13797_v5, %v13424_v15 }
 0x55c   : > { %v10981_v42 = vpop.eup %10980  ;;  %11000 = vtanh.f32 %v9409_v50  ;;  %v6795_v47 = vadd.f32 1.0, %v10979_v34  ;;  %v7058_v57 = vmul.f32 %v13478_v30, %v6982_v28 }
 0x55d   : > { %v10983_v27 = vpop.eup %10982  ;;  %11002 = vpow2.f32 %v9001_v46  ;;  %v6983_v38 = vmul.f32 %v10981_v42, %v10977_v51 }
 0x55e   : > { %v10985_v22 = vpop.eup %10984  ;;  %11004 = vrcp.f32 %v6795_v47  ;;  %v7145_v31 = vadd.f32 %v7058_v57, %v7057_v2 }
 0x55f   : > { %v10987_v25 = vpop.eup %10986  ;;  %11006 = vtanh.f32 %v9410_v1  ;;  %v6796_v39 = vadd.f32 1.0, %v10985_v22  ;;  %v7059_v60 = vmul.f32 %v13472_v20, %v6983_v38  ;;  %v9416_v1 = vadd.f32 %v15412_v7, %v13429_v3  ;;  %v15413_v38 = vld [vmem:[#allocation190_spill] sm:$0xff] }
 0x560   : > { %v10989_v52 = vpop.eup %10988  ;;  %11008 = vpow2.f32 %v9002_v54  ;;  %7146 = vadd.xlane.f32.xlu0 %v7145_v31  ;;  %v6984_v49 = vmul.f32 %v10987_v25, %v10983_v27  ;;  %v9417_v22 = vadd.f32 %v15413_v38, %v13424_v15 }
 0x561   : > { %v10991_v48 = vpop.eup %10990  ;;  %11010 = vrcp.f32 %v6796_v39 }
 0x562   : > { %v10993_v14 = vpop.eup %10992  ;;  %11012 = vtanh.f32 %v9411_v19  ;;  %v6797_v13 = vadd.f32 1.0, %v10991_v48  ;;  %v7060_v35 = vmul.f32 %v13478_v30, %v6984_v49 }
 0x563   : > { %v10995_v40 = vpop.eup %10994  ;;  %11014 = vpow2.f32 %v9003_v17  ;;  %v6985_v6 = vmul.f32 %v10993_v14, %v10989_v52  ;;  %v15414_v52 = vld [vmem:[#allocation191_spill] sm:$0xff] }
 0x564   : > { %v10997_v10 = vpop.eup %10996  ;;  %11016 = vrcp.f32 %v6797_v13  ;;  %v7148_v55 = vadd.f32 %v7060_v35, %v7059_v60  ;;  %v9418_v49 = vadd.f32 %v15414_v52, %v13429_v3 }
 0x565   : > { %v10999_v62 = vpop.eup %10998  ;;  %11018 = vtanh.f32 %v9412_v0  ;;  %v6798_v44 = vadd.f32 1.0, %v10997_v10  ;;  %v7061_v63 = vmul.f32 %v13472_v20, %v6985_v6 }
 0x566   : > { %v11001_v41 = vpop.eup %11000  ;;  %11020 = vpow2.f32 %v9004_v36  ;;  %7149 = vadd.xlane.f32.xlu1 %v7148_v55  ;;  %v6986_v21 = vmul.f32 %v10999_v62, %v10995_v40 }
 0x567   : > { %v11003_v59 = vpop.eup %11002  ;;  %11022 = vrcp.f32 %v6798_v44 }
 0x568   : > { %v11005_v37 = vpop.eup %11004  ;;  %11024 = vtanh.f32 %v9413_v16  ;;  %v6799_v23 = vadd.f32 1.0, %v11003_v59  ;;  %v7062_v29 = vmul.f32 %v13478_v30, %v6986_v21 }
 0x569   : > { %v11007_v8 = vpop.eup %11006  ;;  %11026 = vpow2.f32 %v9005_v32  ;;  %v6987_v43 = vmul.f32 %v11005_v37, %v11001_v41 }
 0x56a   : > { %v11009_v50 = vpop.eup %11008  ;;  %11028 = vrcp.f32 %v6799_v23  ;;  %v7151_v9 = vadd.f32 %v7062_v29, %v7061_v63  ;;  %v7075_v29 = vpop.xlane.xlu0 %7074 }
 0x56b   : > { %v11011_v53 = vpop.eup %11010  ;;  %11030 = vtanh.f32 %v9414_v58  ;;  %v6800_v45 = vadd.f32 1.0, %v11009_v50  ;;  %v7063_v51 = vmul.f32 %v13472_v20, %v6987_v43 }
 0x56c   : > { %v11013_v46 = vpop.eup %11012  ;;  %11032 = vpow2.f32 %v9006_v26  ;;  %7152 = vadd.xlane.f32.xlu0 %v7151_v9  ;;  %v6988_v24 = vmul.f32 %v11011_v53, %v11007_v8  ;;  %v7081_v8 = vpop.xlane.xlu1 %7080 }
 0x56d   : > { %v11015_v28 = vpop.eup %11014  ;;  %11034 = vrcp.f32 %v6800_v45 }
 0x56e   : > { %v11017_v2 = vpop.eup %11016  ;;  %v6801_v34 = vadd.f32 1.0, %v11015_v28  ;;  %v7064_v11 = vmul.f32 %v13478_v30, %v6988_v24  ;;  %11036 = vtanh.f32 %v9415_v18  ;;  %v7078_v43 = vpop.xlane.xlu0 %7077 }
 0x56f   : > { %v11019_v42 = vpop.eup %11018  ;;  %v6989_v47 = vmul.f32 %v11017_v2, %v11013_v46 }
 0x570   : > { %v11021_v54 = vpop.eup %11020  ;;  %11038 = vrcp.f32 %v6801_v34  ;;  %v7154_v5 = vadd.f32 %v7064_v11, %v7063_v51  ;;  %v7084_v50 = vpop.xlane.xlu1 %7083  ;;  %v11352_v51 = vmov 0  }
 0x571   : > { %v11023_v57 = vpop.eup %11022  ;;  %v6802_v27 = vadd.f32 1.0, %v11021_v54  ;;  %11040 = vtanh.f32 %v9416_v1  ;;  %v7065_v31 = vmul.f32 %v13472_v20, %v6989_v47  ;;  %10091 = vset.pattern.permute.xlu1 %v11352_v51  ;;  %10090 = vset.pattern.permute.xlu0 %v11352_v51 }
 0x572   : > { %v11025_v19 = vpop.eup %11024  ;;  %7155 = vadd.xlane.f32.xlu1 %v7154_v5  ;;  %v6990_v56 = vmul.f32 %v11023_v57, %v11019_v42  ;;  %v13939_v42 = vld [vmem:[#allocation5] ss:$0 sm:$0xff] }
 0x573   : > { %v11027_v25 = vpop.eup %11026  ;;  %11042 = vrcp.f32 %v6802_v27  ;;  %v7176_v57 = vadd.f32 %v13939_v42, %v7075_v29  ;;  %v7177_v27 = vadd.f32 %v13939_v42, %v7078_v43  ;;  %v7178_v38 = vadd.f32 %v13939_v42, %v7081_v8 }
 0x574   : > { %v11029_v39 = vpop.eup %11028  ;;  %v6803_v17 = vadd.f32 1.0, %v11027_v25  ;;  %v7066_v60 = vmul.f32 %v13478_v30, %v6990_v56  ;;  %11044 = vtanh.f32 %v9417_v22  ;;  %v7179_v22 = vadd.f32 %v13939_v42, %v7084_v50 }
 0x575   : > { %v11031_v48 = vpop.eup %11030  ;;  %v6991_v33 = vmul.f32 %v11029_v39, %v11025_v19 }
 0x576   : > { %v11033_v0 = vpop.eup %11032  ;;  %11046 = vrcp.f32 %v6803_v17  ;;  %v7157_v15 = vadd.f32 %v7066_v60, %v7065_v31  ;;  %v7087_v9 = vpop.xlane.xlu0 %7086  ;;  %v15415_v31 = vld [vmem:[#allocation28_spill] sm:$0xff] }
 0x577   : > { %v11035_v4 = vpop.eup %11034  ;;  %v6804_v14 = vadd.f32 1.0, %v11033_v0  ;;  %11048 = vtanh.f32 %v9418_v49  ;;  %v7067_v36 = vmul.f32 %v13472_v20, %v6991_v33  ;;  %v7180_v47 = vadd.f32 %v13939_v42, %v7087_v9  ;;  %v15417_v49 = vld [vmem:[#allocation24_spill] sm:$0xff]  ;;  %v15421_v0 = vld [vmem:[#allocation26_spill] sm:$0xff]  ;;  %v15433_v9 = vld [vmem:[#allocation33_spill] sm:$0xff] }
 0x578   : > { %7158 = vadd.xlane.f32.xlu0 %v7157_v15  ;;  %v6992_v13 = vmul.f32 %v11035_v4, %v11031_v48  ;;  %v11037_v35 = vpop.eup %11036  ;;  %vm15416_vm2 = vcmp.lt.s32.totalorder %v15415_v31, 300  ;;  %vm15418_vm6 = vcmp.lt.s32.totalorder %v15417_v49, 300  ;;  %v15419_v48 = vld [vmem:[#allocation25_spill] sm:$0xff]  ;;  %vm15422_vm10 = vcmp.lt.s32.totalorder %v15421_v0, 300  ;;  %v15423_v4 = vld [vmem:[#allocation27_spill] sm:$0xff] }
 0x579   : > { %11050 = vrcp.f32 %v6804_v14  ;;  %v13954_v25 = vsel %vm15416_vm2, %v7180_v47, -1e+30  ;;  %v13961_v60 = vsel %vm15418_vm6, %v7176_v57, -1e+30  ;;  %vm15420_vm7 = vcmp.lt.s32.totalorder %v15419_v48, 300  ;;  %v15441_v47 = vld [vmem:[#allocation37_spill] sm:$0xff] }
 0x57a   : > { %v11039_v40 = vpop.eup %11038  ;;  %v7068_v3 = vmul.f32 %v13478_v30, %v6992_v13  ;;  %v13965_v33 = vsel %vm15420_vm7, %v7177_v27, -1e+30  ;;  %v13969_v15 = vsel %vm15422_vm10, %v7178_v38, -1e+30  ;;  %vm15424_vm11 = vcmp.lt.s32.totalorder %v15423_v4, 300 }
 0x57b   : > { %v6993_v6 = vmul.f32 %v11039_v40, %v11037_v35  ;;  %v11041_v10 = vpop.eup %11040  ;;  %v13973_v14 = vsel %vm15424_vm11, %v7179_v22, -1e+30  ;;  %v15425_v35 = vld [vmem:[#allocation29_spill] sm:$0xff]  ;;  %vm15434_vm1 = vcmp.lt.s32.totalorder %v15433_v9, 300  ;;  %vm15442_vm12 = vcmp.lt.s32.totalorder %v15441_v47, 300  ;;  %v15451_v9 = vld [vmem:[#allocation42_spill] sm:$0xff] }
 0x57c   : > { %v7160_v61 = vadd.f32 %v7068_v3, %v7067_v36  ;;  %v7090_v53 = vpop.xlane.xlu1 %7089  ;;  %v7246_v36 = vsel %vm7241_vm3, %v13954_v25, -inf  ;;  %vm15426_vm13 = vcmp.lt.s32.totalorder %v15425_v35, 300  ;;  %v15427_v3 = vld [vmem:[#allocation30_spill] sm:$0xff]  ;;  %vm15452_vm10 = vcmp.lt.s32.totalorder %v15451_v9, 300 }
 0x57d   : > { %v11043_v16 = vpop.eup %11042  ;;  %v7069_v55 = vmul.f32 %v13472_v20, %v6993_v6  ;;  %v7181_v19 = vadd.f32 %v13939_v42, %v7090_v53  ;;  %vm15428_vm14 = vcmp.lt.s32.totalorder %v15427_v3, 300 }
 0x57e   : > { %7161 = vadd.xlane.f32.xlu1 %v7160_v61  ;;  %v6994_v12 = vmul.f32 %v11043_v16, %v11041_v10  ;;  %v11045_v62 = vpop.eup %11044  ;;  %v15429_v10 = vld [vmem:[#allocation31_spill] sm:$0xff] }
 0x57f   : > { %v13980_v40 = vsel %vm15426_vm13, %v7181_v19, -1e+30  ;;  %vm15430_vm15 = vcmp.lt.s32.totalorder %v15429_v10, 300 }
 0x580   : > { %v11047_v44 = vpop.eup %11046  ;;  %v7070_v32 = vmul.f32 %v13478_v30, %v6994_v12  ;;  %v7248_v8 = vsel %vm7241_vm3, %v13980_v40, -inf }
 0x581   : > { %v6995_v41 = vmul.f32 %v11047_v44, %v11045_v62  ;;  %v11049_v21 = vpop.eup %11048  ;;  %v7093_v45 = vpop.xlane.xlu0 %7092 }
 0x582   : > { %v7163_v63 = vadd.f32 %v7070_v32, %v7069_v55  ;;  %v7182_v56 = vadd.f32 %v13939_v42, %v7093_v45  ;;  %v7242_v32 = vsel %vm7241_vm3, %v13961_v60, -inf  ;;  %v15435_v45 = vld [vmem:[#allocation34_spill] sm:$0xff] }
 0x583   : > { %v11051_v59 = vpop.eup %11050  ;;  %v7071_v37 = vmul.f32 %v13472_v20, %v6995_v41  ;;  %v7243_v41 = vsel %vm7241_vm3, %v13965_v33, -inf  ;;  %v7247_v29 = vmax.f32 %v7242_v32, %v7246_v36  ;;  %vm15436_vm5 = vcmp.lt.s32.totalorder %v15435_v45, 300 }
 0x584   : > { %7164 = vadd.xlane.f32.xlu0 %v7163_v63  ;;  %v6996_v58 = vmul.f32 %v11051_v59, %v11049_v21  ;;  %v13984_v6 = vsel %vm15428_vm14, %v7182_v56, -1e+30  ;;  %v7244_v59 = vsel %vm7241_vm3, %v13969_v15, -inf  ;;  %v7249_v38 = vmax.f32 %v7243_v41, %v7248_v8  ;;  %v15443_v56 = vld [vmem:[#allocation38_spill] sm:$0xff] }
 0x585   : > { %v7250_v43 = vsel %vm7241_vm3, %v13984_v6, -inf  ;;  %vm15444_vm4 = vcmp.lt.s32.totalorder %v15443_v56, 300 }
 0x586   : > { %v7072_v23 = vmul.f32 %v13478_v30, %v6996_v58  ;;  %v7245_v58 = vsel %vm7241_vm3, %v13973_v14, -inf  ;;  %v7251_v22 = vmax.f32 %v7244_v59, %v7250_v43 }
 0x587   : > { %v7096_v18 = vpop.xlane.xlu1 %7095 }
 0x588   : > { %v7166_v26 = vadd.f32 %v7072_v23, %v7071_v37  ;;  %v7183_v39 = vadd.f32 %v13939_v42, %v7096_v18  ;;  %v15431_v37 = vld [vmem:[#allocation32_spill] sm:$0xff] }
 0x589   : > { %vm15432_vm0 = vcmp.lt.s32.totalorder %v15431_v37, 300  ;;  %v15449_v37 = vld [vmem:[#allocation41_spill] sm:$0xff] }
 0x58a   : > { %7167 = vadd.xlane.f32.xlu1 %v7166_v26  ;;  %v13988_v61 = vsel %vm15430_vm15, %v7183_v39, -1e+30  ;;  %vm15450_vm7 = vcmp.lt.s32.totalorder %v15449_v37, 300 }
 0x58b   : > { %v7252_v50 = vsel %vm7241_vm3, %v13988_v61, -inf }
 0x58c   : > { %v7253_v19 = vmax.f32 %v7245_v58, %v7252_v50 }
 0x58d   : > { %v7099_v46 = vpop.xlane.xlu0 %7098 }
 0x58e   : > { %v7184_v13 = vadd.f32 %v13939_v42, %v7099_v46  ;;  %v15437_v46 = vld [vmem:[#allocation35_spill] sm:$0xff] }
 0x58f   : > { %vm15438_vm8 = vcmp.lt.s32.totalorder %v15437_v46, 300  ;;  %v15453_v46 = vld [vmem:[#allocation43_spill] sm:$0xff] }
 0x590   : > { %v14005_v23 = vsel %vm15432_vm0, %v7184_v13, -1e+30  ;;  %v15445_v13 = vld [vmem:[#allocation39_spill] sm:$0xff]  ;;  %vm15454_vm11 = vcmp.lt.s32.totalorder %v15453_v46, 300  ;;  %v15473_v46 = vld [vmem:[#allocation52_spill] sm:$0xff] }
 0x591   : > { %vm15446_vm2 = vcmp.lt.s32.totalorder %v15445_v13, 300  ;;  %v15463_v13 = vld [vmem:[#allocation49_spill] sm:$0xff] }
 0x593   : > { %v7102_v24 = vpop.xlane.xlu1 %7101 }
 0x594   : > { %v7185_v16 = vadd.f32 %v13939_v42, %v7102_v24 }
 0x596   : > { %v14016_v53 = vsel %vm15434_vm1, %v7185_v16, -1e+30  ;;  %v15447_v16 = vld [vmem:[#allocation40_spill] sm:$0xff]  ;;  %vm15464_vm1 = vcmp.lt.s32.totalorder %v15463_v13, 300 }
 0x597   : > { %v7256_v31 = vsel %vm7241_vm3, %v14016_v53, -inf  ;;  %vm15448_vm6 = vcmp.lt.s32.totalorder %v15447_v16, 300 }
 0x598   : > { %v7257_v32 = vmax.f32 %v7249_v38, %v7256_v31 }
 0x599   : > { %v7105_v28 = vpop.xlane.xlu0 %7104 }
 0x59a   : > { %v7186_v12 = vadd.f32 %v13939_v42, %v7105_v28 }
 0x59c   : > { %v14020_v18 = vsel %vm15436_vm5, %v7186_v12, -1e+30 }
 0x59d   : > { %v7258_v39 = vsel %vm7241_vm3, %v14020_v18, -inf }
 0x59e   : > { %v7259_v41 = vmax.f32 %v7251_v22, %v7258_v39  ;;  %v15457_v22 = vld [vmem:[#allocation45_spill] sm:$0xff] }
 0x59f   : > { %v7108_v2 = vpop.xlane.xlu1 %7107  ;;  %vm15458_vm14 = vcmp.lt.s32.totalorder %v15457_v22, 300 }
 0x5a0   : > { %v7187_v55 = vadd.f32 %v13939_v42, %v7108_v2 }
 0x5a2   : > { %v14024_v24 = vsel %vm15438_vm8, %v7187_v55, -1e+30 }
 0x5a3   : > { %v7260_v49 = vsel %vm7241_vm3, %v14024_v24, -inf }
 0x5a5   : > { %v7111_v20 = vpop.xlane.xlu0 %7110 }
 0x5a6   : > { %v7188_v21 = vadd.f32 %v13939_v42, %v7111_v20  ;;  %v7254_v20 = vsel %vm7241_vm3, %v14005_v23, -inf }
 0x5a7   : > { %v7255_v0 = vmax.f32 %v7247_v29, %v7254_v20 }
 0x5ab   : > { %v7114_v34 = vpop.xlane.xlu1 %7113 }
 0x5ac   : > { %v7189_v63 = vadd.f32 %v13939_v42, %v7114_v34  ;;  %v15439_v34 = vld [vmem:[#allocation36_spill] sm:$0xff] }
 0x5ad   : > { %vm15440_vm9 = vcmp.lt.s32.totalorder %v15439_v34, 300 }
 0x5ae   : > { %v14035_v57 = vsel %vm15442_vm12, %v7189_v63, -1e+30 }
 0x5af   : > { %v7264_v4 = vsel %vm7241_vm3, %v14035_v57, -inf }
 0x5b1   : > { %v7117_v30 = vpop.xlane.xlu0 %7116 }
 0x5b2   : > { %v7190_v26 = vadd.f32 %v13939_v42, %v7117_v30  ;;  %v14031_v30 = vsel %vm15440_vm9, %v7188_v21, -1e+30  ;;  %v7261_v21 = vmax.f32 %v7253_v19, %v7260_v49 }
 0x5b7   : > { %v7120_v7 = vpop.xlane.xlu1 %7119 }
 0x5b8   : > { %v7191_v51 = vadd.f32 %v13939_v42, %v7120_v7  ;;  %v14040_v7 = vsel %vm15444_vm4, %v7190_v26, -1e+30  ;;  %vm15474_vm4 = vcmp.lt.s32.totalorder %v15473_v46, 300 }
 0x5b9   : > { %v7266_v10 = vsel %vm7241_vm3, %v14040_v7, -inf }
 0x5ba   : > { %v14055_v36 = vsel %vm15446_vm2, %v7191_v51, -1e+30  ;;  %v7267_v8 = vmax.f32 %v7259_v41, %v7266_v10 }
 0x5bb   : > { %v7268_v58 = vsel %vm7241_vm3, %v14055_v36, -inf }
 0x5bc   : > { %v7269_v34 = vmax.f32 %v7261_v21, %v7268_v58  ;;  %v15469_v58 = vld [vmem:[#allocation51_spill] sm:$0xff] }
 0x5bd   : > { %v7123_v1 = vpop.xlane.xlu0 %7122  ;;  %vm15470_vm9 = vcmp.lt.s32.totalorder %v15469_v58, 300 }
 0x5be   : > { %v7192_v27 = vadd.f32 %v13939_v42, %v7123_v1  ;;  %v7262_v1 = vsel %vm7241_vm3, %v14031_v30, -inf }
 0x5bf   : > { %v7263_v59 = vmax.f32 %v7255_v0, %v7262_v1  ;;  %v15461_v1 = vld [vmem:[#allocation47_spill] sm:$0xff] }
 0x5c0   : > { %v14061_v12 = vsel %vm15448_vm6, %v7192_v27, -1e+30  ;;  %v15455_v27 = vld [vmem:[#allocation44_spill] sm:$0xff]  ;;  %vm15462_vm0 = vcmp.lt.s32.totalorder %v15461_v1, 300 }
 0x5c1   : > { %vm15456_vm13 = vcmp.lt.s32.totalorder %v15455_v27, 300 }
 0x5c3   : > { %v7126_v11 = vpop.xlane.xlu1 %7125 }
 0x5c4   : > { %v7193_v48 = vadd.f32 %v13939_v42, %v7126_v11 }
 0x5c6   : > { %v14072_v26 = vsel %vm15450_vm7, %v7193_v48, -1e+30  ;;  %v15459_v48 = vld [vmem:[#allocation46_spill] sm:$0xff]  ;;  %vm7489_vm7 = vcmask 0  }
 0x5c7   : > { %v7272_v47 = vsel %vm7241_vm3, %v14072_v26, -inf  ;;  %vm15460_vm15 = vcmp.lt.s32.totalorder %v15459_v48, 300 }
 0x5c9   : > { %v13942_v54 = vpop.xlane.xlu0 %7128 }
 0x5ca   : > { %v7194_v11 = vadd.f32 %v13939_v42, %v13942_v54  ;;  %v7265_v54 = vmax.f32 %v7257_v32, %v7264_v4  ;;  %v15465_v32 = vld [vmem:[#allocation48_spill] sm:$0xff] }
 0x5cb   : > { %vm15466_vm5 = vcmp.lt.s32.totalorder %v15465_v32, 300 }
 0x5cc   : > { %v14081_v45 = vsel %vm15452_vm10, %v7194_v11, -1e+30  ;;  %v7273_v16 = vmax.f32 %v7265_v54, %v7272_v47  ;;  %vm11356_vm10 = vmmov (!%p9008_p11), 0  }
 0x5cd   : > { %v7274_v39 = vsel %vm7241_vm3, %v14081_v45, -inf }
 0x5ce   : > { %v7275_v21 = vmax.f32 %v7267_v8, %v7274_v39 }
 0x5cf   : > { %v13944_v5 = vpop.xlane.xlu1 %7131 }
 0x5d0   : > { %v7195_v55 = vadd.f32 %v13939_v42, %v13944_v5  ;;  %v7270_v5 = vsel %vm7241_vm3, %v14061_v12, -inf }
 0x5d1   : > { %v7271_v31 = vmax.f32 %v7263_v59, %v7270_v5 }
 0x5d2   : > { %v14085_v51 = vsel %vm15454_vm11, %v7195_v55, -1e+30 }
 0x5d3   : > { %v7276_v49 = vsel %vm7241_vm3, %v14085_v51, -inf }
 0x5d4   : > { %v7277_v5 = vmax.f32 %v7269_v34, %v7276_v49 }
 0x5d5   : > { %v7135_v17 = vpop.xlane.xlu0 %7134 }
 0x5d6   : > { %v7196_v63 = vadd.f32 %v13939_v42, %v7135_v17 }
 0x5db   : > { %v13957_v52 = vpop.xlane.xlu1 %7137 }
 0x5dc   : > { %v7197_v29 = vadd.f32 %v13939_v42, %v13957_v52 }
 0x5de   : > { %v14098_v19 = vsel %vm15458_vm14, %v7197_v29, -1e+30  ;;  %v15471_v29 = vld [vmem:[#allocation53_spill] sm:$0xff] }
 0x5df   : > { %v7280_v55 = vsel %vm7241_vm3, %v14098_v19, -inf  ;;  %vm15472_vm12 = vcmp.lt.s32.totalorder %v15471_v29, 300 }
 0x5e1   : > { %v7141_v62 = vpop.xlane.xlu0 %7140 }
 0x5e2   : > { %v7198_v43 = vadd.f32 %v13939_v42, %v7141_v62  ;;  %v14093_v62 = vsel %vm15456_vm13, %v7196_v63, -1e+30  ;;  %v15467_v63 = vld [vmem:[#allocation50_spill] sm:$0xff] }
 0x5e3   : > { %v7278_v11 = vsel %vm7241_vm3, %v14093_v62, -inf  ;;  %vm15468_vm8 = vcmp.lt.s32.totalorder %v15467_v63, 300 }
 0x5e4   : > { %v7279_v47 = vmax.f32 %v7271_v31, %v7278_v11 }
 0x5e7   : > { %v7144_v44 = vpop.xlane.xlu1 %7143 }
 0x5e8   : > { %v7199_v20 = vadd.f32 %v13939_v42, %v7144_v44 }
 0x5ea   : > { %v14113_v4 = vsel %vm15462_vm0, %v7199_v20, -1e+30 }
 0x5ed   : > { %v7147_v28 = vpop.xlane.xlu0 %7146 }
 0x5ee   : > { %v7200_v38 = vadd.f32 %v13939_v42, %v7147_v28  ;;  %v14109_v28 = vsel %vm15460_vm15, %v7198_v43, -1e+30 }
 0x5ef   : > { %v7282_v43 = vsel %vm7241_vm3, %v14109_v28, -inf }
 0x5f0   : > { %v14127_v41 = vsel %vm15466_vm5, %v7200_v38, -1e+30 }
 0x5f1   : > { %v7286_v9 = vsel %vm7241_vm3, %v14127_v41, -inf }
 0x5f2   : > { %v7287_v48 = vmax.f32 %v7279_v47, %v7286_v9  ;;  %v15479_v47 = vld [vmem:[#allocation57_spill] sm:$0xff] }
 0x5f3   : > { %v7150_v2 = vpop.xlane.xlu1 %7149 }
 0x5f4   : > { %v7201_v52 = vadd.f32 %v13939_v42, %v7150_v2 }
 0x5f9   : > { %v7153_v35 = vpop.xlane.xlu0 %7152 }
 0x5fa   : > { %v7202_v56 = vadd.f32 %v13939_v42, %v7153_v35  ;;  %v14117_v35 = vsel %vm15464_vm1, %v7201_v52, -1e+30  ;;  %v15475_v52 = vld [vmem:[#allocation54_spill] sm:$0xff] }
 0x5fb   : > { %v7288_v8 = vsel %vm7241_vm3, %v14117_v35, -inf  ;;  %vm15476_vm2 = vcmp.lt.s32.totalorder %v15475_v52, 300 }
 0x5fc   : > { %v14131_v59 = vsel %vm15468_vm8, %v7202_v56, -1e+30 }
 0x5fd   : > { %v7290_v27 = vsel %vm7241_vm3, %v14131_v59, -inf }
 0x5ff   : > { %v7156_v3 = vpop.xlane.xlu1 %7155 }
 0x600   : > { %v7203_v44 = vadd.f32 %v13939_v42, %v7156_v3 }
 0x602   : > { %v14135_v37 = vsel %vm15470_vm9, %v7203_v44, -1e+30  ;;  %v7283_v44 = vmax.f32 %v7275_v21, %v7282_v43 }
 0x603   : > { %v7292_v38 = vsel %vm7241_vm3, %v14135_v37, -inf }
 0x604   : > { %v7291_v1 = vmax.f32 %v7283_v44, %v7290_v27 }
 0x605   : > { %v7159_v50 = vpop.xlane.xlu0 %7158 }
 0x606   : > { %v7204_v3 = vadd.f32 %v13939_v42, %v7159_v50  ;;  %v7284_v50 = vsel %vm7241_vm3, %v14113_v4, -inf }
 0x608   : > { %v14151_v20 = vsel %vm15474_vm4, %v7204_v3, -1e+30 }
 0x60b   : > { %v7162_v17 = vpop.xlane.xlu1 %7161 }
 0x60c   : > { %v7205_v2 = vadd.f32 %v13939_v42, %v7162_v17  ;;  %v7281_v17 = vmax.f32 %v7273_v16, %v7280_v55 }
 0x60e   : > { %v14139_v54 = vsel %vm15472_vm12, %v7205_v2, -1e+30  ;;  %v7285_v2 = vmax.f32 %v7277_v5, %v7284_v50  ;;  %v7289_v39 = vmax.f32 %v7281_v17, %v7288_v8  ;;  %v14174_v17 = vld [vmem:[#allocation3] sm:$0x1] }
 0x60f   : > { %v7296_v22 = vsel %vm7241_vm3, %v14139_v54, -inf }
 0x610   : > { %v7293_v13 = vmax.f32 %v7285_v2, %v7292_v38  ;;  %v7297_v3 = vmax.f32 %v7289_v39, %v7296_v22 }
 0x611   : > { %v7165_v0 = vpop.xlane.xlu0 %7164 }
 0x612   : > { %v7206_v10 = vadd.f32 %v13939_v42, %v7165_v0  ;;  %v7294_v0 = vsel %vm7241_vm3, %v14151_v20, -inf }
 0x613   : > { %v7295_v55 = vmax.f32 %v7287_v48, %v7294_v0 }
 0x614   : > { %v14155_v34 = vsel %vm15476_vm2, %v7206_v10, -1e+30  ;;  %v15477_v10 = vld [vmem:[#allocation55_spill] sm:$0xff] }
 0x615   : > { %v7298_v31 = vsel %vm7241_vm3, %v14155_v34, -inf  ;;  %vm15478_vm6 = vcmp.lt.s32.totalorder %v15477_v10, 300  ;;  %v7302_v21 = vmax.f32 %v7295_v55, %v7297_v3 }
 0x616   : > { %v7299_v32 = vmax.f32 %v7291_v1, %v7298_v31 }
 0x617   : > { %v7168_v56 = vpop.xlane.xlu1 %7167 }
 0x618   : > { %v7207_v49 = vadd.f32 %v13939_v42, %v7168_v56 }
 0x61a   : > { %v14170_v16 = vsel %vm15478_vm6, %v7207_v49, -1e+30 }
 0x61b   : > { %v7300_v11 = vsel %vm7241_vm3, %v14170_v16, -inf }
 0x61c   : > { %v7301_v42 = vmax.f32 %v7293_v13, %v7300_v11 }
 0x61e   : > { %v7303_v63 = vmax.f32 %v7299_v32, %v7301_v42 }
 0x620   : > { %v7304_v58 = vmax.f32 %v7302_v21, %v7303_v63 }
 0x622   : > { %v7305_v29 = vrot.slane %v7304_v58, 4 }
 0x624   : > { %v7306_v5 = vmax.f32 %v7304_v58, %v7305_v29 }
 0x626   : > { %v7307_v43 = vrot.slane %v7306_v5, 2 }
 0x628   : > { %v7308_v50 = vmax.f32 %v7306_v5, %v7307_v43 }
 0x62a   : > { %v7309_v8 = vrot.slane %v7308_v50, 1 }
 0x62c   : > { %v7310_v9 = vmax.f32 %v7308_v50, %v7309_v8 }
 0x62e   : > { %v14177_v46 = vmax.f32 %v14174_v17, %v7310_v9 }
 0x630   : > { %v7312_v52 = vsub.f32 %v14174_v17, %v14177_v46  ;;  %7973 = vst.msk [vmem:[#allocation3] sm:$0x1] %vm7489_vm7, %v14177_v46  ;;  %v14185_v27 = vrot.slane %v14177_v46, %v15479_v47  ;;  %v7417_v46 = vld [vmem:[#allocation4] sm:$0x1] }
 0x632   : > { %v7321_v38 = vsub.f32 %v13961_v60, %v14185_v27  ;;  %v7322_v22 = vsub.f32 %v13965_v33, %v14185_v27  ;;  %v7323_v56 = vsub.f32 %v13969_v15, %v14185_v27  ;;  %v7324_v44 = vsub.f32 %v13973_v14, %v14185_v27 }
 0x633   : > { %v7325_v2 = vsub.f32 %v13954_v25, %v14185_v27  ;;  %v7326_v48 = vsub.f32 %v13980_v40, %v14185_v27  ;;  %v7327_v60 = vsub.f32 %v13984_v6, %v14185_v27  ;;  %v7330_v33 = vsub.f32 %v14016_v53, %v14185_v27 }
 0x634   : > { %v7353_v39 = vmul.f32 1.442695, %v7321_v38  ;;  %v7355_v49 = vmul.f32 1.442695, %v7322_v22  ;;  %v7357_v0 = vmul.f32 1.442695, %v7323_v56  ;;  %v7328_v25 = vsub.f32 %v13988_v61, %v14185_v27 }
 0x635   : > { %v7359_v31 = vmul.f32 1.442695, %v7324_v44  ;;  %v7361_v15 = vmul.f32 1.442695, %v7325_v2  ;;  %v7363_v14 = vmul.f32 1.442695, %v7326_v48  ;;  %v7329_v40 = vsub.f32 %v14005_v23, %v14185_v27 }
 0x636   : > { %11052 = vpow2.f32 %v7353_v39  ;;  %v7365_v1 = vmul.f32 1.442695, %v7327_v60  ;;  %v7332_v13 = vsub.f32 %v14024_v24, %v14185_v27  ;;  %v7371_v6 = vmul.f32 1.442695, %v7330_v33 }
 0x637   : > { %11054 = vpow2.f32 %v7355_v49  ;;  %v7367_v3 = vmul.f32 1.442695, %v7328_v25  ;;  %v7331_v53 = vsub.f32 %v14020_v18, %v14185_v27  ;;  %v7369_v10 = vmul.f32 1.442695, %v7329_v40 }
 0x638   : > { %11056 = vpow2.f32 %v7357_v0  ;;  %v7334_v61 = vsub.f32 %v14035_v57, %v14185_v27  ;;  %v7375_v11 = vmul.f32 1.442695, %v7332_v13  ;;  %v7333_v42 = vsub.f32 %v14031_v30, %v14185_v27 }
 0x639   : > { %11058 = vpow2.f32 %v7359_v31  ;;  %v7373_v21 = vmul.f32 1.442695, %v7331_v53  ;;  %v7336_v57 = vsub.f32 %v14055_v36, %v14185_v27  ;;  %v7335_v8 = vsub.f32 %v14040_v7, %v14185_v27 }
 0x63a   : > { %11060 = vpow2.f32 %v7361_v15  ;;  %v7379_v58 = vmul.f32 1.442695, %v7334_v61  ;;  %v7377_v30 = vmul.f32 1.442695, %v7333_v42  ;;  %v7338_v22 = vsub.f32 %v14072_v26, %v14185_v27 }
 0x63b   : > { %11062 = vpow2.f32 %v7363_v14  ;;  %v7383_v36 = vmul.f32 1.442695, %v7336_v57  ;;  %v7337_v7 = vsub.f32 %v14061_v12, %v14185_v27  ;;  %v7381_v48 = vmul.f32 1.442695, %v7335_v8 }
 0x63c   : > { %11064 = vpow2.f32 %v7365_v1  ;;  %v7340_v26 = vsub.f32 %v14085_v51, %v14185_v27  ;;  %v7387_v60 = vmul.f32 1.442695, %v7338_v22  ;;  %v7339_v12 = vsub.f32 %v14081_v45, %v14185_v27 }
 0x63d   : > { %11066 = vpow2.f32 %v7371_v6  ;;  %v7385_v1 = vmul.f32 1.442695, %v7337_v7  ;;  %v7342_v51 = vsub.f32 %v14098_v19, %v14185_v27  ;;  %v7341_v45 = vsub.f32 %v14093_v62, %v14185_v27 }
 0x63e   : > { %11068 = vpow2.f32 %v7367_v3  ;;  %v7391_v6 = vmul.f32 1.442695, %v7340_v26  ;;  %v7344_v19 = vsub.f32 %v14113_v4, %v14185_v27  ;;  %v7343_v62 = vsub.f32 %v14109_v28, %v14185_v27 }
 0x63f   : > { %11070 = vpow2.f32 %v7369_v10  ;;  %v7393_v57 = vmul.f32 1.442695, %v7341_v45  ;;  %v7346_v4 = vsub.f32 %v14117_v35, %v14185_v27  ;;  %v7345_v28 = vsub.f32 %v14127_v41, %v14185_v27 }
 0x640   : > { %v11053_v55 = vpop.eup %11052  ;;  %11072 = vpow2.f32 %v7375_v11  ;;  %v7348_v35 = vsub.f32 %v14135_v37, %v14185_v27  ;;  %v7347_v41 = vsub.f32 %v14131_v59, %v14185_v27  ;;  %v7350_v37 = vsub.f32 %v14139_v54, %v14185_v27 }
 0x641   : > { %v11055_v23 = vpop.eup %11054  ;;  %v7419_v32 = vsel %vm7241_vm3, %v11053_v55, 0.0  ;;  %7504 = vperm.xlu0 %10090, %v11053_v55   ;;  %11074 = vpow2.f32 %v7373_v21  ;;  %v7389_v55 = vmul.f32 1.442695, %v7339_v12  ;;  %v7403_v22 = vmul.f32 1.442695, %v7346_v4 }
 0x642   : > { %v11057_v24 = vpop.eup %11056  ;;  %v7420_v18 = vsel %vm7241_vm3, %v11055_v23, 0.0  ;;  %7509 = vperm.xlu1 %10091, %v11055_v23   ;;  %11076 = vpow2.f32 %v7379_v58  ;;  %v7349_v59 = vsub.f32 %v14151_v20, %v14185_v27  ;;  %v7352_v54 = vsub.f32 %v14170_v16, %v14185_v27 }
 0x643   : > { %v11059_v63 = vpop.eup %11058  ;;  %v7421_v29 = vadd.f32 %v7420_v18, %v7419_v32  ;;  %v7422_v5 = vsel %vm7241_vm3, %v11057_v24, 0.0  ;;  %11078 = vpow2.f32 %v7377_v30  ;;  %v7395_v32 = vmul.f32 1.442695, %v7342_v51 }
 0x644   : > { %v11061_v43 = vpop.eup %11060  ;;  %v7424_v9 = vsel %vm7241_vm3, %v11059_v63, 0.0  ;;  %11080 = vpow2.f32 %v7383_v36  ;;  %v7409_v20 = vmul.f32 1.442695, %v7349_v59  ;;  %v7415_v16 = vmul.f32 1.442695, %v7352_v54 }
 0x645   : > { %v7423_v50 = vadd.f32 %v7422_v5, %v7421_v29  ;;  %v11063_v38 = vpop.eup %11062  ;;  %v7426_v2 = vsel %vm7241_vm3, %v11061_v43, 0.0  ;;  %11082 = vpow2.f32 %v7381_v48  ;;  %v7399_v29 = vmul.f32 1.442695, %v7344_v19 }
 0x646   : > { %7514 = vperm.xlu1 %10091, %v11057_v24   ;;  %v11065_v44 = vpop.eup %11064  ;;  %v7428_v0 = vsel %vm7241_vm3, %v11063_v38, 0.0  ;;  %11084 = vpow2.f32 %v7387_v60  ;;  %v7407_v48 = vmul.f32 1.442695, %v7348_v35  ;;  %v7313_v35 = vmul.f32 1.442695, %v7312_v52 }
 0x647   : > { %v7425_v56 = vadd.f32 %v7424_v9, %v7423_v50  ;;  %v11067_v39 = vpop.eup %11066  ;;  %v7430_v25 = vsel %vm7241_vm3, %v11065_v44, 0.0  ;;  %11086 = vpow2.f32 %v7385_v1  ;;  %v7397_v9 = vmul.f32 1.442695, %v7343_v62 }
 0x648   : > { %7549 = vperm.xlu0 %10090, %v11067_v39   ;;  %v11069_v31 = vpop.eup %11068  ;;  %v7436_v23 = vsel %vm7241_vm3, %v11067_v39, 0.0  ;;  %11088 = vpow2.f32 %v7391_v6 }
 0x649   : > { %v7427_v49 = vadd.f32 %v7426_v2, %v7425_v56  ;;  %v14231_v15 = vpop.eup %11070  ;;  %v7432_v13 = vsel %vm7241_vm3, %v11069_v31, 0.0  ;;  %11090 = vpow2.f32 %v7389_v55 }
 0x64a   : > { %7519 = vperm.xlu1 %10091, %v11059_v63   ;;  %v11073_v14 = vpop.eup %11072  ;;  %v7434_v10 = vsel %vm7241_vm3, %v14231_v15, 0.0  ;;  %11092 = vpow2.f32 %v7395_v32 }
 0x64b   : > { %v7429_v33 = vadd.f32 %v7428_v0, %v7427_v49  ;;  %v14239_v53 = vpop.eup %11074  ;;  %v7440_v58 = vsel %vm7241_vm3, %v11073_v14, 0.0  ;;  %11094 = vpow2.f32 %v7393_v57  ;;  %v7401_v49 = vmul.f32 1.442695, %v7345_v28 }
 0x64c   : > { %7559 = vperm.xlu0 %10090, %v11073_v14   ;;  %v11077_v61 = vpop.eup %11076  ;;  %v7438_v21 = vsel %vm7241_vm3, %v14239_v53, 0.0  ;;  %11096 = vpow2.f32 %v7399_v29 }
 0x64d   : > { %v7431_v40 = vadd.f32 %v7430_v25, %v7429_v33  ;;  %v14248_v42 = vpop.eup %11078  ;;  %11098 = vpow2.f32 %v7397_v9  ;;  %v7405_v25 = vmul.f32 1.442695, %v7347_v41 }
 0x64e   : > { %7524 = vperm.xlu1 %10091, %v11061_v43   ;;  %v11081_v18 = vpop.eup %11080  ;;  %v7442_v50 = vsel %vm7241_vm3, %v14248_v42, 0.0  ;;  %11100 = vpow2.f32 %v7403_v22 }
 0x64f   : > { %v7433_v3 = vadd.f32 %v7432_v13, %v7431_v40  ;;  %v11083_v43 = vpop.eup %11082  ;;  %v7448_v7 = vsel %vm7241_vm3, %v11081_v18, 0.0  ;;  %11102 = vpow2.f32 %v7401_v49 }
 0x650   : > { %7569 = vperm.xlu0 %10090, %v11077_v61   ;;  %v11085_v8 = vpop.eup %11084  ;;  %11104 = vpow2.f32 %v7407_v48 }
 0x651   : > { %v7435_v11 = vadd.f32 %v7434_v10, %v7433_v3  ;;  %v11087_v56 = vpop.eup %11086  ;;  %v7452_v14 = vsel %vm7241_vm3, %v11085_v8, 0.0  ;;  %11106 = vpow2.f32 %v7405_v25  ;;  %v7351_v3 = vsub.f32 %v14155_v34, %v14185_v27 }
 0x652   : > { %7529 = vperm.xlu1 %10091, %v11063_v38   ;;  %v7444_v38 = vsel %vm7241_vm3, %v11077_v61, 0.0  ;;  %v11089_v2 = vpop.eup %11088  ;;  %v7450_v26 = vsel %vm7241_vm3, %v11087_v56, 0.0 }
 0x653   : > { %v7437_v24 = vadd.f32 %v7436_v23, %v7435_v11  ;;  %v7456_v6 = vsel %vm7241_vm3, %v11089_v2, 0.0  ;;  %v7413_v23 = vmul.f32 1.442695, %v7351_v3 }
 0x654   : > { %7579 = vperm.xlu0 %10090, %v11081_v18  }
 0x655   : > { %v7439_v63 = vadd.f32 %v7438_v21, %v7437_v24 }
 0x656   : > { %7534 = vperm.xlu1 %10091, %v11065_v44   ;;  %v7446_v44 = vsel %vm7241_vm3, %v11083_v43, 0.0 }
 0x657   : > { %v7441_v5 = vadd.f32 %v7440_v58, %v7439_v63 }
 0x658   : > { %7589 = vperm.xlu0 %10090, %v11085_v8  }
 0x659   : > { %v7443_v30 = vadd.f32 %v7442_v50, %v7441_v5 }
 0x65a   : > { %7539 = vperm.xlu1 %10091, %v11069_v31   ;;  %v11091_v31 = vpop.eup %11090 }
 0x65b   : > { %v7445_v36 = vadd.f32 %v7444_v38, %v7443_v30  ;;  %v11093_v60 = vpop.eup %11092  ;;  %v7454_v1 = vsel %vm7241_vm3, %v11091_v31, 0.0 }
 0x65c   : > { %7599 = vperm.xlu0 %10090, %v11089_v2   ;;  %v11095_v12 = vpop.eup %11094  ;;  %v7460_v55 = vsel %vm7241_vm3, %v11093_v60, 0.0 }
 0x65d   : > { %v7447_v39 = vadd.f32 %v7446_v44, %v7445_v36  ;;  %v11097_v13 = vpop.eup %11096  ;;  %v7458_v61 = vsel %vm7241_vm3, %v11095_v12, 0.0 }
 0x65e   : > { %7544 = vperm.xlu1 %10091, %v14231_v15   ;;  %v7411_v15 = vmul.f32 1.442695, %v7350_v37  ;;  %v11099_v10 = vpop.eup %11098 }
 0x65f   : > { %v7449_v0 = vadd.f32 %v7448_v7, %v7447_v39  ;;  %v11101_v11 = vpop.eup %11100  ;;  %v7462_v24 = vsel %vm7241_vm3, %v11099_v10, 0.0 }
 0x660   : > { %7609 = vperm.xlu0 %10090, %v11093_v60   ;;  %11108 = vpow2.f32 %v7411_v15  ;;  %v11103_v32 = vpop.eup %11102  ;;  %v7468_v58 = vsel %vm7241_vm3, %v11101_v11, 0.0 }
 0x661   : > { %v7451_v33 = vadd.f32 %v7450_v26, %v7449_v0  ;;  %11110 = vpow2.f32 %v7409_v20  ;;  %v11105_v34 = vpop.eup %11104  ;;  %v7466_v63 = vsel %vm7241_vm3, %v11103_v32, 0.0 }
 0x662   : > { %7554 = vperm.xlu1 %10091, %v14239_v53   ;;  %11112 = vpow2.f32 %v7415_v16  ;;  %v11107_v18 = vpop.eup %11106  ;;  %v7472_v8 = vsel %vm7241_vm3, %v11105_v34, 0.0 }
 0x663   : > { %v7453_v40 = vadd.f32 %v7452_v14, %v7451_v33  ;;  %11114 = vpow2.f32 %v7413_v23  ;;  %v7470_v5 = vsel %vm7241_vm3, %v11107_v18, 0.0  ;;  %v15480_v14 = vld [vmem:[#allocation59_spill] sm:$0xff]  ;;  %v15492_v23 = vld [vmem:[#allocation141_spill] sm:$0xff] }
 0x664   : > { %7619 = vperm.xlu0 %10090, %v11097_v13   ;;  %11116 = vpow2.f32 %v7313_v35  ;;  %v15481_v54 = vmax.f32 %v15480_v14, 0.0 }
 0x665   : > { %v7455_v51 = vadd.f32 %v7454_v1, %v7453_v40  ;;  %v15482_v40 = vld [vmem:[#allocation58_spill] sm:$0xff] }
 0x666   : > { %7564 = vperm.xlu1 %10091, %v14248_v42   ;;  %v7464_v42 = vsel %vm7241_vm3, %v11097_v13, 0.0  ;;  %v15484_v13 = vld [vmem:[#allocation143_spill] sm:$0xff] }
 0x667   : > { %v7457_v53 = vadd.f32 %v7456_v6, %v7455_v51  ;;  %v15485_v51 = vmax.f32 %v15484_v13, 0.0  ;;  %v15486_v6 = vld [vmem:[#allocation139_spill] sm:$0xff] }
 0x668   : > { %7629 = vperm.xlu0 %10090, %v11101_v11   ;;  %v15487_v3 = vmax.f32 %v15486_v6, 0.0  ;;  %v15490_v11 = vld [vmem:[#allocation61_spill] sm:$0xff] }
 0x669   : > { %v7459_v45 = vadd.f32 %v7458_v61, %v7457_v53  ;;  %v15488_v53 = vld [vmem:[#allocation60_spill] sm:$0xff] }
 0x66a   : > { %7574 = vperm.xlu1 %10091, %v11083_v43   ;;  %v11109_v62 = vpop.eup %11108 }
 0x66b   : > { %v7461_v19 = vadd.f32 %v7460_v55, %v7459_v45  ;;  %v11111_v29 = vpop.eup %11110  ;;  %v7476_v22 = vsel %vm7241_vm3, %v11109_v62, 0.0  ;;  %v15491_v45 = vmax.f32 %v15490_v11, 0.0  ;;  %v15520_v11 = vld [vmem:[#allocation68_spill] sm:$0xff] }
 0x66c   : > { %7639 = vperm.xlu0 %10090, %v11105_v34   ;;  %v11113_v43 = vpop.eup %11112  ;;  %v7474_v28 = vsel %vm7241_vm3, %v11111_v29, 0.0 }
 0x66d   : > { %v7463_v27 = vadd.f32 %v7462_v24, %v7461_v19  ;;  %v11115_v9 = vpop.eup %11114  ;;  %v7480_v2 = vsel %vm7241_vm3, %v11113_v43, 0.0  ;;  %v15493_v19 = vmax.f32 %v15492_v23, 0.0  ;;  %v15494_v24 = vld [vmem:[#allocation135_spill] sm:$0xff]  ;;  %v15522_v23 = vld [vmem:[#allocation69_spill] sm:$0xff] }
 0x66e   : > { %7584 = vperm.xlu1 %10091, %v11087_v56   ;;  %v7478_v56 = vsel %vm7241_vm3, %v11115_v9, 0.0  ;;  %v11117_v17 = vpop.eup %11116  ;;  %v15495_v34 = vmax.f32 %v15494_v24, 0.0  ;;  %v15524_v24 = vld [vmem:[#allocation149_spill] sm:$0xff] }
 0x66f   : > { %v7465_v21 = vadd.f32 %v7464_v42, %v7463_v27  ;;  %v7418_v48 = vmul.f32 %v11117_v17, %v7417_v46 }
 0x670   : > { %7649 = vperm.xlu0 %10090, %v11109_v62   ;;  %v15498_v62 = vld [vmem:[#allocation62_spill] sm:$0xff] }
 0x671   : > { %v7467_v57 = vadd.f32 %v7466_v63, %v7465_v21  ;;  %v15496_v21 = vld [vmem:[#allocation63_spill] sm:$0xff] }
 0x672   : > { %7594 = vperm.xlu1 %10091, %v11091_v31  }
 0x673   : > { %v7469_v4 = vadd.f32 %v7468_v58, %v7467_v57  ;;  %v15499_v57 = vmax.f32 %v15498_v62, 0.0 }
 0x674   : > { %7659 = vperm.xlu0 %10090, %v11113_v43   ;;  %v15502_v43 = vld [vmem:[#allocation144_spill] sm:$0xff] }
 0x675   : > { %v7471_v50 = vadd.f32 %v7470_v5, %v7469_v4  ;;  %v15500_v4 = vld [vmem:[#allocation147_spill] sm:$0xff] }
 0x676   : > { %7604 = vperm.xlu1 %10091, %v11095_v12   ;;  %v15483_v12 = vmax.f32 %v15482_v40, 0.0 }
 0x677   : > { %v7473_v30 = vadd.f32 %v7472_v8, %v7471_v50  ;;  %v15503_v50 = vmax.f32 %v15502_v43, 0.0  ;;  %v15530_v43 = vld [vmem:[#allocation70_spill] sm:$0xff] }
 0x679   : > { %v7475_v38 = vadd.f32 %v7474_v28, %v7473_v30 }
 0x67a   : > { %7614 = vperm.xlu1 %10091, %v11099_v10   ;;  %v15489_v10 = vmax.f32 %v15488_v53, 0.0 }
 0x67b   : > { %v7477_v36 = vadd.f32 %v7476_v22, %v7475_v38  ;;  %v15504_v22 = vld [vmem:[#allocation64_spill] sm:$0xff] }
 0x67d   : > { %v7479_v44 = vadd.f32 %v7478_v56, %v7477_v36  ;;  %v15505_v36 = vmax.f32 %v15504_v22, 0.0 }
 0x67e   : > { %7624 = vperm.xlu1 %10091, %v11103_v32  }
 0x67f   : > { %v7481_v39 = vadd.f32 %v7480_v2, %v7479_v44  ;;  %v15506_v44 = vld [vmem:[#allocation65_spill] sm:$0xff] }
 0x680   : > { %v15507_v2 = vmax.f32 %v15506_v44, 0.0 }
 0x681   : > { %v7482_v41 = vrot.slane %v7481_v39, 4 }
 0x682   : > { %7634 = vperm.xlu1 %10091, %v11107_v18   ;;  %v15497_v18 = vmax.f32 %v15496_v21, 0.0  ;;  %v15526_v21 = vld [vmem:[#allocation146_spill] sm:$0xff] }
 0x683   : > { %v7483_v49 = vadd.f32 %v7482_v41, %v7481_v39  ;;  %v15508_v41 = vld [vmem:[#allocation145_spill] sm:$0xff] }
 0x685   : > { %v7484_v7 = vrot.slane %v7483_v49, 2 }
 0x686   : > { %7644 = vperm.xlu1 %10091, %v11111_v29   ;;  %v15501_v29 = vmax.f32 %v15500_v4, 0.0  ;;  %v15528_v4 = vld [vmem:[#allocation71_spill] sm:$0xff] }
 0x687   : > { %v7485_v37 = vadd.f32 %v7484_v7, %v7483_v49  ;;  %v15509_v49 = vmax.f32 %v15508_v41, 0.0 }
 0x689   : > { %v7486_v52 = vrot.slane %v7485_v37, 1 }
 0x68a   : > { %7654 = vperm.xlu1 %10091, %v11115_v9  }
 0x68b   : > { %v7487_v0 = vadd.f32 %v7486_v52, %v7485_v37  ;;  %v15510_v37 = vld [vmem:[#allocation142_spill] sm:$0xff] }
 0x68d   : > { %v7488_v31 = vadd.f32 %v7487_v0, %v7418_v48 }
 0x68e   : > { %7494 = vperm.xlu1 %10091, %v11117_v17   ;;  %v15511_v17 = vmax.f32 %v15510_v37, 0.0 }
 0x68f   : > { %7490 = vst.msk [vmem:[#allocation4] sm:$0x1] %vm7489_vm7, %v7488_v31 }
 0x6c0   : > { %v7505_v60 = vpop.permute.xlu0 %7504 }
 0x6c1   : > { %v7510_v26 = vpop.permute.xlu1 %7509  ;;  %v7662_v15 = vmul.f32 %v7505_v60, %v15481_v54  ;;  %v7663_v1 = vmul.f32 %v7505_v60, %v15483_v12  ;;  %v7664_v20 = vmul.f32 %v7505_v60, %v15485_v51  ;;  %v7665_v16 = vmul.f32 %v7505_v60, %v15487_v3  ;;  %v15512_v60 = vld [vmem:[#allocation67_spill] sm:$0xff]  ;;  %v15514_v54 = vld [vmem:[#allocation66_spill] sm:$0xff]  ;;  %v15518_v51 = vld [vmem:[#allocation148_spill] sm:$0xff] }
 0x6c2   : > { %v7666_v61 = vmul.f32 %v7510_v26, %v15489_v10  ;;  %v7667_v55 = vmul.f32 %v7510_v26, %v15491_v45  ;;  %v7668_v32 = vmul.f32 %v7510_v26, %v15493_v19  ;;  %v7669_v27 = vmul.f32 %v7510_v26, %v15495_v34  ;;  %v15516_v12 = vld [vmem:[#allocation151_spill] sm:$0xff] }
 0x6c3   : > { %v15521_v45 = vmax.f32 %v15520_v11, 0.0  ;;  %v15523_v19 = vmax.f32 %v15522_v23, 0.0  ;;  %v15525_v34 = vmax.f32 %v15524_v24, 0.0 }
 0x6c4   : > { %v7790_v28 = vadd.f32 %v7666_v61, %v7662_v15  ;;  %v7827_v9 = vadd.f32 %v7667_v55, %v7663_v1  ;;  %v7864_v38 = vadd.f32 %v7668_v32, %v7664_v20  ;;  %v7901_v35 = vadd.f32 %v7669_v27, %v7665_v16 }
 0x6c5   : > { %v7515_v33 = vpop.permute.xlu1 %7514  ;;  %v15515_v15 = vmax.f32 %v15514_v54, 0.0  ;;  %v15517_v1 = vmax.f32 %v15516_v12, 0.0  ;;  %v15519_v20 = vmax.f32 %v15518_v51, 0.0 }
 0x6c6   : > { %v7670_v63 = vmul.f32 %v7515_v33, %v15497_v18  ;;  %v7671_v58 = vmul.f32 %v7515_v33, %v15499_v57  ;;  %v7672_v5 = vmul.f32 %v7515_v33, %v15501_v29  ;;  %v7673_v8 = vmul.f32 %v7515_v33, %v15503_v50 }
 0x6c7   : > { %v14299_v59 = vpop.permute.xlu0 %7549  ;;  %v15513_v33 = vmax.f32 %v15512_v60, 0.0  ;;  %v15527_v18 = vmax.f32 %v15526_v21, 0.0  ;;  %v15529_v29 = vmax.f32 %v15528_v4, 0.0  ;;  %v15531_v50 = vmax.f32 %v15530_v43, 0.0  ;;  %v15542_v60 = vld [vmem:[#allocation150_spill] sm:$0xff]  ;;  %v15554_v4 = vld [vmem:[#allocation77_spill] sm:$0xff] }
 0x6c8   : > { %v7791_v48 = vadd.f32 %v7790_v28, %v7670_v63  ;;  %v7828_v0 = vadd.f32 %v7827_v9, %v7671_v58  ;;  %v7865_v31 = vadd.f32 %v7864_v38, %v7672_v5  ;;  %v7902_v26 = vadd.f32 %v7901_v35, %v7673_v8  ;;  %v15532_v28 = vld [vmem:[#allocation155_spill] sm:$0xff]  ;;  %v15534_v35 = vld [vmem:[#allocation152_spill] sm:$0xff]  ;;  %v15556_v43 = vld [vmem:[#allocation157_spill] sm:$0xff] }
 0x6c9   : > { %v7520_v25 = vpop.permute.xlu1 %7519  ;;  %v15533_v9 = vmax.f32 %v15532_v28, 0.0  ;;  %v15535_v22 = vmax.f32 %v15534_v35, 0.0  ;;  %v15558_v28 = vld [vmem:[#allocation154_spill] sm:$0xff]  ;;  %v15560_v35 = vld [vmem:[#allocation79_spill] sm:$0xff] }
 0x6ca   : > { %v7674_v56 = vmul.f32 %v7520_v25, %v15505_v36  ;;  %v7675_v39 = vmul.f32 %v7520_v25, %v15507_v2  ;;  %v7676_v7 = vmul.f32 %v7520_v25, %v15509_v49  ;;  %v7677_v46 = vmul.f32 %v7520_v25, %v15511_v17 }
 0x6cb   : > { %v14325_v30 = vpop.permute.xlu0 %7559 }
 0x6cc   : > { %v7792_v3 = vadd.f32 %v7791_v48, %v7674_v56  ;;  %v7829_v16 = vadd.f32 %v7828_v0, %v7675_v39  ;;  %v7866_v25 = vadd.f32 %v7865_v31, %v7676_v7  ;;  %v7903_v53 = vadd.f32 %v7902_v26, %v7677_v46  ;;  %v15536_v7 = vld [vmem:[#allocation72_spill] sm:$0xff]  ;;  %v15538_v46 = vld [vmem:[#allocation73_spill] sm:$0xff] }
 0x6cd   : > { %v7525_v42 = vpop.permute.xlu1 %7524  ;;  %v15537_v37 = vmax.f32 %v15536_v7, 0.0  ;;  %v15540_v0 = vld [vmem:[#allocation153_spill] sm:$0xff] }
 0x6ce   : > { %v7678_v14 = vmul.f32 %v7525_v42, %v15513_v33  ;;  %v7679_v40 = vmul.f32 %v7525_v42, %v15515_v15  ;;  %v7680_v13 = vmul.f32 %v7525_v42, %v15517_v1  ;;  %v7681_v6 = vmul.f32 %v7525_v42, %v15519_v20 }
 0x6cf   : > { %v14343_v10 = vpop.permute.xlu0 %7569  ;;  %v15541_v31 = vmax.f32 %v15540_v0, 0.0  ;;  %v15543_v33 = vmax.f32 %v15542_v60, 0.0 }
 0x6d0   : > { %v7793_v42 = vadd.f32 %v7792_v3, %v7678_v14  ;;  %v7830_v62 = vadd.f32 %v7829_v16, %v7679_v40  ;;  %v7867_v57 = vadd.f32 %v7866_v25, %v7680_v13  ;;  %v7904_v58 = vadd.f32 %v7903_v53, %v7681_v6  ;;  %v15544_v3 = vld [vmem:[#allocation75_spill] sm:$0xff]  ;;  %v15546_v53 = vld [vmem:[#allocation74_spill] sm:$0xff] }
 0x6d1   : > { %v7530_v52 = vpop.permute.xlu1 %7529  ;;  %v15545_v16 = vmax.f32 %v15544_v3, 0.0 }
 0x6d2   : > { %v7682_v55 = vmul.f32 %v7530_v52, %v15521_v45  ;;  %v7683_v32 = vmul.f32 %v7530_v52, %v15523_v19  ;;  %v7684_v27 = vmul.f32 %v7530_v52, %v15525_v34  ;;  %v7685_v63 = vmul.f32 %v7530_v52, %v15527_v18  ;;  %v15548_v45 = vld [vmem:[#allocation159_spill] sm:$0xff]  ;;  %v15550_v19 = vld [vmem:[#allocation156_spill] sm:$0xff] }
 0x6d3   : > { %v7580_v49 = vpop.permute.xlu0 %7579  ;;  %v15539_v52 = vmax.f32 %v15538_v46, 0.0 }
 0x6d4   : > { %v7794_v44 = vadd.f32 %v7793_v42, %v7682_v55  ;;  %v7831_v2 = vadd.f32 %v7830_v62, %v7683_v32  ;;  %v7868_v39 = vadd.f32 %v7867_v57, %v7684_v27  ;;  %v7905_v41 = vadd.f32 %v7904_v58, %v7685_v63  ;;  %v15552_v62 = vld [vmem:[#allocation76_spill] sm:$0xff] }
 0x6d5   : > { %v7535_v61 = vpop.permute.xlu1 %7534  ;;  %v15549_v55 = vmax.f32 %v15548_v45, 0.0  ;;  %v15551_v32 = vmax.f32 %v15550_v19, 0.0  ;;  %v15553_v57 = vmax.f32 %v15552_v62, 0.0  ;;  %v15578_v45 = vld [vmem:[#allocation85_spill] sm:$0xff] }
 0x6d6   : > { %v7686_v5 = vmul.f32 %v7535_v61, %v15529_v29  ;;  %v7687_v8 = vmul.f32 %v7535_v61, %v15531_v50  ;;  %v7688_v38 = vmul.f32 %v7535_v61, %v15533_v9  ;;  %v7689_v36 = vmul.f32 %v7535_v61, %v15535_v22  ;;  %v15580_v19 = vld [vmem:[#allocation165_spill] sm:$0xff] }
 0x6d7   : > { %v15547_v61 = vmax.f32 %v15546_v53, 0.0  ;;  %v7590_v34 = vpop.permute.xlu0 %7589  ;;  %v7698_v58 = vmul.f32 %v14299_v59, %v15553_v57  ;;  %v15555_v29 = vmax.f32 %v15554_v4, 0.0  ;;  %v15557_v50 = vmax.f32 %v15556_v43, 0.0  ;;  %v15576_v53 = vld [vmem:[#allocation84_spill] sm:$0xff]  ;;  %v15586_v57 = vld [vmem:[#allocation82_spill] sm:$0xff] }
 0x6d8   : > { %v7795_v54 = vadd.f32 %v7794_v44, %v7686_v5  ;;  %v7832_v15 = vadd.f32 %v7831_v2, %v7687_v8  ;;  %v7869_v40 = vadd.f32 %v7868_v39, %v7688_v38  ;;  %v7906_v12 = vadd.f32 %v7905_v41, %v7689_v36  ;;  %v15564_v39 = vld [vmem:[#allocation163_spill] sm:$0xff] }
 0x6d9   : > { %v7540_v56 = vpop.permute.xlu1 %7539  ;;  %v7699_v5 = vmul.f32 %v14299_v59, %v15555_v29  ;;  %v7700_v8 = vmul.f32 %v14299_v59, %v15557_v50  ;;  %v15559_v9 = vmax.f32 %v15558_v28, 0.0  ;;  %v15561_v22 = vmax.f32 %v15560_v35, 0.0  ;;  %v15588_v29 = vld [vmem:[#allocation167_spill] sm:$0xff]  ;;  %v15590_v50 = vld [vmem:[#allocation164_spill] sm:$0xff] }
 0x6da   : > { %v7690_v17 = vmul.f32 %v7540_v56, %v15537_v37  ;;  %v7691_v48 = vmul.f32 %v7540_v56, %v15539_v52  ;;  %v7692_v26 = vmul.f32 %v7540_v56, %v15541_v31  ;;  %v7693_v14 = vmul.f32 %v7540_v56, %v15543_v33  ;;  %v15562_v56 = vld [vmem:[#allocation78_spill] sm:$0xff]  ;;  %v15566_v37 = vld [vmem:[#allocation160_spill] sm:$0xff]  ;;  %v15570_v33 = vld [vmem:[#allocation81_spill] sm:$0xff] }
 0x6db   : > { %v7701_v38 = vmul.f32 %v14299_v59, %v15559_v9  ;;  %v15563_v44 = vmax.f32 %v15562_v56, 0.0  ;;  %v15565_v41 = vmax.f32 %v15564_v39, 0.0  ;;  %v15592_v56 = vld [vmem:[#allocation88_spill] sm:$0xff] }
 0x6dc   : > { %v7796_v13 = vadd.f32 %v7795_v54, %v7690_v17  ;;  %v7833_v51 = vadd.f32 %v7832_v15, %v7691_v48  ;;  %v7870_v20 = vadd.f32 %v7869_v40, %v7692_v26  ;;  %v7907_v6 = vadd.f32 %v7906_v12, %v7693_v14  ;;  %v15568_v26 = vld [vmem:[#allocation80_spill] sm:$0xff]  ;;  %v15572_v15 = vld [vmem:[#allocation161_spill] sm:$0xff] }
 0x6dd   : > { %v7545_v1 = vpop.permute.xlu1 %7544  ;;  %v15567_v17 = vmax.f32 %v15566_v37, 0.0  ;;  %v15569_v60 = vmax.f32 %v15568_v26, 0.0  ;;  %v15571_v14 = vmax.f32 %v15570_v33, 0.0  ;;  %v15573_v40 = vmax.f32 %v15572_v15, 0.0 }
 0x6de   : > { %v7694_v25 = vmul.f32 %v7545_v1, %v15545_v16  ;;  %v7695_v11 = vmul.f32 %v7545_v1, %v15547_v61  ;;  %v7696_v23 = vmul.f32 %v7545_v1, %v15549_v55  ;;  %v7697_v24 = vmul.f32 %v7545_v1, %v15551_v32  ;;  %v15574_v1 = vld [vmem:[#allocation158_spill] sm:$0xff] }
 0x6df   : > { %v7706_v59 = vmul.f32 %v14325_v30, %v15569_v60  ;;  %v7707_v54 = vmul.f32 %v14325_v30, %v15571_v14  ;;  %v7708_v12 = vmul.f32 %v14325_v30, %v15573_v40  ;;  %v15577_v61 = vmax.f32 %v15576_v53, 0.0 }
 0x6e0   : > { %v7797_v27 = vadd.f32 %v7796_v13, %v7694_v25  ;;  %v7834_v21 = vadd.f32 %v7833_v51, %v7695_v11  ;;  %v7871_v18 = vadd.f32 %v7870_v20, %v7696_v23  ;;  %v7908_v63 = vadd.f32 %v7907_v6, %v7697_v24 }
 0x6e1   : > { %v7555_v42 = vpop.permute.xlu1 %7554  ;;  %v15575_v13 = vmax.f32 %v15574_v1, 0.0  ;;  %v7714_v11 = vmul.f32 %v14343_v10, %v15577_v61  ;;  %v15579_v55 = vmax.f32 %v15578_v45, 0.0  ;;  %v15581_v32 = vmax.f32 %v15580_v19, 0.0  ;;  %v15608_v45 = vld [vmem:[#allocation92_spill] sm:$0xff] }
 0x6e2   : > { %v7702_v36 = vmul.f32 %v7555_v42, %v15561_v22  ;;  %v7703_v2 = vmul.f32 %v7555_v42, %v15563_v44  ;;  %v7704_v7 = vmul.f32 %v7555_v42, %v15565_v41  ;;  %v7705_v46 = vmul.f32 %v7555_v42, %v15567_v17 }
 0x6e3   : > { %v7798_v52 = vadd.f32 %v7797_v27, %v7698_v58  ;;  %v7835_v48 = vadd.f32 %v7834_v21, %v7699_v5  ;;  %v7872_v0 = vadd.f32 %v7871_v18, %v7700_v8  ;;  %v7909_v31 = vadd.f32 %v7908_v63, %v7701_v38  ;;  %v15582_v27 = vld [vmem:[#allocation162_spill] sm:$0xff]  ;;  %v7600_v18 = vpop.permute.xlu0 %7599  ;;  %v15584_v63 = vld [vmem:[#allocation83_spill] sm:$0xff] }
 0x6e4   : > { %v7709_v51 = vmul.f32 %v14325_v30, %v15575_v13  ;;  %v7715_v23 = vmul.f32 %v14343_v10, %v15579_v55  ;;  %v7716_v24 = vmul.f32 %v14343_v10, %v15581_v32  ;;  %v15583_v21 = vmax.f32 %v15582_v27, 0.0  ;;  %v15610_v32 = vld [vmem:[#allocation93_spill] sm:$0xff] }
 0x6e5   : > { %v7565_v20 = vpop.permute.xlu1 %7564  ;;  %v7799_v6 = vadd.f32 %v7798_v52, %v7702_v36  ;;  %v7836_v3 = vadd.f32 %v7835_v48, %v7703_v2  ;;  %v7873_v16 = vadd.f32 %v7872_v0, %v7704_v7  ;;  %v7910_v25 = vadd.f32 %v7909_v31, %v7705_v46  ;;  %v15594_v2 = vld [vmem:[#allocation89_spill] sm:$0xff]  ;;  %v15598_v46 = vld [vmem:[#allocation166_spill] sm:$0xff] }
 0x6e6   : > { %v7717_v30 = vmul.f32 %v14343_v10, %v15583_v21  ;;  %v15585_v42 = vmax.f32 %v15584_v63, 0.0  ;;  %v15587_v58 = vmax.f32 %v15586_v57, 0.0  ;;  %v15589_v5 = vmax.f32 %v15588_v29, 0.0  ;;  %v15596_v7 = vld [vmem:[#allocation169_spill] sm:$0xff]  ;;  %v15614_v57 = vld [vmem:[#allocation170_spill] sm:$0xff] }
 0x6e7   : > { %v15591_v8 = vmax.f32 %v15590_v50, 0.0  ;;  %v7800_v9 = vadd.f32 %v7799_v6, %v7706_v59  ;;  %v7837_v38 = vadd.f32 %v7836_v3, %v7707_v54  ;;  %v7874_v35 = vadd.f32 %v7873_v16, %v7708_v12  ;;  %v15600_v59 = vld [vmem:[#allocation87_spill] sm:$0xff]  ;;  %v15602_v54 = vld [vmem:[#allocation86_spill] sm:$0xff]  ;;  %v7610_v3 = vpop.permute.xlu0 %7609  ;;  %v15612_v63 = vld [vmem:[#allocation173_spill] sm:$0xff] }
 0x6e8   : > { %v7710_v62 = vmul.f32 %v7565_v20, %v15585_v42  ;;  %v7711_v4 = vmul.f32 %v7565_v20, %v15587_v58  ;;  %v7712_v43 = vmul.f32 %v7565_v20, %v15589_v5  ;;  %v7911_v22 = vadd.f32 %v7910_v25, %v7709_v51  ;;  %v15604_v12 = vld [vmem:[#allocation171_spill] sm:$0xff]  ;;  %v15606_v51 = vld [vmem:[#allocation168_spill] sm:$0xff]  ;;  %v15618_v50 = vld [vmem:[#allocation90_spill] sm:$0xff] }
 0x6e9   : > { %v7713_v28 = vmul.f32 %v7565_v20, %v15591_v8  ;;  %v7575_v36 = vpop.permute.xlu1 %7574  ;;  %v15593_v10 = vmax.f32 %v15592_v56, 0.0  ;;  %v15595_v39 = vmax.f32 %v15594_v2, 0.0  ;;  %v15597_v37 = vmax.f32 %v15596_v7, 0.0 }
 0x6ea   : > { %v15599_v52 = vmax.f32 %v15598_v46, 0.0  ;;  %v7801_v0 = vadd.f32 %v7800_v9, %v7710_v62  ;;  %v7838_v31 = vadd.f32 %v7837_v38, %v7711_v4  ;;  %v7875_v26 = vadd.f32 %v7874_v35, %v7712_v43  ;;  %v15620_v9 = vld [vmem:[#allocation175_spill] sm:$0xff] }
 0x6eb   : > { %v7722_v44 = vmul.f32 %v7580_v49, %v15593_v10  ;;  %v7723_v41 = vmul.f32 %v7580_v49, %v15595_v39  ;;  %v7724_v17 = vmul.f32 %v7580_v49, %v15597_v37  ;;  %v7912_v60 = vadd.f32 %v7911_v22, %v7713_v28  ;;  %v15622_v22 = vld [vmem:[#allocation172_spill] sm:$0xff] }
 0x6ec   : > { %v7725_v48 = vmul.f32 %v7580_v49, %v15599_v52  ;;  %v15601_v33 = vmax.f32 %v15600_v59, 0.0  ;;  %v15603_v15 = vmax.f32 %v15602_v54, 0.0  ;;  %v15605_v1 = vmax.f32 %v15604_v12, 0.0  ;;  %v15624_v37 = vld [vmem:[#allocation96_spill] sm:$0xff] }
 0x6ed   : > { %v15607_v20 = vmax.f32 %v15606_v51, 0.0  ;;  %v7802_v16 = vadd.f32 %v7801_v0, %v7714_v11  ;;  %v7839_v25 = vadd.f32 %v7838_v31, %v7715_v23  ;;  %v7876_v49 = vadd.f32 %v7875_v26, %v7716_v24  ;;  %v7585_v61 = vpop.permute.xlu1 %7584  ;;  %v15616_v23 = vld [vmem:[#allocation91_spill] sm:$0xff]  ;;  %v15626_v0 = vld [vmem:[#allocation97_spill] sm:$0xff]  ;;  %v15634_v51 = vld [vmem:[#allocation94_spill] sm:$0xff] }
 0x6ee   : > { %v7718_v14 = vmul.f32 %v7575_v36, %v15601_v33  ;;  %v7719_v40 = vmul.f32 %v7575_v36, %v15603_v15  ;;  %v7720_v13 = vmul.f32 %v7575_v36, %v15605_v1  ;;  %v7913_v53 = vadd.f32 %v7912_v60, %v7717_v30  ;;  %v15628_v60 = vld [vmem:[#allocation177_spill] sm:$0xff] }
 0x6ef   : > { %v7721_v6 = vmul.f32 %v7575_v36, %v15607_v20  ;;  %v15609_v55 = vmax.f32 %v15608_v45, 0.0  ;;  %v15611_v27 = vmax.f32 %v15610_v32, 0.0  ;;  %v15613_v42 = vmax.f32 %v15612_v63, 0.0 }
 0x6f0   : > { %v15615_v58 = vmax.f32 %v15614_v57, 0.0  ;;  %v7803_v29 = vadd.f32 %v7802_v16, %v7718_v14  ;;  %v7840_v5 = vadd.f32 %v7839_v25, %v7719_v40  ;;  %v7877_v43 = vadd.f32 %v7876_v49, %v7720_v13  ;;  %v15630_v14 = vld [vmem:[#allocation174_spill] sm:$0xff]  ;;  %v7620_v40 = vpop.permute.xlu0 %7619  ;;  %v15636_v16 = vld [vmem:[#allocation179_spill] sm:$0xff] }
 0x6f1   : > { %v7730_v19 = vmul.f32 %v7590_v34, %v15609_v55  ;;  %v7731_v21 = vmul.f32 %v7590_v34, %v15611_v27  ;;  %v7732_v62 = vmul.f32 %v7590_v34, %v15613_v42  ;;  %v7914_v11 = vadd.f32 %v7913_v53, %v7721_v6  ;;  %v7595_v7 = vpop.permute.xlu1 %7594  ;;  %v15638_v53 = vld [vmem:[#allocation176_spill] sm:$0xff]  ;;  %v15640_v42 = vld [vmem:[#allocation101_spill] sm:$0xff] }
 0x6f2   : > { %v7733_v4 = vmul.f32 %v7590_v34, %v15615_v58  ;;  %v15617_v24 = vmax.f32 %v15616_v23, 0.0  ;;  %v15619_v8 = vmax.f32 %v15618_v50, 0.0  ;;  %v15621_v38 = vmax.f32 %v15620_v9, 0.0 }
 0x6f3   : > { %v15623_v36 = vmax.f32 %v15622_v22, 0.0  ;;  %v7804_v10 = vadd.f32 %v7803_v29, %v7722_v44  ;;  %v7841_v2 = vadd.f32 %v7840_v5, %v7723_v41  ;;  %v7878_v39 = vadd.f32 %v7877_v43, %v7724_v17  ;;  %v15632_v17 = vld [vmem:[#allocation95_spill] sm:$0xff]  ;;  %v15642_v29 = vld [vmem:[#allocation102_spill] sm:$0xff] }
 0x6f4   : > { %v7726_v30 = vmul.f32 %v7585_v61, %v15617_v24  ;;  %v7727_v28 = vmul.f32 %v7585_v61, %v15619_v8  ;;  %v7728_v35 = vmul.f32 %v7585_v61, %v15621_v38  ;;  %v7915_v34 = vadd.f32 %v7914_v11, %v7725_v48  ;;  %v15644_v11 = vld [vmem:[#allocation181_spill] sm:$0xff] }
 0x6f5   : > { %v7729_v56 = vmul.f32 %v7585_v61, %v15623_v36  ;;  %v15625_v46 = vmax.f32 %v15624_v37, 0.0  ;;  %v15627_v31 = vmax.f32 %v15626_v0, 0.0  ;;  %v15629_v59 = vmax.f32 %v15628_v60, 0.0  ;;  %v7605_v63 = vpop.permute.xlu1 %7604  ;;  %v7630_v37 = vpop.permute.xlu0 %7629 }
 0x6f6   : > { %v15631_v54 = vmax.f32 %v15630_v14, 0.0  ;;  %v7805_v12 = vadd.f32 %v7804_v10, %v7726_v30  ;;  %v7842_v1 = vadd.f32 %v7841_v2, %v7727_v28  ;;  %v7879_v44 = vadd.f32 %v7878_v39, %v7728_v35  ;;  %v15646_v30 = vld [vmem:[#allocation178_spill] sm:$0xff]  ;;  %v15650_v35 = vld [vmem:[#allocation99_spill] sm:$0xff]  ;;  %v15654_v39 = vld [vmem:[#allocation180_spill] sm:$0xff] }
 0x6f7   : > { %v7738_v52 = vmul.f32 %v7600_v18, %v15625_v46  ;;  %v7739_v26 = vmul.f32 %v7600_v18, %v15627_v31  ;;  %v7740_v33 = vmul.f32 %v7600_v18, %v15629_v59  ;;  %v7916_v41 = vadd.f32 %v7915_v34, %v7729_v56  ;;  %v15652_v56 = vld [vmem:[#allocation98_spill] sm:$0xff]  ;;  %v15656_v59 = vld [vmem:[#allocation107_spill] sm:$0xff] }
 0x6f8   : > { %v7741_v15 = vmul.f32 %v7600_v18, %v15631_v54  ;;  %v15633_v48 = vmax.f32 %v15632_v17, 0.0  ;;  %v15635_v20 = vmax.f32 %v15634_v51, 0.0  ;;  %v15637_v25 = vmax.f32 %v15636_v16, 0.0 }
 0x6f9   : > { %v15639_v61 = vmax.f32 %v15638_v53, 0.0  ;;  %v7806_v55 = vadd.f32 %v7805_v12, %v7730_v19  ;;  %v7843_v32 = vadd.f32 %v7842_v1, %v7731_v21  ;;  %v7880_v18 = vadd.f32 %v7879_v44, %v7732_v62  ;;  %v15648_v21 = vld [vmem:[#allocation100_spill] sm:$0xff]  ;;  %v7615_v60 = vpop.permute.xlu1 %7614  ;;  %v15658_v12 = vld [vmem:[#allocation105_spill] sm:$0xff] }
 0x6fa   : > { %v7734_v13 = vmul.f32 %v7595_v7, %v15633_v48  ;;  %v7735_v6 = vmul.f32 %v7595_v7, %v15635_v20  ;;  %v7736_v49 = vmul.f32 %v7595_v7, %v15637_v25  ;;  %v7917_v27 = vadd.f32 %v7916_v41, %v7733_v4  ;;  %v15660_v41 = vld [vmem:[#allocation103_spill] sm:$0xff] }
 0x6fb   : > { %v7737_v45 = vmul.f32 %v7595_v7, %v15639_v61  ;;  %v15641_v57 = vmax.f32 %v15640_v42, 0.0  ;;  %v15643_v5 = vmax.f32 %v15642_v29, 0.0  ;;  %v15645_v23 = vmax.f32 %v15644_v11, 0.0 }
 0x6fc   : > { %v15647_v50 = vmax.f32 %v15646_v30, 0.0  ;;  %v7807_v28 = vadd.f32 %v7806_v55, %v7734_v13  ;;  %v7844_v9 = vadd.f32 %v7843_v32, %v7735_v6  ;;  %v7881_v38 = vadd.f32 %v7880_v18, %v7736_v49  ;;  %v15662_v13 = vld [vmem:[#allocation104_spill] sm:$0xff]  ;;  %v15666_v49 = vld [vmem:[#allocation110_spill] sm:$0xff]  ;;  %v15670_v18 = vld [vmem:[#allocation109_spill] sm:$0xff] }
 0x6fd   : > { %v7746_v58 = vmul.f32 %v7610_v3, %v15641_v57  ;;  %v7747_v43 = vmul.f32 %v7610_v3, %v15643_v5  ;;  %v7748_v24 = vmul.f32 %v7610_v3, %v15645_v23  ;;  %v7918_v19 = vadd.f32 %v7917_v27, %v7737_v45  ;;  %v15668_v45 = vld [vmem:[#allocation106_spill] sm:$0xff]  ;;  %v7625_v11 = vpop.permute.xlu1 %7624  ;;  %v15672_v23 = vld [vmem:[#allocation115_spill] sm:$0xff] }
 0x6fe   : > { %v7749_v8 = vmul.f32 %v7610_v3, %v15647_v50  ;;  %v15649_v62 = vmax.f32 %v15648_v21, 0.0  ;;  %v15651_v22 = vmax.f32 %v15650_v35, 0.0  ;;  %v15653_v10 = vmax.f32 %v15652_v56, 0.0 }
 0x6ff   : > { %v15655_v34 = vmax.f32 %v15654_v39, 0.0  ;;  %v7808_v46 = vadd.f32 %v7807_v28, %v7738_v52  ;;  %v7845_v0 = vadd.f32 %v7844_v9, %v7739_v26  ;;  %v7882_v3 = vadd.f32 %v7881_v38, %v7740_v33  ;;  %v15664_v26 = vld [vmem:[#allocation108_spill] sm:$0xff]  ;;  %v15674_v28 = vld [vmem:[#allocation113_spill] sm:$0xff] }
 0x700   : > { %v7742_v4 = vmul.f32 %v7605_v63, %v15649_v62  ;;  %v7743_v36 = vmul.f32 %v7605_v63, %v15651_v22  ;;  %v7744_v2 = vmul.f32 %v7605_v63, %v15653_v10  ;;  %v7919_v31 = vadd.f32 %v7918_v19, %v7741_v15  ;;  %v15676_v19 = vld [vmem:[#allocation111_spill] sm:$0xff] }
 0x701   : > { %v7745_v7 = vmul.f32 %v7605_v63, %v15655_v34  ;;  %v15657_v14 = vmax.f32 %v15656_v59, 0.0  ;;  %v15659_v1 = vmax.f32 %v15658_v12, 0.0  ;;  %v15661_v17 = vmax.f32 %v15660_v41, 0.0 }
 0x702   : > { %v15663_v51 = vmax.f32 %v15662_v13, 0.0  ;;  %v7809_v6 = vadd.f32 %v7808_v46, %v7742_v4  ;;  %v7846_v16 = vadd.f32 %v7845_v0, %v7743_v36  ;;  %v7883_v25 = vadd.f32 %v7882_v3, %v7744_v2  ;;  %v15678_v4 = vld [vmem:[#allocation112_spill] sm:$0xff]  ;;  %v7640_v36 = vpop.permute.xlu0 %7639  ;;  %v15682_v2 = vld [vmem:[#allocation118_spill] sm:$0xff]  ;;  %v15686_v3 = vld [vmem:[#allocation117_spill] sm:$0xff] }
 0x703   : > { %v7750_v54 = vmul.f32 %v7615_v60, %v15657_v14  ;;  %v7751_v44 = vmul.f32 %v7615_v60, %v15659_v1  ;;  %v7752_v48 = vmul.f32 %v7615_v60, %v15661_v17  ;;  %v7920_v52 = vadd.f32 %v7919_v31, %v7745_v7  ;;  %v15684_v7 = vld [vmem:[#allocation114_spill] sm:$0xff] }
 0x704   : > { %v7753_v20 = vmul.f32 %v7615_v60, %v15663_v51  ;;  %v15665_v33 = vmax.f32 %v15664_v26, 0.0  ;;  %v15667_v53 = vmax.f32 %v15666_v49, 0.0  ;;  %v15669_v55 = vmax.f32 %v15668_v45, 0.0 }
 0x705   : > { %v15671_v27 = vmax.f32 %v15670_v18, 0.0  ;;  %v7810_v42 = vadd.f32 %v7809_v6, %v7746_v58  ;;  %v7847_v57 = vadd.f32 %v7846_v16, %v7747_v43  ;;  %v7884_v29 = vadd.f32 %v7883_v25, %v7748_v24  ;;  %v15680_v24 = vld [vmem:[#allocation116_spill] sm:$0xff] }
 0x706   : > { %v7754_v15 = vmul.f32 %v7620_v40, %v15665_v33  ;;  %v7755_v61 = vmul.f32 %v7620_v40, %v15667_v53  ;;  %v7756_v32 = vmul.f32 %v7620_v40, %v15669_v55  ;;  %v7921_v5 = vadd.f32 %v7920_v52, %v7749_v8  ;;  %v15694_v25 = vld [vmem:[#allocation120_spill] sm:$0xff]  ;;  %v15698_v55 = vld [vmem:[#allocation126_spill] sm:$0xff] }
 0x707   : > { %v7757_v63 = vmul.f32 %v7620_v40, %v15671_v27  ;;  %v15673_v30 = vmax.f32 %v15672_v23, 0.0  ;;  %v15675_v9 = vmax.f32 %v15674_v28, 0.0  ;;  %v15677_v21 = vmax.f32 %v15676_v19, 0.0  ;;  %v15696_v53 = vld [vmem:[#allocation124_spill] sm:$0xff]  ;;  %v15700_v27 = vld [vmem:[#allocation122_spill] sm:$0xff] }
 0x708   : > { %v15679_v35 = vmax.f32 %v15678_v4, 0.0  ;;  %v7811_v56 = vadd.f32 %v7810_v42, %v7750_v54  ;;  %v7848_v40 = vadd.f32 %v7847_v57, %v7751_v44  ;;  %v7885_v58 = vadd.f32 %v7884_v29, %v7752_v48  ;;  %v7635_v54 = vpop.permute.xlu1 %7634  ;;  %v15688_v44 = vld [vmem:[#allocation123_spill] sm:$0xff]  ;;  %v15690_v48 = vld [vmem:[#allocation121_spill] sm:$0xff] }
 0x709   : > { %v7758_v50 = vmul.f32 %v7625_v11, %v15673_v30  ;;  %v7759_v38 = vmul.f32 %v7625_v11, %v15675_v9  ;;  %v7760_v62 = vmul.f32 %v7625_v11, %v15677_v21  ;;  %v7922_v43 = vadd.f32 %v7921_v5, %v7753_v20  ;;  %v15692_v20 = vld [vmem:[#allocation119_spill] sm:$0xff]  ;;  %v15702_v57 = vld [vmem:[#allocation125_spill] sm:$0xff] }
 0x70a   : > { %v7761_v22 = vmul.f32 %v7625_v11, %v15679_v35  ;;  %v15681_v8 = vmax.f32 %v15680_v24, 0.0  ;;  %v15683_v39 = vmax.f32 %v15682_v2, 0.0  ;;  %v15685_v46 = vmax.f32 %v15684_v7, 0.0  ;;  %v7650_v11 = vpop.permute.xlu0 %7649 }
 0x70b   : > { %v15687_v31 = vmax.f32 %v15686_v3, 0.0  ;;  %v7812_v59 = vadd.f32 %v7811_v56, %v7754_v15  ;;  %v7849_v14 = vadd.f32 %v7848_v40, %v7755_v61  ;;  %v7886_v12 = vadd.f32 %v7885_v58, %v7756_v32  ;;  %v15710_v58 = vld [vmem:[#allocation128_spill] sm:$0xff] }
 0x70c   : > { %v7762_v10 = vmul.f32 %v7630_v37, %v15681_v8  ;;  %v7763_v34 = vmul.f32 %v7630_v37, %v15683_v39  ;;  %v7764_v0 = vmul.f32 %v7630_v37, %v15685_v46  ;;  %v7923_v1 = vadd.f32 %v7922_v43, %v7757_v63  ;;  %v7645_v9 = vpop.permute.xlu1 %7644  ;;  %v15712_v39 = vld [vmem:[#allocation132_spill] sm:$0xff]  ;;  %v15714_v46 = vld [vmem:[#allocation133_spill] sm:$0xff] }
 0x70d   : > { %v7765_v60 = vmul.f32 %v7630_v37, %v15687_v31  ;;  %v15689_v41 = vmax.f32 %v15688_v44, 0.0  ;;  %v15691_v13 = vmax.f32 %v15690_v48, 0.0  ;;  %v15693_v6 = vmax.f32 %v15692_v20, 0.0  ;;  %v15716_v31 = vld [vmem:[#allocation130_spill] sm:$0xff] }
 0x70e   : > { %v15695_v52 = vmax.f32 %v15694_v25, 0.0  ;;  %v7813_v33 = vadd.f32 %v7812_v59, %v7758_v50  ;;  %v7850_v49 = vadd.f32 %v7849_v14, %v7759_v38  ;;  %v7887_v37 = vadd.f32 %v7886_v12, %v7760_v62  ;;  %v15704_v38 = vld [vmem:[#allocation131_spill] sm:$0xff]  ;;  %v15706_v62 = vld [vmem:[#allocation129_spill] sm:$0xff]  ;;  %v15718_v14 = vld [vmem:[#allocation182_spill] sm:$0xff] }
 0x70f   : > { %v7766_v17 = vmul.f32 %v7635_v54, %v15689_v41  ;;  %v7767_v51 = vmul.f32 %v7635_v54, %v15691_v13  ;;  %v7768_v16 = vmul.f32 %v7635_v54, %v15693_v6  ;;  %v7924_v15 = vadd.f32 %v7923_v1, %v7761_v22  ;;  %v15708_v22 = vld [vmem:[#allocation127_spill] sm:$0xff]  ;;  %v15720_v13 = vld [vmem:[#allocation137_spill] sm:$0xff]  ;;  %v15722_v6 = vld [vmem:[#allocation136_spill] sm:$0xff] }
 0x710   : > { %v7769_v26 = vmul.f32 %v7635_v54, %v15695_v52  ;;  %v15697_v61 = vmax.f32 %v15696_v53, 0.0  ;;  %v15699_v32 = vmax.f32 %v15698_v55, 0.0  ;;  %v15701_v63 = vmax.f32 %v15700_v27, 0.0  ;;  %v15724_v52 = vld [vmem:[#allocation134_spill] sm:$0xff]  ;;  %v7660_v53 = vpop.permute.xlu0 %7659 }
 0x711   : > { %v15703_v29 = vmax.f32 %v15702_v57, 0.0  ;;  %v7814_v23 = vadd.f32 %v7813_v33, %v7762_v10  ;;  %v7851_v30 = vadd.f32 %v7850_v49, %v7763_v34  ;;  %v7888_v28 = vadd.f32 %v7887_v37, %v7764_v0  ;;  %v15726_v49 = vld [vmem:[#allocation184_spill] sm:$0xff]  ;;  %v15728_v57 = vld [vmem:[#allocation138_spill] sm:$0xff] }
 0x712   : > { %v7770_v45 = vmul.f32 %v7640_v36, %v15697_v61  ;;  %v7771_v18 = vmul.f32 %v7640_v36, %v15699_v32  ;;  %v7772_v42 = vmul.f32 %v7640_v36, %v15701_v63  ;;  %v7925_v50 = vadd.f32 %v7924_v15, %v7765_v60 }
 0x713   : > { %v7773_v5 = vmul.f32 %v7640_v36, %v15703_v29  ;;  %v15705_v19 = vmax.f32 %v15704_v38, 0.0  ;;  %v15707_v4 = vmax.f32 %v15706_v62, 0.0  ;;  %v15709_v56 = vmax.f32 %v15708_v22, 0.0  ;;  %v15734_v38 = vld [vmem:[#allocation183_spill] sm:$0xff] }
 0x714   : > { %v15711_v43 = vmax.f32 %v15710_v58, 0.0  ;;  %v7815_v8 = vadd.f32 %v7814_v23, %v7766_v17  ;;  %v7852_v36 = vadd.f32 %v7851_v30, %v7767_v51  ;;  %v7889_v2 = vadd.f32 %v7888_v28, %v7768_v16  ;;  %v7655_v17 = vpop.permute.xlu1 %7654  ;;  %v15732_v28 = vld [vmem:[#allocation185_spill] sm:$0xff] }
 0x715   : > { %v7774_v21 = vmul.f32 %v7645_v9, %v15705_v19  ;;  %v7775_v35 = vmul.f32 %v7645_v9, %v15707_v4  ;;  %v7776_v40 = vmul.f32 %v7645_v9, %v15709_v56  ;;  %v7926_v10 = vadd.f32 %v7925_v50, %v7769_v26 }
 0x716   : > { %v7777_v24 = vmul.f32 %v7645_v9, %v15711_v43  ;;  %v15713_v34 = vmax.f32 %v15712_v39, 0.0  ;;  %v15715_v0 = vmax.f32 %v15714_v46, 0.0  ;;  %v15717_v60 = vmax.f32 %v15716_v31, 0.0 }
 0x717   : > { %v15719_v12 = vmax.f32 %v15718_v14, 0.0  ;;  %v7816_v54 = vadd.f32 %v7815_v8, %v7770_v45  ;;  %v7853_v44 = vadd.f32 %v7852_v36, %v7771_v18  ;;  %v7890_v41 = vadd.f32 %v7889_v2, %v7772_v42 }
 0x718   : > { %v7778_v7 = vmul.f32 %v7650_v11, %v15713_v34  ;;  %v7779_v3 = vmul.f32 %v7650_v11, %v15715_v0  ;;  %v7780_v59 = vmul.f32 %v7650_v11, %v15717_v60  ;;  %v7927_v48 = vadd.f32 %v7926_v10, %v7773_v5 }
 0x719   : > { %v7781_v1 = vmul.f32 %v7650_v11, %v15719_v12  ;;  %v15721_v51 = vmax.f32 %v15720_v13, 0.0  ;;  %v15723_v16 = vmax.f32 %v15722_v6, 0.0  ;;  %v15725_v26 = vmax.f32 %v15724_v52, 0.0  ;;  %v15730_v11 = vld [vmem:[#allocation140_spill] sm:$0xff] }
 0x71a   : > { %v15727_v37 = vmax.f32 %v15726_v49, 0.0  ;;  %v7817_v61 = vadd.f32 %v7816_v54, %v7774_v21  ;;  %v7854_v55 = vadd.f32 %v7853_v44, %v7775_v35  ;;  %v7891_v45 = vadd.f32 %v7890_v41, %v7776_v40 }
 0x71b   : > { %v7782_v20 = vmul.f32 %v7655_v17, %v15721_v51  ;;  %v7783_v25 = vmul.f32 %v7655_v17, %v15723_v16  ;;  %v7784_v33 = vmul.f32 %v7655_v17, %v15725_v26  ;;  %v7928_v32 = vadd.f32 %v7927_v48, %v7777_v24  ;;  %v15736_v51 = vld [vmem:[#allocation23_spill] sm:$0xff]  ;;  %v7495_v26 = vpop.permute.xlu1 %7494 }
 0x71c   : > { %v7785_v15 = vmul.f32 %v7655_v17, %v15727_v37  ;;  %v7818_v18 = vadd.f32 %v7817_v61, %v7778_v7  ;;  %v7855_v27 = vadd.f32 %v7854_v55, %v7779_v3  ;;  %v7892_v63 = vadd.f32 %v7891_v45, %v7780_v59  ;;  %v7491_v61 = vld [vmem:[#allocation2] sm:$0xf] }
 0x71d   : > { %v7929_v42 = vadd.f32 %v7928_v32, %v7781_v1  ;;  %v15729_v29 = vmax.f32 %v15728_v57, 0.0  ;;  %v15731_v23 = vmax.f32 %v15730_v11, 0.0  ;;  %v15733_v50 = vmax.f32 %v15732_v28, 0.0  ;;  %v8008_v57 = vld [vmem:[#allocation15 + $0x88] sm:$0xff] (!%p9008_p11)  ;;  %v8039_v11 = vld [vmem:[#allocation15 + $0x180] sm:$0xff] (!%p9008_p11) }
 0x71e   : > { %v15735_v19 = vmax.f32 %v15734_v38, 0.0  ;;  %v7819_v21 = vadd.f32 %v7818_v18, %v7782_v20  ;;  %v7856_v4 = vadd.f32 %v7855_v27, %v7783_v25  ;;  %v7893_v35 = vadd.f32 %v7892_v63, %v7784_v33  ;;  %v7979_v63 = vld [vmem:[#allocation4] sm:$0x1] (!%p9008_p11)  ;;  %v7992_v28 = vld [vmem:[#allocation15 + $0x8] sm:$0xff] (!%p9008_p11) }
 0x71f   : > { %v7786_v5 = vmul.f32 %v7660_v53, %v15729_v29  ;;  %v7787_v30 = vmul.f32 %v7660_v53, %v15731_v23  ;;  %v7788_v9 = vmul.f32 %v7660_v53, %v15733_v50  ;;  %v7930_v22 = vadd.f32 %v7929_v42, %v7785_v15  ;;  %v8007_v42 = vld [vmem:[#allocation15 + $0x80] sm:$0xff] (!%p9008_p11)  ;;  %v8040_v23 = vld [vmem:[#allocation15 + $0x188] sm:$0xff] (!%p9008_p11) }
 0x720   : > { %v7789_v62 = vmul.f32 %v7660_v53, %v15735_v19  ;;  %v11353_v10 = vmov 1966171168   ;;  %v7500_v53 = vrot.slane %v7495_v26, %v15479_v47  ;;  %v15737_v18 = vlaneseq  ;;  %v7991_v47 = vld [vmem:[#allocation15] sm:$0xff] (!%p9008_p11) }
 0x721   : > { %v7820_v56 = vadd.f32 %v7819_v21, %v7786_v5  ;;  %v7857_v40 = vadd.f32 %v7856_v4, %v7787_v30  ;;  %v7894_v58 = vadd.f32 %v7893_v35, %v7788_v9  ;;  %v7945_v39 = vunpack.c.l.s4 %v11353_v10  ;;  %v8023_v50 = vld [vmem:[#allocation15 + $0x100] sm:$0xff] (!%p9008_p11)  ;;  %v8024_v9 = vld [vmem:[#allocation15 + $0x108] sm:$0xff] (!%p9008_p11)  ;;  %v8010_v21 = vld [vmem:[#allocation15 + $0x98] sm:$0xff] (!%p9008_p11) }
 0x722   : > { %v7931_v43 = vadd.f32 %v7930_v22, %v7789_v62  ;;  %v7501_v32 = vmul.f32 %v7500_v53, %v7491_v61  ;;  %vm7970_vm3 = vcmp.lt.s32.totalorder %v15737_v18, 512  ;;  %v11354_v29 = vmov (!%p9008_p11), 0   ;;  %v8009_v62 = vld [vmem:[#allocation15 + $0x90] sm:$0xff] (!%p9008_p11)  ;;  %v8042_v22 = vld [vmem:[#allocation15 + $0x198] sm:$0xff] (!%p9008_p11)  ;;  %v8012_v10 = vld [vmem:[#allocation15 + $0xa8] sm:$0xff] (!%p9008_p11) }
 0x723   : > { %v7821_v24 = vrot.slane %v7820_v56, 4  ;;  %v7858_v8 = vrot.slane %v7857_v40, 4  ;;  %v7895_v36 = vrot.slane %v7894_v58, 4  ;;  %v7946_v14 = vunpack.c.0.s8 %v7945_v39  ;;  %11118 = vset.pattern.permute.xlu0 (!%p9008_p11), %v11354_v29  ;;  %v8041_v4 = vld [vmem:[#allocation15 + $0x190] sm:$0xff] (!%p9008_p11)  ;;  %v8043_v39 = vld [vmem:[#allocation15 + $0x1a0] sm:$0xff] (!%p9008_p11)  ;;  %v8002_v29 = vld [vmem:[#allocation15 + $0x58] sm:$0xff] (!%p9008_p11) }
 0x724   : > { %v7932_v2 = vrot.slane %v7931_v43, 4  ;;  %v9139_v5 = vpack.c.bf16 (!%p9008_p11), %v8008_v57, %v8007_v42  ;;  %7982 = vperm.xlu0 (!%p9008_p11), %11118, %v7979_v63   ;;  %v9171_v30 = vpack.c.bf16 (!%p9008_p11), %v8040_v23, %v8039_v11  ;;  %v9141_v38 = vpack.c.bf16 (!%p9008_p11), %v7992_v28, %v7991_v47  ;;  %v8031_v61 = vld [vmem:[#allocation15 + $0x140] sm:$0xff] (!%p9008_p11)  ;;  %v8049_v18 = vld [vmem:[#allocation15 + $0x1d0] sm:$0xff] (!%p9008_p11)  ;;  %v8034_v47 = vld [vmem:[#allocation15 + $0x158] sm:$0xff] (!%p9008_p11) }
 0x725   : > { %v7822_v34 = vadd.f32 %v7821_v24, %v7820_v56  ;;  %v7859_v7 = vadd.f32 %v7858_v8, %v7857_v40  ;;  %v7896_v46 = vadd.f32 %v7895_v36, %v7894_v58  ;;  %v7949_v20 = vsub.s32 %v7946_v14, %v15736_v51  ;;  %v7993_v56 = vld [vmem:[#allocation15 + $0x10] sm:$0xff] (!%p9008_p11)  ;;  %v7994_v40 = vld [vmem:[#allocation15 + $0x18] sm:$0xff] (!%p9008_p11)  ;;  %v8011_v36 = vld [vmem:[#allocation15 + $0xa0] sm:$0xff] (!%p9008_p11) }
 0x726   : > { %v7933_v0 = vadd.f32 %v7932_v2, %v7931_v43  ;;  %9140 = vmatprep.subr.bf16.mxu0 (!%p9008_p11), %v9139_v5  ;;  %v9173_v19 = vpack.c.bf16 (!%p9008_p11), %v8024_v9, %v8023_v50  ;;  %9172 = vmatprep.subr.bf16.mxu1 (!%p9008_p11), %v9171_v30  ;;  %v9143_v35 = vpack.c.bf16 (!%p9008_p11), %v8010_v21, %v8009_v62  ;;  %v8025_v24 = vld [vmem:[#allocation15 + $0x110] sm:$0xff] (!%p9008_p11)  ;;  %v8026_v8 = vld [vmem:[#allocation15 + $0x118] sm:$0xff] (!%p9008_p11)  ;;  %v8019_v30 = vld [vmem:[#allocation15 + $0xe0] sm:$0xff] (!%p9008_p11) }
 0x727   : > { %v7823_v3 = vrot.slane %v7822_v34, 2  ;;  %v7860_v31 = vrot.slane %v7859_v7, 2  ;;  %v7897_v60 = vrot.slane %v7896_v46, 2  ;;  %9142 = vmatpush3.bf16.msra.mxu0 (!%p9008_p11), %v9141_v38  ;;  %v9175_v58 = vpack.c.bf16 (!%p9008_p11), %v8042_v22, %v8041_v4  ;;  %v8014_v14 = vld [vmem:[#allocation15 + $0xb8] sm:$0xff] (!%p9008_p11)  ;;  %v8029_v51 = vld [vmem:[#allocation15 + $0x130] sm:$0xff] (!%p9008_p11)  ;;  %v8020_v28 = vld [vmem:[#allocation15 + $0xe8] sm:$0xff] (!%p9008_p11) }
 0x728   : > { %v7934_v59 = vrot.slane %v7933_v0, 2  ;;  %9174 = vmatpush3.bf16.msra.mxu1 (!%p9008_p11), %v9173_v19  ;;  %v9145_v43 = vpack.c.bf16 (!%p9008_p11), %v7994_v40, %v7993_v56  ;;  %9144 = vmatprep.subr.bf16.mxu0 (!%p9008_p11), %v9143_v35  ;;  %v9177_v2 = vpack.c.bf16 (!%p9008_p11), %v8026_v8, %v8025_v24  ;;  %v8001_v57 = vld [vmem:[#allocation15 + $0x50] sm:$0xff] (!%p9008_p11)  ;;  %v8051_v50 = vld [vmem:[#allocation15 + $0x1e0] sm:$0xff] (!%p9008_p11)  ;;  %v8052_v9 = vld [vmem:[#allocation15 + $0x1e8] sm:$0xff] (!%p9008_p11)  ;;  %v9163_v4 = vpack.c.bf16 (!%p9008_p11), %v8020_v28, %v8019_v30 }
 0x729   : > { %v7824_v12 = vadd.f32 %v7823_v3, %v7822_v34  ;;  %v7861_v1 = vadd.f32 %v7860_v31, %v7859_v7  ;;  %v7898_v54 = vadd.f32 %v7897_v60, %v7896_v46  ;;  %v8044_v34 = vld [vmem:[#allocation15 + $0x1a8] sm:$0xff] (!%p9008_p11)  ;;  %9176 = vmatprep.subr.bf16.mxu1 (!%p9008_p11), %v9175_v58  ;;  %v9147_v7 = vpack.c.bf16 (!%p9008_p11), %v8012_v10, %v8011_v36  ;;  %v8027_v31 = vld [vmem:[#allocation15 + $0x120] sm:$0xff] (!%p9008_p11)  ;;  %v8033_v23 = vld [vmem:[#allocation15 + $0x150] sm:$0xff] (!%p9008_p11) }
 0x72a   : > { %v7935_v44 = vadd.f32 %v7934_v59, %v7933_v0  ;;  %v9179_v46 = vpack.c.bf16 (!%p9008_p11), %v8044_v34, %v8043_v39  ;;  %v7995_v0 = vld [vmem:[#allocation15 + $0x20] sm:$0xff] (!%p9008_p11)  ;;  %v7996_v3 = vld [vmem:[#allocation15 + $0x28] sm:$0xff] (!%p9008_p11)  ;;  %v8013_v59 = vld [vmem:[#allocation15 + $0xb0] sm:$0xff] (!%p9008_p11)  ;;  %v9161_v38 = vpack.c.bf16 (!%p9008_p11), %v8002_v29, %v8001_v57  ;;  %v9193_v19 = vpack.c.bf16 (!%p9008_p11), %v8034_v47, %v8033_v23 }
 0x72b   : > { %v7825_v41 = vrot.slane %v7824_v12, 1  ;;  %v7862_v48 = vrot.slane %v7861_v1, 1  ;;  %v7899_v17 = vrot.slane %v7898_v54, 1  ;;  %v8028_v60 = vld [vmem:[#allocation15 + $0x128] sm:$0xff] (!%p9008_p11)  ;;  %9146 = vmatpush3.bf16.msra.mxu0 (!%p9008_p11), %v9145_v43  ;;  %v8003_v62 = vld [vmem:[#allocation15 + $0x60] sm:$0xff] (!%p9008_p11)  ;;  %v9195_v35 = vpack.c.bf16 (!%p9008_p11), %v8052_v9, %v8051_v50  ;;  %v8021_v40 = vld [vmem:[#allocation15 + $0xf0] sm:$0xff] (!%p9008_p11) }
 0x72c   : > { %v7936_v13 = vrot.slane %v7935_v44, 1  ;;  %9178 = vmatpush3.bf16.msra.mxu1 (!%p9008_p11), %v9177_v2  ;;  %9148 = vmatprep.subr.bf16.mxu0 (!%p9008_p11), %v9147_v7  ;;  %v8004_v21 = vld [vmem:[#allocation15 + $0x68] sm:$0xff] (!%p9008_p11)  ;;  %v8035_v22 = vld [vmem:[#allocation15 + $0x160] sm:$0xff] (!%p9008_p11)  ;;  %v8022_v58 = vld [vmem:[#allocation15 + $0xf8] sm:$0xff] (!%p9008_p11)  ;;  %v11357_v28 = vmov (!%p9008_p11), 0.0  }
 0x72d   : > { %v7826_v6 = vadd.f32 %v7825_v41, %v7824_v12  ;;  %v7863_v16 = vadd.f32 %v7862_v48, %v7861_v1  ;;  %v7900_v25 = vadd.f32 %v7899_v17, %v7898_v54  ;;  %v9149_v12 = vpack.c.bf16 (!%p9008_p11), %v7996_v3, %v7995_v0  ;;  %v8045_v54 = vld [vmem:[#allocation15 + $0x1b0] sm:$0xff] (!%p9008_p11)  ;;  %9180 = vmatprep.subr.bf16.mxu1 (!%p9008_p11), %v9179_v46  ;;  %v8036_v56 = vld [vmem:[#allocation15 + $0x168] sm:$0xff] (!%p9008_p11)  ;;  %v8054_v24 = vld [vmem:[#allocation15 + $0x1f8] sm:$0xff] (!%p9008_p11) }
 0x72e   : > { %v7937_v52 = vadd.f32 %v7936_v13, %v7935_v44  ;;  %v9181_v1 = vpack.c.bf16 (!%p9008_p11), %v8028_v60, %v8027_v31  ;;  %v8046_v44 = vld [vmem:[#allocation15 + $0x1b8] sm:$0xff] (!%p9008_p11)  ;;  %v7997_v41 = vld [vmem:[#allocation15 + $0x30] sm:$0xff] (!%p9008_p11)  ;;  %v9151_v48 = vpack.c.bf16 (!%p9008_p11), %v8014_v14, %v8013_v59  ;;  %v9165_v8 = vpack.c.bf16 (!%p9008_p11), %v8004_v21, %v8003_v62  ;;  %v8232_v23 = vld [vmem:[%s15739_s4 + $0x70] sm:$0xff] (!%p9008_p11) }
 0x72f   : > { %v7942_v33 = vcombine.low %v7826_v6, %v7863_v16  ;;  %v9183_v17 = vpack.c.bf16 (!%p9008_p11), %v8046_v44, %v8045_v54  ;;  %v7998_v13 = vld [vmem:[#allocation15 + $0x38] sm:$0xff] (!%p9008_p11)  ;;  %v8015_v6 = vld [vmem:[#allocation15 + $0xc0] sm:$0xff] (!%p9008_p11)  ;;  %v8016_v16 = vld [vmem:[#allocation15 + $0xc8] sm:$0xff] (!%p9008_p11)  ;;  %9150 = vmatpush3.bf16.msra.mxu0 (!%p9008_p11), %v9149_v12  ;;  %v9197_v36 = vpack.c.bf16 (!%p9008_p11), %v8036_v56, %v8035_v22  ;;  %v9167_v10 = vpack.c.bf16 (!%p9008_p11), %v8022_v58, %v8021_v40 }
 0x730   : > { %v7943_v49 = vcombine.low %v7900_v25, %v7937_v52  ;;  %v8047_v25 = vld [vmem:[#allocation15 + $0x1c0] sm:$0xff] (!%p9008_p11)  ;;  %v8048_v52 = vld [vmem:[#allocation15 + $0x1c8] sm:$0xff] (!%p9008_p11)  ;;  %9182 = vmatpush3.bf16.msra.mxu1 (!%p9008_p11), %v9181_v1  ;;  %v9153_v26 = vpack.c.bf16 (!%p9008_p11), %v7998_v13, %v7997_v41  ;;  %9152 = vmatprep.subr.bf16.mxu0 (!%p9008_p11), %v9151_v48  ;;  %v8053_v43 = vld [vmem:[#allocation15 + $0x1f0] sm:$0xff] (!%p9008_p11)  ;;  %v11355_v31 = vmov (!%p9008_p11), 0.0|0.0  }
 0x731   : > { %v7950_v37 = vrot.slane %v7942_v33, %v7949_v20  ;;  %9184 = vmatprep.subr.bf16.mxu1 (!%p9008_p11), %v9183_v17  ;;  %v9187_v53 = vpack.c.bf16 (!%p9008_p11), %v8048_v52, %v8047_v25  ;;  %v8005_v2 = vld [vmem:[#allocation15 + $0x70] sm:$0xff] (!%p9008_p11)  ;;  %v9199_v39 = vpack.c.bf16 (!%p9008_p11), %v8054_v24, %v8053_v43  ;;  %v8006_v34 = vld [vmem:[#allocation15 + $0x78] sm:$0xff] (!%p9008_p11)  ;;  %v8219_v54 = vld [vmem:[%s15739_s4 + $0x8] sm:$0xff] (!%p9008_p11) }
 0x732   : > { %v7957_v15 = vrot.slane %v7943_v49, %v7949_v20  ;;  %v7999_v49 = vld [vmem:[#allocation15 + $0x40] sm:$0xff] (!%p9008_p11)  ;;  %v8037_v7 = vld [vmem:[#allocation15 + $0x170] sm:$0xff] (!%p9008_p11)  ;;  %v8038_v46 = vld [vmem:[#allocation15 + $0x178] sm:$0xff] (!%p9008_p11)  ;;  %v9169_v0 = vpack.c.bf16 (!%p9008_p11), %v8006_v34, %v8005_v2 }
 0x733   : > { %9154 = vmatpush3.bf16.msra.mxu0 (!%p9008_p11), %v9153_v26  ;;  %v9201_v3 = vpack.c.bf16 (!%p9008_p11), %v8038_v46, %v8037_v7  ;;  %v15738_v59 = vld [vmem:[#allocation57_spill] sm:$0xff] (!%p9008_p11)  ;;  %v15740_v17 = vld [vmem:[#allocation56_spill] sm:$0xff] (!%p9008_p11)  ;;  %v8234_v40 = vld [vmem:[#allocation6] sm:$0x1] (!%p9008_p11) }
 0x734   : > { %v7958_v55 = vcombine.low %v7950_v37, %v7957_v15  ;;  %7977 = sbr.rel (%p9008_p11) target bundleno = 2436 (0x984), region = 100  ;;  %v8000_v37 = vld [vmem:[#allocation15 + $0x48] sm:$0xff] (!%p9008_p11)  ;;  %v9155_v15 = vpack.c.bf16 (!%p9008_p11), %v8016_v16, %v8015_v6  ;;  %v8218_v1 = vld [vmem:[%s15739_s4] sm:$0xff] (!%p9008_p11)  ;;  %v8233_v47 = vld [vmem:[%s15739_s4 + $0x78] sm:$0xff] (!%p9008_p11) }
 0x735   : > { %v9157_v63 = vpack.c.bf16 (!%p9008_p11), %v8000_v37, %v7999_v49  ;;  %v9204_v48 = vpack.c.bf16 (!%p9008_p11), %v8219_v54, %v8218_v1  ;;  %v8220_v26 = vld [vmem:[%s15739_s4 + $0x10] sm:$0xff] (!%p9008_p11)  ;;  %v8222_v37 = vld [vmem:[%s15739_s4 + $0x20] sm:$0xff] (!%p9008_p11)  ;;  %v9225_v30 = vpack.c.bf16 (!%p9008_p11), %v8233_v47, %v8232_v23 }
 0x736   : > { %v7965_v45 = vrot.slane %v7958_v55, %v7949_v20  ;;  %v8030_v20 = vld [vmem:[#allocation15 + $0x138] sm:$0xff] (!%p9008_p11)  ;;  %v8032_v55 = vld [vmem:[#allocation15 + $0x148] sm:$0xff] (!%p9008_p11)  ;;  %9156 = vmatprep.subr.bf16.mxu0 (!%p9008_p11), %v9155_v15  ;;  %v8223_v15 = vld [vmem:[%s15739_s4 + $0x28] sm:$0xff] (!%p9008_p11) }
 0x737   : > { %v9185_v33 = vpack.c.bf16 (!%p9008_p11), %v8030_v20, %v8029_v51  ;;  %v9189_v42 = vpack.c.bf16 (!%p9008_p11), %v8032_v55, %v8031_v61  ;;  %9158 = vmatpush3.bf16.msra.mxu0 (!%p9008_p11), %v9157_v63  ;;  %v15741_v51 = vld [vmem:[#allocation23_spill] sm:$0xff] (!%p9008_p11)  ;;  %v8225_v55 = vld [vmem:[%s15739_s4 + $0x38] sm:$0xff] (!%p9008_p11)  ;;  %v8230_v29 = vld [vmem:[%s15739_s4 + $0x60] sm:$0xff] (!%p9008_p11) }
 0x738   : > { %v7967_v27 = vadd.f32 %v7965_v45, %v7501_v32  ;;  %v8017_v45 = vld [vmem:[#allocation15 + $0xd0] sm:$0xff] (!%p9008_p11)  ;;  %v8018_v32 = vld [vmem:[#allocation15 + $0xd8] sm:$0xff] (!%p9008_p11)  ;;  %v15742_v20 = vsub.s32 (!%p9008_p11), 3, %v15741_v51  ;;  %v15743_v25 = vsub.s32 (!%p9008_p11), 2, %v15741_v51  ;;  %v8224_v61 = vld [vmem:[%s15739_s4 + $0x30] sm:$0xff] (!%p9008_p11) }
 0x739   : > { %9186 = vmatpush3.bf16.msra.mxu1 (!%p9008_p11), %v9185_v33  ;;  %v9159_v5 = vpack.c.bf16 (!%p9008_p11), %v8018_v32, %v8017_v45  ;;  %v8221_v33 = vld [vmem:[%s15739_s4 + $0x18] sm:$0xff] (!%p9008_p11)  ;;  %v9213_v45 = vpack.c.bf16 (!%p9008_p11), %v8225_v55, %v8224_v61  ;;  %v8226_v32 = vld [vmem:[%s15739_s4 + $0x40] sm:$0xff] (!%p9008_p11)  ;;  %v8228_v63 = vld [vmem:[%s15739_s4 + $0x50] sm:$0xff] (!%p9008_p11) }
 0x73a   : > { %7972 = vst.msk [vmem:[#allocation2] sm:$0xf] %vm7970_vm3, %v7967_v27  ;;  %v8050_v27 = vld [vmem:[#allocation15 + $0x1d8] sm:$0xff] (!%p9008_p11)  ;;  %9188 = vmatprep.subr.bf16.mxu1 (!%p9008_p11), %v9187_v53  ;;  %v9207_v49 = vpack.c.bf16 (!%p9008_p11), %v8221_v33, %v8220_v26  ;;  %v9210_v53 = vpack.c.bf16 (!%p9008_p11), %v8223_v15, %v8222_v37 }
 0x73b   : > { %v9191_v11 = vpack.c.bf16 %v8050_v27, %v8049_v18  ;;  %9160 = vmatprep.subr.bf16.mxu0 %v9159_v5  ;;  %v8227_v18 = vld [vmem:[%s15739_s4 + $0x48] sm:$0xff] }
 0x73c   : > { %9162 = vmatpush3.bf16.msra.mxu0 %v9161_v38  ;;  %v9216_v27 = vpack.c.bf16 %v8227_v18, %v8226_v32  ;;  %v8231_v5 = vld [vmem:[%s15739_s4 + $0x68] sm:$0xff]  ;;  %v8055_v38 = vld [vmem:[%s15744_s18] sm:$0x1] }
 0x73d   : > { %9190 = vmatpush3.bf16.msra.mxu1 %v9189_v42  ;;  %9164 = vmatprep.subr.bf16.mxu0 %v9163_v4  ;;  %v8229_v42 = vld [vmem:[%s15739_s4 + $0x58] sm:$0xff] }
 0x73e   : > { %9192 = vmatprep.subr.bf16.mxu1 %v9191_v11  ;;  %v9219_v57 = vpack.c.bf16 %v8229_v42, %v8228_v63  ;;  %v9222_v11 = vpack.c.bf16 %v8231_v5, %v8230_v29 }
 0x740   : > { %9166 = vmatpush3.bf16.msra.mxu0 %v9165_v8 }
 0x741   : > { %9194 = vmatpush3.bf16.msra.mxu1 %v9193_v19  ;;  %9168 = vmatprep.subr.bf16.mxu0 %v9167_v10  ;;  %v7978_v12 = vld [vmem:[#allocation2] sm:$0xf] }
 0x742   : > { %9196 = vmatprep.subr.bf16.mxu1 %v9195_v35 }
 0x744   : > { %9170 = vmatpush3.bf16.msra.mxu0 %v9169_v0 }
 0x745   : > { %9198 = vmatpush3.bf16.msra.mxu1 %v9197_v36  ;;  %9203 = vmatprep.subr.bf16.mxu0 %v11355_v31 }
 0x746   : > { %9200 = vmatprep.subr.bf16.mxu1 %v9199_v39 }
 0x749   : > { %9202 = vmatpush3.bf16.msra.mxu1 %v9201_v3 }
 0x7a3   : > { %v7983_v60 = vpop.permute.xlu0 %7982 }
 0x7a4   : > { %v7988_v14 = vrot.slane %v7983_v60, %v15738_v59 }
 0x7a6   : > { %11119 = vrcp.f32 %v7988_v14 }
 0x7b0   : > { %v11120_v44 = vpop.eup %11119 }
 0x7b1   : > { %v7990_v41 = vmul.f32 %v11120_v44, %v7978_v12 }
 0x7b3   : > { %v8064_v13 = vrot.slane %v7990_v41, %v15740_v17  ;;  %v8072_v6 = vrot.slane %v7990_v41, %v15742_v20  ;;  %v8060_v16 = vrot.slane %v7990_v41, %v15738_v59  ;;  %v8068_v52 = vrot.slane %v7990_v41, %v15743_v25 }
 0x7b5   : > { %8141 = vmatprep.mubr.f32.mxu0 %v8064_v13  ;;  %8211 = vmatprep.mubr.f32.mxu1 %v8072_v6 }
 0x7b6   : > { %8142 = vmatmul.mubr.f32.vlgmr.msra.gmra.mrb[0].mxu0 %v8060_v16  ;;  %8212 = vmatmul.mubr.f32.vlgmr.msra.gmra.mrb[0].mxu1 %v8068_v52 }
 0x7b7   : > { %9205 = vmatpush3.bf16.msra.mxu0 %v9204_v48  ;;  %9136 = vmatprep.mubr.msk.f32.mxu0 %vm11356_vm10, %v11357_v28 }
 0x7b8   : > { %9206 = vmatprep.subr.bf16.mxu0 %v11355_v31 }
 0x7bb   : > { %9208 = vmatpush3.bf16.msra.mxu0 %v9207_v49 }
 0x7bc   : > { %9209 = vmatprep.subr.bf16.mxu0 %v11355_v31 }
 0x7bf   : > { %9211 = vmatpush3.bf16.msra.mxu0 %v9210_v53 }
 0x7c0   : > { %9212 = vmatprep.subr.bf16.mxu0 %v11355_v31 }
 0x7c3   : > { %9214 = vmatpush3.bf16.msra.mxu0 %v9213_v45 }
 0x7c4   : > { %9215 = vmatprep.subr.bf16.mxu0 %v11355_v31 }
 0x7c7   : > { %9217 = vmatpush3.bf16.msra.mxu0 %v9216_v27 }
 0x7c8   : > { %9218 = vmatprep.subr.bf16.mxu0 %v11355_v31 }
 0x7cb   : > { %9220 = vmatpush3.bf16.msra.mxu0 %v9219_v57 }
 0x7cc   : > { %9221 = vmatprep.subr.bf16.mxu0 %v11355_v31 }
 0x7cf   : > { %9223 = vmatpush3.bf16.msra.mxu0 %v9222_v11 }
 0x7d0   : > { %9224 = vmatprep.subr.bf16.mxu0 %v11355_v31 }
 0x7d3   : > { %9226 = vmatpush3.bf16.msra.mxu0 %v9225_v30 }
 0x889   : > { %v9049_v50 = vpop.f32.mrb[0].mxu0  ;;  %v9084_v9 = vpop.f32.mrb[0].mxu1 }
 0x88a   : > { %v9050_v19 = vpop.f32.mrb[1].mxu0  ;;  %v9085_v62 = vpop.f32.mrb[1].mxu1 }
 0x88b   : > { %v9051_v21 = vadd.f32 %v9050_v19, %v9049_v50  ;;  %v9086_v4 = vadd.f32 %v9085_v62, %v9084_v9 }
 0x88d   : > { %v8144_v35 = vadd.f32 %v9051_v21, %v8055_v38 }
 0x88f   : > { %v8214_v22 = vadd.f32 %v9086_v4, %v8144_v35 }
 0x891   : > { %v8217_v56 = vmax.f32 %v8214_v22, 0.0 }
 0x893   : > { %9137 = vmatmul.mubr.f32.vlgmr.msra.gmra.mrb[2].mxu0 %v8217_v56 }
 0x966   : > { %v8301_v58 = vpop.f32.mrb[2].mxu0 }
 0x967   : > { %v8302_v43 = vadd.f32 %v8301_v58, %v8234_v40  ;;  %v9138_v24 = vpop.f32.mrb[3].mxu0 }
 0x969   : > { %v9009_v8 = vmul.f32 -1.442695, %v8302_v43 }
 0x96b   : > { %11121 = vpow2.f32 %v9009_v8 }
 0x975   : > { %v11122_v36 = vpop.eup %11121 }
 0x976   : > { %v8308_v2 = vadd.f32 1.0, %v11122_v36 }
 0x978   : > { %11123 = vrcp.f32 %v8308_v2 }
 0x982   : > { %v11124_v10 = vpop.eup %11123 }
 0x983   : > { %8311 = vst.msk [vmem:[#allocation16] sm:$0x1] %vm7489_vm7, %v11124_v10 }
 0x984 PF: > { %p10037_p4 = scmp.eq.s32.totalorder %s11454_s8, 1  ;;  %s11358_s17 = smov [#allocation16]  }
 0x985   : > { %s8319_s16 = sshll.u32 %s11358_s17, 4  ;;  %s8320_s16 = int_to_ptr.vmem [resolvable:$true] %s8319_s16 }
 0x986   : > { %s11265_s15 = scalar_lea.vmem %s8320_s16, 16  ;;  %s11271_s25 = scalar_lea.vmem %s8320_s16, 32 }
 0x987   : > { %p11266_p0 = scmp.ne.s32.totalorder %s8320_s16, %s11265_s15  ;;  %p11272_p9 = scmp.lt.s32.totalorder %s8320_s16, %s8320_s16 }
 0x988   : > { %p11273_p13 = scmp.lt.s32.totalorder %s11271_s25, %s11265_s15 }
 0x989   : > { %p11267_p5 = pnand %p11266_p0, %p10037_p4 }
 0x98a   : > { %p11274_p10 = por %p11273_p13, %p11272_p9 }
 0x98b   : > { %p11268_p8 = pneg %p11267_p5 }
 0x98d   : > { %p11275_p1 = pnand %p11274_p10, %p11268_p8 }
 0x98f   : > { %11278 = shalt.err (!%p11275_p1)
}
 0x990   : > { %s15745_s23 = sld [smem:[#allocation196_spill]] }
 0x996   : > { %s11279_s10 = scalar_lea.hbm %s15745_s23, 16 }
 0x997   : > { %p11280_p2 = scmp.ne.s32.totalorder %s15745_s23, %s11279_s10  ;;  %p11285_p6 = scmp.lt.u32.totalorder %s11279_s10, %s15745_s23 }
 0x999   : > { %p11281_p12 = pnand %p11280_p2, %p10037_p4 }
 0x99b   : > { %p11282_p3 = pneg %p11281_p12 }
 0x99d   : > { %p11287_p7 = pnand %p11285_p6, %p11282_p3 }
 0x99f   : > { %11290 = shalt.err (!%p11287_p7)
}
 0x9a0   : > { %10013 = dma.vmem_to_hbm [thread:$0]  (%p10037_p4), %s8320_s16, 16, %s15745_s23, [#allocation9]  }
 0x9a1   : > { %11320 = dma.done.wait (%p10037_p4), [#allocation9], 16  }
 0x9a2   : > { %11322 = vsyncadd (%p10037_p4), [#allocation9], 4294967280 }
 0x9a3 PF: > { %s15746_s15 = sld [smem:[#allocation21_spill]]  ;;  %s15747_s20 = sld [smem:[#allocation22_spill]] }
 0x9a4   : > { %s15748_s29 = smov %s11329_s30  ;;  %s15749_s30 = smov %s11333_s14 }
 0x9a9   : > { %p30_p11 = scmp.ge.s32.totalorder %s15746_s15, 4   ;;  %s15750_s14 = smov %s15747_s20 }
 0x9ab   :  { %32 = sbr.rel (!%p30_p11) target bundleno = 12 (0xc), region = 133 }
 0x9b2   :  { %8332 = vsyncpa [#allocation8], 1 }
 0x9b3   :  { %8334 = vsyncpa [#allocation8 + $0x1], 1 }
 0x9b4   :  { %8335 = vsyncpa [#allocation11], 1 }
 0x9b5   :  { %8336 = vsyncpa [#allocation14], 1 }
 0x9b6   :  { %8337 = vsyncpa [#allocation9], 1 }
 0x9b7   :  { %8339 = vsyncpa [#allocation9 + $0x1], 1 }

</bundles_post_ra>
